<compile_context>
chip_gen: v7x
topology: tpu7x:2x2x1
jax: 0.10.0
libtpu: 0.0.40
codegen_flags: <defaults>
</compile_context>

<pallas_src>
import functools

import jax
import jax.numpy as jnp
from jax.experimental import pallas as pl
from jax.experimental.pallas import tpu as pltpu


# ------------------------------------------------------------------ kernels --

def conv_relu_kernel(a_ref, w_ref, b_ref, o_ref, *, nb):
    """nb images per step: ReLU((O,K) @ (K,Lp) + bias).  Lane-dense output (Lp = mult of 128)."""
    w = w_ref[...]                               # (O, K) bf16, VMEM resident
    b = b_ref[...]                               # (O, 1) f32, broadcast over lanes
    for i in range(nb):                          # static unroll
        acc = jnp.dot(w, a_ref[i], preferred_element_type=jnp.float32)
        o_ref[i] = jnp.maximum(acc + b, 0.0).astype(o_ref.dtype)


def max4_kernel(a_ref, b_ref, c_ref, d_ref, o_ref):
    o_ref[...] = jnp.maximum(jnp.maximum(a_ref[...], b_ref[...]),
                             jnp.maximum(c_ref[...], d_ref[...]))


def mm_bias_kernel(a_ref, b_ref, bias_ref, o_ref, *, relu):
    acc = jnp.dot(a_ref[...], b_ref[...], preferred_element_type=jnp.float32)
    acc = acc + bias_ref[...]
    if relu:
        acc = jnp.maximum(acc, 0.0)
    o_ref[...] = acc.astype(o_ref.dtype)


def lstm_seq_kernel(gx_ref, whh_ref, hseq_ref, h_sc, c_sc, *, tt, hidden):
    """tt timesteps per grid step; (h, c) carried in VMEM scratch across steps."""
    @pl.when(pl.program_id(0) == 0)
    def _():
        h_sc[...] = jnp.zeros_like(h_sc)
        c_sc[...] = jnp.zeros_like(c_sc)

    w = whh_ref[...]                             # (H, 4H) bf16, VMEM resident
    h = h_sc[...]
    c = c_sc[...]
    Hd = hidden
    for i in range(tt):                          # static unroll
        gates = gx_ref[i] + jnp.dot(h.astype(w.dtype), w,
                                    preferred_element_type=jnp.float32)
        ig = jax.nn.sigmoid(gates[:, 0 * Hd:1 * Hd])
        fg = jax.nn.sigmoid(gates[:, 1 * Hd:2 * Hd])
        gg = jnp.tanh(gates[:, 2 * Hd:3 * Hd])
        og = jax.nn.sigmoid(gates[:, 3 * Hd:4 * Hd])
        c = fg * c + ig * gg
        h = og * jnp.tanh(c)
        hseq_ref[i] = h
    h_sc[...] = h
    c_sc[...] = c


# ----------------------------------------------------------------- wrappers --

def _pick_images_per_block(n, bytes_per_image, cap=2 * 1024 * 1024, max_nb=8):
    """Largest divisor of n that is <= max_nb and keeps an input block under `cap` bytes."""
    best = 1
    for d in range(1, min(n, max_nb) + 1):
        if n % d == 0 and d * bytes_per_image <= cap:
            best = d
    return best


def conv3x3_relu(x, w_mat, b_col):
    """x:(N,C,H,W) bf16, w_mat:(O,C*9) bf16, b_col:(O,1) f32 -> ReLU(conv) (N,O,H,W) bf16."""
    N, C, H, W = x.shape
    O = w_mat.shape[0]
    HW = H * W
    Lp = ((HW + 127) // 128) * 128                        # lane-dense spatial dim

    xp = jnp.pad(x, ((0, 0), (0, 0), (1, 1), (1, 1)))
    taps = [xp[:, :, dy:dy + H, dx:dx + W] for dy in range(3) for dx in range(3)]
    patches = jnp.stack(taps, axis=2).reshape(N, C * 9, HW)   # (c,ky,kx) order, no transpose
    patches = jnp.pad(patches, ((0, 0), (0, 0), (0, Lp - HW)))

    nb = _pick_images_per_block(N, C * 9 * Lp * 2)            # amortize grid-step overhead
    out = pl.pallas_call(
        functools.partial(conv_relu_kernel, nb=nb),
        out_shape=jax.ShapeDtypeStruct((N, O, Lp), jnp.bfloat16),
        grid=(N // nb,),
        in_specs=[pl.BlockSpec((nb, C * 9, Lp), lambda n: (n, 0, 0)),
                  pl.BlockSpec((O, C * 9), lambda n: (0, 0)),
                  pl.BlockSpec((O, 1), lambda n: (0, 0))],
        out_specs=pl.BlockSpec((nb, O, Lp), lambda n: (n, 0, 0)),
        compiler_params=pltpu.CompilerParams(
            dimension_semantics=("parallel",)),
    )(patches, w_mat, b_col)
    return out[:, :, :HW].reshape(N, O, H, W)


def maxpool2x2(x, block_rows=128):
    """2x2 max pool, stride 2, floor semantics (nn.MaxPool2d(2)).  x: (N,C,H,W)."""
    N, C, H, W = x.shape
    H2, W2 = H // 2, W // 2
    views = [x[:, :, dy:2 * H2:2, dx:2 * W2:2] for dy in (0, 1) for dx in (0, 1)]

    size = N * C * H2 * W2
    R = ((pl.cdiv(size, 128) + block_rows - 1) // block_rows) * block_rows
    pad_amt = R * 128 - size
    flats = [jnp.pad(v.reshape(-1), (0, pad_amt)).reshape(R, 128) for v in views]

    out = pl.pallas_call(
        max4_kernel,
        out_shape=jax.ShapeDtypeStruct((R, 128), x.dtype),
        grid=(R // block_rows,),
        in_specs=[pl.BlockSpec((block_rows, 128), lambda i: (i, 0))] * 4,
        out_specs=pl.BlockSpec((block_rows, 128), lambda i: (i, 0)),
        compiler_params=pltpu.CompilerParams(
            dimension_semantics=("parallel",)),
    )(*flats)
    return out.reshape(-1)[:size].reshape(N, C, H2, W2)


def matmul_bias(a, b, bias, *, relu=False, out_dtype=jnp.float32):
    """Small-M act(a @ b + bias) as a single unpadded block.  a:(M,K) b:(K,N) bias:(N,)."""
    M, K = a.shape
    Nout = b.shape[1]
    return pl.pallas_call(
        functools.partial(mm_bias_kernel, relu=relu),
        out_shape=jax.ShapeDtypeStruct((M, Nout), out_dtype),
        grid=(1,),
        in_specs=[pl.BlockSpec((M, K), lambda i: (0, 0)),
                  pl.BlockSpec((K, Nout), lambda i: (0, 0)),
                  pl.BlockSpec((1, Nout), lambda i: (0, 0))],
        out_specs=pl.BlockSpec((M, Nout), lambda i: (0, 0)),
    )(a, b, bias.reshape(1, Nout))


def lstm_layer(gx_tb, w_hh_t):
    """One LSTM layer.  gx_tb:(T,B,4H) precomputed x-gates (f32), w_hh_t:(H,4H) bf16."""
    T, B, H4 = gx_tb.shape
    Hd = w_hh_t.shape[0]
    # timesteps per grid step: largest divisor of T that is <= 16
    tt = max(d for d in range(1, min(T, 16) + 1) if T % d == 0)
    return pl.pallas_call(
        functools.partial(lstm_seq_kernel, tt=tt, hidden=Hd),
        out_shape=jax.ShapeDtypeStruct((T, B, Hd), jnp.float32),
        grid=(T // tt,),
        in_specs=[pl.BlockSpec((tt, B, H4), lambda t: (t, 0, 0)),
                  pl.BlockSpec((Hd, H4), lambda t: (0, 0))],
        out_specs=pl.BlockSpec((tt, B, Hd), lambda t: (t, 0, 0)),
        scratch_shapes=[pltpu.VMEM((B, Hd), jnp.float32),
                        pltpu.VMEM((B, Hd), jnp.float32)],
        compiler_params=pltpu.CompilerParams(
            dimension_semantics=("arbitrary",)),
    )(gx_tb, w_hh_t)


# -------------------------------------------------------------------- model --

def wind_turbine_forward(params, x):
    """x: (batch, seq, C, H, W) f32 -> (batch, seq, output_dim) f32."""
    B, T, C, H, W = x.shape
    N = B * T
    xf = x.reshape(N, C, H, W).astype(jnp.bfloat16)

    # ---- CNN feature extractor (conv -> relu -> pool) x2, NCHW layout throughout
    h1 = conv3x3_relu(xf, params["conv1_wm"], params["conv1_bc"])
    p1 = maxpool2x2(h1)
    h2 = conv3x3_relu(p1, params["conv2_wm"], params["conv2_bc"])
    p2 = maxpool2x2(h2)

    flat = p2.reshape(N, -1)                                     # NCHW flatten (free)
    feat = matmul_bias(flat, params["cnn_fc_wt"], params["cnn_fc_b"])   # (N, F) f32

    # reorder rows (b,t) -> (t,b) once (tiny tensor) so LSTM blocks index time directly
    Fdim = feat.shape[-1]
    feat_tb = feat.reshape(B, T, Fdim).transpose(1, 0, 2).reshape(T * B, Fdim)

    # ---- 2-layer LSTM: per-layer gate projection (one matmul) + recurrent kernel
    gx0 = matmul_bias(feat_tb.astype(jnp.bfloat16),
                      params["w_ih0_t"], params["lstm_b0"])      # (T*B, 4H)
    h0 = lstm_layer(gx0.reshape(T, B, -1), params["w_hh0_t"])    # (T, B, H)

    Hd = h0.shape[-1]
    gx1 = matmul_bias(h0.reshape(T * B, Hd).astype(jnp.bfloat16),
                      params["w_ih1_t"], params["lstm_b1"])
    h1s = lstm_layer(gx1.reshape(T, B, -1), params["w_hh1_t"])   # (T, B, H)

    # ---- final FC (K=H, N=output_dim=2): plain XLA dot — too small for a pallas_call
    y = jnp.dot(h1s.reshape(T * B, Hd), params["fc_wt"]) + params["fc_b"]
    return y.reshape(T, B, -1).transpose(1, 0, 2)                # (B, T, output_dim)


# ------------------------------------------------------- params & preparation --

def init_params(key, input_channels, feature_dim, hidden_dim, output_dim,
                input_height, input_width):
    """PyTorch-layout parameters with PyTorch-style uniform init."""
    def uni(k, shape, fan_in):
        bound = 1.0 / jnp.sqrt(jnp.float32(fan_in))
        return jax.random.uniform(k, shape, jnp.float32, -bound, bound)

    ks = jax.random.split(key, 16)
    H4 = 4 * hidden_dim
    fc_in = 32 * (input_height // 4) * (input_width // 4)
    return {
        "conv1_w": uni(ks[0], (16, input_channels, 3, 3), input_channels * 9),
        "conv1_b": uni(ks[1], (16,), input_channels * 9),
        "conv2_w": uni(ks[2], (32, 16, 3, 3), 16 * 9),
        "conv2_b": uni(ks[3], (32,), 16 * 9),
        "cnn_fc_w": uni(ks[4], (feature_dim, fc_in), fc_in),
        "cnn_fc_b": uni(ks[5], (feature_dim,), fc_in),
        "w_ih0": uni(ks[6], (H4, feature_dim), hidden_dim),
        "w_hh0": uni(ks[7], (H4, hidden_dim), hidden_dim),
        "b_ih0": uni(ks[8], (H4,), hidden_dim),
        "b_hh0": uni(ks[9], (H4,), hidden_dim),
        "w_ih1": uni(ks[10], (H4, hidden_dim), hidden_dim),
        "w_hh1": uni(ks[11], (H4, hidden_dim), hidden_dim),
        "b_ih1": uni(ks[12], (H4,), hidden_dim),
        "b_hh1": uni(ks[13], (H4,), hidden_dim),
        "fc_w": uni(ks[14], (output_dim, hidden_dim), hidden_dim),
        "fc_b": uni(ks[15], (output_dim,), hidden_dim),
    }


def prepare_params(raw):
    """One-time hoist of all weight transposes / reshapes / bf16 casts."""
    f32, bf16 = jnp.float32, jnp.bfloat16
    p = {}
    for li in (1, 2):
        w = raw[f"conv{li}_w"]
        O = w.shape[0]
        p[f"conv{li}_wm"] = w.reshape(O, -1).astype(bf16)     # (O, C*9), (c,ky,kx) order
        p[f"conv{li}_bc"] = raw[f"conv{li}_b"].reshape(O, 1).astype(f32)
    p["cnn_fc_wt"] = raw["cnn_fc_w"].T.astype(bf16)
    p["cnn_fc_b"] = raw["cnn_fc_b"].astype(f32)
    for li in (0, 1):
        p[f"w_ih{li}_t"] = raw[f"w_ih{li}"].T.astype(bf16)
        p[f"w_hh{li}_t"] = raw[f"w_hh{li}"].T.astype(bf16)
        p[f"lstm_b{li}"] = (raw[f"b_ih{li}"] + raw[f"b_hh{li}"]).astype(f32)
    p["fc_wt"] = raw["fc_w"].T.astype(f32)
    p["fc_b"] = raw["fc_b"].astype(f32)
    return p


if __name__ == "__main__":
    # Small shapes consistent with the module (H=33, W=41 keep the odd-size pooling / fc-size
    # semantics; seq shrunk; hidden_dim=128 / feature_dim=64 / output_dim=2 as in the spec).
    batch, seq = 2, 8
    input_channels, input_height, input_width = 3, 33, 41
    feature_dim, hidden_dim, output_dim = 64, 128, 2

    key = jax.random.PRNGKey(0)
    kp, kx = jax.random.split(key)
    raw = init_params(kp, input_channels, feature_dim, hidden_dim,
                      output_dim, input_height, input_width)
    params = prepare_params(raw)
    x = jax.random.normal(
        kx, (batch, seq, input_channels, input_height, input_width),
        dtype=jnp.float32)

    fwd = jax.jit(wind_turbine_forward)
    y = fwd(params, x)
    y = jax.block_until_ready(y)
    assert y.shape == (batch, seq, output_dim), y.shape
    assert bool(jnp.all(jnp.isfinite(y)))
    print("KERNEL_OK")
</pallas_src>

<mosaic_0001>
module attributes {stable_mosaic.version = 11 : i64} {
  func.func @conv_relu_kernel(%arg0: i32, %arg1: memref<8x27x1408xbf16, #tpu.memory_space<vmem>>, %arg2: memref<16x27xbf16, #tpu.memory_space<vmem>>, %arg3: memref<16x1xf32, #tpu.memory_space<vmem>>, %arg4: memref<8x16x1408xbf16, #tpu.memory_space<vmem>>) attributes {dimension_semantics = [#tpu.dimension_semantics<parallel>], iteration_bounds = array<i64: 2>, scalar_prefetch = 0 : i64, scratch_operands = 0 : i64, tpu.core_type = #tpu.core_type<tc>, window_params = [{transform_indices = @transform_0, window_bounds = array<i64: 8, 27, 1408>}, {pipeline_mode = #tpu.pipeline_mode<synchronous>, transform_indices = @transform_1, window_bounds = array<i64: 16, 27>}, {pipeline_mode = #tpu.pipeline_mode<synchronous>, transform_indices = @transform_2, window_bounds = array<i64: 16, 1>}, {transform_indices = @transform_3, window_bounds = array<i64: 8, 16, 1408>}]} {
    %c0 = arith.constant 0 : index
    %c0_0 = arith.constant 0 : index
    %0 = vector.load %arg2[%c0, %c0_0] : memref<16x27xbf16, #tpu.memory_space<vmem>>, vector<16x27xbf16>
    %c0_1 = arith.constant 0 : index
    %c0_2 = arith.constant 0 : index
    %1 = vector.load %arg3[%c0_1, %c0_2] : memref<16x1xf32, #tpu.memory_space<vmem>>, vector<16x1xf32>
    %c0_3 = arith.constant 0 : index
    %c0_4 = arith.constant 0 : index
    %c0_5 = arith.constant 0 : index
    %2 = vector.load %arg1[%c0_3, %c0_4, %c0_5] : memref<8x27x1408xbf16, #tpu.memory_space<vmem>>, vector<1x27x1408xbf16>
    %3 = vector.shape_cast %2 : vector<1x27x1408xbf16> to vector<27x1408xbf16>
    %cst = arith.constant dense<0.000000e+00> : vector<16x1408xf32>
    %4 = tpu.matmul %0, %3, %cst {dimension_numbers = #tpu.dot_dimension_numbers<[1], [0], [0], [1], [0, 0, 1, 1], [], []>} : vector<16x27xbf16>, vector<27x1408xbf16>, vector<16x1408xf32> -> vector<16x1408xf32>
    %5 = vector.broadcast %1 : vector<16x1xf32> to vector<16x1408xf32>
    %6 = arith.addf %4, %5 : vector<16x1408xf32>
    %cst_6 = arith.constant 0.000000e+00 : f32
    %7 = vector.broadcast %cst_6 : f32 to vector<16x1408xf32>
    %8 = arith.maximumf %6, %7 : vector<16x1408xf32>
    %9 = arith.truncf %8 : vector<16x1408xf32> to vector<16x1408xbf16>
    %c0_7 = arith.constant 0 : index
    %c0_8 = arith.constant 0 : index
    %c0_9 = arith.constant 0 : index
    %10 = vector.load %arg4[%c0_7, %c0_8, %c0_9] : memref<8x16x1408xbf16, #tpu.memory_space<vmem>>, vector<1x16x1408xbf16>
    %11 = vector.shape_cast %10 : vector<1x16x1408xbf16> to vector<16x1408xbf16>
    %12 = vector.shape_cast %9 : vector<16x1408xbf16> to vector<1x16x1408xbf16>
    tpu.vector_store %arg4[%c0_7, %c0_8, %c0_9], %12 {strides = array<i32>} : memref<8x16x1408xbf16, #tpu.memory_space<vmem>>, vector<1x16x1408xbf16>,
    %c1 = arith.constant 1 : index
    %c0_10 = arith.constant 0 : index
    %c0_11 = arith.constant 0 : index
    %13 = vector.load %arg1[%c1, %c0_10, %c0_11] : memref<8x27x1408xbf16, #tpu.memory_space<vmem>>, vector<1x27x1408xbf16>
    %14 = vector.shape_cast %13 : vector<1x27x1408xbf16> to vector<27x1408xbf16>
    %cst_12 = arith.constant dense<0.000000e+00> : vector<16x1408xf32>
    %15 = tpu.matmul %0, %14, %cst_12 {dimension_numbers = #tpu.dot_dimension_numbers<[1], [0], [0], [1], [0, 0, 1, 1], [], []>} : vector<16x27xbf16>, vector<27x1408xbf16>, vector<16x1408xf32> -> vector<16x1408xf32>
    %16 = vector.broadcast %1 : vector<16x1xf32> to vector<16x1408xf32>
    %17 = arith.addf %15, %16 : vector<16x1408xf32>
    %cst_13 = arith.constant 0.000000e+00 : f32
    %18 = vector.broadcast %cst_13 : f32 to vector<16x1408xf32>
    %19 = arith.maximumf %17, %18 : vector<16x1408xf32>
    %20 = arith.truncf %19 : vector<16x1408xf32> to vector<16x1408xbf16>
    %c1_14 = arith.constant 1 : index
    %c0_15 = arith.constant 0 : index
    %c0_16 = arith.constant 0 : index
    %21 = vector.load %arg4[%c1_14, %c0_15, %c0_16] : memref<8x16x1408xbf16, #tpu.memory_space<vmem>>, vector<1x16x1408xbf16>
    %22 = vector.shape_cast %21 : vector<1x16x1408xbf16> to vector<16x1408xbf16>
    %23 = vector.shape_cast %20 : vector<16x1408xbf16> to vector<1x16x1408xbf16>
    tpu.vector_store %arg4[%c1_14, %c0_15, %c0_16], %23 {strides = array<i32>} : memref<8x16x1408xbf16, #tpu.memory_space<vmem>>, vector<1x16x1408xbf16>,
    %c2 = arith.constant 2 : index
    %c0_17 = arith.constant 0 : index
    %c0_18 = arith.constant 0 : index
    %24 = vector.load %arg1[%c2, %c0_17, %c0_18] : memref<8x27x1408xbf16, #tpu.memory_space<vmem>>, vector<1x27x1408xbf16>
    %25 = vector.shape_cast %24 : vector<1x27x1408xbf16> to vector<27x1408xbf16>
    %cst_19 = arith.constant dense<0.000000e+00> : vector<16x1408xf32>
    %26 = tpu.matmul %0, %25, %cst_19 {dimension_numbers = #tpu.dot_dimension_numbers<[1], [0], [0], [1], [0, 0, 1, 1], [], []>} : vector<16x27xbf16>, vector<27x1408xbf16>, vector<16x1408xf32> -> vector<16x1408xf32>
    %27 = vector.broadcast %1 : vector<16x1xf32> to vector<16x1408xf32>
    %28 = arith.addf %26, %27 : vector<16x1408xf32>
    %cst_20 = arith.constant 0.000000e+00 : f32
    %29 = vector.broadcast %cst_20 : f32 to vector<16x1408xf32>
    %30 = arith.maximumf %28, %29 : vector<16x1408xf32>
    %31 = arith.truncf %30 : vector<16x1408xf32> to vector<16x1408xbf16>
    %c2_21 = arith.constant 2 : index
    %c0_22 = arith.constant 0 : index
    %c0_23 = arith.constant 0 : index
    %32 = vector.load %arg4[%c2_21, %c0_22, %c0_23] : memref<8x16x1408xbf16, #tpu.memory_space<vmem>>, vector<1x16x1408xbf16>
    %33 = vector.shape_cast %32 : vector<1x16x1408xbf16> to vector<16x1408xbf16>
    %34 = vector.shape_cast %31 : vector<16x1408xbf16> to vector<1x16x1408xbf16>
    tpu.vector_store %arg4[%c2_21, %c0_22, %c0_23], %34 {strides = array<i32>} : memref<8x16x1408xbf16, #tpu.memory_space<vmem>>, vector<1x16x1408xbf16>,
    %c3 = arith.constant 3 : index
    %c0_24 = arith.constant 0 : index
    %c0_25 = arith.constant 0 : index
    %35 = vector.load %arg1[%c3, %c0_24, %c0_25] : memref<8x27x1408xbf16, #tpu.memory_space<vmem>>, vector<1x27x1408xbf16>
    %36 = vector.shape_cast %35 : vector<1x27x1408xbf16> to vector<27x1408xbf16>
    %cst_26 = arith.constant dense<0.000000e+00> : vector<16x1408xf32>
    %37 = tpu.matmul %0, %36, %cst_26 {dimension_numbers = #tpu.dot_dimension_numbers<[1], [0], [0], [1], [0, 0, 1, 1], [], []>} : vector<16x27xbf16>, vector<27x1408xbf16>, vector<16x1408xf32> -> vector<16x1408xf32>
    %38 = vector.broadcast %1 : vector<16x1xf32> to vector<16x1408xf32>
    %39 = arith.addf %37, %38 : vector<16x1408xf32>
    %cst_27 = arith.constant 0.000000e+00 : f32
    %40 = vector.broadcast %cst_27 : f32 to vector<16x1408xf32>
    %41 = arith.maximumf %39, %40 : vector<16x1408xf32>
    %42 = arith.truncf %41 : vector<16x1408xf32> to vector<16x1408xbf16>
    %c3_28 = arith.constant 3 : index
    %c0_29 = arith.constant 0 : index
    %c0_30 = arith.constant 0 : index
    %43 = vector.load %arg4[%c3_28, %c0_29, %c0_30] : memref<8x16x1408xbf16, #tpu.memory_space<vmem>>, vector<1x16x1408xbf16>
    %44 = vector.shape_cast %43 : vector<1x16x1408xbf16> to vector<16x1408xbf16>
    %45 = vector.shape_cast %42 : vector<16x1408xbf16> to vector<1x16x1408xbf16>
    tpu.vector_store %arg4[%c3_28, %c0_29, %c0_30], %45 {strides = array<i32>} : memref<8x16x1408xbf16, #tpu.memory_space<vmem>>, vector<1x16x1408xbf16>,
    %c4 = arith.constant 4 : index
    %c0_31 = arith.constant 0 : index
    %c0_32 = arith.constant 0 : index
    %46 = vector.load %arg1[%c4, %c0_31, %c0_32] : memref<8x27x1408xbf16, #tpu.memory_space<vmem>>, vector<1x27x1408xbf16>
    %47 = vector.shape_cast %46 : vector<1x27x1408xbf16> to vector<27x1408xbf16>
    %cst_33 = arith.constant dense<0.000000e+00> : vector<16x1408xf32>
    %48 = tpu.matmul %0, %47, %cst_33 {dimension_numbers = #tpu.dot_dimension_numbers<[1], [0], [0], [1], [0, 0, 1, 1], [], []>} : vector<16x27xbf16>, vector<27x1408xbf16>, vector<16x1408xf32> -> vector<16x1408xf32>
    %49 = vector.broadcast %1 : vector<16x1xf32> to vector<16x1408xf32>
    %50 = arith.addf %48, %49 : vector<16x1408xf32>
    %cst_34 = arith.constant 0.000000e+00 : f32
    %51 = vector.broadcast %cst_34 : f32 to vector<16x1408xf32>
    %52 = arith.maximumf %50, %51 : vector<16x1408xf32>
    %53 = arith.truncf %52 : vector<16x1408xf32> to vector<16x1408xbf16>
    %c4_35 = arith.constant 4 : index
    %c0_36 = arith.constant 0 : index
    %c0_37 = arith.constant 0 : index
    %54 = vector.load %arg4[%c4_35, %c0_36, %c0_37] : memref<8x16x1408xbf16, #tpu.memory_space<vmem>>, vector<1x16x1408xbf16>
    %55 = vector.shape_cast %54 : vector<1x16x1408xbf16> to vector<16x1408xbf16>
    %56 = vector.shape_cast %53 : vector<16x1408xbf16> to vector<1x16x1408xbf16>
    tpu.vector_store %arg4[%c4_35, %c0_36, %c0_37], %56 {strides = array<i32>} : memref<8x16x1408xbf16, #tpu.memory_space<vmem>>, vector<1x16x1408xbf16>,
    %c5 = arith.constant 5 : index
    %c0_38 = arith.constant 0 : index
    %c0_39 = arith.constant 0 : index
    %57 = vector.load %arg1[%c5, %c0_38, %c0_39] : memref<8x27x1408xbf16, #tpu.memory_space<vmem>>, vector<1x27x1408xbf16>
    %58 = vector.shape_cast %57 : vector<1x27x1408xbf16> to vector<27x1408xbf16>
    %cst_40 = arith.constant dense<0.000000e+00> : vector<16x1408xf32>
    %59 = tpu.matmul %0, %58, %cst_40 {dimension_numbers = #tpu.dot_dimension_numbers<[1], [0], [0], [1], [0, 0, 1, 1], [], []>} : vector<16x27xbf16>, vector<27x1408xbf16>, vector<16x1408xf32> -> vector<16x1408xf32>
    %60 = vector.broadcast %1 : vector<16x1xf32> to vector<16x1408xf32>
    %61 = arith.addf %59, %60 : vector<16x1408xf32>
    %cst_41 = arith.constant 0.000000e+00 : f32
    %62 = vector.broadcast %cst_41 : f32 to vector<16x1408xf32>
    %63 = arith.maximumf %61, %62 : vector<16x1408xf32>
    %64 = arith.truncf %63 : vector<16x1408xf32> to vector<16x1408xbf16>
    %c5_42 = arith.constant 5 : index
    %c0_43 = arith.constant 0 : index
    %c0_44 = arith.constant 0 : index
    %65 = vector.load %arg4[%c5_42, %c0_43, %c0_44] : memref<8x16x1408xbf16, #tpu.memory_space<vmem>>, vector<1x16x1408xbf16>
    %66 = vector.shape_cast %65 : vector<1x16x1408xbf16> to vector<16x1408xbf16>
    %67 = vector.shape_cast %64 : vector<16x1408xbf16> to vector<1x16x1408xbf16>
    tpu.vector_store %arg4[%c5_42, %c0_43, %c0_44], %67 {strides = array<i32>} : memref<8x16x1408xbf16, #tpu.memory_space<vmem>>, vector<1x16x1408xbf16>,
    %c6 = arith.constant 6 : index
    %c0_45 = arith.constant 0 : index
    %c0_46 = arith.constant 0 : index
    %68 = vector.load %arg1[%c6, %c0_45, %c0_46] : memref<8x27x1408xbf16, #tpu.memory_space<vmem>>, vector<1x27x1408xbf16>
    %69 = vector.shape_cast %68 : vector<1x27x1408xbf16> to vector<27x1408xbf16>
    %cst_47 = arith.constant dense<0.000000e+00> : vector<16x1408xf32>
    %70 = tpu.matmul %0, %69, %cst_47 {dimension_numbers = #tpu.dot_dimension_numbers<[1], [0], [0], [1], [0, 0, 1, 1], [], []>} : vector<16x27xbf16>, vector<27x1408xbf16>, vector<16x1408xf32> -> vector<16x1408xf32>
    %71 = vector.broadcast %1 : vector<16x1xf32> to vector<16x1408xf32>
    %72 = arith.addf %70, %71 : vector<16x1408xf32>
    %cst_48 = arith.constant 0.000000e+00 : f32
    %73 = vector.broadcast %cst_48 : f32 to vector<16x1408xf32>
    %74 = arith.maximumf %72, %73 : vector<16x1408xf32>
    %75 = arith.truncf %74 : vector<16x1408xf32> to vector<16x1408xbf16>
    %c6_49 = arith.constant 6 : index
    %c0_50 = arith.constant 0 : index
    %c0_51 = arith.constant 0 : index
    %76 = vector.load %arg4[%c6_49, %c0_50, %c0_51] : memref<8x16x1408xbf16, #tpu.memory_space<vmem>>, vector<1x16x1408xbf16>
    %77 = vector.shape_cast %76 : vector<1x16x1408xbf16> to vector<16x1408xbf16>
    %78 = vector.shape_cast %75 : vector<16x1408xbf16> to vector<1x16x1408xbf16>
    tpu.vector_store %arg4[%c6_49, %c0_50, %c0_51], %78 {strides = array<i32>} : memref<8x16x1408xbf16, #tpu.memory_space<vmem>>, vector<1x16x1408xbf16>,
    %c7 = arith.constant 7 : index
    %c0_52 = arith.constant 0 : index
    %c0_53 = arith.constant 0 : index
    %79 = vector.load %arg1[%c7, %c0_52, %c0_53] : memref<8x27x1408xbf16, #tpu.memory_space<vmem>>, vector<1x27x1408xbf16>
    %80 = vector.shape_cast %79 : vector<1x27x1408xbf16> to vector<27x1408xbf16>
    %cst_54 = arith.constant dense<0.000000e+00> : vector<16x1408xf32>
    %81 = tpu.matmul %0, %80, %cst_54 {dimension_numbers = #tpu.dot_dimension_numbers<[1], [0], [0], [1], [0, 0, 1, 1], [], []>} : vector<16x27xbf16>, vector<27x1408xbf16>, vector<16x1408xf32> -> vector<16x1408xf32>
    %82 = vector.broadcast %1 : vector<16x1xf32> to vector<16x1408xf32>
    %83 = arith.addf %81, %82 : vector<16x1408xf32>
    %cst_55 = arith.constant 0.000000e+00 : f32
    %84 = vector.broadcast %cst_55 : f32 to vector<16x1408xf32>
    %85 = arith.maximumf %83, %84 : vector<16x1408xf32>
    %86 = arith.truncf %85 : vector<16x1408xf32> to vector<16x1408xbf16>
    %c7_56 = arith.constant 7 : index
    %c0_57 = arith.constant 0 : index
    %c0_58 = arith.constant 0 : index
    %87 = vector.load %arg4[%c7_56, %c0_57, %c0_58] : memref<8x16x1408xbf16, #tpu.memory_space<vmem>>, vector<1x16x1408xbf16>
    %88 = vector.shape_cast %87 : vector<1x16x1408xbf16> to vector<16x1408xbf16>
    %89 = vector.shape_cast %86 : vector<16x1408xbf16> to vector<1x16x1408xbf16>
    tpu.vector_store %arg4[%c7_56, %c0_57, %c0_58], %89 {strides = array<i32>} : memref<8x16x1408xbf16, #tpu.memory_space<vmem>>, vector<1x16x1408xbf16>,
    return
  }
  func.func @transform_0(%arg0: i32) -> (i32, i32, i32) {
    %c0_i32 = arith.constant 0 : i32
    %c0_i32_0 = arith.constant 0 : i32
    %c0_i32_1 = arith.constant 0 : i32
    return %arg0, %c0_i32, %c0_i32_0 : i32, i32, i32
  }
  func.func @transform_1(%arg0: i32) -> (i32, i32) {
    %c0_i32 = arith.constant 0 : i32
    %c0_i32_0 = arith.constant 0 : i32
    %c0_i32_1 = arith.constant 0 : i32
    return %c0_i32, %c0_i32_0 : i32, i32
  }
  func.func @transform_2(%arg0: i32) -> (i32, i32) {
    %c0_i32 = arith.constant 0 : i32
    %c0_i32_0 = arith.constant 0 : i32
    %c0_i32_1 = arith.constant 0 : i32
    return %c0_i32, %c0_i32_0 : i32, i32
  }
  func.func @transform_3(%arg0: i32) -> (i32, i32, i32) {
    %c0_i32 = arith.constant 0 : i32
    %c0_i32_0 = arith.constant 0 : i32
    %c0_i32_1 = arith.constant 0 : i32
    return %arg0, %c0_i32, %c0_i32_0 : i32, i32, i32
  }
}

module attributes {stable_mosaic.version = 11 : i64} {
  func.func @max4_kernel(%arg0: i32, %arg1: memref<128x128xbf16, #tpu.memory_space<vmem>>, %arg2: memref<128x128xbf16, #tpu.memory_space<vmem>>, %arg3: memref<128x128xbf16, #tpu.memory_space<vmem>>, %arg4: memref<128x128xbf16, #tpu.memory_space<vmem>>, %arg5: memref<128x128xbf16, #tpu.memory_space<vmem>>) attributes {dimension_semantics = [#tpu.dimension_semantics<parallel>], iteration_bounds = array<i64: 5>, scalar_prefetch = 0 : i64, scratch_operands = 0 : i64, tpu.core_type = #tpu.core_type<tc>, window_params = [{transform_indices = @transform_0, window_bounds = array<i64: 128, 128>}, {transform_indices = @transform_1, window_bounds = array<i64: 128, 128>}, {transform_indices = @transform_2, window_bounds = array<i64: 128, 128>}, {transform_indices = @transform_3, window_bounds = array<i64: 128, 128>}, {transform_indices = @transform_4, window_bounds = array<i64: 128, 128>}]} {
    %c0 = arith.constant 0 : index
    %c0_0 = arith.constant 0 : index
    %0 = vector.load %arg1[%c0, %c0_0] : memref<128x128xbf16, #tpu.memory_space<vmem>>, vector<128x128xbf16>
    %c0_1 = arith.constant 0 : index
    %c0_2 = arith.constant 0 : index
    %1 = vector.load %arg2[%c0_1, %c0_2] : memref<128x128xbf16, #tpu.memory_space<vmem>>, vector<128x128xbf16>
    %2 = arith.maximumf %0, %1 : vector<128x128xbf16>
    %c0_3 = arith.constant 0 : index
    %c0_4 = arith.constant 0 : index
    %3 = vector.load %arg3[%c0_3, %c0_4] : memref<128x128xbf16, #tpu.memory_space<vmem>>, vector<128x128xbf16>
    %c0_5 = arith.constant 0 : index
    %c0_6 = arith.constant 0 : index
    %4 = vector.load %arg4[%c0_5, %c0_6] : memref<128x128xbf16, #tpu.memory_space<vmem>>, vector<128x128xbf16>
    %5 = arith.maximumf %3, %4 : vector<128x128xbf16>
    %6 = arith.maximumf %2, %5 : vector<128x128xbf16>
    %c0_7 = arith.constant 0 : index
    %c0_8 = arith.constant 0 : index
    %7 = vector.load %arg5[%c0_7, %c0_8] : memref<128x128xbf16, #tpu.memory_space<vmem>>, vector<128x128xbf16>
    tpu.vector_store %arg5[%c0_7, %c0_8], %6 {strides = array<i32>} : memref<128x128xbf16, #tpu.memory_space<vmem>>, vector<128x128xbf16>,
    return
  }
  func.func @transform_0(%arg0: i32) -> (i32, i32) {
    %c0_i32 = arith.constant 0 : i32
    %c0_i32_0 = arith.constant 0 : i32
    return %arg0, %c0_i32 : i32, i32
  }
  func.func @transform_1(%arg0: i32) -> (i32, i32) {
    %c0_i32 = arith.constant 0 : i32
    %c0_i32_0 = arith.constant 0 : i32
    return %arg0, %c0_i32 : i32, i32
  }
  func.func @transform_2(%arg0: i32) -> (i32, i32) {
    %c0_i32 = arith.constant 0 : i32
    %c0_i32_0 = arith.constant 0 : i32
    return %arg0, %c0_i32 : i32, i32
  }
  func.func @transform_3(%arg0: i32) -> (i32, i32) {
    %c0_i32 = arith.constant 0 : i32
    %c0_i32_0 = arith.constant 0 : i32
    return %arg0, %c0_i32 : i32, i32
  }
  func.func @transform_4(%arg0: i32) -> (i32, i32) {
    %c0_i32 = arith.constant 0 : i32
    %c0_i32_0 = arith.constant 0 : i32
    return %arg0, %c0_i32 : i32, i32
  }
}

module attributes {stable_mosaic.version = 11 : i64} {
  func.func @conv_relu_kernel(%arg0: i32, %arg1: memref<8x144x384xbf16, #tpu.memory_space<vmem>>, %arg2: memref<32x144xbf16, #tpu.memory_space<vmem>>, %arg3: memref<32x1xf32, #tpu.memory_space<vmem>>, %arg4: memref<8x32x384xbf16, #tpu.memory_space<vmem>>) attributes {dimension_semantics = [#tpu.dimension_semantics<parallel>], iteration_bounds = array<i64: 2>, scalar_prefetch = 0 : i64, scratch_operands = 0 : i64, tpu.core_type = #tpu.core_type<tc>, window_params = [{transform_indices = @transform_0, window_bounds = array<i64: 8, 144, 384>}, {pipeline_mode = #tpu.pipeline_mode<synchronous>, transform_indices = @transform_1, window_bounds = array<i64: 32, 144>}, {pipeline_mode = #tpu.pipeline_mode<synchronous>, transform_indices = @transform_2, window_bounds = array<i64: 32, 1>}, {transform_indices = @transform_3, window_bounds = array<i64: 8, 32, 384>}]} {
    %c0 = arith.constant 0 : index
    %c0_0 = arith.constant 0 : index
    %0 = vector.load %arg2[%c0, %c0_0] : memref<32x144xbf16, #tpu.memory_space<vmem>>, vector<32x144xbf16>
    %c0_1 = arith.constant 0 : index
    %c0_2 = arith.constant 0 : index
    %1 = vector.load %arg3[%c0_1, %c0_2] : memref<32x1xf32, #tpu.memory_space<vmem>>, vector<32x1xf32>
    %c0_3 = arith.constant 0 : index
    %c0_4 = arith.constant 0 : index
    %c0_5 = arith.constant 0 : index
    %2 = vector.load %arg1[%c0_3, %c0_4, %c0_5] : memref<8x144x384xbf16, #tpu.memory_space<vmem>>, vector<1x144x384xbf16>
    %3 = vector.shape_cast %2 : vector<1x144x384xbf16> to vector<144x384xbf16>
    %cst = arith.constant dense<0.000000e+00> : vector<32x384xf32>
    %4 = tpu.matmul %0, %3, %cst {dimension_numbers = #tpu.dot_dimension_numbers<[1], [0], [0], [1], [0, 0, 1, 1], [], []>} : vector<32x144xbf16>, vector<144x384xbf16>, vector<32x384xf32> -> vector<32x384xf32>
    %5 = vector.broadcast %1 : vector<32x1xf32> to vector<32x384xf32>
    %6 = arith.addf %4, %5 : vector<32x384xf32>
    %cst_6 = arith.constant 0.000000e+00 : f32
    %7 = vector.broadcast %cst_6 : f32 to vector<32x384xf32>
    %8 = arith.maximumf %6, %7 : vector<32x384xf32>
    %9 = arith.truncf %8 : vector<32x384xf32> to vector<32x384xbf16>
    %c0_7 = arith.constant 0 : index
    %c0_8 = arith.constant 0 : index
    %c0_9 = arith.constant 0 : index
    %10 = vector.load %arg4[%c0_7, %c0_8, %c0_9] : memref<8x32x384xbf16, #tpu.memory_space<vmem>>, vector<1x32x384xbf16>
    %11 = vector.shape_cast %10 : vector<1x32x384xbf16> to vector<32x384xbf16>
    %12 = vector.shape_cast %9 : vector<32x384xbf16> to vector<1x32x384xbf16>
    tpu.vector_store %arg4[%c0_7, %c0_8, %c0_9], %12 {strides = array<i32>} : memref<8x32x384xbf16, #tpu.memory_space<vmem>>, vector<1x32x384xbf16>,
    %c1 = arith.constant 1 : index
    %c0_10 = arith.constant 0 : index
    %c0_11 = arith.constant 0 : index
    %13 = vector.load %arg1[%c1, %c0_10, %c0_11] : memref<8x144x384xbf16, #tpu.memory_space<vmem>>, vector<1x144x384xbf16>
    %14 = vector.shape_cast %13 : vector<1x144x384xbf16> to vector<144x384xbf16>
    %cst_12 = arith.constant dense<0.000000e+00> : vector<32x384xf32>
    %15 = tpu.matmul %0, %14, %cst_12 {dimension_numbers = #tpu.dot_dimension_numbers<[1], [0], [0], [1], [0, 0, 1, 1], [], []>} : vector<32x144xbf16>, vector<144x384xbf16>, vector<32x384xf32> -> vector<32x384xf32>
    %16 = vector.broadcast %1 : vector<32x1xf32> to vector<32x384xf32>
    %17 = arith.addf %15, %16 : vector<32x384xf32>
    %cst_13 = arith.constant 0.000000e+00 : f32
    %18 = vector.broadcast %cst_13 : f32 to vector<32x384xf32>
    %19 = arith.maximumf %17, %18 : vector<32x384xf32>
    %20 = arith.truncf %19 : vector<32x384xf32> to vector<32x384xbf16>
    %c1_14 = arith.constant 1 : index
    %c0_15 = arith.constant 0 : index
    %c0_16 = arith.constant 0 : index
    %21 = vector.load %arg4[%c1_14, %c0_15, %c0_16] : memref<8x32x384xbf16, #tpu.memory_space<vmem>>, vector<1x32x384xbf16>
    %22 = vector.shape_cast %21 : vector<1x32x384xbf16> to vector<32x384xbf16>
    %23 = vector.shape_cast %20 : vector<32x384xbf16> to vector<1x32x384xbf16>
    tpu.vector_store %arg4[%c1_14, %c0_15, %c0_16], %23 {strides = array<i32>} : memref<8x32x384xbf16, #tpu.memory_space<vmem>>, vector<1x32x384xbf16>,
    %c2 = arith.constant 2 : index
    %c0_17 = arith.constant 0 : index
    %c0_18 = arith.constant 0 : index
    %24 = vector.load %arg1[%c2, %c0_17, %c0_18] : memref<8x144x384xbf16, #tpu.memory_space<vmem>>, vector<1x144x384xbf16>
    %25 = vector.shape_cast %24 : vector<1x144x384xbf16> to vector<144x384xbf16>
    %cst_19 = arith.constant dense<0.000000e+00> : vector<32x384xf32>
    %26 = tpu.matmul %0, %25, %cst_19 {dimension_numbers = #tpu.dot_dimension_numbers<[1], [0], [0], [1], [0, 0, 1, 1], [], []>} : vector<32x144xbf16>, vector<144x384xbf16>, vector<32x384xf32> -> vector<32x384xf32>
    %27 = vector.broadcast %1 : vector<32x1xf32> to vector<32x384xf32>
    %28 = arith.addf %26, %27 : vector<32x384xf32>
    %cst_20 = arith.constant 0.000000e+00 : f32
    %29 = vector.broadcast %cst_20 : f32 to vector<32x384xf32>
    %30 = arith.maximumf %28, %29 : vector<32x384xf32>
    %31 = arith.truncf %30 : vector<32x384xf32> to vector<32x384xbf16>
    %c2_21 = arith.constant 2 : index
    %c0_22 = arith.constant 0 : index
    %c0_23 = arith.constant 0 : index
    %32 = vector.load %arg4[%c2_21, %c0_22, %c0_23] : memref<8x32x384xbf16, #tpu.memory_space<vmem>>, vector<1x32x384xbf16>
    %33 = vector.shape_cast %32 : vector<1x32x384xbf16> to vector<32x384xbf16>
    %34 = vector.shape_cast %31 : vector<32x384xbf16> to vector<1x32x384xbf16>
    tpu.vector_store %arg4[%c2_21, %c0_22, %c0_23], %34 {strides = array<i32>} : memref<8x32x384xbf16, #tpu.memory_space<vmem>>, vector<1x32x384xbf16>,
    %c3 = arith.constant 3 : index
    %c0_24 = arith.constant 0 : index
    %c0_25 = arith.constant 0 : index
    %35 = vector.load %arg1[%c3, %c0_24, %c0_25] : memref<8x144x384xbf16, #tpu.memory_space<vmem>>, vector<1x144x384xbf16>
    %36 = vector.shape_cast %35 : vector<1x144x384xbf16> to vector<144x384xbf16>
    %cst_26 = arith.constant dense<0.000000e+00> : vector<32x384xf32>
    %37 = tpu.matmul %0, %36, %cst_26 {dimension_numbers = #tpu.dot_dimension_numbers<[1], [0], [0], [1], [0, 0, 1, 1], [], []>} : vector<32x144xbf16>, vector<144x384xbf16>, vector<32x384xf32> -> vector<32x384xf32>
    %38 = vector.broadcast %1 : vector<32x1xf32> to vector<32x384xf32>
    %39 = arith.addf %37, %38 : vector<32x384xf32>
    %cst_27 = arith.constant 0.000000e+00 : f32
    %40 = vector.broadcast %cst_27 : f32 to vector<32x384xf32>
    %41 = arith.maximumf %39, %40 : vector<32x384xf32>
    %42 = arith.truncf %41 : vector<32x384xf32> to vector<32x384xbf16>
    %c3_28 = arith.constant 3 : index
    %c0_29 = arith.constant 0 : index
    %c0_30 = arith.constant 0 : index
    %43 = vector.load %arg4[%c3_28, %c0_29, %c0_30] : memref<8x32x384xbf16, #tpu.memory_space<vmem>>, vector<1x32x384xbf16>
    %44 = vector.shape_cast %43 : vector<1x32x384xbf16> to vector<32x384xbf16>
    %45 = vector.shape_cast %42 : vector<32x384xbf16> to vector<1x32x384xbf16>
    tpu.vector_store %arg4[%c3_28, %c0_29, %c0_30], %45 {strides = array<i32>} : memref<8x32x384xbf16, #tpu.memory_space<vmem>>, vector<1x32x384xbf16>,
    %c4 = arith.constant 4 : index
    %c0_31 = arith.constant 0 : index
    %c0_32 = arith.constant 0 : index
    %46 = vector.load %arg1[%c4, %c0_31, %c0_32] : memref<8x144x384xbf16, #tpu.memory_space<vmem>>, vector<1x144x384xbf16>
    %47 = vector.shape_cast %46 : vector<1x144x384xbf16> to vector<144x384xbf16>
    %cst_33 = arith.constant dense<0.000000e+00> : vector<32x384xf32>
    %48 = tpu.matmul %0, %47, %cst_33 {dimension_numbers = #tpu.dot_dimension_numbers<[1], [0], [0], [1], [0, 0, 1, 1], [], []>} : vector<32x144xbf16>, vector<144x384xbf16>, vector<32x384xf32> -> vector<32x384xf32>
    %49 = vector.broadcast %1 : vector<32x1xf32> to vector<32x384xf32>
    %50 = arith.addf %48, %49 : vector<32x384xf32>
    %cst_34 = arith.constant 0.000000e+00 : f32
    %51 = vector.broadcast %cst_34 : f32 to vector<32x384xf32>
    %52 = arith.maximumf %50, %51 : vector<32x384xf32>
    %53 = arith.truncf %52 : vector<32x384xf32> to vector<32x384xbf16>
    %c4_35 = arith.constant 4 : index
    %c0_36 = arith.constant 0 : index
    %c0_37 = arith.constant 0 : index
    %54 = vector.load %arg4[%c4_35, %c0_36, %c0_37] : memref<8x32x384xbf16, #tpu.memory_space<vmem>>, vector<1x32x384xbf16>
    %55 = vector.shape_cast %54 : vector<1x32x384xbf16> to vector<32x384xbf16>
    %56 = vector.shape_cast %53 : vector<32x384xbf16> to vector<1x32x384xbf16>
    tpu.vector_store %arg4[%c4_35, %c0_36, %c0_37], %56 {strides = array<i32>} : memref<8x32x384xbf16, #tpu.memory_space<vmem>>, vector<1x32x384xbf16>,
    %c5 = arith.constant 5 : index
    %c0_38 = arith.constant 0 : index
    %c0_39 = arith.constant 0 : index
    %57 = vector.load %arg1[%c5, %c0_38, %c0_39] : memref<8x144x384xbf16, #tpu.memory_space<vmem>>, vector<1x144x384xbf16>
    %58 = vector.shape_cast %57 : vector<1x144x384xbf16> to vector<144x384xbf16>
    %cst_40 = arith.constant dense<0.000000e+00> : vector<32x384xf32>
    %59 = tpu.matmul %0, %58, %cst_40 {dimension_numbers = #tpu.dot_dimension_numbers<[1], [0], [0], [1], [0, 0, 1, 1], [], []>} : vector<32x144xbf16>, vector<144x384xbf16>, vector<32x384xf32> -> vector<32x384xf32>
    %60 = vector.broadcast %1 : vector<32x1xf32> to vector<32x384xf32>
    %61 = arith.addf %59, %60 : vector<32x384xf32>
    %cst_41 = arith.constant 0.000000e+00 : f32
    %62 = vector.broadcast %cst_41 : f32 to vector<32x384xf32>
    %63 = arith.maximumf %61, %62 : vector<32x384xf32>
    %64 = arith.truncf %63 : vector<32x384xf32> to vector<32x384xbf16>
    %c5_42 = arith.constant 5 : index
    %c0_43 = arith.constant 0 : index
    %c0_44 = arith.constant 0 : index
    %65 = vector.load %arg4[%c5_42, %c0_43, %c0_44] : memref<8x32x384xbf16, #tpu.memory_space<vmem>>, vector<1x32x384xbf16>
    %66 = vector.shape_cast %65 : vector<1x32x384xbf16> to vector<32x384xbf16>
    %67 = vector.shape_cast %64 : vector<32x384xbf16> to vector<1x32x384xbf16>
    tpu.vector_store %arg4[%c5_42, %c0_43, %c0_44], %67 {strides = array<i32>} : memref<8x32x384xbf16, #tpu.memory_space<vmem>>, vector<1x32x384xbf16>,
    %c6 = arith.constant 6 : index
    %c0_45 = arith.constant 0 : index
    %c0_46 = arith.constant 0 : index
    %68 = vector.load %arg1[%c6, %c0_45, %c0_46] : memref<8x144x384xbf16, #tpu.memory_space<vmem>>, vector<1x144x384xbf16>
    %69 = vector.shape_cast %68 : vector<1x144x384xbf16> to vector<144x384xbf16>
    %cst_47 = arith.constant dense<0.000000e+00> : vector<32x384xf32>
    %70 = tpu.matmul %0, %69, %cst_47 {dimension_numbers = #tpu.dot_dimension_numbers<[1], [0], [0], [1], [0, 0, 1, 1], [], []>} : vector<32x144xbf16>, vector<144x384xbf16>, vector<32x384xf32> -> vector<32x384xf32>
    %71 = vector.broadcast %1 : vector<32x1xf32> to vector<32x384xf32>
    %72 = arith.addf %70, %71 : vector<32x384xf32>
    %cst_48 = arith.constant 0.000000e+00 : f32
    %73 = vector.broadcast %cst_48 : f32 to vector<32x384xf32>
    %74 = arith.maximumf %72, %73 : vector<32x384xf32>
    %75 = arith.truncf %74 : vector<32x384xf32> to vector<32x384xbf16>
    %c6_49 = arith.constant 6 : index
    %c0_50 = arith.constant 0 : index
    %c0_51 = arith.constant 0 : index
    %76 = vector.load %arg4[%c6_49, %c0_50, %c0_51] : memref<8x32x384xbf16, #tpu.memory_space<vmem>>, vector<1x32x384xbf16>
    %77 = vector.shape_cast %76 : vector<1x32x384xbf16> to vector<32x384xbf16>
    %78 = vector.shape_cast %75 : vector<32x384xbf16> to vector<1x32x384xbf16>
    tpu.vector_store %arg4[%c6_49, %c0_50, %c0_51], %78 {strides = array<i32>} : memref<8x32x384xbf16, #tpu.memory_space<vmem>>, vector<1x32x384xbf16>,
    %c7 = arith.constant 7 : index
    %c0_52 = arith.constant 0 : index
    %c0_53 = arith.constant 0 : index
    %79 = vector.load %arg1[%c7, %c0_52, %c0_53] : memref<8x144x384xbf16, #tpu.memory_space<vmem>>, vector<1x144x384xbf16>
    %80 = vector.shape_cast %79 : vector<1x144x384xbf16> to vector<144x384xbf16>
    %cst_54 = arith.constant dense<0.000000e+00> : vector<32x384xf32>
    %81 = tpu.matmul %0, %80, %cst_54 {dimension_numbers = #tpu.dot_dimension_numbers<[1], [0], [0], [1], [0, 0, 1, 1], [], []>} : vector<32x144xbf16>, vector<144x384xbf16>, vector<32x384xf32> -> vector<32x384xf32>
    %82 = vector.broadcast %1 : vector<32x1xf32> to vector<32x384xf32>
    %83 = arith.addf %81, %82 : vector<32x384xf32>
    %cst_55 = arith.constant 0.000000e+00 : f32
    %84 = vector.broadcast %cst_55 : f32 to vector<32x384xf32>
    %85 = arith.maximumf %83, %84 : vector<32x384xf32>
    %86 = arith.truncf %85 : vector<32x384xf32> to vector<32x384xbf16>
    %c7_56 = arith.constant 7 : index
    %c0_57 = arith.constant 0 : index
    %c0_58 = arith.constant 0 : index
    %87 = vector.load %arg4[%c7_56, %c0_57, %c0_58] : memref<8x32x384xbf16, #tpu.memory_space<vmem>>, vector<1x32x384xbf16>
    %88 = vector.shape_cast %87 : vector<1x32x384xbf16> to vector<32x384xbf16>
    %89 = vector.shape_cast %86 : vector<32x384xbf16> to vector<1x32x384xbf16>
    tpu.vector_store %arg4[%c7_56, %c0_57, %c0_58], %89 {strides = array<i32>} : memref<8x32x384xbf16, #tpu.memory_space<vmem>>, vector<1x32x384xbf16>,
    return
  }
  func.func @transform_0(%arg0: i32) -> (i32, i32, i32) {
    %c0_i32 = arith.constant 0 : i32
    %c0_i32_0 = arith.constant 0 : i32
    %c0_i32_1 = arith.constant 0 : i32
    return %arg0, %c0_i32, %c0_i32_0 : i32, i32, i32
  }
  func.func @transform_1(%arg0: i32) -> (i32, i32) {
    %c0_i32 = arith.constant 0 : i32
    %c0_i32_0 = arith.constant 0 : i32
    %c0_i32_1 = arith.constant 0 : i32
    return %c0_i32, %c0_i32_0 : i32, i32
  }
  func.func @transform_2(%arg0: i32) -> (i32, i32) {
    %c0_i32 = arith.constant 0 : i32
    %c0_i32_0 = arith.constant 0 : i32
    %c0_i32_1 = arith.constant 0 : i32
    return %c0_i32, %c0_i32_0 : i32, i32
  }
  func.func @transform_3(%arg0: i32) -> (i32, i32, i32) {
    %c0_i32 = arith.constant 0 : i32
    %c0_i32_0 = arith.constant 0 : i32
    %c0_i32_1 = arith.constant 0 : i32
    return %arg0, %c0_i32, %c0_i32_0 : i32, i32, i32
  }
}

module attributes {stable_mosaic.version = 11 : i64} {
  func.func @max4_kernel(%arg0: i32, %arg1: memref<128x128xbf16, #tpu.memory_space<vmem>>, %arg2: memref<128x128xbf16, #tpu.memory_space<vmem>>, %arg3: memref<128x128xbf16, #tpu.memory_space<vmem>>, %arg4: memref<128x128xbf16, #tpu.memory_space<vmem>>, %arg5: memref<128x128xbf16, #tpu.memory_space<vmem>>) attributes {dimension_semantics = [#tpu.dimension_semantics<parallel>], iteration_bounds = array<i64: 3>, scalar_prefetch = 0 : i64, scratch_operands = 0 : i64, tpu.core_type = #tpu.core_type<tc>, window_params = [{transform_indices = @transform_0, window_bounds = array<i64: 128, 128>}, {transform_indices = @transform_1, window_bounds = array<i64: 128, 128>}, {transform_indices = @transform_2, window_bounds = array<i64: 128, 128>}, {transform_indices = @transform_3, window_bounds = array<i64: 128, 128>}, {transform_indices = @transform_4, window_bounds = array<i64: 128, 128>}]} {
    %c0 = arith.constant 0 : index
    %c0_0 = arith.constant 0 : index
    %0 = vector.load %arg1[%c0, %c0_0] : memref<128x128xbf16, #tpu.memory_space<vmem>>, vector<128x128xbf16>
    %c0_1 = arith.constant 0 : index
    %c0_2 = arith.constant 0 : index
    %1 = vector.load %arg2[%c0_1, %c0_2] : memref<128x128xbf16, #tpu.memory_space<vmem>>, vector<128x128xbf16>
    %2 = arith.maximumf %0, %1 : vector<128x128xbf16>
    %c0_3 = arith.constant 0 : index
    %c0_4 = arith.constant 0 : index
    %3 = vector.load %arg3[%c0_3, %c0_4] : memref<128x128xbf16, #tpu.memory_space<vmem>>, vector<128x128xbf16>
    %c0_5 = arith.constant 0 : index
    %c0_6 = arith.constant 0 : index
    %4 = vector.load %arg4[%c0_5, %c0_6] : memref<128x128xbf16, #tpu.memory_space<vmem>>, vector<128x128xbf16>
    %5 = arith.maximumf %3, %4 : vector<128x128xbf16>
    %6 = arith.maximumf %2, %5 : vector<128x128xbf16>
    %c0_7 = arith.constant 0 : index
    %c0_8 = arith.constant 0 : index
    %7 = vector.load %arg5[%c0_7, %c0_8] : memref<128x128xbf16, #tpu.memory_space<vmem>>, vector<128x128xbf16>
    tpu.vector_store %arg5[%c0_7, %c0_8], %6 {strides = array<i32>} : memref<128x128xbf16, #tpu.memory_space<vmem>>, vector<128x128xbf16>,
    return
  }
  func.func @transform_0(%arg0: i32) -> (i32, i32) {
    %c0_i32 = arith.constant 0 : i32
    %c0_i32_0 = arith.constant 0 : i32
    return %arg0, %c0_i32 : i32, i32
  }
  func.func @transform_1(%arg0: i32) -> (i32, i32) {
    %c0_i32 = arith.constant 0 : i32
    %c0_i32_0 = arith.constant 0 : i32
    return %arg0, %c0_i32 : i32, i32
  }
  func.func @transform_2(%arg0: i32) -> (i32, i32) {
    %c0_i32 = arith.constant 0 : i32
    %c0_i32_0 = arith.constant 0 : i32
    return %arg0, %c0_i32 : i32, i32
  }
  func.func @transform_3(%arg0: i32) -> (i32, i32) {
    %c0_i32 = arith.constant 0 : i32
    %c0_i32_0 = arith.constant 0 : i32
    return %arg0, %c0_i32 : i32, i32
  }
  func.func @transform_4(%arg0: i32) -> (i32, i32) {
    %c0_i32 = arith.constant 0 : i32
    %c0_i32_0 = arith.constant 0 : i32
    return %arg0, %c0_i32 : i32, i32
  }
}

module attributes {stable_mosaic.version = 11 : i64} {
  func.func @mm_bias_kernel(%arg0: i32, %arg1: memref<16x2560xbf16, #tpu.memory_space<vmem>>, %arg2: memref<2560x64xbf16, #tpu.memory_space<vmem>>, %arg3: memref<1x64xf32, #tpu.memory_space<vmem>>, %arg4: memref<16x64xf32, #tpu.memory_space<vmem>>) attributes {dimension_semantics = [#tpu.dimension_semantics<arbitrary>], iteration_bounds = array<i64: 1>, scalar_prefetch = 0 : i64, scratch_operands = 0 : i64, tpu.core_type = #tpu.core_type<tc>, window_params = [{pipeline_mode = #tpu.pipeline_mode<synchronous>, transform_indices = @transform_0, window_bounds = array<i64: 16, 2560>}, {pipeline_mode = #tpu.pipeline_mode<synchronous>, transform_indices = @transform_1, window_bounds = array<i64: 2560, 64>}, {pipeline_mode = #tpu.pipeline_mode<synchronous>, transform_indices = @transform_2, window_bounds = array<i64: 1, 64>}, {pipeline_mode = #tpu.pipeline_mode<synchronous>, transform_indices = @transform_3, window_bounds = array<i64: 16, 64>}]} {
    %c0 = arith.constant 0 : index
    %c0_0 = arith.constant 0 : index
    %0 = vector.load %arg1[%c0, %c0_0] : memref<16x2560xbf16, #tpu.memory_space<vmem>>, vector<16x2560xbf16>
    %c0_1 = arith.constant 0 : index
    %c0_2 = arith.constant 0 : index
    %1 = vector.load %arg2[%c0_1, %c0_2] : memref<2560x64xbf16, #tpu.memory_space<vmem>>, vector<2560x64xbf16>
    %cst = arith.constant dense<0.000000e+00> : vector<16x64xf32>
    %2 = tpu.matmul %0, %1, %cst {dimension_numbers = #tpu.dot_dimension_numbers<[1], [0], [0], [1], [0, 0, 1, 1], [], []>} : vector<16x2560xbf16>, vector<2560x64xbf16>, vector<16x64xf32> -> vector<16x64xf32>
    %c0_3 = arith.constant 0 : index
    %c0_4 = arith.constant 0 : index
    %3 = vector.load %arg3[%c0_3, %c0_4] : memref<1x64xf32, #tpu.memory_space<vmem>>, vector<1x64xf32>
    %4 = vector.broadcast %3 : vector<1x64xf32> to vector<16x64xf32>
    %5 = arith.addf %2, %4 : vector<16x64xf32>
    %c0_5 = arith.constant 0 : index
    %c0_6 = arith.constant 0 : index
    %6 = vector.load %arg4[%c0_5, %c0_6] : memref<16x64xf32, #tpu.memory_space<vmem>>, vector<16x64xf32>
    tpu.vector_store %arg4[%c0_5, %c0_6], %5 {strides = array<i32>} : memref<16x64xf32, #tpu.memory_space<vmem>>, vector<16x64xf32>,
    return
  }
  func.func @transform_0(%arg0: i32) -> (i32, i32) {
    %c0_i32 = arith.constant 0 : i32
    %c0_i32_0 = arith.constant 0 : i32
    %c0_i32_1 = arith.constant 0 : i32
    return %c0_i32, %c0_i32_0 : i32, i32
  }
  func.func @transform_1(%arg0: i32) -> (i32, i32) {
    %c0_i32 = arith.constant 0 : i32
    %c0_i32_0 = arith.constant 0 : i32
    %c0_i32_1 = arith.constant 0 : i32
    return %c0_i32, %c0_i32_0 : i32, i32
  }
  func.func @transform_2(%arg0: i32) -> (i32, i32) {
    %c0_i32 = arith.constant 0 : i32
    %c0_i32_0 = arith.constant 0 : i32
    %c0_i32_1 = arith.constant 0 : i32
    return %c0_i32, %c0_i32_0 : i32, i32
  }
  func.func @transform_3(%arg0: i32) -> (i32, i32) {
    %c0_i32 = arith.constant 0 : i32
    %c0_i32_0 = arith.constant 0 : i32
    %c0_i32_1 = arith.constant 0 : i32
    return %c0_i32, %c0_i32_0 : i32, i32
  }
}

module attributes {stable_mosaic.version = 11 : i64} {
  func.func @mm_bias_kernel(%arg0: i32, %arg1: memref<16x64xbf16, #tpu.memory_space<vmem>>, %arg2: memref<64x512xbf16, #tpu.memory_space<vmem>>, %arg3: memref<1x512xf32, #tpu.memory_space<vmem>>, %arg4: memref<16x512xf32, #tpu.memory_space<vmem>>) attributes {dimension_semantics = [#tpu.dimension_semantics<arbitrary>], iteration_bounds = array<i64: 1>, scalar_prefetch = 0 : i64, scratch_operands = 0 : i64, tpu.core_type = #tpu.core_type<tc>, window_params = [{pipeline_mode = #tpu.pipeline_mode<synchronous>, transform_indices = @transform_0, window_bounds = array<i64: 16, 64>}, {pipeline_mode = #tpu.pipeline_mode<synchronous>, transform_indices = @transform_1, window_bounds = array<i64: 64, 512>}, {pipeline_mode = #tpu.pipeline_mode<synchronous>, transform_indices = @transform_2, window_bounds = array<i64: 1, 512>}, {pipeline_mode = #tpu.pipeline_mode<synchronous>, transform_indices = @transform_3, window_bounds = array<i64: 16, 512>}]} {
    %c0 = arith.constant 0 : index
    %c0_0 = arith.constant 0 : index
    %0 = vector.load %arg1[%c0, %c0_0] : memref<16x64xbf16, #tpu.memory_space<vmem>>, vector<16x64xbf16>
    %c0_1 = arith.constant 0 : index
    %c0_2 = arith.constant 0 : index
    %1 = vector.load %arg2[%c0_1, %c0_2] : memref<64x512xbf16, #tpu.memory_space<vmem>>, vector<64x512xbf16>
    %cst = arith.constant dense<0.000000e+00> : vector<16x512xf32>
    %2 = tpu.matmul %0, %1, %cst {dimension_numbers = #tpu.dot_dimension_numbers<[1], [0], [0], [1], [0, 0, 1, 1], [], []>} : vector<16x64xbf16>, vector<64x512xbf16>, vector<16x512xf32> -> vector<16x512xf32>
    %c0_3 = arith.constant 0 : index
    %c0_4 = arith.constant 0 : index
    %3 = vector.load %arg3[%c0_3, %c0_4] : memref<1x512xf32, #tpu.memory_space<vmem>>, vector<1x512xf32>
    %4 = vector.broadcast %3 : vector<1x512xf32> to vector<16x512xf32>
    %5 = arith.addf %2, %4 : vector<16x512xf32>
    %c0_5 = arith.constant 0 : index
    %c0_6 = arith.constant 0 : index
    %6 = vector.load %arg4[%c0_5, %c0_6] : memref<16x512xf32, #tpu.memory_space<vmem>>, vector<16x512xf32>
    tpu.vector_store %arg4[%c0_5, %c0_6], %5 {strides = array<i32>} : memref<16x512xf32, #tpu.memory_space<vmem>>, vector<16x512xf32>,
    return
  }
  func.func @transform_0(%arg0: i32) -> (i32, i32) {
    %c0_i32 = arith.constant 0 : i32
    %c0_i32_0 = arith.constant 0 : i32
    %c0_i32_1 = arith.constant 0 : i32
    return %c0_i32, %c0_i32_0 : i32, i32
  }
  func.func @transform_1(%arg0: i32) -> (i32, i32) {
    %c0_i32 = arith.constant 0 : i32
    %c0_i32_0 = arith.constant 0 : i32
    %c0_i32_1 = arith.constant 0 : i32
    return %c0_i32, %c0_i32_0 : i32, i32
  }
  func.func @transform_2(%arg0: i32) -> (i32, i32) {
    %c0_i32 = arith.constant 0 : i32
    %c0_i32_0 = arith.constant 0 : i32
    %c0_i32_1 = arith.constant 0 : i32
    return %c0_i32, %c0_i32_0 : i32, i32
  }
  func.func @transform_3(%arg0: i32) -> (i32, i32) {
    %c0_i32 = arith.constant 0 : i32
    %c0_i32_0 = arith.constant 0 : i32
    %c0_i32_1 = arith.constant 0 : i32
    return %c0_i32, %c0_i32_0 : i32, i32
  }
}

module attributes {stable_mosaic.version = 11 : i64} {
  func.func @lstm_seq_kernel(%arg0: i32, %arg1: memref<8x2x512xf32, #tpu.memory_space<vmem>>, %arg2: memref<128x512xbf16, #tpu.memory_space<vmem>>, %arg3: memref<8x2x128xf32, #tpu.memory_space<vmem>>, %arg4: memref<2x128xf32, #tpu.memory_space<vmem>>, %arg5: memref<2x128xf32, #tpu.memory_space<vmem>>) attributes {dimension_semantics = [#tpu.dimension_semantics<arbitrary>], iteration_bounds = array<i64: 1>, scalar_prefetch = 0 : i64, scratch_operands = 2 : i64, tpu.core_type = #tpu.core_type<tc>, window_params = [{transform_indices = @transform_0, window_bounds = array<i64: 8, 2, 512>}, {pipeline_mode = #tpu.pipeline_mode<synchronous>, transform_indices = @transform_1, window_bounds = array<i64: 128, 512>}, {transform_indices = @transform_2, window_bounds = array<i64: 8, 2, 128>}]} {
    %c0_i32 = arith.constant 0 : i32
    %0 = arith.cmpi eq, %arg0, %c0_i32 : i32
    %1 = arith.extui %0 : i1 to i32
    %c0_i32_0 = arith.constant 0 : i32
    %2 = arith.cmpi ne, %1, %c0_i32_0 : i32
    scf.if %2 {
      %cst_82 = arith.constant 0.000000e+00 : f32
      %272 = vector.broadcast %cst_82 : f32 to vector<2x128xf32>
      %c0_83 = arith.constant 0 : index
      %c0_84 = arith.constant 0 : index
      %273 = vector.load %arg4[%c0_83, %c0_84] : memref<2x128xf32, #tpu.memory_space<vmem>>, vector<2x128xf32>
      tpu.vector_store %arg4[%c0_83, %c0_84], %272 {strides = array<i32>} : memref<2x128xf32, #tpu.memory_space<vmem>>, vector<2x128xf32>,
      %cst_85 = arith.constant 0.000000e+00 : f32
      %274 = vector.broadcast %cst_85 : f32 to vector<2x128xf32>
      %c0_86 = arith.constant 0 : index
      %c0_87 = arith.constant 0 : index
      %275 = vector.load %arg5[%c0_86, %c0_87] : memref<2x128xf32, #tpu.memory_space<vmem>>, vector<2x128xf32>
      tpu.vector_store %arg5[%c0_86, %c0_87], %274 {strides = array<i32>} : memref<2x128xf32, #tpu.memory_space<vmem>>, vector<2x128xf32>,
    } else {
    }
    %c0 = arith.constant 0 : index
    %c0_1 = arith.constant 0 : index
    %3 = vector.load %arg2[%c0, %c0_1] : memref<128x512xbf16, #tpu.memory_space<vmem>>, vector<128x512xbf16>
    %c0_2 = arith.constant 0 : index
    %c0_3 = arith.constant 0 : index
    %4 = vector.load %arg4[%c0_2, %c0_3] : memref<2x128xf32, #tpu.memory_space<vmem>>, vector<2x128xf32>
    %c0_4 = arith.constant 0 : index
    %c0_5 = arith.constant 0 : index
    %5 = vector.load %arg5[%c0_4, %c0_5] : memref<2x128xf32, #tpu.memory_space<vmem>>, vector<2x128xf32>
    %c0_6 = arith.constant 0 : index
    %c0_7 = arith.constant 0 : index
    %c0_8 = arith.constant 0 : index
    %6 = vector.load %arg1[%c0_6, %c0_7, %c0_8] : memref<8x2x512xf32, #tpu.memory_space<vmem>>, vector<1x2x512xf32>
    %7 = vector.shape_cast %6 : vector<1x2x512xf32> to vector<2x512xf32>
    %8 = arith.truncf %4 : vector<2x128xf32> to vector<2x128xbf16>
    %cst = arith.constant dense<0.000000e+00> : vector<2x512xf32>
    %9 = tpu.matmul %8, %3, %cst {dimension_numbers = #tpu.dot_dimension_numbers<[1], [0], [0], [1], [0, 0, 1, 1], [], []>} : vector<2x128xbf16>, vector<128x512xbf16>, vector<2x512xf32> -> vector<2x512xf32>
    %10 = arith.addf %7, %9 : vector<2x512xf32>
    %11 = vector.extract_strided_slice %10 {offsets = [0, 0], sizes = [2, 128], strides = [1, 1]} : vector<2x512xf32> to vector<2x128xf32>
    %12 = arith.negf %11 : vector<2x128xf32>
    %13 = math.exp %12 : vector<2x128xf32>
    %cst_9 = arith.constant 1.000000e+00 : f32
    %14 = vector.broadcast %cst_9 : f32 to vector<2x128xf32>
    %15 = arith.addf %14, %13 : vector<2x128xf32>
    %16 = arith.divf %14, %15 : vector<2x128xf32>
    %17 = vector.extract_strided_slice %10 {offsets = [0, 128], sizes = [2, 128], strides = [1, 1]} : vector<2x512xf32> to vector<2x128xf32>
    %18 = arith.negf %17 : vector<2x128xf32>
    %19 = math.exp %18 : vector<2x128xf32>
    %cst_10 = arith.constant 1.000000e+00 : f32
    %20 = vector.broadcast %cst_10 : f32 to vector<2x128xf32>
    %21 = arith.addf %20, %19 : vector<2x128xf32>
    %22 = arith.divf %20, %21 : vector<2x128xf32>
    %23 = vector.extract_strided_slice %10 {offsets = [0, 256], sizes = [2, 128], strides = [1, 1]} : vector<2x512xf32> to vector<2x128xf32>
    %24 = math.tanh %23 : vector<2x128xf32>
    %25 = vector.extract_strided_slice %10 {offsets = [0, 384], sizes = [2, 128], strides = [1, 1]} : vector<2x512xf32> to vector<2x128xf32>
    %26 = arith.negf %25 : vector<2x128xf32>
    %27 = math.exp %26 : vector<2x128xf32>
    %cst_11 = arith.constant 1.000000e+00 : f32
    %28 = vector.broadcast %cst_11 : f32 to vector<2x128xf32>
    %29 = arith.addf %28, %27 : vector<2x128xf32>
    %30 = arith.divf %28, %29 : vector<2x128xf32>
    %31 = arith.mulf %22, %5 : vector<2x128xf32>
    %32 = arith.mulf %16, %24 : vector<2x128xf32>
    %33 = arith.addf %31, %32 : vector<2x128xf32>
    %34 = math.tanh %33 : vector<2x128xf32>
    %35 = arith.mulf %30, %34 : vector<2x128xf32>
    %c0_12 = arith.constant 0 : index
    %c0_13 = arith.constant 0 : index
    %c0_14 = arith.constant 0 : index
    %36 = vector.load %arg3[%c0_12, %c0_13, %c0_14] : memref<8x2x128xf32, #tpu.memory_space<vmem>>, vector<1x2x128xf32>
    %37 = vector.shape_cast %36 : vector<1x2x128xf32> to vector<2x128xf32>
    %38 = vector.shape_cast %35 : vector<2x128xf32> to vector<1x2x128xf32>
    tpu.vector_store %arg3[%c0_12, %c0_13, %c0_14], %38 {strides = array<i32>} : memref<8x2x128xf32, #tpu.memory_space<vmem>>, vector<1x2x128xf32>,
    %c1 = arith.constant 1 : index
    %c0_15 = arith.constant 0 : index
    %c0_16 = arith.constant 0 : index
    %39 = vector.load %arg1[%c1, %c0_15, %c0_16] : memref<8x2x512xf32, #tpu.memory_space<vmem>>, vector<1x2x512xf32>
    %40 = vector.shape_cast %39 : vector<1x2x512xf32> to vector<2x512xf32>
    %41 = arith.truncf %35 : vector<2x128xf32> to vector<2x128xbf16>
    %cst_17 = arith.constant dense<0.000000e+00> : vector<2x512xf32>
    %42 = tpu.matmul %41, %3, %cst_17 {dimension_numbers = #tpu.dot_dimension_numbers<[1], [0], [0], [1], [0, 0, 1, 1], [], []>} : vector<2x128xbf16>, vector<128x512xbf16>, vector<2x512xf32> -> vector<2x512xf32>
    %43 = arith.addf %40, %42 : vector<2x512xf32>
    %44 = vector.extract_strided_slice %43 {offsets = [0, 0], sizes = [2, 128], strides = [1, 1]} : vector<2x512xf32> to vector<2x128xf32>
    %45 = arith.negf %44 : vector<2x128xf32>
    %46 = math.exp %45 : vector<2x128xf32>
    %cst_18 = arith.constant 1.000000e+00 : f32
    %47 = vector.broadcast %cst_18 : f32 to vector<2x128xf32>
    %48 = arith.addf %47, %46 : vector<2x128xf32>
    %49 = arith.divf %47, %48 : vector<2x128xf32>
    %50 = vector.extract_strided_slice %43 {offsets = [0, 128], sizes = [2, 128], strides = [1, 1]} : vector<2x512xf32> to vector<2x128xf32>
    %51 = arith.negf %50 : vector<2x128xf32>
    %52 = math.exp %51 : vector<2x128xf32>
    %cst_19 = arith.constant 1.000000e+00 : f32
    %53 = vector.broadcast %cst_19 : f32 to vector<2x128xf32>
    %54 = arith.addf %53, %52 : vector<2x128xf32>
    %55 = arith.divf %53, %54 : vector<2x128xf32>
    %56 = vector.extract_strided_slice %43 {offsets = [0, 256], sizes = [2, 128], strides = [1, 1]} : vector<2x512xf32> to vector<2x128xf32>
    %57 = math.tanh %56 : vector<2x128xf32>
    %58 = vector.extract_strided_slice %43 {offsets = [0, 384], sizes = [2, 128], strides = [1, 1]} : vector<2x512xf32> to vector<2x128xf32>
    %59 = arith.negf %58 : vector<2x128xf32>
    %60 = math.exp %59 : vector<2x128xf32>
    %cst_20 = arith.constant 1.000000e+00 : f32
    %61 = vector.broadcast %cst_20 : f32 to vector<2x128xf32>
    %62 = arith.addf %61, %60 : vector<2x128xf32>
    %63 = arith.divf %61, %62 : vector<2x128xf32>
    %64 = arith.mulf %55, %33 : vector<2x128xf32>
    %65 = arith.mulf %49, %57 : vector<2x128xf32>
    %66 = arith.addf %64, %65 : vector<2x128xf32>
    %67 = math.tanh %66 : vector<2x128xf32>
    %68 = arith.mulf %63, %67 : vector<2x128xf32>
    %c1_21 = arith.constant 1 : index
    %c0_22 = arith.constant 0 : index
    %c0_23 = arith.constant 0 : index
    %69 = vector.load %arg3[%c1_21, %c0_22, %c0_23] : memref<8x2x128xf32, #tpu.memory_space<vmem>>, vector<1x2x128xf32>
    %70 = vector.shape_cast %69 : vector<1x2x128xf32> to vector<2x128xf32>
    %71 = vector.shape_cast %68 : vector<2x128xf32> to vector<1x2x128xf32>
    tpu.vector_store %arg3[%c1_21, %c0_22, %c0_23], %71 {strides = array<i32>} : memref<8x2x128xf32, #tpu.memory_space<vmem>>, vector<1x2x128xf32>,
    %c2 = arith.constant 2 : index
    %c0_24 = arith.constant 0 : index
    %c0_25 = arith.constant 0 : index
    %72 = vector.load %arg1[%c2, %c0_24, %c0_25] : memref<8x2x512xf32, #tpu.memory_space<vmem>>, vector<1x2x512xf32>
    %73 = vector.shape_cast %72 : vector<1x2x512xf32> to vector<2x512xf32>
    %74 = arith.truncf %68 : vector<2x128xf32> to vector<2x128xbf16>
    %cst_26 = arith.constant dense<0.000000e+00> : vector<2x512xf32>
    %75 = tpu.matmul %74, %3, %cst_26 {dimension_numbers = #tpu.dot_dimension_numbers<[1], [0], [0], [1], [0, 0, 1, 1], [], []>} : vector<2x128xbf16>, vector<128x512xbf16>, vector<2x512xf32> -> vector<2x512xf32>
    %76 = arith.addf %73, %75 : vector<2x512xf32>
    %77 = vector.extract_strided_slice %76 {offsets = [0, 0], sizes = [2, 128], strides = [1, 1]} : vector<2x512xf32> to vector<2x128xf32>
    %78 = arith.negf %77 : vector<2x128xf32>
    %79 = math.exp %78 : vector<2x128xf32>
    %cst_27 = arith.constant 1.000000e+00 : f32
    %80 = vector.broadcast %cst_27 : f32 to vector<2x128xf32>
    %81 = arith.addf %80, %79 : vector<2x128xf32>
    %82 = arith.divf %80, %81 : vector<2x128xf32>
    %83 = vector.extract_strided_slice %76 {offsets = [0, 128], sizes = [2, 128], strides = [1, 1]} : vector<2x512xf32> to vector<2x128xf32>
    %84 = arith.negf %83 : vector<2x128xf32>
    %85 = math.exp %84 : vector<2x128xf32>
    %cst_28 = arith.constant 1.000000e+00 : f32
    %86 = vector.broadcast %cst_28 : f32 to vector<2x128xf32>
    %87 = arith.addf %86, %85 : vector<2x128xf32>
    %88 = arith.divf %86, %87 : vector<2x128xf32>
    %89 = vector.extract_strided_slice %76 {offsets = [0, 256], sizes = [2, 128], strides = [1, 1]} : vector<2x512xf32> to vector<2x128xf32>
    %90 = math.tanh %89 : vector<2x128xf32>
    %91 = vector.extract_strided_slice %76 {offsets = [0, 384], sizes = [2, 128], strides = [1, 1]} : vector<2x512xf32> to vector<2x128xf32>
    %92 = arith.negf %91 : vector<2x128xf32>
    %93 = math.exp %92 : vector<2x128xf32>
    %cst_29 = arith.constant 1.000000e+00 : f32
    %94 = vector.broadcast %cst_29 : f32 to vector<2x128xf32>
    %95 = arith.addf %94, %93 : vector<2x128xf32>
    %96 = arith.divf %94, %95 : vector<2x128xf32>
    %97 = arith.mulf %88, %66 : vector<2x128xf32>
    %98 = arith.mulf %82, %90 : vector<2x128xf32>
    %99 = arith.addf %97, %98 : vector<2x128xf32>
    %100 = math.tanh %99 : vector<2x128xf32>
    %101 = arith.mulf %96, %100 : vector<2x128xf32>
    %c2_30 = arith.constant 2 : index
    %c0_31 = arith.constant 0 : index
    %c0_32 = arith.constant 0 : index
    %102 = vector.load %arg3[%c2_30, %c0_31, %c0_32] : memref<8x2x128xf32, #tpu.memory_space<vmem>>, vector<1x2x128xf32>
    %103 = vector.shape_cast %102 : vector<1x2x128xf32> to vector<2x128xf32>
    %104 = vector.shape_cast %101 : vector<2x128xf32> to vector<1x2x128xf32>
    tpu.vector_store %arg3[%c2_30, %c0_31, %c0_32], %104 {strides = array<i32>} : memref<8x2x128xf32, #tpu.memory_space<vmem>>, vector<1x2x128xf32>,
    %c3 = arith.constant 3 : index
    %c0_33 = arith.constant 0 : index
    %c0_34 = arith.constant 0 : index
    %105 = vector.load %arg1[%c3, %c0_33, %c0_34] : memref<8x2x512xf32, #tpu.memory_space<vmem>>, vector<1x2x512xf32>
    %106 = vector.shape_cast %105 : vector<1x2x512xf32> to vector<2x512xf32>
    %107 = arith.truncf %101 : vector<2x128xf32> to vector<2x128xbf16>
    %cst_35 = arith.constant dense<0.000000e+00> : vector<2x512xf32>
    %108 = tpu.matmul %107, %3, %cst_35 {dimension_numbers = #tpu.dot_dimension_numbers<[1], [0], [0], [1], [0, 0, 1, 1], [], []>} : vector<2x128xbf16>, vector<128x512xbf16>, vector<2x512xf32> -> vector<2x512xf32>
    %109 = arith.addf %106, %108 : vector<2x512xf32>
    %110 = vector.extract_strided_slice %109 {offsets = [0, 0], sizes = [2, 128], strides = [1, 1]} : vector<2x512xf32> to vector<2x128xf32>
    %111 = arith.negf %110 : vector<2x128xf32>
    %112 = math.exp %111 : vector<2x128xf32>
    %cst_36 = arith.constant 1.000000e+00 : f32
    %113 = vector.broadcast %cst_36 : f32 to vector<2x128xf32>
    %114 = arith.addf %113, %112 : vector<2x128xf32>
    %115 = arith.divf %113, %114 : vector<2x128xf32>
    %116 = vector.extract_strided_slice %109 {offsets = [0, 128], sizes = [2, 128], strides = [1, 1]} : vector<2x512xf32> to vector<2x128xf32>
    %117 = arith.negf %116 : vector<2x128xf32>
    %118 = math.exp %117 : vector<2x128xf32>
    %cst_37 = arith.constant 1.000000e+00 : f32
    %119 = vector.broadcast %cst_37 : f32 to vector<2x128xf32>
    %120 = arith.addf %119, %118 : vector<2x128xf32>
    %121 = arith.divf %119, %120 : vector<2x128xf32>
    %122 = vector.extract_strided_slice %109 {offsets = [0, 256], sizes = [2, 128], strides = [1, 1]} : vector<2x512xf32> to vector<2x128xf32>
    %123 = math.tanh %122 : vector<2x128xf32>
    %124 = vector.extract_strided_slice %109 {offsets = [0, 384], sizes = [2, 128], strides = [1, 1]} : vector<2x512xf32> to vector<2x128xf32>
    %125 = arith.negf %124 : vector<2x128xf32>
    %126 = math.exp %125 : vector<2x128xf32>
    %cst_38 = arith.constant 1.000000e+00 : f32
    %127 = vector.broadcast %cst_38 : f32 to vector<2x128xf32>
    %128 = arith.addf %127, %126 : vector<2x128xf32>
    %129 = arith.divf %127, %128 : vector<2x128xf32>
    %130 = arith.mulf %121, %99 : vector<2x128xf32>
    %131 = arith.mulf %115, %123 : vector<2x128xf32>
    %132 = arith.addf %130, %131 : vector<2x128xf32>
    %133 = math.tanh %132 : vector<2x128xf32>
    %134 = arith.mulf %129, %133 : vector<2x128xf32>
    %c3_39 = arith.constant 3 : index
    %c0_40 = arith.constant 0 : index
    %c0_41 = arith.constant 0 : index
    %135 = vector.load %arg3[%c3_39, %c0_40, %c0_41] : memref<8x2x128xf32, #tpu.memory_space<vmem>>, vector<1x2x128xf32>
    %136 = vector.shape_cast %135 : vector<1x2x128xf32> to vector<2x128xf32>
    %137 = vector.shape_cast %134 : vector<2x128xf32> to vector<1x2x128xf32>
    tpu.vector_store %arg3[%c3_39, %c0_40, %c0_41], %137 {strides = array<i32>} : memref<8x2x128xf32, #tpu.memory_space<vmem>>, vector<1x2x128xf32>,
    %c4 = arith.constant 4 : index
    %c0_42 = arith.constant 0 : index
    %c0_43 = arith.constant 0 : index
    %138 = vector.load %arg1[%c4, %c0_42, %c0_43] : memref<8x2x512xf32, #tpu.memory_space<vmem>>, vector<1x2x512xf32>
    %139 = vector.shape_cast %138 : vector<1x2x512xf32> to vector<2x512xf32>
    %140 = arith.truncf %134 : vector<2x128xf32> to vector<2x128xbf16>
    %cst_44 = arith.constant dense<0.000000e+00> : vector<2x512xf32>
    %141 = tpu.matmul %140, %3, %cst_44 {dimension_numbers = #tpu.dot_dimension_numbers<[1], [0], [0], [1], [0, 0, 1, 1], [], []>} : vector<2x128xbf16>, vector<128x512xbf16>, vector<2x512xf32> -> vector<2x512xf32>
    %142 = arith.addf %139, %141 : vector<2x512xf32>
    %143 = vector.extract_strided_slice %142 {offsets = [0, 0], sizes = [2, 128], strides = [1, 1]} : vector<2x512xf32> to vector<2x128xf32>
    %144 = arith.negf %143 : vector<2x128xf32>
    %145 = math.exp %144 : vector<2x128xf32>
    %cst_45 = arith.constant 1.000000e+00 : f32
    %146 = vector.broadcast %cst_45 : f32 to vector<2x128xf32>
    %147 = arith.addf %146, %145 : vector<2x128xf32>
    %148 = arith.divf %146, %147 : vector<2x128xf32>
    %149 = vector.extract_strided_slice %142 {offsets = [0, 128], sizes = [2, 128], strides = [1, 1]} : vector<2x512xf32> to vector<2x128xf32>
    %150 = arith.negf %149 : vector<2x128xf32>
    %151 = math.exp %150 : vector<2x128xf32>
    %cst_46 = arith.constant 1.000000e+00 : f32
    %152 = vector.broadcast %cst_46 : f32 to vector<2x128xf32>
    %153 = arith.addf %152, %151 : vector<2x128xf32>
    %154 = arith.divf %152, %153 : vector<2x128xf32>
    %155 = vector.extract_strided_slice %142 {offsets = [0, 256], sizes = [2, 128], strides = [1, 1]} : vector<2x512xf32> to vector<2x128xf32>
    %156 = math.tanh %155 : vector<2x128xf32>
    %157 = vector.extract_strided_slice %142 {offsets = [0, 384], sizes = [2, 128], strides = [1, 1]} : vector<2x512xf32> to vector<2x128xf32>
    %158 = arith.negf %157 : vector<2x128xf32>
    %159 = math.exp %158 : vector<2x128xf32>
    %cst_47 = arith.constant 1.000000e+00 : f32
    %160 = vector.broadcast %cst_47 : f32 to vector<2x128xf32>
    %161 = arith.addf %160, %159 : vector<2x128xf32>
    %162 = arith.divf %160, %161 : vector<2x128xf32>
    %163 = arith.mulf %154, %132 : vector<2x128xf32>
    %164 = arith.mulf %148, %156 : vector<2x128xf32>
    %165 = arith.addf %163, %164 : vector<2x128xf32>
    %166 = math.tanh %165 : vector<2x128xf32>
    %167 = arith.mulf %162, %166 : vector<2x128xf32>
    %c4_48 = arith.constant 4 : index
    %c0_49 = arith.constant 0 : index
    %c0_50 = arith.constant 0 : index
    %168 = vector.load %arg3[%c4_48, %c0_49, %c0_50] : memref<8x2x128xf32, #tpu.memory_space<vmem>>, vector<1x2x128xf32>
    %169 = vector.shape_cast %168 : vector<1x2x128xf32> to vector<2x128xf32>
    %170 = vector.shape_cast %167 : vector<2x128xf32> to vector<1x2x128xf32>
    tpu.vector_store %arg3[%c4_48, %c0_49, %c0_50], %170 {strides = array<i32>} : memref<8x2x128xf32, #tpu.memory_space<vmem>>, vector<1x2x128xf32>,
    %c5 = arith.constant 5 : index
    %c0_51 = arith.constant 0 : index
    %c0_52 = arith.constant 0 : index
    %171 = vector.load %arg1[%c5, %c0_51, %c0_52] : memref<8x2x512xf32, #tpu.memory_space<vmem>>, vector<1x2x512xf32>
    %172 = vector.shape_cast %171 : vector<1x2x512xf32> to vector<2x512xf32>
    %173 = arith.truncf %167 : vector<2x128xf32> to vector<2x128xbf16>
    %cst_53 = arith.constant dense<0.000000e+00> : vector<2x512xf32>
    %174 = tpu.matmul %173, %3, %cst_53 {dimension_numbers = #tpu.dot_dimension_numbers<[1], [0], [0], [1], [0, 0, 1, 1], [], []>} : vector<2x128xbf16>, vector<128x512xbf16>, vector<2x512xf32> -> vector<2x512xf32>
    %175 = arith.addf %172, %174 : vector<2x512xf32>
    %176 = vector.extract_strided_slice %175 {offsets = [0, 0], sizes = [2, 128], strides = [1, 1]} : vector<2x512xf32> to vector<2x128xf32>
    %177 = arith.negf %176 : vector<2x128xf32>
    %178 = math.exp %177 : vector<2x128xf32>
    %cst_54 = arith.constant 1.000000e+00 : f32
    %179 = vector.broadcast %cst_54 : f32 to vector<2x128xf32>
    %180 = arith.addf %179, %178 : vector<2x128xf32>
    %181 = arith.divf %179, %180 : vector<2x128xf32>
    %182 = vector.extract_strided_slice %175 {offsets = [0, 128], sizes = [2, 128], strides = [1, 1]} : vector<2x512xf32> to vector<2x128xf32>
    %183 = arith.negf %182 : vector<2x128xf32>
    %184 = math.exp %183 : vector<2x128xf32>
    %cst_55 = arith.constant 1.000000e+00 : f32
    %185 = vector.broadcast %cst_55 : f32 to vector<2x128xf32>
    %186 = arith.addf %185, %184 : vector<2x128xf32>
    %187 = arith.divf %185, %186 : vector<2x128xf32>
    %188 = vector.extract_strided_slice %175 {offsets = [0, 256], sizes = [2, 128], strides = [1, 1]} : vector<2x512xf32> to vector<2x128xf32>
    %189 = math.tanh %188 : vector<2x128xf32>
    %190 = vector.extract_strided_slice %175 {offsets = [0, 384], sizes = [2, 128], strides = [1, 1]} : vector<2x512xf32> to vector<2x128xf32>
    %191 = arith.negf %190 : vector<2x128xf32>
    %192 = math.exp %191 : vector<2x128xf32>
    %cst_56 = arith.constant 1.000000e+00 : f32
    %193 = vector.broadcast %cst_56 : f32 to vector<2x128xf32>
    %194 = arith.addf %193, %192 : vector<2x128xf32>
    %195 = arith.divf %193, %194 : vector<2x128xf32>
    %196 = arith.mulf %187, %165 : vector<2x128xf32>
    %197 = arith.mulf %181, %189 : vector<2x128xf32>
    %198 = arith.addf %196, %197 : vector<2x128xf32>
    %199 = math.tanh %198 : vector<2x128xf32>
    %200 = arith.mulf %195, %199 : vector<2x128xf32>
    %c5_57 = arith.constant 5 : index
    %c0_58 = arith.constant 0 : index
    %c0_59 = arith.constant 0 : index
    %201 = vector.load %arg3[%c5_57, %c0_58, %c0_59] : memref<8x2x128xf32, #tpu.memory_space<vmem>>, vector<1x2x128xf32>
    %202 = vector.shape_cast %201 : vector<1x2x128xf32> to vector<2x128xf32>
    %203 = vector.shape_cast %200 : vector<2x128xf32> to vector<1x2x128xf32>
    tpu.vector_store %arg3[%c5_57, %c0_58, %c0_59], %203 {strides = array<i32>} : memref<8x2x128xf32, #tpu.memory_space<vmem>>, vector<1x2x128xf32>,
    %c6 = arith.constant 6 : index
    %c0_60 = arith.constant 0 : index
    %c0_61 = arith.constant 0 : index
    %204 = vector.load %arg1[%c6, %c0_60, %c0_61] : memref<8x2x512xf32, #tpu.memory_space<vmem>>, vector<1x2x512xf32>
    %205 = vector.shape_cast %204 : vector<1x2x512xf32> to vector<2x512xf32>
    %206 = arith.truncf %200 : vector<2x128xf32> to vector<2x128xbf16>
    %cst_62 = arith.constant dense<0.000000e+00> : vector<2x512xf32>
    %207 = tpu.matmul %206, %3, %cst_62 {dimension_numbers = #tpu.dot_dimension_numbers<[1], [0], [0], [1], [0, 0, 1, 1], [], []>} : vector<2x128xbf16>, vector<128x512xbf16>, vector<2x512xf32> -> vector<2x512xf32>
    %208 = arith.addf %205, %207 : vector<2x512xf32>
    %209 = vector.extract_strided_slice %208 {offsets = [0, 0], sizes = [2, 128], strides = [1, 1]} : vector<2x512xf32> to vector<2x128xf32>
    %210 = arith.negf %209 : vector<2x128xf32>
    %211 = math.exp %210 : vector<2x128xf32>
    %cst_63 = arith.constant 1.000000e+00 : f32
    %212 = vector.broadcast %cst_63 : f32 to vector<2x128xf32>
    %213 = arith.addf %212, %211 : vector<2x128xf32>
    %214 = arith.divf %212, %213 : vector<2x128xf32>
    %215 = vector.extract_strided_slice %208 {offsets = [0, 128], sizes = [2, 128], strides = [1, 1]} : vector<2x512xf32> to vector<2x128xf32>
    %216 = arith.negf %215 : vector<2x128xf32>
    %217 = math.exp %216 : vector<2x128xf32>
    %cst_64 = arith.constant 1.000000e+00 : f32
    %218 = vector.broadcast %cst_64 : f32 to vector<2x128xf32>
    %219 = arith.addf %218, %217 : vector<2x128xf32>
    %220 = arith.divf %218, %219 : vector<2x128xf32>
    %221 = vector.extract_strided_slice %208 {offsets = [0, 256], sizes = [2, 128], strides = [1, 1]} : vector<2x512xf32> to vector<2x128xf32>
    %222 = math.tanh %221 : vector<2x128xf32>
    %223 = vector.extract_strided_slice %208 {offsets = [0, 384], sizes = [2, 128], strides = [1, 1]} : vector<2x512xf32> to vector<2x128xf32>
    %224 = arith.negf %223 : vector<2x128xf32>
    %225 = math.exp %224 : vector<2x128xf32>
    %cst_65 = arith.constant 1.000000e+00 : f32
    %226 = vector.broadcast %cst_65 : f32 to vector<2x128xf32>
    %227 = arith.addf %226, %225 : vector<2x128xf32>
    %228 = arith.divf %226, %227 : vector<2x128xf32>
    %229 = arith.mulf %220, %198 : vector<2x128xf32>
    %230 = arith.mulf %214, %222 : vector<2x128xf32>
    %231 = arith.addf %229, %230 : vector<2x128xf32>
    %232 = math.tanh %231 : vector<2x128xf32>
    %233 = arith.mulf %228, %232 : vector<2x128xf32>
    %c6_66 = arith.constant 6 : index
    %c0_67 = arith.constant 0 : index
    %c0_68 = arith.constant 0 : index
    %234 = vector.load %arg3[%c6_66, %c0_67, %c0_68] : memref<8x2x128xf32, #tpu.memory_space<vmem>>, vector<1x2x128xf32>
    %235 = vector.shape_cast %234 : vector<1x2x128xf32> to vector<2x128xf32>
    %236 = vector.shape_cast %233 : vector<2x128xf32> to vector<1x2x128xf32>
    tpu.vector_store %arg3[%c6_66, %c0_67, %c0_68], %236 {strides = array<i32>} : memref<8x2x128xf32, #tpu.memory_space<vmem>>, vector<1x2x128xf32>,
    %c7 = arith.constant 7 : index
    %c0_69 = arith.constant 0 : index
    %c0_70 = arith.constant 0 : index
    %237 = vector.load %arg1[%c7, %c0_69, %c0_70] : memref<8x2x512xf32, #tpu.memory_space<vmem>>, vector<1x2x512xf32>
    %238 = vector.shape_cast %237 : vector<1x2x512xf32> to vector<2x512xf32>
    %239 = arith.truncf %233 : vector<2x128xf32> to vector<2x128xbf16>
    %cst_71 = arith.constant dense<0.000000e+00> : vector<2x512xf32>
    %240 = tpu.matmul %239, %3, %cst_71 {dimension_numbers = #tpu.dot_dimension_numbers<[1], [0], [0], [1], [0, 0, 1, 1], [], []>} : vector<2x128xbf16>, vector<128x512xbf16>, vector<2x512xf32> -> vector<2x512xf32>
    %241 = arith.addf %238, %240 : vector<2x512xf32>
    %242 = vector.extract_strided_slice %241 {offsets = [0, 0], sizes = [2, 128], strides = [1, 1]} : vector<2x512xf32> to vector<2x128xf32>
    %243 = arith.negf %242 : vector<2x128xf32>
    %244 = math.exp %243 : vector<2x128xf32>
    %cst_72 = arith.constant 1.000000e+00 : f32
    %245 = vector.broadcast %cst_72 : f32 to vector<2x128xf32>
    %246 = arith.addf %245, %244 : vector<2x128xf32>
    %247 = arith.divf %245, %246 : vector<2x128xf32>
    %248 = vector.extract_strided_slice %241 {offsets = [0, 128], sizes = [2, 128], strides = [1, 1]} : vector<2x512xf32> to vector<2x128xf32>
    %249 = arith.negf %248 : vector<2x128xf32>
    %250 = math.exp %249 : vector<2x128xf32>
    %cst_73 = arith.constant 1.000000e+00 : f32
    %251 = vector.broadcast %cst_73 : f32 to vector<2x128xf32>
    %252 = arith.addf %251, %250 : vector<2x128xf32>
    %253 = arith.divf %251, %252 : vector<2x128xf32>
    %254 = vector.extract_strided_slice %241 {offsets = [0, 256], sizes = [2, 128], strides = [1, 1]} : vector<2x512xf32> to vector<2x128xf32>
    %255 = math.tanh %254 : vector<2x128xf32>
    %256 = vector.extract_strided_slice %241 {offsets = [0, 384], sizes = [2, 128], strides = [1, 1]} : vector<2x512xf32> to vector<2x128xf32>
    %257 = arith.negf %256 : vector<2x128xf32>
    %258 = math.exp %257 : vector<2x128xf32>
    %cst_74 = arith.constant 1.000000e+00 : f32
    %259 = vector.broadcast %cst_74 : f32 to vector<2x128xf32>
    %260 = arith.addf %259, %258 : vector<2x128xf32>
    %261 = arith.divf %259, %260 : vector<2x128xf32>
    %262 = arith.mulf %253, %231 : vector<2x128xf32>
    %263 = arith.mulf %247, %255 : vector<2x128xf32>
    %264 = arith.addf %262, %263 : vector<2x128xf32>
    %265 = math.tanh %264 : vector<2x128xf32>
    %266 = arith.mulf %261, %265 : vector<2x128xf32>
    %c7_75 = arith.constant 7 : index
    %c0_76 = arith.constant 0 : index
    %c0_77 = arith.constant 0 : index
    %267 = vector.load %arg3[%c7_75, %c0_76, %c0_77] : memref<8x2x128xf32, #tpu.memory_space<vmem>>, vector<1x2x128xf32>
    %268 = vector.shape_cast %267 : vector<1x2x128xf32> to vector<2x128xf32>
    %269 = vector.shape_cast %266 : vector<2x128xf32> to vector<1x2x128xf32>
    tpu.vector_store %arg3[%c7_75, %c0_76, %c0_77], %269 {strides = array<i32>} : memref<8x2x128xf32, #tpu.memory_space<vmem>>, vector<1x2x128xf32>,
    %c0_78 = arith.constant 0 : index
    %c0_79 = arith.constant 0 : index
    %270 = vector.load %arg4[%c0_78, %c0_79] : memref<2x128xf32, #tpu.memory_space<vmem>>, vector<2x128xf32>
    tpu.vector_store %arg4[%c0_78, %c0_79], %266 {strides = array<i32>} : memref<2x128xf32, #tpu.memory_space<vmem>>, vector<2x128xf32>,
    %c0_80 = arith.constant 0 : index
    %c0_81 = arith.constant 0 : index
    %271 = vector.load %arg5[%c0_80, %c0_81] : memref<2x128xf32, #tpu.memory_space<vmem>>, vector<2x128xf32>
    tpu.vector_store %arg5[%c0_80, %c0_81], %264 {strides = array<i32>} : memref<2x128xf32, #tpu.memory_space<vmem>>, vector<2x128xf32>,
    return
  }
  func.func @transform_0(%arg0: i32) -> (i32, i32, i32) {
    %c0_i32 = arith.constant 0 : i32
    %c0_i32_0 = arith.constant 0 : i32
    %c0_i32_1 = arith.constant 0 : i32
    return %arg0, %c0_i32, %c0_i32_0 : i32, i32, i32
  }
  func.func @transform_1(%arg0: i32) -> (i32, i32) {
    %c0_i32 = arith.constant 0 : i32
    %c0_i32_0 = arith.constant 0 : i32
    %c0_i32_1 = arith.constant 0 : i32
    return %c0_i32, %c0_i32_0 : i32, i32
  }
  func.func @transform_2(%arg0: i32) -> (i32, i32, i32) {
    %c0_i32 = arith.constant 0 : i32
    %c0_i32_0 = arith.constant 0 : i32
    %c0_i32_1 = arith.constant 0 : i32
    return %arg0, %c0_i32, %c0_i32_0 : i32, i32, i32
  }
}

module attributes {stable_mosaic.version = 11 : i64} {
  func.func @mm_bias_kernel(%arg0: i32, %arg1: memref<16x128xbf16, #tpu.memory_space<vmem>>, %arg2: memref<128x512xbf16, #tpu.memory_space<vmem>>, %arg3: memref<1x512xf32, #tpu.memory_space<vmem>>, %arg4: memref<16x512xf32, #tpu.memory_space<vmem>>) attributes {dimension_semantics = [#tpu.dimension_semantics<arbitrary>], iteration_bounds = array<i64: 1>, scalar_prefetch = 0 : i64, scratch_operands = 0 : i64, tpu.core_type = #tpu.core_type<tc>, window_params = [{pipeline_mode = #tpu.pipeline_mode<synchronous>, transform_indices = @transform_0, window_bounds = array<i64: 16, 128>}, {pipeline_mode = #tpu.pipeline_mode<synchronous>, transform_indices = @transform_1, window_bounds = array<i64: 128, 512>}, {pipeline_mode = #tpu.pipeline_mode<synchronous>, transform_indices = @transform_2, window_bounds = array<i64: 1, 512>}, {pipeline_mode = #tpu.pipeline_mode<synchronous>, transform_indices = @transform_3, window_bounds = array<i64: 16, 512>}]} {
    %c0 = arith.constant 0 : index
    %c0_0 = arith.constant 0 : index
    %0 = vector.load %arg1[%c0, %c0_0] : memref<16x128xbf16, #tpu.memory_space<vmem>>, vector<16x128xbf16>
    %c0_1 = arith.constant 0 : index
    %c0_2 = arith.constant 0 : index
    %1 = vector.load %arg2[%c0_1, %c0_2] : memref<128x512xbf16, #tpu.memory_space<vmem>>, vector<128x512xbf16>
    %cst = arith.constant dense<0.000000e+00> : vector<16x512xf32>
    %2 = tpu.matmul %0, %1, %cst {dimension_numbers = #tpu.dot_dimension_numbers<[1], [0], [0], [1], [0, 0, 1, 1], [], []>} : vector<16x128xbf16>, vector<128x512xbf16>, vector<16x512xf32> -> vector<16x512xf32>
    %c0_3 = arith.constant 0 : index
    %c0_4 = arith.constant 0 : index
    %3 = vector.load %arg3[%c0_3, %c0_4] : memref<1x512xf32, #tpu.memory_space<vmem>>, vector<1x512xf32>
    %4 = vector.broadcast %3 : vector<1x512xf32> to vector<16x512xf32>
    %5 = arith.addf %2, %4 : vector<16x512xf32>
    %c0_5 = arith.constant 0 : index
    %c0_6 = arith.constant 0 : index
    %6 = vector.load %arg4[%c0_5, %c0_6] : memref<16x512xf32, #tpu.memory_space<vmem>>, vector<16x512xf32>
    tpu.vector_store %arg4[%c0_5, %c0_6], %5 {strides = array<i32>} : memref<16x512xf32, #tpu.memory_space<vmem>>, vector<16x512xf32>,
    return
  }
  func.func @transform_0(%arg0: i32) -> (i32, i32) {
    %c0_i32 = arith.constant 0 : i32
    %c0_i32_0 = arith.constant 0 : i32
    %c0_i32_1 = arith.constant 0 : i32
    return %c0_i32, %c0_i32_0 : i32, i32
  }
  func.func @transform_1(%arg0: i32) -> (i32, i32) {
    %c0_i32 = arith.constant 0 : i32
    %c0_i32_0 = arith.constant 0 : i32
    %c0_i32_1 = arith.constant 0 : i32
    return %c0_i32, %c0_i32_0 : i32, i32
  }
  func.func @transform_2(%arg0: i32) -> (i32, i32) {
    %c0_i32 = arith.constant 0 : i32
    %c0_i32_0 = arith.constant 0 : i32
    %c0_i32_1 = arith.constant 0 : i32
    return %c0_i32, %c0_i32_0 : i32, i32
  }
  func.func @transform_3(%arg0: i32) -> (i32, i32) {
    %c0_i32 = arith.constant 0 : i32
    %c0_i32_0 = arith.constant 0 : i32
    %c0_i32_1 = arith.constant 0 : i32
    return %c0_i32, %c0_i32_0 : i32, i32
  }
}

</mosaic_0001>

<bundles_post_ra>
// kernel: wind_turbine_forward.9
= control target key start
LH: loop header
LB: loop body
LE: loop exit
PB: predicated region body
PF: predicated region fallthrough
CT: control target
= control target key end

     0   :  { %s5480_s12 = smov 0   ;;  %s6232_s0 = inlined_call_operand.vmem [shape: bf16[16,27,1408], index: 0, kind: input, shape index: {}]   ;;  %s6233_s1 = inlined_call_operand.vmem [shape: bf16[16,27], index: 1, kind: input, shape index: {}]   ;;  %s6234_s2 = inlined_call_operand.vmem [shape: f32[16,1], index: 2, kind: input, shape index: {}]   ;;  %s6235_s3 = inlined_call_operand.vmem [shape: bf16[16,16,1408], index: 3, kind: output, shape index: {}]  }
   0x1 LB: > { %s4407_s13 = sadd.s32 4294967295, %s5454_s12   ;;  %p4411_p0 = scmp.ge.s32.totalorder %s5454_s12, 1  ;;  %s5454_s12 = sphi %s5480_s12, %s13_s12  }
   0x2   : > { %p139_p1 = scmp.lt.s32.totalorder %s5454_s12, 3 }
   0x4   : > { %p140_p2 = pnand %p4411_p0, %p139_p1 }
   0x5   : > { %s4412_s14 = sshll.u32 (!%p140_p2), %s4407_s13, 3  ;;  %v5456_v0 = vmov (!%p140_p2), 0   ;;  %v182_v1 = vld [vmem:[%s6234_s2] sm:$0xff] (!%p140_p2)  ;;  %vm328_vm0 = vcmask (!%p140_p2), 1044480   ;;  %v183_v2 = vld [vmem:[%s6234_s2 + $0x8] sm:$0xff] (!%p140_p2)  ;;  %vm329_vm1 = vcmask (!%p140_p2), 1045504  }
   0x6   : > { %143 = sbr.rel (%p140_p2) target bundleno = 432 (0x1b0), region = 32  ;;  %p166_p3 = scmp.lt.s32.totalorder (!%p140_p2), %s4412_s14, 15  ;;  %397 = vmatprep.mubr.bf16.mxu0 (!%p140_p2), %v5456_v0  ;;  %440 = vmatprep.mubr.bf16.mxu1 (!%p140_p2), %v5456_v0  ;;  %v5457_v3 = vmov (!%p140_p2), 65535   ;;  %v5520_v16 = vld [vmem:[%s6233_s1] sm:$0xff] (!%p140_p2)   ;;  %vm324_vm2 = vcmask (!%p140_p2), 220160   ;;  %v5458_v37 = vmov (!%p140_p2), 0.0  }
   0x7   : > { %5189 = vset.pattern.permute.xlu0 (!%p140_p2), %v5456_v0  ;;  %v330_v4 = vsel (!%p140_p2), %vm328_vm0, 4294967295, %v5457_v3  ;;  %vm5459_vm3 = vmmov (!%p140_p2), 0  }
   0x8   : > { %210 = vperm.xlu0 (!%p140_p2), %5189, %v182_v1   ;;  %v5509_v9 = vsel (!%p140_p2), %vm329_vm1, %v330_v4, 0 }
   0xc   : > { %215 = vperm.xlu0 (!%p140_p2), %5189, %v183_v2  }
   0xd   : > { %s6237_s14 = smov (!%p166_p3, %s4412_s14), 15 }
   0xe   : > { %s5175_s19 = smul.u32 176, %s6237_s14 }
   0xf   : > { %s5176_s27 = smul.u32 88, %s6237_s14 }
  0x10   : > { %s5503_s22 = scalar_lea.vmem %s6232_s0, %s5175_s19 }
  0x11   : > { %v5190_v5 = vld [vmem:[%s5503_s22 + $0x4] ss:$44 sps:$4 sm:$0xff]   ;;  %v5192_v6 = vld [vmem:[%s5503_s22 + $0xc] ss:$44 sps:$4 sm:$0xff]   ;;  %v5195_v8 = vld [vmem:[%s5503_s22 + $0x8] ss:$44 sps:$4 sm:$0xff]   ;;  %s5963_s30 = scalar_lea.vmem %s6235_s3, %s5176_s27 }
  0x12   : > { %365 = vmatprep.subr.bf16.mxu0 %v5190_v5  ;;  %v5194_v7 = vld [vmem:[%s5503_s22] ss:$44 sps:$4 sm:$0xff]   ;;  %408 = vmatprep.subr.bf16.mxu1 %v5192_v6  ;;  %v5196_v10 = vld [vmem:[%s5503_s22 + $0x5c] ss:$44 sps:$4 sm:$0x3f]  }
  0x13   : > { %366 = vmatpush1.bf16.msra.mxu0 %v5194_v7  ;;  %409 = vmatpush1.bf16.msra.mxu1 %v5195_v8  ;;  %v5198_v11 = vld [vmem:[%s5503_s22 + $0x64] ss:$44 sps:$4 sm:$0x3f]   ;;  %v336_v12 = vand.u32 %v5196_v10, %v5509_v9  ;;  %v5201_v14 = vld [vmem:[%s5503_s22 + $0x60] ss:$44 sps:$4 sm:$0x3f]  }
  0x14   : > { %v5200_v13 = vld [vmem:[%s5503_s22 + $0x58] ss:$44 sps:$4 sm:$0x3f]   ;;  %v342_v15 = vand.u32 %v5198_v11, %v5509_v9  ;;  %v5205_v17 = vld [vmem:[%s5503_s22 + $0x14] ss:$44 sps:$4 sm:$0xff]   ;;  %v339_v19 = vand.u32 %v5201_v14, %v5509_v9 }
  0x15   : > { %367 = vmatprep.subr.bf16.mxu0 %v336_v12  ;;  %v333_v18 = vand.u32 %v5200_v13, %v5509_v9  ;;  %v5203_v20 = vld [vmem:[%s5503_s22 + $0x10] ss:$44 sps:$4 sm:$0xff]   ;;  %v5206_v21 = vld [vmem:[%s5503_s22 + $0x18] ss:$44 sps:$4 sm:$0xff]   ;;  %v5215_v32 = vld [vmem:[%s5503_s22 + $0x20] ss:$44 sps:$4 sm:$0xff]  }
  0x16   : > { %410 = vmatprep.subr.bf16.mxu1 %v342_v15  ;;  %v5208_v22 = vld [vmem:[%s5503_s22 + $0x1c] ss:$44 sps:$4 sm:$0xff]   ;;  %v5211_v24 = vld [vmem:[%s5503_s22 + $0x6c] ss:$44 sps:$4 sm:$0x3f]  }
  0x17   : > { %368 = vmatpush1.bf16.msra.mxu0 %v333_v18  ;;  %411 = vmatpush1.bf16.msra.mxu1 %v339_v19  ;;  %v5209_v23 = vld [vmem:[%s5503_s22 + $0x68] ss:$44 sps:$4 sm:$0x3f]   ;;  %v5212_v25 = vld [vmem:[%s5503_s22 + $0x70] ss:$44 sps:$4 sm:$0x3f]   ;;  %v348_v26 = vand.u32 %v5211_v24, %v5509_v9 }
  0x18   : > { %451 = vmatprep.subr.bf16.mxu0 %v5205_v17  ;;  %494 = vmatprep.subr.bf16.mxu1 %v5208_v22  ;;  %v5214_v27 = vld [vmem:[%s5503_s22 + $0x74] ss:$44 sps:$4 sm:$0x3f]   ;;  %v345_v29 = vand.u32 %v5209_v23, %v5509_v9  ;;  %v351_v30 = vand.u32 %v5212_v25, %v5509_v9  ;;  %v5217_v31 = vld [vmem:[%s5503_s22 + $0x24] ss:$44 sps:$4 sm:$0xff]  }
  0x19   : > { %v354_v28 = vand.u32 %v5214_v27, %v5509_v9  ;;  %v5221_v33 = vld [vmem:[%s5503_s22 + $0x7c] ss:$44 sps:$4 sm:$0x3f]   ;;  %v5219_v34 = vld [vmem:[%s5503_s22 + $0x78] ss:$44 sps:$4 sm:$0x3f]  }
  0x1a   : > { %4439 = vmatmul.mubr.msk.bf16.vlgmr.msra.gmra.mrb[0].mxu0 %vm324_vm2, %v5520_v16  ;;  %4440 = vmatmul.mubr.msk.bf16.vlgmr.msra.gmra.mrb[0].mxu1 %vm324_vm2, %v5520_v16  ;;  %v5218_v35 = vld [vmem:[%s5503_s22 + $0x28] ss:$44 sps:$4 sm:$0xff]   ;;  %v5222_v36 = vld [vmem:[%s5503_s22 + $0x80] ss:$44 sps:$4 sm:$0x3f]   ;;  %v360_v38 = vand.u32 %v5221_v33, %v5509_v9  ;;  %v357_v39 = vand.u32 %v5219_v34, %v5509_v9 }
  0x1b   : > { %452 = vmatpush1.bf16.msra.mxu0 %v5203_v20  ;;  %495 = vmatpush1.bf16.msra.mxu1 %v5206_v21  ;;  %v363_v40 = vand.u32 %v5222_v36, %v5509_v9  ;;  %v5225_v41 = vld [vmem:[%s5503_s22 + $0xb4] ss:$44 sps:$4 sm:$0xff]   ;;  %v5231_v42 = vld [vmem:[%s5503_s22 + $0x10c] ss:$44 sps:$4 sm:$0x3f]  }
  0x1c   : > { %453 = vmatprep.subr.bf16.mxu0 %v348_v26  ;;  %483 = vmatprep.mubr.bf16.mxu0 %v5456_v0  ;;  %v5228_v43 = vld [vmem:[%s5503_s22 + $0xbc] ss:$44 sps:$4 sm:$0xff]   ;;  %v5234_v44 = vld [vmem:[%s5503_s22 + $0x114] ss:$44 sps:$4 sm:$0x3f]   ;;  %v853_v49 = vand.u32 %v5231_v42, %v5509_v9 }
  0x1d   : > { %496 = vmatprep.subr.bf16.mxu1 %v354_v28  ;;  %526 = vmatprep.mubr.bf16.mxu1 %v5456_v0  ;;  %v5223_v45 = vld [vmem:[%s5503_s22 + $0xb0] ss:$44 sps:$4 sm:$0xff]   ;;  %v5226_v46 = vld [vmem:[%s5503_s22 + $0xb8] ss:$44 sps:$4 sm:$0xff]   ;;  %v859_v50 = vand.u32 %v5234_v44, %v5509_v9  ;;  %v5235_v57 = vld [vmem:[%s5503_s22 + $0xc0] ss:$44 sps:$4 sm:$0xff]  }
  0x1e   : > { %v5229_v47 = vld [vmem:[%s5503_s22 + $0x108] ss:$44 sps:$4 sm:$0x3f]   ;;  %v5232_v48 = vld [vmem:[%s5503_s22 + $0x110] ss:$44 sps:$4 sm:$0x3f]  }
  0x1f   : > { %454 = vmatpush1.bf16.msra.mxu0 %v345_v29  ;;  %497 = vmatpush1.bf16.msra.mxu1 %v351_v30  ;;  %v5237_v51 = vld [vmem:[%s5503_s22 + $0xc4] ss:$44 sps:$4 sm:$0xff]   ;;  %v5240_v52 = vld [vmem:[%s5503_s22 + $0xcc] ss:$44 sps:$4 sm:$0xff]   ;;  %v850_v53 = vand.u32 %v5229_v47, %v5509_v9  ;;  %v856_v54 = vand.u32 %v5232_v48, %v5509_v9  ;;  %v5238_v59 = vld [vmem:[%s5503_s22 + $0xc8] ss:$44 sps:$4 sm:$0xff]  }
  0x20   : > { %537 = vmatprep.subr.bf16.mxu0 %v5217_v31  ;;  %5111 = vmatprep.subr.bf16.mxu1 %v5458_v37  ;;  %v5243_v55 = vld [vmem:[%s5503_s22 + $0x11c] ss:$44 sps:$4 sm:$0x3f]   ;;  %v5246_v56 = vld [vmem:[%s5503_s22 + $0x124] ss:$44 sps:$4 sm:$0x3f]  }
  0x21   : > { %v5241_v58 = vld [vmem:[%s5503_s22 + $0x118] ss:$44 sps:$4 sm:$0x3f]   ;;  %v5244_v60 = vld [vmem:[%s5503_s22 + $0x120] ss:$44 sps:$4 sm:$0x3f]   ;;  %v865_v61 = vand.u32 %v5243_v55, %v5509_v9  ;;  %v871_v62 = vand.u32 %v5246_v56, %v5509_v9 }
  0x22   : > { %4441 = vmatmul.mubr.msk.bf16.vlgmr.msra.gmra.mrb[4].mxu0 %vm324_vm2, %v5520_v16  ;;  %4442 = vmatmul.mubr.msk.bf16.vlgmr.msra.gmra.mrb[4].mxu1 %vm324_vm2, %v5520_v16  ;;  %v862_v63 = vand.u32 %v5241_v58, %v5509_v9  ;;  %v868_v1 = vand.u32 %v5244_v60, %v5509_v9  ;;  %v5249_v2 = vld [vmem:[%s5503_s22 + $0xd4] ss:$44 sps:$4 sm:$0xff]   ;;  %v5253_v3 = vld [vmem:[%s5503_s22 + $0x12c] ss:$44 sps:$4 sm:$0x3f]  }
  0x23   : > { %538 = vmatpush1.bf16.msra.mxu0 %v5215_v32  ;;  %5112 = vmatpush3.bf16.msra.mxu1 %v5218_v35  ;;  %v5247_v4 = vld [vmem:[%s5503_s22 + $0xd0] ss:$44 sps:$4 sm:$0xff]   ;;  %v5250_v5 = vld [vmem:[%s5503_s22 + $0xd8] ss:$44 sps:$4 sm:$0xff]   ;;  %v877_v8 = vand.u32 %v5253_v3, %v5509_v9  ;;  %v5255_v17 = vld [vmem:[%s5503_s22 + $0x160] ss:$44 sps:$4 sm:$0xff]  }
  0x24   : > { %539 = vmatprep.subr.bf16.mxu0 %v360_v38  ;;  %5113 = vmatprep.subr.bf16.mxu1 %v5458_v37  ;;  %v5251_v6 = vld [vmem:[%s5503_s22 + $0x128] ss:$44 sps:$4 sm:$0x3f]   ;;  %v5254_v7 = vld [vmem:[%s5503_s22 + $0x130] ss:$44 sps:$4 sm:$0x3f]  }
  0x25   : > { %569 = vmatprep.mubr.bf16.mxu0 %v5456_v0  ;;  %5115 = vmatprep.mubr.msk.bf16.mxu1 %vm5459_vm3, %v5458_v37  ;;  %v5257_v10 = vld [vmem:[%s5503_s22 + $0x164] ss:$44 sps:$4 sm:$0xff]   ;;  %v5260_v11 = vld [vmem:[%s5503_s22 + $0x16c] ss:$44 sps:$4 sm:$0xff]   ;;  %v874_v12 = vand.u32 %v5251_v6, %v5509_v9  ;;  %v880_v13 = vand.u32 %v5254_v7, %v5509_v9  ;;  %v5258_v19 = vld [vmem:[%s5503_s22 + $0x168] ss:$44 sps:$4 sm:$0xff]  }
  0x26   : > { %v5263_v14 = vld [vmem:[%s5503_s22 + $0x1bc] ss:$44 sps:$4 sm:$0x3f]   ;;  %v5266_v15 = vld [vmem:[%s5503_s22 + $0x1c4] ss:$44 sps:$4 sm:$0x3f]  }
  0x27   : > { %540 = vmatpush1.bf16.msra.mxu0 %v357_v39  ;;  %5114 = vmatpush3.bf16.msra.mxu1 %v363_v40  ;;  %v5261_v18 = vld [vmem:[%s5503_s22 + $0x1b8] ss:$44 sps:$4 sm:$0x3f]   ;;  %v5264_v20 = vld [vmem:[%s5503_s22 + $0x1c0] ss:$44 sps:$4 sm:$0x3f]   ;;  %v1371_v21 = vand.u32 %v5263_v14, %v5509_v9  ;;  %v1377_v22 = vand.u32 %v5266_v15, %v5509_v9 }
  0x28   : > { %882 = vmatprep.subr.bf16.mxu0 %v5225_v41  ;;  %925 = vmatprep.subr.bf16.mxu1 %v5228_v43  ;;  %v1368_v23 = vand.u32 %v5261_v18, %v5509_v9  ;;  %v1374_v24 = vand.u32 %v5264_v20, %v5509_v9  ;;  %v5269_v25 = vld [vmem:[%s5503_s22 + $0x174] ss:$44 sps:$4 sm:$0xff]   ;;  %v5275_v26 = vld [vmem:[%s5503_s22 + $0x1cc] ss:$44 sps:$4 sm:$0x3f]  }
  0x29   : > { %v5272_v27 = vld [vmem:[%s5503_s22 + $0x17c] ss:$44 sps:$4 sm:$0xff]   ;;  %v5278_v28 = vld [vmem:[%s5503_s22 + $0x1d4] ss:$44 sps:$4 sm:$0x3f]   ;;  %v1383_v33 = vand.u32 %v5275_v26, %v5509_v9 }
  0x2a   : > { %4443 = vmatmul.mubr.msk.bf16.vlgmr.msra.gmra.mrb[8].mxu0 %vm324_vm2, %v5520_v16  ;;  %5116 = vmatmul.mubr.msk.bf16.vlgmr.msra.gmra.mrb[8].mxu1 %vm324_vm2, %v5520_v16  ;;  %v5267_v29 = vld [vmem:[%s5503_s22 + $0x170] ss:$44 sps:$4 sm:$0xff]   ;;  %v5270_v30 = vld [vmem:[%s5503_s22 + $0x178] ss:$44 sps:$4 sm:$0xff]   ;;  %v1389_v34 = vand.u32 %v5278_v28, %v5509_v9  ;;  %v5279_v40 = vld [vmem:[%s5503_s22 + $0x180] ss:$44 sps:$4 sm:$0xff]  }
  0x2b   : > { %883 = vmatpush1.bf16.msra.mxu0 %v5223_v45  ;;  %926 = vmatpush1.bf16.msra.mxu1 %v5226_v46  ;;  %v5273_v31 = vld [vmem:[%s5503_s22 + $0x1c8] ss:$44 sps:$4 sm:$0x3f]   ;;  %v5276_v32 = vld [vmem:[%s5503_s22 + $0x1d0] ss:$44 sps:$4 sm:$0x3f]  }
  0x2c   : > { %884 = vmatprep.subr.bf16.mxu0 %v853_v49  ;;  %927 = vmatprep.subr.bf16.mxu1 %v859_v50  ;;  %v1380_v35 = vand.u32 %v5273_v31, %v5509_v9  ;;  %v1386_v36 = vand.u32 %v5276_v32, %v5509_v9  ;;  %v5281_v38 = vld [vmem:[%s5503_s22 + $0x184] ss:$44 sps:$4 sm:$0xff]   ;;  %v5285_v39 = vld [vmem:[%s5503_s22 + $0x1dc] ss:$44 sps:$4 sm:$0x3f]  }
  0x2d   : > { %914 = vmatprep.mubr.bf16.mxu0 %v5456_v0  ;;  %957 = vmatprep.mubr.bf16.mxu1 %v5456_v0  ;;  %v5283_v41 = vld [vmem:[%s5503_s22 + $0x1d8] ss:$44 sps:$4 sm:$0x3f]   ;;  %v5282_v42 = vld [vmem:[%s5503_s22 + $0x188] ss:$44 sps:$4 sm:$0xff]   ;;  %v1395_v44 = vand.u32 %v5285_v39, %v5509_v9 }
  0x2e   : > { %v5286_v43 = vld [vmem:[%s5503_s22 + $0x1e0] ss:$44 sps:$4 sm:$0x3f]   ;;  %v1392_v45 = vand.u32 %v5283_v41, %v5509_v9  ;;  %v5292_v49 = vld [vmem:[%s5503_s22 + $0x21c] ss:$44 sps:$4 sm:$0xff]  }
  0x2f   : > { %885 = vmatpush1.bf16.msra.mxu0 %v850_v53  ;;  %928 = vmatpush1.bf16.msra.mxu1 %v856_v54  ;;  %v1398_v46 = vand.u32 %v5286_v43, %v5509_v9  ;;  %v5289_v47 = vld [vmem:[%s5503_s22 + $0x214] ss:$44 sps:$4 sm:$0xff]   ;;  %v5295_v48 = vld [vmem:[%s5503_s22 + $0x26c] ss:$44 sps:$4 sm:$0x3f]  }
  0x30   : > { %968 = vmatprep.subr.bf16.mxu0 %v5237_v51  ;;  %1011 = vmatprep.subr.bf16.mxu1 %v5240_v52  ;;  %v5298_v50 = vld [vmem:[%s5503_s22 + $0x274] ss:$44 sps:$4 sm:$0x3f]   ;;  %v5287_v51 = vld [vmem:[%s5503_s22 + $0x210] ss:$44 sps:$4 sm:$0xff]   ;;  %v1889_v55 = vand.u32 %v5295_v48, %v5509_v9 }
  0x31   : > { %v5290_v52 = vld [vmem:[%s5503_s22 + $0x218] ss:$44 sps:$4 sm:$0xff]   ;;  %v5293_v53 = vld [vmem:[%s5503_s22 + $0x268] ss:$44 sps:$4 sm:$0x3f]   ;;  %v1895_v56 = vand.u32 %v5298_v50, %v5509_v9 }
  0x32   : > { %4503 = vmatmul.mubr.msk.bf16.vlgmr.msra.gmra.mrb[12].mxu0 %vm324_vm2, %v5520_v16  ;;  %4504 = vmatmul.mubr.msk.bf16.vlgmr.msra.gmra.mrb[12].mxu1 %vm324_vm2, %v5520_v16  ;;  %v5296_v54 = vld [vmem:[%s5503_s22 + $0x270] ss:$44 sps:$4 sm:$0x3f]   ;;  %v5304_v58 = vld [vmem:[%s5503_s22 + $0x22c] ss:$44 sps:$4 sm:$0xff]  }
  0x33   : > { %969 = vmatpush1.bf16.msra.mxu0 %v5235_v57  ;;  %1012 = vmatpush1.bf16.msra.mxu1 %v5238_v59  ;;  %v5301_v57 = vld [vmem:[%s5503_s22 + $0x224] ss:$44 sps:$4 sm:$0xff]   ;;  %v1886_v59 = vand.u32 %v5293_v53, %v5509_v9  ;;  %v1892_v60 = vand.u32 %v5296_v54, %v5509_v9  ;;  %v5308_v3 = vld [vmem:[%s5503_s22 + $0x280] ss:$44 sps:$4 sm:$0x3f]  }
  0x34   : > { %970 = vmatprep.subr.bf16.mxu0 %v865_v61  ;;  %1013 = vmatprep.subr.bf16.mxu1 %v871_v62  ;;  %v5307_v61 = vld [vmem:[%s5503_s22 + $0x27c] ss:$44 sps:$4 sm:$0x3f]   ;;  %v5310_v62 = vld [vmem:[%s5503_s22 + $0x284] ss:$44 sps:$4 sm:$0x3f]   ;;  %v1904_v7 = vand.u32 %v5308_v3, %v5509_v9 }
  0x35   : > { %1000 = vmatprep.mubr.bf16.mxu0 %v5456_v0  ;;  %1043 = vmatprep.mubr.bf16.mxu1 %v5456_v0  ;;  %v5318_v14 = vld [vmem:[%s5503_s22 + $0x290] ss:$44 sps:$4 sm:$0x3f]   ;;  %v5324_v18 = vld [vmem:[%s5503_s22 + $0x2cc] ss:$44 sps:$4 sm:$0xff]  }
  0x36   : > { %v1916_v20 = vand.u32 %v5318_v14, %v5509_v9  ;;  %v5328_v26 = vld [vmem:[%s5503_s22 + $0x320] ss:$44 sps:$4 sm:$0x3f]   ;;  %v5340_v39 = vld [vmem:[%s5503_s22 + $0x330] ss:$44 sps:$4 sm:$0x3f]  }
  0x37   : > { %971 = vmatpush1.bf16.msra.mxu0 %v862_v63  ;;  %1014 = vmatpush1.bf16.msra.mxu1 %v868_v1  ;;  %v5299_v63 = vld [vmem:[%s5503_s22 + $0x220] ss:$44 sps:$4 sm:$0xff]   ;;  %v5305_v1 = vld [vmem:[%s5503_s22 + $0x278] ss:$44 sps:$4 sm:$0x3f]   ;;  %v2422_v43 = vand.u32 %v5340_v39, %v5509_v9 }
  0x38   : > { %1054 = vmatprep.subr.bf16.mxu0 %v5249_v2  ;;  %5119 = vmatprep.subr.bf16.mxu1 %v5458_v37  ;;  %v5302_v2 = vld [vmem:[%s5503_s22 + $0x228] ss:$44 sps:$4 sm:$0xff]   ;;  %v1898_v6 = vand.u32 %v5305_v1, %v5509_v9  ;;  %v5339_v32 = vld [vmem:[%s5503_s22 + $0x32c] ss:$44 sps:$4 sm:$0x3f]  }
  0x39   : > { %v5333_v31 = vld [vmem:[%s5503_s22 + $0x2d4] ss:$44 sps:$4 sm:$0xff]   ;;  %v5359_v54 = vld [vmem:[%s5503_s22 + $0x3cc] ss:$44 sps:$4 sm:$0x3f]  }
  0x3a   : > { %4505 = vmatmul.mubr.msk.bf16.vlgmr.msra.gmra.mrb[16].mxu0 %vm324_vm2, %v5520_v16  ;;  %4506 = vmatmul.mubr.msk.bf16.vlgmr.msra.gmra.mrb[16].mxu1 %vm324_vm2, %v5520_v16  ;;  %v5346_v48 = vld [vmem:[%s5503_s22 + $0x2e8] ss:$44 sps:$4 sm:$0xff]   ;;  %v5368_v1 = vld [vmem:[%s5503_s22 + $0x38c] ss:$44 sps:$4 sm:$0xff]  }
  0x3b   : > { %1055 = vmatpush1.bf16.msra.mxu0 %v5247_v4  ;;  %5120 = vmatpush3.bf16.msra.mxu1 %v5250_v5  ;;  %v1901_v4 = vand.u32 %v5307_v61, %v5509_v9  ;;  %v1907_v5 = vand.u32 %v5310_v62, %v5509_v9  ;;  %v5353_v53 = vld [vmem:[%s5503_s22 + $0x374] ss:$44 sps:$4 sm:$0xff]   ;;  %v5400_v39 = vld [vmem:[%s5503_s22 + $0x43c] ss:$44 sps:$4 sm:$0xff]  }
  0x3c   : > { %1056 = vmatprep.subr.bf16.mxu0 %v877_v8  ;;  %5121 = vmatprep.subr.bf16.mxu1 %v5458_v37  ;;  %v5313_v8 = vld [vmem:[%s5503_s22 + $0x234] ss:$44 sps:$4 sm:$0xff]  }
  0x3d   : > { %1086 = vmatprep.mubr.bf16.mxu0 %v5456_v0  ;;  %5123 = vmatprep.mubr.msk.bf16.mxu1 %vm5459_vm3, %v5458_v37  ;;  %v5789_v62 = vld [vmem:[%s6233_s1] sm:$0xff]  }
  0x3f   : > { %1057 = vmatpush1.bf16.msra.mxu0 %v874_v12  ;;  %5122 = vmatpush3.bf16.msra.mxu1 %v880_v13  ;;  %v5314_v12 = vld [vmem:[%s5503_s22 + $0x238] ss:$44 sps:$4 sm:$0xff]   ;;  %v5315_v13 = vld [vmem:[%s5503_s22 + $0x288] ss:$44 sps:$4 sm:$0x3f]  }
  0x40   : > { %1400 = vmatprep.subr.bf16.mxu0 %v5257_v10  ;;  %1443 = vmatprep.subr.bf16.mxu1 %v5260_v11  ;;  %v5317_v10 = vld [vmem:[%s5503_s22 + $0x28c] ss:$44 sps:$4 sm:$0x3f]   ;;  %v5311_v11 = vld [vmem:[%s5503_s22 + $0x230] ss:$44 sps:$4 sm:$0xff]  }
  0x41   : > { %v1913_v15 = vand.u32 %v5317_v10, %v5509_v9  ;;  %v5372_v10 = vld [vmem:[%s5503_s22 + $0x3e0] ss:$44 sps:$4 sm:$0x3f]  }
  0x42   : > { %4507 = vmatmul.mubr.msk.bf16.vlgmr.msra.gmra.mrb[20].mxu0 %vm324_vm2, %v5520_v16  ;;  %5124 = vmatmul.mubr.msk.bf16.vlgmr.msra.gmra.mrb[20].mxu1 %vm324_vm2, %v5520_v16  ;;  %v2940_v14 = vand.u32 %v5372_v10, %v5509_v9  ;;  %v5432_v10 = vld [vmem:[%s5503_s22 + $0x4ec] ss:$44 sps:$4 sm:$0xff]  }
  0x43   : > { %1401 = vmatpush1.bf16.msra.mxu0 %v5255_v17  ;;  %1444 = vmatpush1.bf16.msra.mxu1 %v5258_v19  ;;  %v5321_v17 = vld [vmem:[%s5503_s22 + $0x2c4] ss:$44 sps:$4 sm:$0xff]   ;;  %v1910_v19 = vand.u32 %v5315_v13, %v5509_v9 }
  0x44   : > { %1402 = vmatprep.subr.bf16.mxu0 %v1371_v21  ;;  %1445 = vmatprep.subr.bf16.mxu1 %v1377_v22  ;;  %v5327_v21 = vld [vmem:[%s5503_s22 + $0x31c] ss:$44 sps:$4 sm:$0x3f]   ;;  %v5330_v22 = vld [vmem:[%s5503_s22 + $0x324] ss:$44 sps:$4 sm:$0x3f]  }
  0x45   : > { %1432 = vmatprep.mubr.bf16.mxu0 %v5456_v0  ;;  %1475 = vmatprep.mubr.bf16.mxu1 %v5456_v0  ;;  %v2413_v28 = vand.u32 %v5330_v22, %v5509_v9 }
  0x47   : > { %1403 = vmatpush1.bf16.msra.mxu0 %v1368_v23  ;;  %1446 = vmatpush1.bf16.msra.mxu1 %v1374_v24  ;;  %v5319_v23 = vld [vmem:[%s5503_s22 + $0x2c0] ss:$44 sps:$4 sm:$0xff]   ;;  %v5325_v24 = vld [vmem:[%s5503_s22 + $0x318] ss:$44 sps:$4 sm:$0x3f]  }
  0x48   : > { %1486 = vmatprep.subr.bf16.mxu0 %v5269_v25  ;;  %1529 = vmatprep.subr.bf16.mxu1 %v5272_v27  ;;  %v5322_v25 = vld [vmem:[%s5503_s22 + $0x2c8] ss:$44 sps:$4 sm:$0xff]   ;;  %v2407_v27 = vand.u32 %v5327_v21, %v5509_v9  ;;  %v5382_v21 = vld [vmem:[%s5503_s22 + $0x3f0] ss:$44 sps:$4 sm:$0x3f]  }
  0x4a   : > { %4579 = vmatmul.mubr.msk.bf16.vlgmr.msra.gmra.mrb[24].mxu0 %vm324_vm2, %v5520_v16  ;;  %4580 = vmatmul.mubr.msk.bf16.vlgmr.msra.gmra.mrb[24].mxu1 %vm324_vm2, %v5520_v16 }
  0x4b   : > { %1487 = vmatpush1.bf16.msra.mxu0 %v5267_v29  ;;  %1530 = vmatpush1.bf16.msra.mxu1 %v5270_v30  ;;  %v2404_v29 = vand.u32 %v5325_v24, %v5509_v9  ;;  %v2410_v30 = vand.u32 %v5328_v26, %v5509_v9  ;;  %v2952_v24 = vand.u32 %v5382_v21, %v5509_v9  ;;  %v5388_v26 = vld [vmem:[%s5503_s22 + $0x42c] ss:$44 sps:$4 sm:$0xff]  }
  0x4c   : > { %1488 = vmatprep.subr.bf16.mxu0 %v1383_v33  ;;  %1531 = vmatprep.subr.bf16.mxu1 %v1389_v34  ;;  %v5336_v33 = vld [vmem:[%s5503_s22 + $0x2dc] ss:$44 sps:$4 sm:$0xff]   ;;  %v5342_v34 = vld [vmem:[%s5503_s22 + $0x334] ss:$44 sps:$4 sm:$0x3f]  }
  0x4d   : > { %1518 = vmatprep.mubr.bf16.mxu0 %v5456_v0  ;;  %1561 = vmatprep.mubr.bf16.mxu1 %v5456_v0  ;;  %v2425_v41 = vand.u32 %v5342_v34, %v5509_v9 }
  0x4f   : > { %1489 = vmatpush1.bf16.msra.mxu0 %v1380_v35  ;;  %1532 = vmatpush1.bf16.msra.mxu1 %v1386_v36  ;;  %v5331_v35 = vld [vmem:[%s5503_s22 + $0x2d0] ss:$44 sps:$4 sm:$0xff]   ;;  %v5334_v36 = vld [vmem:[%s5503_s22 + $0x2d8] ss:$44 sps:$4 sm:$0xff]  }
  0x50   : > { %1572 = vmatprep.subr.bf16.mxu0 %v5281_v38  ;;  %5127 = vmatprep.subr.bf16.mxu1 %v5458_v37  ;;  %v5337_v38 = vld [vmem:[%s5503_s22 + $0x328] ss:$44 sps:$4 sm:$0x3f]  }
  0x52   : > { %4581 = vmatmul.mubr.msk.bf16.vlgmr.msra.gmra.mrb[28].mxu0 %vm324_vm2, %v5520_v16  ;;  %4582 = vmatmul.mubr.msk.bf16.vlgmr.msra.gmra.mrb[28].mxu1 %vm324_vm2, %v5520_v16 }
  0x53   : > { %1573 = vmatpush1.bf16.msra.mxu0 %v5279_v40  ;;  %5128 = vmatpush3.bf16.msra.mxu1 %v5282_v42  ;;  %v2419_v40 = vand.u32 %v5339_v32, %v5509_v9  ;;  %v2416_v42 = vand.u32 %v5337_v38, %v5509_v9  ;;  %v5392_v32 = vld [vmem:[%s5503_s22 + $0x480] ss:$44 sps:$4 sm:$0x3f]  }
  0x54   : > { %1574 = vmatprep.subr.bf16.mxu0 %v1395_v44  ;;  %5129 = vmatprep.subr.bf16.mxu1 %v5458_v37  ;;  %v5345_v44 = vld [vmem:[%s5503_s22 + $0x2e4] ss:$44 sps:$4 sm:$0xff]   ;;  %v5397_v38 = vld [vmem:[%s5503_s22 + $0x434] ss:$44 sps:$4 sm:$0xff]  }
  0x55   : > { %1604 = vmatprep.mubr.bf16.mxu0 %v5456_v0  ;;  %5131 = vmatprep.mubr.msk.bf16.mxu1 %vm5459_vm3, %v5458_v37 }
  0x57   : > { %1575 = vmatpush1.bf16.msra.mxu0 %v1392_v45  ;;  %5130 = vmatpush3.bf16.msra.mxu1 %v1398_v46  ;;  %v5349_v45 = vld [vmem:[%s5503_s22 + $0x33c] ss:$44 sps:$4 sm:$0x3f]   ;;  %v5343_v46 = vld [vmem:[%s5503_s22 + $0x2e0] ss:$44 sps:$4 sm:$0xff]  }
  0x58   : > { %1918 = vmatprep.subr.bf16.mxu0 %v5289_v47  ;;  %1961 = vmatprep.subr.bf16.mxu1 %v5292_v49  ;;  %v5347_v47 = vld [vmem:[%s5503_s22 + $0x338] ss:$44 sps:$4 sm:$0x3f]   ;;  %v5350_v49 = vld [vmem:[%s5503_s22 + $0x340] ss:$44 sps:$4 sm:$0x3f]   ;;  %v2431_v50 = vand.u32 %v5349_v45, %v5509_v9 }
  0x59   : > { %v5404_v45 = vld [vmem:[%s5503_s22 + $0x490] ss:$44 sps:$4 sm:$0x3f]  }
  0x5a   : > { %4583 = vmatmul.mubr.msk.bf16.vlgmr.msra.gmra.mrb[32].mxu0 %vm324_vm2, %v5520_v16  ;;  %5132 = vmatmul.mubr.msk.bf16.vlgmr.msra.gmra.mrb[32].mxu1 %vm324_vm2, %v5520_v16 }
  0x5b   : > { %1919 = vmatpush1.bf16.msra.mxu0 %v5287_v51  ;;  %1962 = vmatpush1.bf16.msra.mxu1 %v5290_v52  ;;  %v2428_v51 = vand.u32 %v5347_v47, %v5509_v9  ;;  %v2434_v52 = vand.u32 %v5350_v49, %v5509_v9  ;;  %v3458_v49 = vand.u32 %v5404_v45, %v5509_v9 }
  0x5c   : > { %1920 = vmatprep.subr.bf16.mxu0 %v1889_v55  ;;  %1963 = vmatprep.subr.bf16.mxu1 %v1895_v56  ;;  %v5356_v55 = vld [vmem:[%s5503_s22 + $0x37c] ss:$44 sps:$4 sm:$0xff]   ;;  %v5362_v56 = vld [vmem:[%s5503_s22 + $0x3d4] ss:$44 sps:$4 sm:$0x3f]  }
  0x5d   : > { %1950 = vmatprep.mubr.bf16.mxu0 %v5456_v0  ;;  %1993 = vmatprep.mubr.bf16.mxu1 %v5456_v0  ;;  %v2931_v61 = vand.u32 %v5362_v56, %v5509_v9 }
  0x5f   : > { %1921 = vmatpush1.bf16.msra.mxu0 %v1886_v59  ;;  %1964 = vmatpush1.bf16.msra.mxu1 %v1892_v60  ;;  %v5360_v59 = vld [vmem:[%s5503_s22 + $0x3d0] ss:$44 sps:$4 sm:$0x3f]   ;;  %v2925_v60 = vand.u32 %v5359_v54, %v5509_v9  ;;  %v5411_v54 = vld [vmem:[%s5503_s22 + $0x498] ss:$44 sps:$4 sm:$0x3f]  }
  0x60   : > { %2004 = vmatprep.subr.bf16.mxu0 %v5301_v57  ;;  %2047 = vmatprep.subr.bf16.mxu1 %v5304_v58  ;;  %v5354_v57 = vld [vmem:[%s5503_s22 + $0x378] ss:$44 sps:$4 sm:$0xff]   ;;  %v5357_v58 = vld [vmem:[%s5503_s22 + $0x3c8] ss:$44 sps:$4 sm:$0x3f]   ;;  %v2928_v3 = vand.u32 %v5360_v59, %v5509_v9 }
  0x61   : > { %v5420_v59 = vld [vmem:[%s5503_s22 + $0x4dc] ss:$44 sps:$4 sm:$0xff]  }
  0x62   : > { %4655 = vmatmul.mubr.msk.bf16.vlgmr.msra.gmra.mrb[36].mxu0 %vm324_vm2, %v5520_v16  ;;  %4656 = vmatmul.mubr.msk.bf16.vlgmr.msra.gmra.mrb[36].mxu1 %vm324_vm2, %v5520_v16 }
  0x63   : > { %2005 = vmatpush1.bf16.msra.mxu0 %v5299_v63  ;;  %2048 = vmatpush1.bf16.msra.mxu1 %v5302_v2  ;;  %v5365_v63 = vld [vmem:[%s5503_s22 + $0x384] ss:$44 sps:$4 sm:$0xff]   ;;  %v2922_v2 = vand.u32 %v5357_v58, %v5509_v9  ;;  %v5417_v58 = vld [vmem:[%s5503_s22 + $0x4d4] ss:$44 sps:$4 sm:$0xff]  }
  0x64   : > { %2006 = vmatprep.subr.bf16.mxu0 %v1901_v4  ;;  %2049 = vmatprep.subr.bf16.mxu1 %v1907_v5  ;;  %v5371_v4 = vld [vmem:[%s5503_s22 + $0x3dc] ss:$44 sps:$4 sm:$0x3f]   ;;  %v5374_v5 = vld [vmem:[%s5503_s22 + $0x3e4] ss:$44 sps:$4 sm:$0x3f]  }
  0x65   : > { %2036 = vmatprep.mubr.bf16.mxu0 %v5456_v0  ;;  %2079 = vmatprep.mubr.bf16.mxu1 %v5456_v0 }
  0x67   : > { %2007 = vmatpush1.bf16.msra.mxu0 %v1898_v6  ;;  %2050 = vmatpush1.bf16.msra.mxu1 %v1904_v7  ;;  %v5363_v6 = vld [vmem:[%s5503_s22 + $0x380] ss:$44 sps:$4 sm:$0xff]   ;;  %v5366_v7 = vld [vmem:[%s5503_s22 + $0x388] ss:$44 sps:$4 sm:$0xff]  }
  0x68   : > { %2090 = vmatprep.subr.bf16.mxu0 %v5313_v8  ;;  %5135 = vmatprep.subr.bf16.mxu1 %v5458_v37  ;;  %v5369_v8 = vld [vmem:[%s5503_s22 + $0x3d8] ss:$44 sps:$4 sm:$0x3f]  }
  0x69   : > { %v2934_v13 = vand.u32 %v5369_v8, %v5509_v9  ;;  %v5429_v8 = vld [vmem:[%s5503_s22 + $0x4e4] ss:$44 sps:$4 sm:$0xff]  }
  0x6a   : > { %4657 = vmatmul.mubr.msk.bf16.vlgmr.msra.gmra.mrb[40].mxu0 %vm324_vm2, %v5520_v16  ;;  %4658 = vmatmul.mubr.msk.bf16.vlgmr.msra.gmra.mrb[40].mxu1 %vm324_vm2, %v5520_v16 }
  0x6b   : > { %2091 = vmatpush1.bf16.msra.mxu0 %v5311_v11  ;;  %5136 = vmatpush3.bf16.msra.mxu1 %v5314_v12  ;;  %v2937_v11 = vand.u32 %v5371_v4, %v5509_v9  ;;  %v2943_v12 = vand.u32 %v5374_v5, %v5509_v9 }
  0x6c   : > { %2092 = vmatprep.subr.bf16.mxu0 %v1913_v15  ;;  %5137 = vmatprep.subr.bf16.mxu1 %v5458_v37  ;;  %v5377_v15 = vld [vmem:[%s5503_s22 + $0x394] ss:$44 sps:$4 sm:$0xff]  }
  0x6d   : > { %2122 = vmatprep.mubr.bf16.mxu0 %v5456_v0  ;;  %5139 = vmatprep.mubr.msk.bf16.mxu1 %vm5459_vm3, %v5458_v37 }
  0x6f   : > { %2093 = vmatpush1.bf16.msra.mxu0 %v1910_v19  ;;  %5138 = vmatpush3.bf16.msra.mxu1 %v1916_v20  ;;  %v5378_v19 = vld [vmem:[%s5503_s22 + $0x398] ss:$44 sps:$4 sm:$0xff]   ;;  %v5379_v20 = vld [vmem:[%s5503_s22 + $0x3e8] ss:$44 sps:$4 sm:$0x3f]  }
  0x70   : > { %2436 = vmatprep.subr.bf16.mxu0 %v5321_v17  ;;  %2479 = vmatprep.subr.bf16.mxu1 %v5324_v18  ;;  %v5381_v17 = vld [vmem:[%s5503_s22 + $0x3ec] ss:$44 sps:$4 sm:$0x3f]   ;;  %v5375_v18 = vld [vmem:[%s5503_s22 + $0x390] ss:$44 sps:$4 sm:$0xff]  }
  0x71   : > { %v2949_v22 = vand.u32 %v5381_v17, %v5509_v9  ;;  %v5436_v17 = vld [vmem:[%s5503_s22 + $0x540] ss:$44 sps:$4 sm:$0x3f]  }
  0x72   : > { %4659 = vmatmul.mubr.msk.bf16.vlgmr.msra.gmra.mrb[44].mxu0 %vm324_vm2, %v5520_v16  ;;  %5140 = vmatmul.mubr.msk.bf16.vlgmr.msra.gmra.mrb[44].mxu1 %vm324_vm2, %v5520_v16  ;;  %v3976_v21 = vand.u32 %v5436_v17, %v5509_v9 }
  0x73   : > { %2437 = vmatpush1.bf16.msra.mxu0 %v5319_v23  ;;  %2480 = vmatpush1.bf16.msra.mxu1 %v5322_v25  ;;  %v2946_v23 = vand.u32 %v5379_v20, %v5509_v9  ;;  %v5385_v25 = vld [vmem:[%s5503_s22 + $0x424] ss:$44 sps:$4 sm:$0xff]  }
  0x74   : > { %2438 = vmatprep.subr.bf16.mxu0 %v2407_v27  ;;  %2481 = vmatprep.subr.bf16.mxu1 %v2413_v28  ;;  %v5391_v27 = vld [vmem:[%s5503_s22 + $0x47c] ss:$44 sps:$4 sm:$0x3f]   ;;  %v5394_v28 = vld [vmem:[%s5503_s22 + $0x484] ss:$44 sps:$4 sm:$0x3f]  }
  0x75   : > { %2468 = vmatprep.mubr.bf16.mxu0 %v5456_v0  ;;  %2511 = vmatprep.mubr.bf16.mxu1 %v5456_v0  ;;  %v3449_v34 = vand.u32 %v5394_v28, %v5509_v9 }
  0x77   : > { %2439 = vmatpush1.bf16.msra.mxu0 %v2404_v29  ;;  %2482 = vmatpush1.bf16.msra.mxu1 %v2410_v30  ;;  %v5383_v29 = vld [vmem:[%s5503_s22 + $0x420] ss:$44 sps:$4 sm:$0xff]   ;;  %v5386_v30 = vld [vmem:[%s5503_s22 + $0x428] ss:$44 sps:$4 sm:$0xff]  }
  0x78   : > { %2522 = vmatprep.subr.bf16.mxu0 %v5333_v31  ;;  %2565 = vmatprep.subr.bf16.mxu1 %v5336_v33  ;;  %v5389_v31 = vld [vmem:[%s5503_s22 + $0x478] ss:$44 sps:$4 sm:$0x3f]   ;;  %v3443_v33 = vand.u32 %v5391_v27, %v5509_v9  ;;  %v5446_v27 = vld [vmem:[%s5503_s22 + $0x550] ss:$44 sps:$4 sm:$0x3f]  }
  0x7a   : > { %4731 = vmatmul.mubr.msk.bf16.vlgmr.msra.gmra.mrb[48].mxu0 %vm324_vm2, %v5520_v16  ;;  %4732 = vmatmul.mubr.msk.bf16.vlgmr.msra.gmra.mrb[48].mxu1 %vm324_vm2, %v5520_v16 }
  0x7b   : > { %2523 = vmatpush1.bf16.msra.mxu0 %v5331_v35  ;;  %2566 = vmatpush1.bf16.msra.mxu1 %v5334_v36  ;;  %v3440_v35 = vand.u32 %v5389_v31, %v5509_v9  ;;  %v3446_v36 = vand.u32 %v5392_v32, %v5509_v9 }
  0x7c   : > { %2524 = vmatprep.subr.bf16.mxu0 %v2419_v40  ;;  %2567 = vmatprep.subr.bf16.mxu1 %v2425_v41  ;;  %v5403_v40 = vld [vmem:[%s5503_s22 + $0x48c] ss:$44 sps:$4 sm:$0x3f]   ;;  %v5406_v41 = vld [vmem:[%s5503_s22 + $0x494] ss:$44 sps:$4 sm:$0x3f]  }
  0x7d   : > { %2554 = vmatprep.mubr.bf16.mxu0 %v5456_v0  ;;  %2597 = vmatprep.mubr.bf16.mxu1 %v5456_v0  ;;  %v3461_v47 = vand.u32 %v5406_v41, %v5509_v9 }
  0x7f   : > { %2525 = vmatpush1.bf16.msra.mxu0 %v2416_v42  ;;  %2568 = vmatpush1.bf16.msra.mxu1 %v2422_v43  ;;  %v5395_v42 = vld [vmem:[%s5503_s22 + $0x430] ss:$44 sps:$4 sm:$0xff]   ;;  %v5398_v43 = vld [vmem:[%s5503_s22 + $0x438] ss:$44 sps:$4 sm:$0xff]  }
  0x80   : > { %2608 = vmatprep.subr.bf16.mxu0 %v5345_v44  ;;  %5143 = vmatprep.subr.bf16.mxu1 %v5458_v37  ;;  %v5401_v44 = vld [vmem:[%s5503_s22 + $0x488] ss:$44 sps:$4 sm:$0x3f]  }
  0x82   : > { %4733 = vmatmul.mubr.msk.bf16.vlgmr.msra.gmra.mrb[52].mxu0 %vm324_vm2, %v5520_v16  ;;  %4734 = vmatmul.mubr.msk.bf16.vlgmr.msra.gmra.mrb[52].mxu1 %vm324_vm2, %v5520_v16  ;;  %v5351_v16 = vld [vmem:[%s5503_s22 + $0x370] ss:$44 sps:$4 sm:$0xff]  }
  0x83   : > { %2609 = vmatpush1.bf16.msra.mxu0 %v5343_v46  ;;  %5144 = vmatpush3.bf16.msra.mxu1 %v5346_v48  ;;  %v3455_v46 = vand.u32 %v5403_v40, %v5509_v9  ;;  %v3452_v48 = vand.u32 %v5401_v44, %v5509_v9 }
  0x84   : > { %2610 = vmatprep.subr.bf16.mxu0 %v2431_v50  ;;  %5145 = vmatprep.subr.bf16.mxu1 %v5458_v37  ;;  %v5409_v50 = vld [vmem:[%s5503_s22 + $0x444] ss:$44 sps:$4 sm:$0xff]  }
  0x85   : > { %2640 = vmatprep.mubr.bf16.mxu0 %v5456_v0  ;;  %5147 = vmatprep.mubr.msk.bf16.mxu1 %vm5459_vm3, %v5458_v37 }
  0x87   : > { %2611 = vmatpush1.bf16.msra.mxu0 %v2428_v51  ;;  %5146 = vmatpush3.bf16.msra.mxu1 %v2434_v52  ;;  %v5413_v51 = vld [vmem:[%s5503_s22 + $0x49c] ss:$44 sps:$4 sm:$0x3f]   ;;  %v5407_v52 = vld [vmem:[%s5503_s22 + $0x440] ss:$44 sps:$4 sm:$0xff]   ;;  %v5947_v31 = vpop.permute.xlu0 %210 }
  0x88   : > { %2954 = vmatprep.subr.bf16.mxu0 %v5353_v53  ;;  %2997 = vmatprep.subr.bf16.mxu1 %v5356_v55  ;;  %v5410_v53 = vld [vmem:[%s5503_s22 + $0x448] ss:$44 sps:$4 sm:$0xff]   ;;  %v5414_v55 = vld [vmem:[%s5503_s22 + $0x4a0] ss:$44 sps:$4 sm:$0x3f]   ;;  %v3467_v56 = vand.u32 %v5413_v51, %v5509_v9 }
  0x8a   : > { %4735 = vmatmul.mubr.msk.bf16.vlgmr.msra.gmra.mrb[56].mxu0 %vm324_vm2, %v5789_v62  ;;  %5148 = vmatmul.mubr.msk.bf16.vlgmr.msra.gmra.mrb[56].mxu1 %vm324_vm2, %v5789_v62 }
  0x8b   : > { %2955 = vmatpush1.bf16.msra.mxu0 %v5351_v16  ;;  %2998 = vmatpush1.bf16.msra.mxu1 %v5354_v57  ;;  %v3464_v16 = vand.u32 %v5411_v54, %v5509_v9  ;;  %v3470_v57 = vand.u32 %v5414_v55, %v5509_v9  ;;  %v5949_v32 = vpop.permute.xlu0 %215 }
  0x8c   : > { %2956 = vmatprep.subr.bf16.mxu0 %v2925_v60  ;;  %2999 = vmatprep.subr.bf16.mxu1 %v2931_v61  ;;  %v5423_v60 = vld [vmem:[%s5503_s22 + $0x52c] ss:$44 sps:$4 sm:$0x3f]   ;;  %v5426_v61 = vld [vmem:[%s5503_s22 + $0x534] ss:$44 sps:$4 sm:$0x3f]  }
  0x8d   : > { %2986 = vmatprep.mubr.bf16.mxu0 %v5456_v0  ;;  %3029 = vmatprep.mubr.bf16.mxu1 %v5456_v0  ;;  %v3961_v4 = vand.u32 %v5423_v60, %v5509_v9  ;;  %v3967_v5 = vand.u32 %v5426_v61, %v5509_v9 }
  0x8f   : > { %2957 = vmatpush1.bf16.msra.mxu0 %v2922_v2  ;;  %3000 = vmatpush1.bf16.msra.mxu1 %v2928_v3  ;;  %v5421_v2 = vld [vmem:[%s5503_s22 + $0x528] ss:$44 sps:$4 sm:$0x3f]   ;;  %v5424_v3 = vld [vmem:[%s5503_s22 + $0x530] ss:$44 sps:$4 sm:$0x3f]  }
  0x90   : > { %3040 = vmatprep.subr.bf16.mxu0 %v5365_v63  ;;  %3083 = vmatprep.subr.bf16.mxu1 %v5368_v1  ;;  %v5415_v63 = vld [vmem:[%s5503_s22 + $0x4d0] ss:$44 sps:$4 sm:$0xff]   ;;  %v5418_v1 = vld [vmem:[%s5503_s22 + $0x4d8] ss:$44 sps:$4 sm:$0xff]  }
  0x92   : > { %4807 = vmatmul.mubr.msk.bf16.vlgmr.msra.gmra.mrb[60].mxu0 %vm324_vm2, %v5789_v62  ;;  %4808 = vmatmul.mubr.msk.bf16.vlgmr.msra.gmra.mrb[60].mxu1 %vm324_vm2, %v5789_v62 }
  0x93   : > { %3041 = vmatpush1.bf16.msra.mxu0 %v5363_v6  ;;  %3084 = vmatpush1.bf16.msra.mxu1 %v5366_v7  ;;  %v3958_v6 = vand.u32 %v5421_v2, %v5509_v9  ;;  %v3964_v7 = vand.u32 %v5424_v3, %v5509_v9 }
  0x94   : > { %3042 = vmatprep.subr.bf16.mxu0 %v2937_v11  ;;  %3085 = vmatprep.subr.bf16.mxu1 %v2943_v12  ;;  %v5435_v11 = vld [vmem:[%s5503_s22 + $0x53c] ss:$44 sps:$4 sm:$0x3f]   ;;  %v5438_v12 = vld [vmem:[%s5503_s22 + $0x544] ss:$44 sps:$4 sm:$0x3f]  }
  0x95   : > { %3072 = vmatprep.mubr.bf16.mxu0 %v5456_v0  ;;  %3115 = vmatprep.mubr.bf16.mxu1 %v5456_v0 }
  0x97   : > { %3043 = vmatpush1.bf16.msra.mxu0 %v2934_v13  ;;  %3086 = vmatpush1.bf16.msra.mxu1 %v2940_v14  ;;  %v5427_v13 = vld [vmem:[%s5503_s22 + $0x4e0] ss:$44 sps:$4 sm:$0xff]   ;;  %v5430_v14 = vld [vmem:[%s5503_s22 + $0x4e8] ss:$44 sps:$4 sm:$0xff]  }
  0x98   : > { %3126 = vmatprep.subr.bf16.mxu0 %v5377_v15  ;;  %5151 = vmatprep.subr.bf16.mxu1 %v5458_v37  ;;  %v5433_v15 = vld [vmem:[%s5503_s22 + $0x538] ss:$44 sps:$4 sm:$0x3f]  }
  0x99   : > { %v3970_v20 = vand.u32 %v5433_v15, %v5509_v9 }
  0x9a   : > { %4809 = vmatmul.mubr.msk.bf16.vlgmr.msra.gmra.mrb[64].mxu0 %vm324_vm2, %v5789_v62  ;;  %4810 = vmatmul.mubr.msk.bf16.vlgmr.msra.gmra.mrb[64].mxu1 %vm324_vm2, %v5789_v62 }
  0x9b   : > { %3127 = vmatpush1.bf16.msra.mxu0 %v5375_v18  ;;  %5152 = vmatpush3.bf16.msra.mxu1 %v5378_v19  ;;  %v3973_v18 = vand.u32 %v5435_v11, %v5509_v9  ;;  %v3979_v19 = vand.u32 %v5438_v12, %v5509_v9 }
  0x9c   : > { %3128 = vmatprep.subr.bf16.mxu0 %v2949_v22  ;;  %5153 = vmatprep.subr.bf16.mxu1 %v5458_v37  ;;  %v5441_v22 = vld [vmem:[%s5503_s22 + $0x4f4] ss:$44 sps:$4 sm:$0xff]  }
  0x9d   : > { %3158 = vmatprep.mubr.bf16.mxu0 %v5456_v0  ;;  %5155 = vmatprep.mubr.msk.bf16.mxu1 %vm5459_vm3, %v5458_v37 }
  0x9f   : > { %3129 = vmatpush1.bf16.msra.mxu0 %v2946_v23  ;;  %5154 = vmatpush3.bf16.msra.mxu1 %v2952_v24  ;;  %v5445_v23 = vld [vmem:[%s5503_s22 + $0x54c] ss:$44 sps:$4 sm:$0x3f]   ;;  %v5439_v24 = vld [vmem:[%s5503_s22 + $0x4f0] ss:$44 sps:$4 sm:$0xff]  }
  0xa0   : > { %3472 = vmatprep.subr.bf16.mxu0 %v5385_v25  ;;  %3515 = vmatprep.subr.bf16.mxu1 %v5388_v26  ;;  %v5442_v25 = vld [vmem:[%s5503_s22 + $0x4f8] ss:$44 sps:$4 sm:$0xff]   ;;  %v5443_v26 = vld [vmem:[%s5503_s22 + $0x548] ss:$44 sps:$4 sm:$0x3f]   ;;  %v3985_v28 = vand.u32 %v5445_v23, %v5509_v9 }
  0xa2   : > { %4811 = vmatmul.mubr.msk.bf16.vlgmr.msra.gmra.mrb[68].mxu0 %vm324_vm2, %v5789_v62  ;;  %5156 = vmatmul.mubr.msk.bf16.vlgmr.msra.gmra.mrb[68].mxu1 %vm324_vm2, %v5789_v62 }
  0xa3   : > { %3473 = vmatpush1.bf16.msra.mxu0 %v5383_v29  ;;  %3516 = vmatpush1.bf16.msra.mxu1 %v5386_v30  ;;  %v3982_v29 = vand.u32 %v5443_v26, %v5509_v9  ;;  %v3988_v30 = vand.u32 %v5446_v27, %v5509_v9 }
  0xa4   : > { %3474 = vmatprep.subr.bf16.mxu0 %v3443_v33  ;;  %3517 = vmatprep.subr.bf16.mxu1 %v3449_v34 }
  0xa5   : > { %3504 = vmatprep.mubr.bf16.mxu0 %v5456_v0  ;;  %3547 = vmatprep.mubr.bf16.mxu1 %v5456_v0 }
  0xa7   : > { %3475 = vmatpush1.bf16.msra.mxu0 %v3440_v35  ;;  %3518 = vmatpush1.bf16.msra.mxu1 %v3446_v36 }
  0xa8   : > { %3558 = vmatprep.subr.bf16.mxu0 %v5397_v38  ;;  %3601 = vmatprep.subr.bf16.mxu1 %v5400_v39 }
  0xaa   : > { %4883 = vmatmul.mubr.msk.bf16.vlgmr.msra.gmra.mrb[72].mxu0 %vm324_vm2, %v5789_v62  ;;  %4884 = vmatmul.mubr.msk.bf16.vlgmr.msra.gmra.mrb[72].mxu1 %vm324_vm2, %v5789_v62 }
  0xab   : > { %3559 = vmatpush1.bf16.msra.mxu0 %v5395_v42  ;;  %3602 = vmatpush1.bf16.msra.mxu1 %v5398_v43 }
  0xac   : > { %3560 = vmatprep.subr.bf16.mxu0 %v3455_v46  ;;  %3603 = vmatprep.subr.bf16.mxu1 %v3461_v47 }
  0xad   : > { %3590 = vmatprep.mubr.bf16.mxu0 %v5456_v0  ;;  %3633 = vmatprep.mubr.bf16.mxu1 %v5456_v0 }
  0xaf   : > { %3561 = vmatpush1.bf16.msra.mxu0 %v3452_v48  ;;  %3604 = vmatpush1.bf16.msra.mxu1 %v3458_v49 }
  0xb0   : > { %3644 = vmatprep.subr.bf16.mxu0 %v5409_v50  ;;  %5159 = vmatprep.subr.bf16.mxu1 %v5458_v37 }
  0xb2   : > { %4885 = vmatmul.mubr.msk.bf16.vlgmr.msra.gmra.mrb[76].mxu0 %vm324_vm2, %v5789_v62  ;;  %4886 = vmatmul.mubr.msk.bf16.vlgmr.msra.gmra.mrb[76].mxu1 %vm324_vm2, %v5789_v62 }
  0xb3   : > { %3645 = vmatpush1.bf16.msra.mxu0 %v5407_v52  ;;  %5160 = vmatpush3.bf16.msra.mxu1 %v5410_v53 }
  0xb4   : > { %3646 = vmatprep.subr.bf16.mxu0 %v3467_v56  ;;  %5161 = vmatprep.subr.bf16.mxu1 %v5458_v37 }
  0xb5   : > { %3676 = vmatprep.mubr.bf16.mxu0 %v5456_v0  ;;  %5163 = vmatprep.mubr.msk.bf16.mxu1 %vm5459_vm3, %v5458_v37 }
  0xb7   : > { %3647 = vmatpush1.bf16.msra.mxu0 %v3464_v16  ;;  %5162 = vmatpush3.bf16.msra.mxu1 %v3470_v57 }
  0xb8   : > { %3990 = vmatprep.subr.bf16.mxu0 %v5417_v58  ;;  %4033 = vmatprep.subr.bf16.mxu1 %v5420_v59 }
  0xba   : > { %4887 = vmatmul.mubr.msk.bf16.vlgmr.msra.gmra.mrb[80].mxu0 %vm324_vm2, %v5789_v62  ;;  %5164 = vmatmul.mubr.msk.bf16.vlgmr.msra.gmra.mrb[80].mxu1 %vm324_vm2, %v5789_v62 }
  0xbb   : > { %3991 = vmatpush1.bf16.msra.mxu0 %v5415_v63  ;;  %4034 = vmatpush1.bf16.msra.mxu1 %v5418_v1 }
  0xbc   : > { %3992 = vmatprep.subr.bf16.mxu0 %v3961_v4  ;;  %4035 = vmatprep.subr.bf16.mxu1 %v3967_v5 }
  0xbd   : > { %4022 = vmatprep.mubr.bf16.mxu0 %v5456_v0  ;;  %4065 = vmatprep.mubr.bf16.mxu1 %v5456_v0 }
  0xbf   : > { %3993 = vmatpush1.bf16.msra.mxu0 %v3958_v6  ;;  %4036 = vmatpush1.bf16.msra.mxu1 %v3964_v7 }
  0xc0   : > { %4076 = vmatprep.subr.bf16.mxu0 %v5429_v8  ;;  %4119 = vmatprep.subr.bf16.mxu1 %v5432_v10 }
  0xc2   : > { %4959 = vmatmul.mubr.msk.bf16.vlgmr.msra.gmra.mrb[84].mxu0 %vm324_vm2, %v5789_v62  ;;  %4960 = vmatmul.mubr.msk.bf16.vlgmr.msra.gmra.mrb[84].mxu1 %vm324_vm2, %v5789_v62 }
  0xc3   : > { %4077 = vmatpush1.bf16.msra.mxu0 %v5427_v13  ;;  %4120 = vmatpush1.bf16.msra.mxu1 %v5430_v14 }
  0xc4   : > { %4078 = vmatprep.subr.bf16.mxu0 %v3973_v18  ;;  %4121 = vmatprep.subr.bf16.mxu1 %v3979_v19 }
  0xc5   : > { %4108 = vmatprep.mubr.bf16.mxu0 %v5456_v0  ;;  %4151 = vmatprep.mubr.bf16.mxu1 %v5456_v0 }
  0xc7   : > { %4079 = vmatpush1.bf16.msra.mxu0 %v3970_v20  ;;  %4122 = vmatpush1.bf16.msra.mxu1 %v3976_v21 }
  0xc8   : > { %4162 = vmatprep.subr.bf16.mxu0 %v5441_v22  ;;  %5167 = vmatprep.subr.bf16.mxu1 %v5458_v37 }
  0xca   : > { %4961 = vmatmul.mubr.msk.bf16.vlgmr.msra.gmra.mrb[88].mxu0 %vm324_vm2, %v5789_v62  ;;  %4962 = vmatmul.mubr.msk.bf16.vlgmr.msra.gmra.mrb[88].mxu1 %vm324_vm2, %v5789_v62 }
  0xcb   : > { %4163 = vmatpush1.bf16.msra.mxu0 %v5439_v24  ;;  %5168 = vmatpush3.bf16.msra.mxu1 %v5442_v25 }
  0xcc   : > { %4164 = vmatprep.subr.bf16.mxu0 %v3985_v28  ;;  %5169 = vmatprep.subr.bf16.mxu1 %v5458_v37 }
  0xcd   : > { %4194 = vmatprep.mubr.bf16.mxu0 %v5456_v0  ;;  %5171 = vmatprep.mubr.msk.bf16.mxu1 %vm5459_vm3, %v5458_v37 }
  0xcf   : > { %4165 = vmatpush1.bf16.msra.mxu0 %v3982_v29  ;;  %5170 = vmatpush3.bf16.msra.mxu1 %v3988_v30 }
  0xd2   : > { %4963 = vmatmul.mubr.msk.bf16.vlgmr.msra.gmra.mrb[92].mxu0 %vm324_vm2, %v5789_v62  ;;  %5172 = vmatmul.mubr.msk.bf16.vlgmr.msra.gmra.mrb[92].mxu1 %vm324_vm2, %v5789_v62 }
  0xed   : > { %v399_v9 = vpop.f32.mrb[0].mxu0  ;;  %v442_v33 = vpop.f32.mrb[0].mxu1 }
  0xee   : > { %v400_v34 = vadd.f32 %v399_v9, %v5947_v31  ;;  %v443_v0 = vadd.f32 %v442_v33, %v5947_v31  ;;  %v401_v37 = vpop.f32.mrb[1].mxu0  ;;  %v444_v35 = vpop.f32.mrb[1].mxu1 }
  0xef   : > { %v402_v36 = vadd.f32 %v401_v37, %v5947_v31  ;;  %v445_v38 = vadd.f32 %v444_v35, %v5947_v31  ;;  %v403_v39 = vpop.f32.mrb[2].mxu0  ;;  %v446_v40 = vpop.f32.mrb[2].mxu1 }
  0xf0   : > { %v621_v62 = vmax.f32 %v400_v34, 0.0  ;;  %v623_v41 = vmax.f32 %v443_v0, 0.0  ;;  %v404_v42 = vadd.f32 %v403_v39, %v5949_v32  ;;  %v447_v43 = vadd.f32 %v446_v40, %v5949_v32  ;;  %v405_v44 = vpop.f32.mrb[3].mxu0  ;;  %v448_v45 = vpop.f32.mrb[3].mxu1 }
  0xf1   : > { %v622_v46 = vmax.f32 %v402_v36, 0.0  ;;  %v624_v47 = vmax.f32 %v445_v38, 0.0  ;;  %v406_v48 = vadd.f32 %v405_v44, %v5949_v32  ;;  %v449_v49 = vadd.f32 %v448_v45, %v5949_v32 }
  0xf2   : > { %v632_v50 = vmax.f32 %v404_v42, 0.0  ;;  %v634_v51 = vmax.f32 %v447_v43, 0.0 }
  0xf3   : > { %v4991_v52 = vpack.c.bf16 %v622_v46, %v621_v62  ;;  %v4992_v53 = vpack.c.bf16 %v624_v47, %v623_v41  ;;  %v633_v54 = vmax.f32 %v406_v48, 0.0  ;;  %v635_v55 = vmax.f32 %v449_v49, 0.0 }
  0xf5   : > { %711 = vst [vmem:[%s5963_s30] sm:$0xff] %v4991_v52  ;;  %712 = vst [vmem:[%s5963_s30 + $0x8] sm:$0xff] %v4992_v53  ;;  %v4997_v56 = vpack.c.bf16 %v633_v54, %v632_v50  ;;  %v4998_v16 = vpack.c.bf16 %v635_v55, %v634_v51  ;;  %v485_v57 = vpop.f32.mrb[4].mxu0  ;;  %v528_v58 = vpop.f32.mrb[4].mxu1 }
  0xf6   : > { %v486_v59 = vadd.f32 %v485_v57, %v5947_v31  ;;  %v529_v60 = vadd.f32 %v528_v58, %v5947_v31  ;;  %v487_v61 = vpop.f32.mrb[5].mxu0  ;;  %v530_v63 = vpop.f32.mrb[5].mxu1 }
  0xf7   : > { %717 = vst [vmem:[%s5963_s30 + $0x2c] sm:$0xff] %v4997_v56  ;;  %718 = vst [vmem:[%s5963_s30 + $0x34] sm:$0xff] %v4998_v16  ;;  %v488_v1 = vadd.f32 %v487_v61, %v5947_v31  ;;  %v531_v2 = vadd.f32 %v530_v63, %v5947_v31  ;;  %v489_v3 = vpop.f32.mrb[6].mxu0  ;;  %v532_v4 = vpop.f32.mrb[6].mxu1 }
  0xf8   : > { %v625_v5 = vmax.f32 %v486_v59, 0.0  ;;  %v627_v6 = vmax.f32 %v529_v60, 0.0  ;;  %v490_v7 = vadd.f32 %v489_v3, %v5949_v32  ;;  %v533_v8 = vadd.f32 %v532_v4, %v5949_v32  ;;  %v491_v10 = vpop.f32.mrb[7].mxu0  ;;  %v534_v11 = vpop.f32.mrb[7].mxu1 }
  0xf9   : > { %v626_v12 = vmax.f32 %v488_v1, 0.0  ;;  %v628_v13 = vmax.f32 %v531_v2, 0.0  ;;  %v492_v14 = vadd.f32 %v491_v10, %v5949_v32  ;;  %v535_v15 = vadd.f32 %v534_v11, %v5949_v32 }
  0xfa   : > { %v636_v17 = vmax.f32 %v490_v7, 0.0  ;;  %v638_v18 = vmax.f32 %v533_v8, 0.0 }
  0xfb   : > { %v4993_v19 = vpack.c.bf16 %v626_v12, %v625_v5  ;;  %v4994_v20 = vpack.c.bf16 %v628_v13, %v627_v6  ;;  %v637_v21 = vmax.f32 %v492_v14, 0.0  ;;  %v639_v22 = vmax.f32 %v535_v15, 0.0 }
  0xfd   : > { %713 = vst [vmem:[%s5963_s30 + $0x10] sm:$0xff] %v4993_v19  ;;  %714 = vst [vmem:[%s5963_s30 + $0x18] sm:$0xff] %v4994_v20  ;;  %v4999_v23 = vpack.c.bf16 %v637_v21, %v636_v17  ;;  %v5000_v24 = vpack.c.bf16 %v639_v22, %v638_v18  ;;  %v571_v25 = vpop.f32.mrb[8].mxu0  ;;  %v614_v26 = vpop.f32.mrb[8].mxu1 }
  0xfe   : > { %v572_v27 = vadd.f32 %v571_v25, %v5947_v31  ;;  %v615_v28 = vadd.f32 %v614_v26, %v5947_v31  ;;  %v573_v29 = vpop.f32.mrb[9].mxu0  ;;  %v5117_v30 = vpop.f32.mrb[9].mxu1 }
  0xff   : > { %719 = vst [vmem:[%s5963_s30 + $0x3c] sm:$0xff] %v4999_v23  ;;  %720 = vst [vmem:[%s5963_s30 + $0x44] sm:$0xff] %v5000_v24  ;;  %v574_v9 = vadd.f32 %v573_v29, %v5947_v31  ;;  %v575_v33 = vpop.f32.mrb[10].mxu0  ;;  %v617_v34 = vpop.f32.mrb[10].mxu1 }
 0x100   : > { %v629_v0 = vmax.f32 %v572_v27, 0.0  ;;  %v631_v37 = vmax.f32 %v615_v28, 0.0  ;;  %v576_v35 = vadd.f32 %v575_v33, %v5949_v32  ;;  %v618_v36 = vadd.f32 %v617_v34, %v5949_v32  ;;  %v577_v38 = vpop.f32.mrb[11].mxu0  ;;  %v5118_v39 = vpop.f32.mrb[11].mxu1 }
 0x101   : > { %v630_v40 = vmax.f32 %v574_v9, 0.0  ;;  %v578_v62 = vadd.f32 %v577_v38, %v5949_v32 }
 0x102   : > { %v4996_v41 = vpack.c.bf16 %v631_v37, %v631_v37  ;;  %v640_v42 = vmax.f32 %v576_v35, 0.0  ;;  %v642_v43 = vmax.f32 %v618_v36, 0.0 }
 0x103   : > { %v4995_v44 = vpack.c.bf16 %v630_v40, %v629_v0  ;;  %v641_v45 = vmax.f32 %v578_v62, 0.0 }
 0x104   : > { %716 = vst [vmem:[%s5963_s30 + $0x28] sm:$0xf] %v4996_v41  ;;  %v5002_v46 = vpack.c.bf16 %v642_v43, %v642_v43 }
 0x105   : > { %715 = vst [vmem:[%s5963_s30 + $0x20] sm:$0xff] %v4995_v44  ;;  %v5001_v47 = vpack.c.bf16 %v641_v45, %v640_v42  ;;  %v916_v48 = vpop.f32.mrb[12].mxu0  ;;  %v959_v49 = vpop.f32.mrb[12].mxu1 }
 0x106   : > { %722 = vst [vmem:[%s5963_s30 + $0x54] sm:$0xf] %v5002_v46  ;;  %v917_v50 = vadd.f32 %v916_v48, %v5947_v31  ;;  %v960_v51 = vadd.f32 %v959_v49, %v5947_v31  ;;  %v918_v52 = vpop.f32.mrb[13].mxu0  ;;  %v961_v53 = vpop.f32.mrb[13].mxu1 }
 0x107   : > { %721 = vst [vmem:[%s5963_s30 + $0x4c] sm:$0xff] %v5001_v47  ;;  %v919_v54 = vadd.f32 %v918_v52, %v5947_v31  ;;  %v962_v55 = vadd.f32 %v961_v53, %v5947_v31  ;;  %v920_v56 = vpop.f32.mrb[14].mxu0  ;;  %v963_v16 = vpop.f32.mrb[14].mxu1 }
 0x108   : > { %v1138_v57 = vmax.f32 %v917_v50, 0.0  ;;  %v1140_v58 = vmax.f32 %v960_v51, 0.0  ;;  %v921_v59 = vadd.f32 %v920_v56, %v5949_v32  ;;  %v964_v60 = vadd.f32 %v963_v16, %v5949_v32  ;;  %v922_v61 = vpop.f32.mrb[15].mxu0  ;;  %v965_v63 = vpop.f32.mrb[15].mxu1 }
 0x109   : > { %v1139_v1 = vmax.f32 %v919_v54, 0.0  ;;  %v1141_v2 = vmax.f32 %v962_v55, 0.0  ;;  %v923_v3 = vadd.f32 %v922_v61, %v5949_v32  ;;  %v966_v4 = vadd.f32 %v965_v63, %v5949_v32 }
 0x10a   : > { %v1149_v5 = vmax.f32 %v921_v59, 0.0  ;;  %v1151_v6 = vmax.f32 %v964_v60, 0.0 }
 0x10b   : > { %v5003_v7 = vpack.c.bf16 %v1139_v1, %v1138_v57  ;;  %v5004_v8 = vpack.c.bf16 %v1141_v2, %v1140_v58  ;;  %v1150_v10 = vmax.f32 %v923_v3, 0.0  ;;  %v1152_v11 = vmax.f32 %v966_v4, 0.0 }
 0x10d   : > { %4521 = vst [vmem:[%s5963_s30 + $0x58] sm:$0xff] %v5003_v7  ;;  %4522 = vst [vmem:[%s5963_s30 + $0x60] sm:$0xff] %v5004_v8  ;;  %v5009_v12 = vpack.c.bf16 %v1150_v10, %v1149_v5  ;;  %v5010_v13 = vpack.c.bf16 %v1152_v11, %v1151_v6  ;;  %v1002_v14 = vpop.f32.mrb[16].mxu0  ;;  %v1045_v15 = vpop.f32.mrb[16].mxu1 }
 0x10e   : > { %v1003_v17 = vadd.f32 %v1002_v14, %v5947_v31  ;;  %v1046_v18 = vadd.f32 %v1045_v15, %v5947_v31  ;;  %v1004_v19 = vpop.f32.mrb[17].mxu0  ;;  %v1047_v20 = vpop.f32.mrb[17].mxu1 }
 0x10f   : > { %4527 = vst [vmem:[%s5963_s30 + $0x84] sm:$0xff] %v5009_v12  ;;  %4528 = vst [vmem:[%s5963_s30 + $0x8c] sm:$0xff] %v5010_v13  ;;  %v1005_v21 = vadd.f32 %v1004_v19, %v5947_v31  ;;  %v1048_v22 = vadd.f32 %v1047_v20, %v5947_v31  ;;  %v1006_v23 = vpop.f32.mrb[18].mxu0  ;;  %v1049_v24 = vpop.f32.mrb[18].mxu1 }
 0x110   : > { %v1142_v25 = vmax.f32 %v1003_v17, 0.0  ;;  %v1144_v26 = vmax.f32 %v1046_v18, 0.0  ;;  %v1007_v27 = vadd.f32 %v1006_v23, %v5949_v32  ;;  %v1050_v28 = vadd.f32 %v1049_v24, %v5949_v32  ;;  %v1008_v29 = vpop.f32.mrb[19].mxu0  ;;  %v1051_v30 = vpop.f32.mrb[19].mxu1 }
 0x111   : > { %v1143_v9 = vmax.f32 %v1005_v21, 0.0  ;;  %v1145_v33 = vmax.f32 %v1048_v22, 0.0  ;;  %v1009_v34 = vadd.f32 %v1008_v29, %v5949_v32  ;;  %v1052_v0 = vadd.f32 %v1051_v30, %v5949_v32 }
 0x112   : > { %v1153_v37 = vmax.f32 %v1007_v27, 0.0  ;;  %v1155_v35 = vmax.f32 %v1050_v28, 0.0 }
 0x113   : > { %v5005_v36 = vpack.c.bf16 %v1143_v9, %v1142_v25  ;;  %v5006_v38 = vpack.c.bf16 %v1145_v33, %v1144_v26  ;;  %v1154_v39 = vmax.f32 %v1009_v34, 0.0  ;;  %v1156_v40 = vmax.f32 %v1052_v0, 0.0 }
 0x115   : > { %4523 = vst [vmem:[%s5963_s30 + $0x68] sm:$0xff] %v5005_v36  ;;  %4524 = vst [vmem:[%s5963_s30 + $0x70] sm:$0xff] %v5006_v38  ;;  %v5011_v62 = vpack.c.bf16 %v1154_v39, %v1153_v37  ;;  %v5012_v41 = vpack.c.bf16 %v1156_v40, %v1155_v35  ;;  %v1088_v42 = vpop.f32.mrb[20].mxu0  ;;  %v1131_v43 = vpop.f32.mrb[20].mxu1 }
 0x116   : > { %v1089_v44 = vadd.f32 %v1088_v42, %v5947_v31  ;;  %v1132_v45 = vadd.f32 %v1131_v43, %v5947_v31  ;;  %v1090_v46 = vpop.f32.mrb[21].mxu0  ;;  %v5125_v47 = vpop.f32.mrb[21].mxu1 }
 0x117   : > { %4529 = vst [vmem:[%s5963_s30 + $0x94] sm:$0xff] %v5011_v62  ;;  %4530 = vst [vmem:[%s5963_s30 + $0x9c] sm:$0xff] %v5012_v41  ;;  %v1091_v48 = vadd.f32 %v1090_v46, %v5947_v31  ;;  %v1092_v49 = vpop.f32.mrb[22].mxu0  ;;  %v1134_v50 = vpop.f32.mrb[22].mxu1 }
 0x118   : > { %v1146_v51 = vmax.f32 %v1089_v44, 0.0  ;;  %v1148_v52 = vmax.f32 %v1132_v45, 0.0  ;;  %v1093_v53 = vadd.f32 %v1092_v49, %v5949_v32  ;;  %v1135_v54 = vadd.f32 %v1134_v50, %v5949_v32  ;;  %v1094_v55 = vpop.f32.mrb[23].mxu0  ;;  %v5126_v56 = vpop.f32.mrb[23].mxu1 }
 0x119   : > { %v1147_v16 = vmax.f32 %v1091_v48, 0.0  ;;  %v1095_v57 = vadd.f32 %v1094_v55, %v5949_v32 }
 0x11a   : > { %v5008_v58 = vpack.c.bf16 %v1148_v52, %v1148_v52  ;;  %v1157_v59 = vmax.f32 %v1093_v53, 0.0  ;;  %v1159_v60 = vmax.f32 %v1135_v54, 0.0 }
 0x11b   : > { %v5007_v61 = vpack.c.bf16 %v1147_v16, %v1146_v51  ;;  %v1158_v63 = vmax.f32 %v1095_v57, 0.0 }
 0x11c   : > { %4526 = vst [vmem:[%s5963_s30 + $0x80] sm:$0xf] %v5008_v58  ;;  %v5014_v1 = vpack.c.bf16 %v1159_v60, %v1159_v60 }
 0x11d   : > { %4525 = vst [vmem:[%s5963_s30 + $0x78] sm:$0xff] %v5007_v61  ;;  %v5013_v2 = vpack.c.bf16 %v1158_v63, %v1157_v59  ;;  %v1434_v3 = vpop.f32.mrb[24].mxu0  ;;  %v1477_v4 = vpop.f32.mrb[24].mxu1 }
 0x11e   : > { %4532 = vst [vmem:[%s5963_s30 + $0xac] sm:$0xf] %v5014_v1  ;;  %v1435_v5 = vadd.f32 %v1434_v3, %v5947_v31  ;;  %v1478_v6 = vadd.f32 %v1477_v4, %v5947_v31  ;;  %v1436_v7 = vpop.f32.mrb[25].mxu0  ;;  %v1479_v8 = vpop.f32.mrb[25].mxu1 }
 0x11f   : > { %4531 = vst [vmem:[%s5963_s30 + $0xa4] sm:$0xff] %v5013_v2  ;;  %v1437_v10 = vadd.f32 %v1436_v7, %v5947_v31  ;;  %v1480_v11 = vadd.f32 %v1479_v8, %v5947_v31  ;;  %v1438_v12 = vpop.f32.mrb[26].mxu0  ;;  %v1481_v13 = vpop.f32.mrb[26].mxu1 }
 0x120   : > { %v1656_v14 = vmax.f32 %v1435_v5, 0.0  ;;  %v1658_v15 = vmax.f32 %v1478_v6, 0.0  ;;  %v1439_v17 = vadd.f32 %v1438_v12, %v5949_v32  ;;  %v1482_v18 = vadd.f32 %v1481_v13, %v5949_v32  ;;  %v1440_v19 = vpop.f32.mrb[27].mxu0  ;;  %v1483_v20 = vpop.f32.mrb[27].mxu1 }
 0x121   : > { %v1657_v21 = vmax.f32 %v1437_v10, 0.0  ;;  %v1659_v22 = vmax.f32 %v1480_v11, 0.0  ;;  %v1441_v23 = vadd.f32 %v1440_v19, %v5949_v32  ;;  %v1484_v24 = vadd.f32 %v1483_v20, %v5949_v32 }
 0x122   : > { %v1667_v25 = vmax.f32 %v1439_v17, 0.0  ;;  %v1669_v26 = vmax.f32 %v1482_v18, 0.0 }
 0x123   : > { %v5015_v27 = vpack.c.bf16 %v1657_v21, %v1656_v14  ;;  %v5016_v28 = vpack.c.bf16 %v1659_v22, %v1658_v15  ;;  %v1668_v29 = vmax.f32 %v1441_v23, 0.0  ;;  %v1670_v30 = vmax.f32 %v1484_v24, 0.0 }
 0x125   : > { %4597 = vst [vmem:[%s5963_s30 + $0xb0] sm:$0xff] %v5015_v27  ;;  %4598 = vst [vmem:[%s5963_s30 + $0xb8] sm:$0xff] %v5016_v28  ;;  %v5021_v9 = vpack.c.bf16 %v1668_v29, %v1667_v25  ;;  %v5022_v33 = vpack.c.bf16 %v1670_v30, %v1669_v26  ;;  %v1520_v34 = vpop.f32.mrb[28].mxu0  ;;  %v1563_v0 = vpop.f32.mrb[28].mxu1 }
 0x126   : > { %v1521_v37 = vadd.f32 %v1520_v34, %v5947_v31  ;;  %v1564_v35 = vadd.f32 %v1563_v0, %v5947_v31  ;;  %v1522_v36 = vpop.f32.mrb[29].mxu0  ;;  %v1565_v38 = vpop.f32.mrb[29].mxu1 }
 0x127   : > { %4603 = vst [vmem:[%s5963_s30 + $0xdc] sm:$0xff] %v5021_v9  ;;  %4604 = vst [vmem:[%s5963_s30 + $0xe4] sm:$0xff] %v5022_v33  ;;  %v1523_v39 = vadd.f32 %v1522_v36, %v5947_v31  ;;  %v1566_v40 = vadd.f32 %v1565_v38, %v5947_v31  ;;  %v1524_v62 = vpop.f32.mrb[30].mxu0  ;;  %v1567_v41 = vpop.f32.mrb[30].mxu1 }
 0x128   : > { %v1660_v42 = vmax.f32 %v1521_v37, 0.0  ;;  %v1662_v43 = vmax.f32 %v1564_v35, 0.0  ;;  %v1525_v44 = vadd.f32 %v1524_v62, %v5949_v32  ;;  %v1568_v45 = vadd.f32 %v1567_v41, %v5949_v32  ;;  %v1526_v46 = vpop.f32.mrb[31].mxu0  ;;  %v1569_v47 = vpop.f32.mrb[31].mxu1 }
 0x129   : > { %v1661_v48 = vmax.f32 %v1523_v39, 0.0  ;;  %v1663_v49 = vmax.f32 %v1566_v40, 0.0  ;;  %v1527_v50 = vadd.f32 %v1526_v46, %v5949_v32  ;;  %v1570_v51 = vadd.f32 %v1569_v47, %v5949_v32 }
 0x12a   : > { %v1671_v52 = vmax.f32 %v1525_v44, 0.0  ;;  %v1673_v53 = vmax.f32 %v1568_v45, 0.0 }
 0x12b   : > { %v5017_v54 = vpack.c.bf16 %v1661_v48, %v1660_v42  ;;  %v5018_v55 = vpack.c.bf16 %v1663_v49, %v1662_v43  ;;  %v1672_v56 = vmax.f32 %v1527_v50, 0.0  ;;  %v1674_v16 = vmax.f32 %v1570_v51, 0.0 }
 0x12d   : > { %4599 = vst [vmem:[%s5963_s30 + $0xc0] sm:$0xff] %v5017_v54  ;;  %4600 = vst [vmem:[%s5963_s30 + $0xc8] sm:$0xff] %v5018_v55  ;;  %v5023_v57 = vpack.c.bf16 %v1672_v56, %v1671_v52  ;;  %v5024_v58 = vpack.c.bf16 %v1674_v16, %v1673_v53  ;;  %v1606_v59 = vpop.f32.mrb[32].mxu0  ;;  %v1649_v60 = vpop.f32.mrb[32].mxu1 }
 0x12e   : > { %v1607_v61 = vadd.f32 %v1606_v59, %v5947_v31  ;;  %v1650_v63 = vadd.f32 %v1649_v60, %v5947_v31  ;;  %v1608_v1 = vpop.f32.mrb[33].mxu0  ;;  %v5133_v2 = vpop.f32.mrb[33].mxu1 }
 0x12f   : > { %4605 = vst [vmem:[%s5963_s30 + $0xec] sm:$0xff] %v5023_v57  ;;  %4606 = vst [vmem:[%s5963_s30 + $0xf4] sm:$0xff] %v5024_v58  ;;  %v1609_v3 = vadd.f32 %v1608_v1, %v5947_v31  ;;  %v1610_v4 = vpop.f32.mrb[34].mxu0  ;;  %v1652_v5 = vpop.f32.mrb[34].mxu1 }
 0x130   : > { %v1664_v6 = vmax.f32 %v1607_v61, 0.0  ;;  %v1666_v7 = vmax.f32 %v1650_v63, 0.0  ;;  %v1611_v8 = vadd.f32 %v1610_v4, %v5949_v32  ;;  %v1653_v10 = vadd.f32 %v1652_v5, %v5949_v32  ;;  %v1612_v11 = vpop.f32.mrb[35].mxu0  ;;  %v5134_v12 = vpop.f32.mrb[35].mxu1 }
 0x131   : > { %v1665_v13 = vmax.f32 %v1609_v3, 0.0  ;;  %v1613_v14 = vadd.f32 %v1612_v11, %v5949_v32 }
 0x132   : > { %v5020_v15 = vpack.c.bf16 %v1666_v7, %v1666_v7  ;;  %v1675_v17 = vmax.f32 %v1611_v8, 0.0  ;;  %v1677_v18 = vmax.f32 %v1653_v10, 0.0 }
 0x133   : > { %v5019_v19 = vpack.c.bf16 %v1665_v13, %v1664_v6  ;;  %v1676_v20 = vmax.f32 %v1613_v14, 0.0 }
 0x134   : > { %4602 = vst [vmem:[%s5963_s30 + $0xd8] sm:$0xf] %v5020_v15  ;;  %v5026_v21 = vpack.c.bf16 %v1677_v18, %v1677_v18 }
 0x135   : > { %4601 = vst [vmem:[%s5963_s30 + $0xd0] sm:$0xff] %v5019_v19  ;;  %v5025_v22 = vpack.c.bf16 %v1676_v20, %v1675_v17  ;;  %v1952_v23 = vpop.f32.mrb[36].mxu0  ;;  %v1995_v24 = vpop.f32.mrb[36].mxu1 }
 0x136   : > { %4608 = vst [vmem:[%s5963_s30 + $0x104] sm:$0xf] %v5026_v21  ;;  %v1953_v25 = vadd.f32 %v1952_v23, %v5947_v31  ;;  %v1996_v26 = vadd.f32 %v1995_v24, %v5947_v31  ;;  %v1954_v27 = vpop.f32.mrb[37].mxu0  ;;  %v1997_v28 = vpop.f32.mrb[37].mxu1 }
 0x137   : > { %4607 = vst [vmem:[%s5963_s30 + $0xfc] sm:$0xff] %v5025_v22  ;;  %v1955_v29 = vadd.f32 %v1954_v27, %v5947_v31  ;;  %v1998_v30 = vadd.f32 %v1997_v28, %v5947_v31  ;;  %v1956_v9 = vpop.f32.mrb[38].mxu0  ;;  %v1999_v33 = vpop.f32.mrb[38].mxu1 }
 0x138   : > { %v2174_v34 = vmax.f32 %v1953_v25, 0.0  ;;  %v2176_v0 = vmax.f32 %v1996_v26, 0.0  ;;  %v1957_v37 = vadd.f32 %v1956_v9, %v5949_v32  ;;  %v2000_v35 = vadd.f32 %v1999_v33, %v5949_v32  ;;  %v1958_v36 = vpop.f32.mrb[39].mxu0  ;;  %v2001_v38 = vpop.f32.mrb[39].mxu1 }
 0x139   : > { %v2175_v39 = vmax.f32 %v1955_v29, 0.0  ;;  %v2177_v40 = vmax.f32 %v1998_v30, 0.0  ;;  %v1959_v62 = vadd.f32 %v1958_v36, %v5949_v32  ;;  %v2002_v41 = vadd.f32 %v2001_v38, %v5949_v32 }
 0x13a   : > { %v2185_v42 = vmax.f32 %v1957_v37, 0.0  ;;  %v2187_v43 = vmax.f32 %v2000_v35, 0.0 }
 0x13b   : > { %v5027_v44 = vpack.c.bf16 %v2175_v39, %v2174_v34  ;;  %v5028_v45 = vpack.c.bf16 %v2177_v40, %v2176_v0  ;;  %v2186_v46 = vmax.f32 %v1959_v62, 0.0  ;;  %v2188_v47 = vmax.f32 %v2002_v41, 0.0 }
 0x13d   : > { %4673 = vst [vmem:[%s5963_s30 + $0x108] sm:$0xff] %v5027_v44  ;;  %4674 = vst [vmem:[%s5963_s30 + $0x110] sm:$0xff] %v5028_v45  ;;  %v5033_v48 = vpack.c.bf16 %v2186_v46, %v2185_v42  ;;  %v5034_v49 = vpack.c.bf16 %v2188_v47, %v2187_v43  ;;  %v2038_v50 = vpop.f32.mrb[40].mxu0  ;;  %v2081_v51 = vpop.f32.mrb[40].mxu1 }
 0x13e   : > { %v2039_v52 = vadd.f32 %v2038_v50, %v5947_v31  ;;  %v2082_v53 = vadd.f32 %v2081_v51, %v5947_v31  ;;  %v2040_v54 = vpop.f32.mrb[41].mxu0  ;;  %v2083_v55 = vpop.f32.mrb[41].mxu1 }
 0x13f   : > { %4679 = vst [vmem:[%s5963_s30 + $0x134] sm:$0xff] %v5033_v48  ;;  %4680 = vst [vmem:[%s5963_s30 + $0x13c] sm:$0xff] %v5034_v49  ;;  %v2041_v56 = vadd.f32 %v2040_v54, %v5947_v31  ;;  %v2084_v16 = vadd.f32 %v2083_v55, %v5947_v31  ;;  %v2042_v57 = vpop.f32.mrb[42].mxu0  ;;  %v2085_v58 = vpop.f32.mrb[42].mxu1 }
 0x140   : > { %v2178_v59 = vmax.f32 %v2039_v52, 0.0  ;;  %v2180_v60 = vmax.f32 %v2082_v53, 0.0  ;;  %v2043_v61 = vadd.f32 %v2042_v57, %v5949_v32  ;;  %v2086_v63 = vadd.f32 %v2085_v58, %v5949_v32  ;;  %v2044_v1 = vpop.f32.mrb[43].mxu0  ;;  %v2087_v2 = vpop.f32.mrb[43].mxu1 }
 0x141   : > { %v2179_v3 = vmax.f32 %v2041_v56, 0.0  ;;  %v2181_v4 = vmax.f32 %v2084_v16, 0.0  ;;  %v2045_v5 = vadd.f32 %v2044_v1, %v5949_v32  ;;  %v2088_v6 = vadd.f32 %v2087_v2, %v5949_v32 }
 0x142   : > { %v2189_v7 = vmax.f32 %v2043_v61, 0.0  ;;  %v2191_v8 = vmax.f32 %v2086_v63, 0.0 }
 0x143   : > { %v5029_v10 = vpack.c.bf16 %v2179_v3, %v2178_v59  ;;  %v5030_v11 = vpack.c.bf16 %v2181_v4, %v2180_v60  ;;  %v2190_v12 = vmax.f32 %v2045_v5, 0.0  ;;  %v2192_v13 = vmax.f32 %v2088_v6, 0.0 }
 0x145   : > { %4675 = vst [vmem:[%s5963_s30 + $0x118] sm:$0xff] %v5029_v10  ;;  %4676 = vst [vmem:[%s5963_s30 + $0x120] sm:$0xff] %v5030_v11  ;;  %v5035_v14 = vpack.c.bf16 %v2190_v12, %v2189_v7  ;;  %v5036_v15 = vpack.c.bf16 %v2192_v13, %v2191_v8  ;;  %v2124_v17 = vpop.f32.mrb[44].mxu0  ;;  %v2167_v18 = vpop.f32.mrb[44].mxu1 }
 0x146   : > { %v2125_v19 = vadd.f32 %v2124_v17, %v5947_v31  ;;  %v2168_v20 = vadd.f32 %v2167_v18, %v5947_v31  ;;  %v2126_v21 = vpop.f32.mrb[45].mxu0  ;;  %v5141_v22 = vpop.f32.mrb[45].mxu1 }
 0x147   : > { %4681 = vst [vmem:[%s5963_s30 + $0x144] sm:$0xff] %v5035_v14  ;;  %4682 = vst [vmem:[%s5963_s30 + $0x14c] sm:$0xff] %v5036_v15  ;;  %v2127_v23 = vadd.f32 %v2126_v21, %v5947_v31  ;;  %v2128_v24 = vpop.f32.mrb[46].mxu0  ;;  %v2170_v25 = vpop.f32.mrb[46].mxu1 }
 0x148   : > { %v2182_v26 = vmax.f32 %v2125_v19, 0.0  ;;  %v2184_v27 = vmax.f32 %v2168_v20, 0.0  ;;  %v2129_v28 = vadd.f32 %v2128_v24, %v5949_v32  ;;  %v2171_v29 = vadd.f32 %v2170_v25, %v5949_v32  ;;  %v2130_v30 = vpop.f32.mrb[47].mxu0  ;;  %v5142_v9 = vpop.f32.mrb[47].mxu1 }
 0x149   : > { %v2183_v33 = vmax.f32 %v2127_v23, 0.0  ;;  %v2131_v34 = vadd.f32 %v2130_v30, %v5949_v32 }
 0x14a   : > { %v5032_v0 = vpack.c.bf16 %v2184_v27, %v2184_v27  ;;  %v2193_v37 = vmax.f32 %v2129_v28, 0.0  ;;  %v2195_v35 = vmax.f32 %v2171_v29, 0.0 }
 0x14b   : > { %v5031_v36 = vpack.c.bf16 %v2183_v33, %v2182_v26  ;;  %v2194_v38 = vmax.f32 %v2131_v34, 0.0 }
 0x14c   : > { %4678 = vst [vmem:[%s5963_s30 + $0x130] sm:$0xf] %v5032_v0  ;;  %v5038_v39 = vpack.c.bf16 %v2195_v35, %v2195_v35 }
 0x14d   : > { %4677 = vst [vmem:[%s5963_s30 + $0x128] sm:$0xff] %v5031_v36  ;;  %v5037_v40 = vpack.c.bf16 %v2194_v38, %v2193_v37  ;;  %v2470_v62 = vpop.f32.mrb[48].mxu0  ;;  %v2513_v41 = vpop.f32.mrb[48].mxu1 }
 0x14e   : > { %4684 = vst [vmem:[%s5963_s30 + $0x15c] sm:$0xf] %v5038_v39  ;;  %v2471_v42 = vadd.f32 %v2470_v62, %v5947_v31  ;;  %v2514_v43 = vadd.f32 %v2513_v41, %v5947_v31  ;;  %v2472_v44 = vpop.f32.mrb[49].mxu0  ;;  %v2515_v45 = vpop.f32.mrb[49].mxu1 }
 0x14f   : > { %4683 = vst [vmem:[%s5963_s30 + $0x154] sm:$0xff] %v5037_v40  ;;  %v2473_v46 = vadd.f32 %v2472_v44, %v5947_v31  ;;  %v2516_v47 = vadd.f32 %v2515_v45, %v5947_v31  ;;  %v2474_v48 = vpop.f32.mrb[50].mxu0  ;;  %v2517_v49 = vpop.f32.mrb[50].mxu1 }
 0x150   : > { %v2692_v50 = vmax.f32 %v2471_v42, 0.0  ;;  %v2694_v51 = vmax.f32 %v2514_v43, 0.0  ;;  %v2475_v52 = vadd.f32 %v2474_v48, %v5949_v32  ;;  %v2518_v53 = vadd.f32 %v2517_v49, %v5949_v32  ;;  %v2476_v54 = vpop.f32.mrb[51].mxu0  ;;  %v2519_v55 = vpop.f32.mrb[51].mxu1 }
 0x151   : > { %v2693_v56 = vmax.f32 %v2473_v46, 0.0  ;;  %v2695_v16 = vmax.f32 %v2516_v47, 0.0  ;;  %v2477_v57 = vadd.f32 %v2476_v54, %v5949_v32  ;;  %v2520_v58 = vadd.f32 %v2519_v55, %v5949_v32 }
 0x152   : > { %v2703_v59 = vmax.f32 %v2475_v52, 0.0  ;;  %v2705_v60 = vmax.f32 %v2518_v53, 0.0 }
 0x153   : > { %v5039_v61 = vpack.c.bf16 %v2693_v56, %v2692_v50  ;;  %v5040_v63 = vpack.c.bf16 %v2695_v16, %v2694_v51  ;;  %v2704_v1 = vmax.f32 %v2477_v57, 0.0  ;;  %v2706_v2 = vmax.f32 %v2520_v58, 0.0 }
 0x155   : > { %4749 = vst [vmem:[%s5963_s30 + $0x160] sm:$0xff] %v5039_v61  ;;  %4750 = vst [vmem:[%s5963_s30 + $0x168] sm:$0xff] %v5040_v63  ;;  %v5045_v3 = vpack.c.bf16 %v2704_v1, %v2703_v59  ;;  %v5046_v4 = vpack.c.bf16 %v2706_v2, %v2705_v60  ;;  %v2556_v5 = vpop.f32.mrb[52].mxu0  ;;  %v2599_v6 = vpop.f32.mrb[52].mxu1 }
 0x156   : > { %v2557_v7 = vadd.f32 %v2556_v5, %v5947_v31  ;;  %v2600_v8 = vadd.f32 %v2599_v6, %v5947_v31  ;;  %v2558_v10 = vpop.f32.mrb[53].mxu0  ;;  %v2601_v11 = vpop.f32.mrb[53].mxu1 }
 0x157   : > { %4755 = vst [vmem:[%s5963_s30 + $0x18c] sm:$0xff] %v5045_v3  ;;  %4756 = vst [vmem:[%s5963_s30 + $0x194] sm:$0xff] %v5046_v4  ;;  %v2559_v12 = vadd.f32 %v2558_v10, %v5947_v31  ;;  %v2602_v13 = vadd.f32 %v2601_v11, %v5947_v31  ;;  %v2560_v14 = vpop.f32.mrb[54].mxu0  ;;  %v2603_v15 = vpop.f32.mrb[54].mxu1 }
 0x158   : > { %v2696_v17 = vmax.f32 %v2557_v7, 0.0  ;;  %v2698_v18 = vmax.f32 %v2600_v8, 0.0  ;;  %v2561_v19 = vadd.f32 %v2560_v14, %v5949_v32  ;;  %v2604_v20 = vadd.f32 %v2603_v15, %v5949_v32  ;;  %v2562_v21 = vpop.f32.mrb[55].mxu0  ;;  %v2605_v22 = vpop.f32.mrb[55].mxu1 }
 0x159   : > { %v2697_v23 = vmax.f32 %v2559_v12, 0.0  ;;  %v2699_v24 = vmax.f32 %v2602_v13, 0.0  ;;  %v2563_v25 = vadd.f32 %v2562_v21, %v5949_v32  ;;  %v2606_v26 = vadd.f32 %v2605_v22, %v5949_v32 }
 0x15a   : > { %v2707_v27 = vmax.f32 %v2561_v19, 0.0  ;;  %v2709_v28 = vmax.f32 %v2604_v20, 0.0 }
 0x15b   : > { %v5041_v29 = vpack.c.bf16 %v2697_v23, %v2696_v17  ;;  %v5042_v30 = vpack.c.bf16 %v2699_v24, %v2698_v18  ;;  %v2708_v9 = vmax.f32 %v2563_v25, 0.0  ;;  %v2710_v33 = vmax.f32 %v2606_v26, 0.0 }
 0x15d   : > { %4751 = vst [vmem:[%s5963_s30 + $0x170] sm:$0xff] %v5041_v29  ;;  %4752 = vst [vmem:[%s5963_s30 + $0x178] sm:$0xff] %v5042_v30  ;;  %v5047_v34 = vpack.c.bf16 %v2708_v9, %v2707_v27  ;;  %v5048_v0 = vpack.c.bf16 %v2710_v33, %v2709_v28  ;;  %v2642_v37 = vpop.f32.mrb[56].mxu0  ;;  %v2685_v35 = vpop.f32.mrb[56].mxu1 }
 0x15e   : > { %v2643_v36 = vadd.f32 %v2642_v37, %v5947_v31  ;;  %v2686_v38 = vadd.f32 %v2685_v35, %v5947_v31  ;;  %v2644_v39 = vpop.f32.mrb[57].mxu0  ;;  %v5149_v40 = vpop.f32.mrb[57].mxu1 }
 0x15f   : > { %4757 = vst [vmem:[%s5963_s30 + $0x19c] sm:$0xff] %v5047_v34  ;;  %4758 = vst [vmem:[%s5963_s30 + $0x1a4] sm:$0xff] %v5048_v0  ;;  %v2645_v62 = vadd.f32 %v2644_v39, %v5947_v31  ;;  %v2646_v41 = vpop.f32.mrb[58].mxu0  ;;  %v2688_v42 = vpop.f32.mrb[58].mxu1 }
 0x160   : > { %v2700_v43 = vmax.f32 %v2643_v36, 0.0  ;;  %v2702_v44 = vmax.f32 %v2686_v38, 0.0  ;;  %v2647_v45 = vadd.f32 %v2646_v41, %v5949_v32  ;;  %v2689_v46 = vadd.f32 %v2688_v42, %v5949_v32  ;;  %v2648_v47 = vpop.f32.mrb[59].mxu0  ;;  %v5150_v48 = vpop.f32.mrb[59].mxu1 }
 0x161   : > { %v2701_v49 = vmax.f32 %v2645_v62, 0.0  ;;  %v2649_v50 = vadd.f32 %v2648_v47, %v5949_v32 }
 0x162   : > { %v5044_v51 = vpack.c.bf16 %v2702_v44, %v2702_v44  ;;  %v2711_v52 = vmax.f32 %v2647_v45, 0.0  ;;  %v2713_v53 = vmax.f32 %v2689_v46, 0.0 }
 0x163   : > { %v5043_v54 = vpack.c.bf16 %v2701_v49, %v2700_v43  ;;  %v2712_v55 = vmax.f32 %v2649_v50, 0.0 }
 0x164   : > { %4754 = vst [vmem:[%s5963_s30 + $0x188] sm:$0xf] %v5044_v51  ;;  %v5050_v56 = vpack.c.bf16 %v2713_v53, %v2713_v53 }
 0x165   : > { %4753 = vst [vmem:[%s5963_s30 + $0x180] sm:$0xff] %v5043_v54  ;;  %v5049_v16 = vpack.c.bf16 %v2712_v55, %v2711_v52  ;;  %v2988_v57 = vpop.f32.mrb[60].mxu0  ;;  %v3031_v58 = vpop.f32.mrb[60].mxu1 }
 0x166   : > { %4760 = vst [vmem:[%s5963_s30 + $0x1b4] sm:$0xf] %v5050_v56  ;;  %v2989_v59 = vadd.f32 %v2988_v57, %v5947_v31  ;;  %v3032_v60 = vadd.f32 %v3031_v58, %v5947_v31  ;;  %v2990_v61 = vpop.f32.mrb[61].mxu0  ;;  %v3033_v63 = vpop.f32.mrb[61].mxu1 }
 0x167   : > { %4759 = vst [vmem:[%s5963_s30 + $0x1ac] sm:$0xff] %v5049_v16  ;;  %v2991_v1 = vadd.f32 %v2990_v61, %v5947_v31  ;;  %v3034_v2 = vadd.f32 %v3033_v63, %v5947_v31  ;;  %v2992_v3 = vpop.f32.mrb[62].mxu0  ;;  %v3035_v4 = vpop.f32.mrb[62].mxu1 }
 0x168   : > { %v3210_v5 = vmax.f32 %v2989_v59, 0.0  ;;  %v3212_v6 = vmax.f32 %v3032_v60, 0.0  ;;  %v2993_v7 = vadd.f32 %v2992_v3, %v5949_v32  ;;  %v3036_v8 = vadd.f32 %v3035_v4, %v5949_v32  ;;  %v2994_v10 = vpop.f32.mrb[63].mxu0  ;;  %v3037_v11 = vpop.f32.mrb[63].mxu1 }
 0x169   : > { %v3211_v12 = vmax.f32 %v2991_v1, 0.0  ;;  %v3213_v13 = vmax.f32 %v3034_v2, 0.0  ;;  %v2995_v14 = vadd.f32 %v2994_v10, %v5949_v32  ;;  %v3038_v15 = vadd.f32 %v3037_v11, %v5949_v32 }
 0x16a   : > { %v3221_v17 = vmax.f32 %v2993_v7, 0.0  ;;  %v3223_v18 = vmax.f32 %v3036_v8, 0.0 }
 0x16b   : > { %v5051_v19 = vpack.c.bf16 %v3211_v12, %v3210_v5  ;;  %v5052_v20 = vpack.c.bf16 %v3213_v13, %v3212_v6  ;;  %v3222_v21 = vmax.f32 %v2995_v14, 0.0  ;;  %v3224_v22 = vmax.f32 %v3038_v15, 0.0 }
 0x16d   : > { %4825 = vst [vmem:[%s5963_s30 + $0x1b8] sm:$0xff] %v5051_v19  ;;  %4826 = vst [vmem:[%s5963_s30 + $0x1c0] sm:$0xff] %v5052_v20  ;;  %v5057_v23 = vpack.c.bf16 %v3222_v21, %v3221_v17  ;;  %v5058_v24 = vpack.c.bf16 %v3224_v22, %v3223_v18  ;;  %v3074_v25 = vpop.f32.mrb[64].mxu0  ;;  %v3117_v26 = vpop.f32.mrb[64].mxu1 }
 0x16e   : > { %v3075_v27 = vadd.f32 %v3074_v25, %v5947_v31  ;;  %v3118_v28 = vadd.f32 %v3117_v26, %v5947_v31  ;;  %v3076_v29 = vpop.f32.mrb[65].mxu0  ;;  %v3119_v30 = vpop.f32.mrb[65].mxu1 }
 0x16f   : > { %4831 = vst [vmem:[%s5963_s30 + $0x1e4] sm:$0xff] %v5057_v23  ;;  %4832 = vst [vmem:[%s5963_s30 + $0x1ec] sm:$0xff] %v5058_v24  ;;  %v3077_v9 = vadd.f32 %v3076_v29, %v5947_v31  ;;  %v3120_v33 = vadd.f32 %v3119_v30, %v5947_v31  ;;  %v3078_v34 = vpop.f32.mrb[66].mxu0  ;;  %v3121_v0 = vpop.f32.mrb[66].mxu1 }
 0x170   : > { %v3214_v37 = vmax.f32 %v3075_v27, 0.0  ;;  %v3216_v35 = vmax.f32 %v3118_v28, 0.0  ;;  %v3079_v36 = vadd.f32 %v3078_v34, %v5949_v32  ;;  %v3122_v38 = vadd.f32 %v3121_v0, %v5949_v32  ;;  %v3080_v39 = vpop.f32.mrb[67].mxu0  ;;  %v3123_v40 = vpop.f32.mrb[67].mxu1 }
 0x171   : > { %v3215_v62 = vmax.f32 %v3077_v9, 0.0  ;;  %v3217_v41 = vmax.f32 %v3120_v33, 0.0  ;;  %v3081_v42 = vadd.f32 %v3080_v39, %v5949_v32  ;;  %v3124_v43 = vadd.f32 %v3123_v40, %v5949_v32 }
 0x172   : > { %v3225_v44 = vmax.f32 %v3079_v36, 0.0  ;;  %v3227_v45 = vmax.f32 %v3122_v38, 0.0 }
 0x173   : > { %v5053_v46 = vpack.c.bf16 %v3215_v62, %v3214_v37  ;;  %v5054_v47 = vpack.c.bf16 %v3217_v41, %v3216_v35  ;;  %v3226_v48 = vmax.f32 %v3081_v42, 0.0  ;;  %v3228_v49 = vmax.f32 %v3124_v43, 0.0 }
 0x175   : > { %4827 = vst [vmem:[%s5963_s30 + $0x1c8] sm:$0xff] %v5053_v46  ;;  %4828 = vst [vmem:[%s5963_s30 + $0x1d0] sm:$0xff] %v5054_v47  ;;  %v5059_v50 = vpack.c.bf16 %v3226_v48, %v3225_v44  ;;  %v5060_v51 = vpack.c.bf16 %v3228_v49, %v3227_v45  ;;  %v3160_v52 = vpop.f32.mrb[68].mxu0  ;;  %v3203_v53 = vpop.f32.mrb[68].mxu1 }
 0x176   : > { %v3161_v54 = vadd.f32 %v3160_v52, %v5947_v31  ;;  %v3204_v55 = vadd.f32 %v3203_v53, %v5947_v31  ;;  %v3162_v56 = vpop.f32.mrb[69].mxu0  ;;  %v5157_v16 = vpop.f32.mrb[69].mxu1 }
 0x177   : > { %4833 = vst [vmem:[%s5963_s30 + $0x1f4] sm:$0xff] %v5059_v50  ;;  %4834 = vst [vmem:[%s5963_s30 + $0x1fc] sm:$0xff] %v5060_v51  ;;  %v3163_v57 = vadd.f32 %v3162_v56, %v5947_v31  ;;  %v3164_v58 = vpop.f32.mrb[70].mxu0  ;;  %v3206_v59 = vpop.f32.mrb[70].mxu1 }
 0x178   : > { %v3218_v60 = vmax.f32 %v3161_v54, 0.0  ;;  %v3220_v61 = vmax.f32 %v3204_v55, 0.0  ;;  %v3165_v63 = vadd.f32 %v3164_v58, %v5949_v32  ;;  %v3207_v1 = vadd.f32 %v3206_v59, %v5949_v32  ;;  %v3166_v2 = vpop.f32.mrb[71].mxu0  ;;  %v5158_v3 = vpop.f32.mrb[71].mxu1 }
 0x179   : > { %v3219_v4 = vmax.f32 %v3163_v57, 0.0  ;;  %v3167_v5 = vadd.f32 %v3166_v2, %v5949_v32 }
 0x17a   : > { %v5056_v6 = vpack.c.bf16 %v3220_v61, %v3220_v61  ;;  %v3229_v7 = vmax.f32 %v3165_v63, 0.0  ;;  %v3231_v8 = vmax.f32 %v3207_v1, 0.0 }
 0x17b   : > { %v5055_v10 = vpack.c.bf16 %v3219_v4, %v3218_v60  ;;  %v3230_v11 = vmax.f32 %v3167_v5, 0.0 }
 0x17c   : > { %4830 = vst [vmem:[%s5963_s30 + $0x1e0] sm:$0xf] %v5056_v6  ;;  %v5062_v12 = vpack.c.bf16 %v3231_v8, %v3231_v8 }
 0x17d   : > { %4829 = vst [vmem:[%s5963_s30 + $0x1d8] sm:$0xff] %v5055_v10  ;;  %v5061_v13 = vpack.c.bf16 %v3230_v11, %v3229_v7  ;;  %v3506_v14 = vpop.f32.mrb[72].mxu0  ;;  %v3549_v15 = vpop.f32.mrb[72].mxu1 }
 0x17e   : > { %4836 = vst [vmem:[%s5963_s30 + $0x20c] sm:$0xf] %v5062_v12  ;;  %v3507_v17 = vadd.f32 %v3506_v14, %v5947_v31  ;;  %v3550_v18 = vadd.f32 %v3549_v15, %v5947_v31  ;;  %v3508_v19 = vpop.f32.mrb[73].mxu0  ;;  %v3551_v20 = vpop.f32.mrb[73].mxu1 }
 0x17f   : > { %4835 = vst [vmem:[%s5963_s30 + $0x204] sm:$0xff] %v5061_v13  ;;  %v3509_v21 = vadd.f32 %v3508_v19, %v5947_v31  ;;  %v3552_v22 = vadd.f32 %v3551_v20, %v5947_v31  ;;  %v3510_v23 = vpop.f32.mrb[74].mxu0  ;;  %v3553_v24 = vpop.f32.mrb[74].mxu1 }
 0x180   : > { %v3728_v25 = vmax.f32 %v3507_v17, 0.0  ;;  %v3730_v26 = vmax.f32 %v3550_v18, 0.0  ;;  %v3511_v27 = vadd.f32 %v3510_v23, %v5949_v32  ;;  %v3554_v28 = vadd.f32 %v3553_v24, %v5949_v32  ;;  %v3512_v29 = vpop.f32.mrb[75].mxu0  ;;  %v3555_v30 = vpop.f32.mrb[75].mxu1 }
 0x181   : > { %v3729_v9 = vmax.f32 %v3509_v21, 0.0  ;;  %v3731_v33 = vmax.f32 %v3552_v22, 0.0  ;;  %v3513_v34 = vadd.f32 %v3512_v29, %v5949_v32  ;;  %v3556_v0 = vadd.f32 %v3555_v30, %v5949_v32 }
 0x182   : > { %v3739_v37 = vmax.f32 %v3511_v27, 0.0  ;;  %v3741_v35 = vmax.f32 %v3554_v28, 0.0 }
 0x183   : > { %v5063_v36 = vpack.c.bf16 %v3729_v9, %v3728_v25  ;;  %v5064_v38 = vpack.c.bf16 %v3731_v33, %v3730_v26  ;;  %v3740_v39 = vmax.f32 %v3513_v34, 0.0  ;;  %v3742_v40 = vmax.f32 %v3556_v0, 0.0 }
 0x185   : > { %4901 = vst [vmem:[%s5963_s30 + $0x210] sm:$0xff] %v5063_v36  ;;  %4902 = vst [vmem:[%s5963_s30 + $0x218] sm:$0xff] %v5064_v38  ;;  %v5069_v62 = vpack.c.bf16 %v3740_v39, %v3739_v37  ;;  %v5070_v41 = vpack.c.bf16 %v3742_v40, %v3741_v35  ;;  %v3592_v42 = vpop.f32.mrb[76].mxu0  ;;  %v3635_v43 = vpop.f32.mrb[76].mxu1 }
 0x186   : > { %v3593_v44 = vadd.f32 %v3592_v42, %v5947_v31  ;;  %v3636_v45 = vadd.f32 %v3635_v43, %v5947_v31  ;;  %v3594_v46 = vpop.f32.mrb[77].mxu0  ;;  %v3637_v47 = vpop.f32.mrb[77].mxu1 }
 0x187   : > { %4907 = vst [vmem:[%s5963_s30 + $0x23c] sm:$0xff] %v5069_v62  ;;  %4908 = vst [vmem:[%s5963_s30 + $0x244] sm:$0xff] %v5070_v41  ;;  %v3595_v48 = vadd.f32 %v3594_v46, %v5947_v31  ;;  %v3638_v49 = vadd.f32 %v3637_v47, %v5947_v31  ;;  %v3596_v50 = vpop.f32.mrb[78].mxu0  ;;  %v3639_v51 = vpop.f32.mrb[78].mxu1 }
 0x188   : > { %v3732_v52 = vmax.f32 %v3593_v44, 0.0  ;;  %v3734_v53 = vmax.f32 %v3636_v45, 0.0  ;;  %v3597_v54 = vadd.f32 %v3596_v50, %v5949_v32  ;;  %v3640_v55 = vadd.f32 %v3639_v51, %v5949_v32  ;;  %v3598_v56 = vpop.f32.mrb[79].mxu0  ;;  %v3641_v16 = vpop.f32.mrb[79].mxu1 }
 0x189   : > { %v3733_v57 = vmax.f32 %v3595_v48, 0.0  ;;  %v3735_v58 = vmax.f32 %v3638_v49, 0.0  ;;  %v3599_v59 = vadd.f32 %v3598_v56, %v5949_v32  ;;  %v3642_v60 = vadd.f32 %v3641_v16, %v5949_v32 }
 0x18a   : > { %v3743_v61 = vmax.f32 %v3597_v54, 0.0  ;;  %v3745_v63 = vmax.f32 %v3640_v55, 0.0 }
 0x18b   : > { %v5065_v1 = vpack.c.bf16 %v3733_v57, %v3732_v52  ;;  %v5066_v2 = vpack.c.bf16 %v3735_v58, %v3734_v53  ;;  %v3744_v3 = vmax.f32 %v3599_v59, 0.0  ;;  %v3746_v4 = vmax.f32 %v3642_v60, 0.0 }
 0x18d   : > { %4903 = vst [vmem:[%s5963_s30 + $0x220] sm:$0xff] %v5065_v1  ;;  %4904 = vst [vmem:[%s5963_s30 + $0x228] sm:$0xff] %v5066_v2  ;;  %v5071_v5 = vpack.c.bf16 %v3744_v3, %v3743_v61  ;;  %v5072_v6 = vpack.c.bf16 %v3746_v4, %v3745_v63  ;;  %v3678_v7 = vpop.f32.mrb[80].mxu0  ;;  %v3721_v8 = vpop.f32.mrb[80].mxu1 }
 0x18e   : > { %v3679_v10 = vadd.f32 %v3678_v7, %v5947_v31  ;;  %v3722_v11 = vadd.f32 %v3721_v8, %v5947_v31  ;;  %v3680_v12 = vpop.f32.mrb[81].mxu0  ;;  %v5165_v13 = vpop.f32.mrb[81].mxu1 }
 0x18f   : > { %4909 = vst [vmem:[%s5963_s30 + $0x24c] sm:$0xff] %v5071_v5  ;;  %4910 = vst [vmem:[%s5963_s30 + $0x254] sm:$0xff] %v5072_v6  ;;  %v3681_v14 = vadd.f32 %v3680_v12, %v5947_v31  ;;  %v3682_v15 = vpop.f32.mrb[82].mxu0  ;;  %v3724_v17 = vpop.f32.mrb[82].mxu1 }
 0x190   : > { %v3736_v18 = vmax.f32 %v3679_v10, 0.0  ;;  %v3738_v19 = vmax.f32 %v3722_v11, 0.0  ;;  %v3683_v20 = vadd.f32 %v3682_v15, %v5949_v32  ;;  %v3725_v21 = vadd.f32 %v3724_v17, %v5949_v32  ;;  %v3684_v22 = vpop.f32.mrb[83].mxu0  ;;  %v5166_v23 = vpop.f32.mrb[83].mxu1 }
 0x191   : > { %v3737_v24 = vmax.f32 %v3681_v14, 0.0  ;;  %v3685_v25 = vadd.f32 %v3684_v22, %v5949_v32 }
 0x192   : > { %v5068_v26 = vpack.c.bf16 %v3738_v19, %v3738_v19  ;;  %v3747_v27 = vmax.f32 %v3683_v20, 0.0  ;;  %v3749_v28 = vmax.f32 %v3725_v21, 0.0 }
 0x193   : > { %v5067_v29 = vpack.c.bf16 %v3737_v24, %v3736_v18  ;;  %v3748_v30 = vmax.f32 %v3685_v25, 0.0 }
 0x194   : > { %4906 = vst [vmem:[%s5963_s30 + $0x238] sm:$0xf] %v5068_v26  ;;  %v5074_v9 = vpack.c.bf16 %v3749_v28, %v3749_v28 }
 0x195   : > { %4905 = vst [vmem:[%s5963_s30 + $0x230] sm:$0xff] %v5067_v29  ;;  %v5073_v33 = vpack.c.bf16 %v3748_v30, %v3747_v27  ;;  %v4024_v34 = vpop.f32.mrb[84].mxu0  ;;  %v4067_v0 = vpop.f32.mrb[84].mxu1 }
 0x196   : > { %4912 = vst [vmem:[%s5963_s30 + $0x264] sm:$0xf] %v5074_v9  ;;  %v4025_v37 = vadd.f32 %v4024_v34, %v5947_v31  ;;  %v4068_v35 = vadd.f32 %v4067_v0, %v5947_v31  ;;  %v4026_v36 = vpop.f32.mrb[85].mxu0  ;;  %v4069_v38 = vpop.f32.mrb[85].mxu1 }
 0x197   : > { %4911 = vst [vmem:[%s5963_s30 + $0x25c] sm:$0xff] %v5073_v33  ;;  %v4027_v39 = vadd.f32 %v4026_v36, %v5947_v31  ;;  %v4070_v40 = vadd.f32 %v4069_v38, %v5947_v31  ;;  %v4028_v62 = vpop.f32.mrb[86].mxu0  ;;  %v4071_v41 = vpop.f32.mrb[86].mxu1 }
 0x198   : > { %v4246_v42 = vmax.f32 %v4025_v37, 0.0  ;;  %v4248_v43 = vmax.f32 %v4068_v35, 0.0  ;;  %v4029_v44 = vadd.f32 %v4028_v62, %v5949_v32  ;;  %v4072_v45 = vadd.f32 %v4071_v41, %v5949_v32  ;;  %v4030_v46 = vpop.f32.mrb[87].mxu0  ;;  %v4073_v47 = vpop.f32.mrb[87].mxu1 }
 0x199   : > { %v4247_v48 = vmax.f32 %v4027_v39, 0.0  ;;  %v4249_v49 = vmax.f32 %v4070_v40, 0.0  ;;  %v4031_v50 = vadd.f32 %v4030_v46, %v5949_v32  ;;  %v4074_v51 = vadd.f32 %v4073_v47, %v5949_v32 }
 0x19a   : > { %v4257_v52 = vmax.f32 %v4029_v44, 0.0  ;;  %v4259_v53 = vmax.f32 %v4072_v45, 0.0 }
 0x19b   : > { %v5075_v54 = vpack.c.bf16 %v4247_v48, %v4246_v42  ;;  %v5076_v55 = vpack.c.bf16 %v4249_v49, %v4248_v43  ;;  %v4258_v56 = vmax.f32 %v4031_v50, 0.0  ;;  %v4260_v16 = vmax.f32 %v4074_v51, 0.0 }
 0x19d   : > { %4977 = vst [vmem:[%s5963_s30 + $0x268] sm:$0xff] %v5075_v54  ;;  %4978 = vst [vmem:[%s5963_s30 + $0x270] sm:$0xff] %v5076_v55  ;;  %v5081_v57 = vpack.c.bf16 %v4258_v56, %v4257_v52  ;;  %v5082_v58 = vpack.c.bf16 %v4260_v16, %v4259_v53  ;;  %v4110_v59 = vpop.f32.mrb[88].mxu0  ;;  %v4153_v60 = vpop.f32.mrb[88].mxu1 }
 0x19e   : > { %v4111_v61 = vadd.f32 %v4110_v59, %v5947_v31  ;;  %v4154_v63 = vadd.f32 %v4153_v60, %v5947_v31  ;;  %v4112_v1 = vpop.f32.mrb[89].mxu0  ;;  %v4155_v2 = vpop.f32.mrb[89].mxu1 }
 0x19f   : > { %4983 = vst [vmem:[%s5963_s30 + $0x294] sm:$0xff] %v5081_v57  ;;  %4984 = vst [vmem:[%s5963_s30 + $0x29c] sm:$0xff] %v5082_v58  ;;  %v4113_v3 = vadd.f32 %v4112_v1, %v5947_v31  ;;  %v4156_v4 = vadd.f32 %v4155_v2, %v5947_v31  ;;  %v4114_v5 = vpop.f32.mrb[90].mxu0  ;;  %v4157_v6 = vpop.f32.mrb[90].mxu1 }
 0x1a0   : > { %v4250_v7 = vmax.f32 %v4111_v61, 0.0  ;;  %v4252_v8 = vmax.f32 %v4154_v63, 0.0  ;;  %v4115_v10 = vadd.f32 %v4114_v5, %v5949_v32  ;;  %v4158_v11 = vadd.f32 %v4157_v6, %v5949_v32  ;;  %v4116_v12 = vpop.f32.mrb[91].mxu0  ;;  %v4159_v13 = vpop.f32.mrb[91].mxu1 }
 0x1a1   : > { %v4251_v14 = vmax.f32 %v4113_v3, 0.0  ;;  %v4253_v15 = vmax.f32 %v4156_v4, 0.0  ;;  %v4117_v17 = vadd.f32 %v4116_v12, %v5949_v32  ;;  %v4160_v18 = vadd.f32 %v4159_v13, %v5949_v32 }
 0x1a2   : > { %v4261_v19 = vmax.f32 %v4115_v10, 0.0  ;;  %v4263_v20 = vmax.f32 %v4158_v11, 0.0 }
 0x1a3   : > { %v5077_v21 = vpack.c.bf16 %v4251_v14, %v4250_v7  ;;  %v5078_v22 = vpack.c.bf16 %v4253_v15, %v4252_v8  ;;  %v4262_v23 = vmax.f32 %v4117_v17, 0.0  ;;  %v4264_v24 = vmax.f32 %v4160_v18, 0.0 }
 0x1a5   : > { %4979 = vst [vmem:[%s5963_s30 + $0x278] sm:$0xff] %v5077_v21  ;;  %4980 = vst [vmem:[%s5963_s30 + $0x280] sm:$0xff] %v5078_v22  ;;  %v5083_v25 = vpack.c.bf16 %v4262_v23, %v4261_v19  ;;  %v5084_v26 = vpack.c.bf16 %v4264_v24, %v4263_v20  ;;  %v4196_v27 = vpop.f32.mrb[92].mxu0  ;;  %v4239_v28 = vpop.f32.mrb[92].mxu1 }
 0x1a6   : > { %v4197_v29 = vadd.f32 %v4196_v27, %v5947_v31  ;;  %v4240_v30 = vadd.f32 %v4239_v28, %v5947_v31  ;;  %v4198_v9 = vpop.f32.mrb[93].mxu0  ;;  %v5173_v33 = vpop.f32.mrb[93].mxu1 }
 0x1a7   : > { %4985 = vst [vmem:[%s5963_s30 + $0x2a4] sm:$0xff] %v5083_v25  ;;  %4986 = vst [vmem:[%s5963_s30 + $0x2ac] sm:$0xff] %v5084_v26  ;;  %v4199_v34 = vadd.f32 %v4198_v9, %v5947_v31  ;;  %v4200_v0 = vpop.f32.mrb[94].mxu0  ;;  %v4242_v37 = vpop.f32.mrb[94].mxu1 }
 0x1a8   : > { %v4254_v35 = vmax.f32 %v4197_v29, 0.0  ;;  %v4256_v36 = vmax.f32 %v4240_v30, 0.0  ;;  %v4201_v38 = vadd.f32 %v4200_v0, %v5949_v32  ;;  %v4243_v39 = vadd.f32 %v4242_v37, %v5949_v32  ;;  %v4202_v40 = vpop.f32.mrb[95].mxu0  ;;  %v5174_v62 = vpop.f32.mrb[95].mxu1 }
 0x1a9   : > { %v4255_v41 = vmax.f32 %v4199_v34, 0.0  ;;  %v4203_v42 = vadd.f32 %v4202_v40, %v5949_v32 }
 0x1aa   : > { %v5080_v43 = vpack.c.bf16 %v4256_v36, %v4256_v36  ;;  %v4265_v44 = vmax.f32 %v4201_v38, 0.0  ;;  %v4267_v31 = vmax.f32 %v4243_v39, 0.0 }
 0x1ab   : > { %v5079_v45 = vpack.c.bf16 %v4255_v41, %v4254_v35  ;;  %v4266_v46 = vmax.f32 %v4203_v42, 0.0 }
 0x1ac   : > { %4982 = vst [vmem:[%s5963_s30 + $0x290] sm:$0xf] %v5080_v43  ;;  %v5086_v47 = vpack.c.bf16 %v4267_v31, %v4267_v31 }
 0x1ad   : > { %4981 = vst [vmem:[%s5963_s30 + $0x288] sm:$0xff] %v5079_v45  ;;  %v5085_v48 = vpack.c.bf16 %v4266_v46, %v4265_v44 }
 0x1ae   : > { %4988 = vst [vmem:[%s5963_s30 + $0x2bc] sm:$0xf] %v5086_v47 }
 0x1af   : > { %4987 = vst [vmem:[%s5963_s30 + $0x2b4] sm:$0xff] %v5085_v48 }
 0x1b0 PF: > { %s13_s12 = sadd.s32 1, %s5454_s12  }
 0x1b1   : > { %p10_p4 = scmp.ge.s32.totalorder %s13_s12, 4  }
 0x1b3   :  { %12 = sbr.rel (!%p10_p4) target bundleno = 1 (0x1), region = 76 }

// kernel: wind_turbine_forward.10
= control target key start
LH: loop header
LB: loop body
LE: loop exit
PB: predicated region body
PF: predicated region fallthrough
CT: control target
= control target key end

     0   :  { %s600_s15 = smov 0   ;;  %s715_s0 = inlined_call_operand.vmem [shape: bf16[640,128], index: 0, kind: input, shape index: {}]   ;;  %s716_s1 = inlined_call_operand.vmem [shape: bf16[640,128], index: 1, kind: input, shape index: {}]   ;;  %s717_s2 = inlined_call_operand.vmem [shape: bf16[640,128], index: 2, kind: input, shape index: {}]   ;;  %s718_s3 = inlined_call_operand.vmem [shape: bf16[640,128], index: 3, kind: input, shape index: {}]   ;;  %s719_s4 = inlined_call_operand.vmem [shape: bf16[640,128], index: 4, kind: output, shape index: {}]  }
   0x1 LB: > { %s487_s16 = sadd.s32 4294967295, %s573_s15   ;;  %p491_p0 = scmp.ge.s32.totalorder %s573_s15, 1  ;;  %s573_s15 = sphi %s600_s15, %s14_s15  }
   0x2   : > { %p196_p1 = scmp.lt.s32.totalorder %s573_s15, 6 }
   0x4   : > { %p197_p2 = pnand %p491_p0, %p196_p1 }
   0x5   : > { %s492_s17 = sshll.u32 (!%p197_p2), %s487_s16, 4 }
   0x6   : > { %200 = sbr.rel (%p197_p2) target bundleno = 47 (0x2f), region = 36  ;;  %p238_p3 = scmp.lt.s32.totalorder (!%p197_p2), %s492_s17, 79 }
   0xd   : > { %s721_s17 = smov (!%p238_p3, %s492_s17), 79 }
   0xe   : > { %s608_s18 = sshll.u32 %s721_s17, 2 }
   0xf   : > { %s614_s21 = scalar_lea.vmem %s715_s0, %s608_s18  ;;  %s620_s24 = scalar_lea.vmem %s716_s1, %s608_s18 }
  0x10   : > { %s626_s27 = scalar_lea.vmem %s717_s2, %s608_s18  ;;  %s632_s30 = scalar_lea.vmem %s718_s3, %s608_s18  ;;  %v267_v0 = vld [vmem:[%s614_s21] sm:$0xf]  ;;  %v268_v1 = vld [vmem:[%s614_s21 + $0x4] sm:$0xf]  ;;  %v269_v10 = vld [vmem:[%s614_s21 + $0x8] sm:$0xf] }
  0x11   : > { %v283_v2 = vld [vmem:[%s620_s24] sm:$0xf]  ;;  %v284_v3 = vld [vmem:[%s620_s24 + $0x4] sm:$0xf]  ;;  %v270_v13 = vld [vmem:[%s614_s21 + $0xc] sm:$0xf]  ;;  %s656_s7 = scalar_lea.vmem %s719_s4, %s608_s18 }
  0x12   : > { %v299_v4 = vmax.bf16 %v283_v2, %v267_v0  ;;  %v315_v5 = vld [vmem:[%s626_s27] sm:$0xf]  ;;  %v316_v6 = vld [vmem:[%s626_s27 + $0x4] sm:$0xf]  ;;  %v300_v7 = vmax.bf16 %v284_v3, %v268_v1  ;;  %v285_v14 = vld [vmem:[%s620_s24 + $0x8] sm:$0xf] }
  0x13   : > { %v331_v8 = vld [vmem:[%s632_s30] sm:$0xf]  ;;  %v332_v9 = vld [vmem:[%s632_s30 + $0x4] sm:$0xf]  ;;  %v286_v15 = vld [vmem:[%s620_s24 + $0xc] sm:$0xf]  ;;  %v301_v16 = vmax.bf16 %v285_v14, %v269_v10 }
  0x14   : > { %v347_v11 = vmax.bf16 %v331_v8, %v315_v5  ;;  %v348_v12 = vmax.bf16 %v332_v9, %v316_v6  ;;  %v302_v17 = vmax.bf16 %v286_v15, %v270_v13  ;;  %v317_v18 = vld [vmem:[%s626_s27 + $0x8] sm:$0xf]  ;;  %v318_v19 = vld [vmem:[%s626_s27 + $0xc] sm:$0xf]  ;;  %v271_v25 = vld [vmem:[%s614_s21 + $0x10] sm:$0xf] }
  0x15   : > { %v333_v20 = vld [vmem:[%s632_s30 + $0x8] sm:$0xf]  ;;  %v334_v23 = vld [vmem:[%s632_s30 + $0xc] sm:$0xf]  ;;  %v272_v26 = vld [vmem:[%s614_s21 + $0x14] sm:$0xf] }
  0x16   : > { %v363_v21 = vmax.bf16 %v347_v11, %v299_v4  ;;  %v364_v22 = vmax.bf16 %v348_v12, %v300_v7  ;;  %v349_v24 = vmax.bf16 %v333_v20, %v317_v18  ;;  %v350_v27 = vmax.bf16 %v334_v23, %v318_v19  ;;  %v287_v28 = vld [vmem:[%s620_s24 + $0x10] sm:$0xf]  ;;  %v288_v29 = vld [vmem:[%s620_s24 + $0x14] sm:$0xf]  ;;  %v273_v41 = vld [vmem:[%s614_s21 + $0x18] sm:$0xf] }
  0x17   : > { %v319_v30 = vld [vmem:[%s626_s27 + $0x10] sm:$0xf]  ;;  %v303_v33 = vmax.bf16 %v287_v28, %v271_v25  ;;  %v304_v34 = vmax.bf16 %v288_v29, %v272_v26  ;;  %v320_v35 = vld [vmem:[%s626_s27 + $0x14] sm:$0xf]  ;;  %v274_v42 = vld [vmem:[%s614_s21 + $0x1c] sm:$0xf] }
  0x18   : > { %v544_v31 = vcombine.low %v363_v21, %v364_v22  ;;  %v365_v32 = vmax.bf16 %v349_v24, %v301_v16  ;;  %v335_v36 = vld [vmem:[%s632_s30 + $0x10] sm:$0xf]  ;;  %v336_v37 = vld [vmem:[%s632_s30 + $0x14] sm:$0xf]  ;;  %v366_v38 = vmax.bf16 %v350_v27, %v302_v17  ;;  %v289_v43 = vld [vmem:[%s620_s24 + $0x18] sm:$0xf] }
  0x19   : > { %v351_v39 = vmax.bf16 %v335_v36, %v319_v30  ;;  %v352_v40 = vmax.bf16 %v336_v37, %v320_v35  ;;  %v290_v44 = vld [vmem:[%s620_s24 + $0x1c] sm:$0xf]  ;;  %v305_v45 = vmax.bf16 %v289_v43, %v273_v41  ;;  %v321_v46 = vld [vmem:[%s626_s27 + $0x18] sm:$0xf]  ;;  %v275_v54 = vld [vmem:[%s614_s21 + $0x20] sm:$0xf] }
  0x1a   : > { %508 = vst [vmem:[%s656_s7] sm:$0xff] %v544_v31   ;;  %v322_v47 = vld [vmem:[%s626_s27 + $0x1c] sm:$0xf]  ;;  %v545_v48 = vcombine.low %v365_v32, %v366_v38  ;;  %v306_v51 = vmax.bf16 %v290_v44, %v274_v42  ;;  %v337_v52 = vld [vmem:[%s632_s30 + $0x18] sm:$0xf]  ;;  %v276_v57 = vld [vmem:[%s614_s21 + $0x24] sm:$0xf] }
  0x1b   : > { %v367_v49 = vmax.bf16 %v351_v39, %v303_v33  ;;  %v368_v50 = vmax.bf16 %v352_v40, %v304_v34  ;;  %v338_v53 = vld [vmem:[%s632_s30 + $0x1c] sm:$0xf]  ;;  %v353_v55 = vmax.bf16 %v337_v52, %v321_v46  ;;  %v291_v58 = vld [vmem:[%s620_s24 + $0x20] sm:$0xf]  ;;  %v292_v59 = vld [vmem:[%s620_s24 + $0x24] sm:$0xf] }
  0x1c   : > { %v354_v56 = vmax.bf16 %v338_v53, %v322_v47  ;;  %546 = vst [vmem:[%s656_s7 + $0x8] sm:$0xff] %v545_v48   ;;  %v307_v61 = vmax.bf16 %v291_v58, %v275_v54  ;;  %v308_v62 = vmax.bf16 %v292_v59, %v276_v57  ;;  %v323_v63 = vld [vmem:[%s626_s27 + $0x20] sm:$0xf]  ;;  %v324_v0 = vld [vmem:[%s626_s27 + $0x24] sm:$0xf] }
  0x1d   : > { %v547_v60 = vcombine.low %v367_v49, %v368_v50  ;;  %v339_v1 = vld [vmem:[%s632_s30 + $0x20] sm:$0xf]  ;;  %v369_v2 = vmax.bf16 %v353_v55, %v305_v45  ;;  %v340_v4 = vld [vmem:[%s632_s30 + $0x24] sm:$0xf]  ;;  %v277_v6 = vld [vmem:[%s614_s21 + $0x28] sm:$0xf] }
  0x1e   : > { %v370_v3 = vmax.bf16 %v354_v56, %v306_v51  ;;  %v355_v5 = vmax.bf16 %v339_v1, %v323_v63  ;;  %v278_v7 = vld [vmem:[%s614_s21 + $0x2c] sm:$0xf]  ;;  %v356_v8 = vmax.bf16 %v340_v4, %v324_v0  ;;  %v293_v9 = vld [vmem:[%s620_s24 + $0x28] sm:$0xf]  ;;  %v279_v22 = vld [vmem:[%s614_s21 + $0x30] sm:$0xf] }
  0x1f   : > { %548 = vst [vmem:[%s656_s7 + $0x10] sm:$0xff] %v547_v60   ;;  %v294_v10 = vld [vmem:[%s620_s24 + $0x2c] sm:$0xf]  ;;  %v325_v11 = vld [vmem:[%s626_s27 + $0x28] sm:$0xf]  ;;  %v309_v14 = vmax.bf16 %v293_v9, %v277_v6 }
  0x20   : > { %v549_v12 = vcombine.low %v369_v2, %v370_v3  ;;  %v371_v13 = vmax.bf16 %v355_v5, %v307_v61  ;;  %v310_v15 = vmax.bf16 %v294_v10, %v278_v7  ;;  %v326_v16 = vld [vmem:[%s626_s27 + $0x2c] sm:$0xf]  ;;  %v341_v17 = vld [vmem:[%s632_s30 + $0x28] sm:$0xf]  ;;  %v372_v19 = vmax.bf16 %v356_v8, %v308_v62  ;;  %v280_v23 = vld [vmem:[%s614_s21 + $0x34] sm:$0xf] }
  0x21   : > { %v342_v18 = vld [vmem:[%s632_s30 + $0x2c] sm:$0xf]  ;;  %v357_v20 = vmax.bf16 %v341_v17, %v325_v11  ;;  %v295_v24 = vld [vmem:[%s620_s24 + $0x30] sm:$0xf]  ;;  %v296_v25 = vld [vmem:[%s620_s24 + $0x34] sm:$0xf] }
  0x22   : > { %v358_v21 = vmax.bf16 %v342_v18, %v326_v16  ;;  %550 = vst [vmem:[%s656_s7 + $0x18] sm:$0xff] %v549_v12   ;;  %v311_v26 = vmax.bf16 %v295_v24, %v279_v22  ;;  %v327_v27 = vld [vmem:[%s626_s27 + $0x30] sm:$0xf]  ;;  %v328_v28 = vld [vmem:[%s626_s27 + $0x34] sm:$0xf]  ;;  %v551_v29 = vcombine.low %v371_v13, %v372_v19  ;;  %v312_v32 = vmax.bf16 %v296_v25, %v280_v23 }
  0x23   : > { %v373_v30 = vmax.bf16 %v357_v20, %v309_v14  ;;  %v343_v33 = vld [vmem:[%s632_s30 + $0x30] sm:$0xf]  ;;  %v344_v34 = vld [vmem:[%s632_s30 + $0x34] sm:$0xf]  ;;  %v281_v35 = vld [vmem:[%s614_s21 + $0x38] sm:$0xf] }
  0x24   : > { %v374_v31 = vmax.bf16 %v358_v21, %v310_v15  ;;  %v359_v36 = vmax.bf16 %v343_v33, %v327_v27  ;;  %v360_v37 = vmax.bf16 %v344_v34, %v328_v28  ;;  %v282_v38 = vld [vmem:[%s614_s21 + $0x3c] sm:$0xf]  ;;  %v297_v39 = vld [vmem:[%s620_s24 + $0x38] sm:$0xf]  ;;  %552 = vst [vmem:[%s656_s7 + $0x20] sm:$0xff] %v551_v29  }
  0x25   : > { %v298_v40 = vld [vmem:[%s620_s24 + $0x3c] sm:$0xf]  ;;  %v313_v42 = vmax.bf16 %v297_v39, %v281_v35  ;;  %v329_v44 = vld [vmem:[%s626_s27 + $0x38] sm:$0xf] }
  0x26   : > { %v553_v41 = vcombine.low %v373_v30, %v374_v31  ;;  %v314_v43 = vmax.bf16 %v298_v40, %v282_v38  ;;  %v330_v45 = vld [vmem:[%s626_s27 + $0x3c] sm:$0xf]  ;;  %v345_v46 = vld [vmem:[%s632_s30 + $0x38] sm:$0xf]  ;;  %v375_v47 = vmax.bf16 %v359_v36, %v311_v26  ;;  %v376_v48 = vmax.bf16 %v360_v37, %v312_v32 }
  0x27   : > { %v346_v49 = vld [vmem:[%s632_s30 + $0x3c] sm:$0xf]  ;;  %v361_v50 = vmax.bf16 %v345_v46, %v329_v44 }
  0x28   : > { %554 = vst [vmem:[%s656_s7 + $0x28] sm:$0xff] %v553_v41   ;;  %v362_v51 = vmax.bf16 %v346_v49, %v330_v45  ;;  %v555_v52 = vcombine.low %v375_v47, %v376_v48 }
  0x29   : > { %v377_v53 = vmax.bf16 %v361_v50, %v313_v42 }
  0x2a   : > { %v378_v54 = vmax.bf16 %v362_v51, %v314_v43  ;;  %556 = vst [vmem:[%s656_s7 + $0x30] sm:$0xff] %v555_v52  }
  0x2c   : > { %v557_v55 = vcombine.low %v377_v53, %v378_v54 }
  0x2e   : > { %558 = vst [vmem:[%s656_s7 + $0x38] sm:$0xff] %v557_v55  }
  0x2f PF: > { %s14_s15 = sadd.s32 1, %s573_s15  }
  0x30   : > { %p11_p4 = scmp.ge.s32.totalorder %s14_s15, 7  }
  0x32   :  { %13 = sbr.rel (!%p11_p4) target bundleno = 1 (0x1), region = 75 }

// kernel: wind_turbine_forward.11
= control target key start
LH: loop header
LB: loop body
LE: loop exit
PB: predicated region body
PF: predicated region fallthrough
CT: control target
= control target key end

     0   :  { %s4080_s12 = smov 0   ;;  %s4711_s0 = inlined_call_operand.vmem [shape: bf16[16,144,384], index: 0, kind: input, shape index: {}]   ;;  %s4712_s1 = inlined_call_operand.vmem [shape: bf16[32,144], index: 1, kind: input, shape index: {}]   ;;  %s4713_s2 = inlined_call_operand.vmem [shape: f32[32,1], index: 2, kind: input, shape index: {}]   ;;  %s4714_s3 = inlined_call_operand.vmem [shape: bf16[16,32,384], index: 3, kind: output, shape index: {}]  }
   0x1 LB: > { %s3041_s13 = sadd.s32 4294967295, %s4057_s12   ;;  %p3045_p0 = scmp.ge.s32.totalorder %s4057_s12, 1  ;;  %s4057_s12 = sphi %s4080_s12, %s13_s12  }
   0x2   : > { %p139_p1 = scmp.lt.s32.totalorder %s4057_s12, 3 }
   0x4   : > { %p140_p2 = pnand %p3045_p0, %p139_p1 }
   0x5   : > { %s3046_s14 = sshll.u32 (!%p140_p2), %s3041_s13, 3  ;;  %v4091_v0 = vld [vmem:[%s4712_s1 + $0x4] ss:$8 sps:$4 sm:$0xff] (!%p140_p2)   ;;  %v4059_v1 = vmov (!%p140_p2), 0   ;;  %vm406_vm0 = vcmask (!%p140_p2), 130048  }
   0x6   : > { %143 = sbr.rel (%p140_p2) target bundleno = 536 (0x218), region = 32  ;;  %466 = vmatprep.subr.bf16.mxu1 (!%p140_p2), %v4059_v1  ;;  %p166_p3 = scmp.lt.s32.totalorder (!%p140_p2), %s3046_s14, 15  ;;  %3751 = vset.pattern.permute.xlu0 (!%p140_p2), %v4059_v1  ;;  %v184_v2 = vld [vmem:[%s4713_s2] sm:$0xff] (!%p140_p2)  ;;  %v185_v3 = vld [vmem:[%s4713_s2 + $0x8] sm:$0xff] (!%p140_p2)  ;;  %v4159_v34 = vld [vmem:[%s4712_s1 + $0x14] ss:$8 sps:$4 sm:$0xff] (!%p140_p2)  }
   0x7   : > { %3083 = vmatprep.mubr.msk.bf16.mxu1 (!%p140_p2), %vm406_vm0, %v4091_v0  ;;  %3081 = vmatprep.mubr.msk.bf16.mxu0 (!%p140_p2), %vm406_vm0, %v4091_v0  ;;  %v4153_v32 = vld [vmem:[%s4712_s1] ss:$8 sps:$4 sm:$0xff] (!%p140_p2)   ;;  %v4175_v40 = vld [vmem:[%s4712_s1 + $0x10] ss:$8 sps:$4 sm:$0xff] (!%p140_p2)  }
   0x8   : > { %226 = vperm.xlu0 (!%p140_p2), %3751, %v184_v2   ;;  %3752 = vset.pattern.permute.xlu1 (!%p140_p2), %v4059_v1 }
   0xc   : > { %231 = vperm.xlu0 (!%p140_p2), %3751, %v185_v3  }
   0xd   : > { %s4716_s14 = smov (!%p166_p3, %s3046_s14), 15 }
   0xe   : > { %s3740_s21 = smul.u32 216, %s4716_s14 }
   0xf   : > { %s3741_s18 = smul.u32 48, %s4716_s14 }
  0x10   : > { %s4112_s24 = scalar_lea.vmem %s4711_s0, %s3740_s21 }
  0x11   : > { %v3753_v4 = vld [vmem:[%s4112_s24 + $0x4] ss:$12 sps:$4 sm:$0xff]   ;;  %v3755_v5 = vld [vmem:[%s4112_s24 + $0x8] ss:$12 sps:$4 sm:$0xff]   ;;  %v3756_v6 = vld [vmem:[%s4112_s24] ss:$12 sps:$4 sm:$0xff]   ;;  %s4496_s20 = scalar_lea.vmem %s4714_s3, %s3741_s18 }
  0x12   : > { %413 = vmatprep.subr.bf16.mxu0 %v3753_v4  ;;  %467 = vmatpush1.bf16.msra.mxu1 %v3755_v5  ;;  %v3757_v7 = vld [vmem:[%s4112_s24 + $0x1c] ss:$12 sps:$4 sm:$0xff]   ;;  %v3759_v8 = vld [vmem:[%s4112_s24 + $0x20] ss:$12 sps:$4 sm:$0xff]   ;;  %v3760_v9 = vld [vmem:[%s4112_s24 + $0x18] ss:$12 sps:$4 sm:$0xff]  }
  0x13   : > { %414 = vmatpush1.bf16.msra.mxu0 %v3756_v6  ;;  %468 = vmatprep.subr.bf16.mxu1 %v4059_v1  ;;  %v3761_v10 = vld [vmem:[%s4112_s24 + $0x34] ss:$12 sps:$4 sm:$0xff]   ;;  %v3763_v11 = vld [vmem:[%s4112_s24 + $0x38] ss:$12 sps:$4 sm:$0xff]   ;;  %v3764_v12 = vld [vmem:[%s4112_s24 + $0x30] ss:$12 sps:$4 sm:$0xff]  }
  0x14   : > { %415 = vmatprep.subr.bf16.mxu0 %v3757_v7  ;;  %v3765_v13 = vld [vmem:[%s4112_s24 + $0x4c] ss:$12 sps:$4 sm:$0xff]   ;;  %v3767_v14 = vld [vmem:[%s4112_s24 + $0x50] ss:$12 sps:$4 sm:$0xff]   ;;  %v3768_v15 = vld [vmem:[%s4112_s24 + $0x48] ss:$12 sps:$4 sm:$0xff]  }
  0x15   : > { %v3769_v16 = vld [vmem:[%s4112_s24 + $0x64] ss:$12 sps:$4 sm:$0xff]   ;;  %v3771_v17 = vld [vmem:[%s4112_s24 + $0x68] ss:$12 sps:$4 sm:$0xff]   ;;  %v3772_v18 = vld [vmem:[%s4112_s24 + $0x60] ss:$12 sps:$4 sm:$0xff]  }
  0x16   : > { %469 = vmatpush1.bf16.msra.mxu1 %v3759_v8  ;;  %v3773_v19 = vld [vmem:[%s4112_s24 + $0x7c] ss:$12 sps:$4 sm:$0xff]   ;;  %v3775_v20 = vld [vmem:[%s4112_s24 + $0x80] ss:$12 sps:$4 sm:$0xff]   ;;  %v3776_v21 = vld [vmem:[%s4112_s24 + $0x78] ss:$12 sps:$4 sm:$0xff]  }
  0x17   : > { %416 = vmatpush1.bf16.msra.mxu0 %v3760_v9  ;;  %470 = vmatprep.subr.bf16.mxu1 %v4059_v1  ;;  %v3777_v22 = vld [vmem:[%s4112_s24 + $0x94] ss:$12 sps:$4 sm:$0xff]   ;;  %v3779_v23 = vld [vmem:[%s4112_s24 + $0x98] ss:$12 sps:$4 sm:$0xff]   ;;  %v3780_v24 = vld [vmem:[%s4112_s24 + $0x90] ss:$12 sps:$4 sm:$0xff]  }
  0x18   : > { %417 = vmatprep.subr.bf16.mxu0 %v3761_v10  ;;  %v3781_v25 = vld [vmem:[%s4112_s24 + $0xac] ss:$12 sps:$4 sm:$0xff]   ;;  %v3783_v26 = vld [vmem:[%s4112_s24 + $0xb0] ss:$12 sps:$4 sm:$0xff]   ;;  %v3784_v27 = vld [vmem:[%s4112_s24 + $0xa8] ss:$12 sps:$4 sm:$0xff]  }
  0x19   : > { %v3785_v28 = vld [vmem:[%s4112_s24 + $0xc4] ss:$12 sps:$4 sm:$0xff]   ;;  %v3787_v29 = vld [vmem:[%s4112_s24 + $0xc8] ss:$12 sps:$4 sm:$0xff]   ;;  %v3788_v30 = vld [vmem:[%s4112_s24 + $0xc0] ss:$12 sps:$4 sm:$0xff]  }
  0x1a   : > { %471 = vmatpush1.bf16.msra.mxu1 %v3763_v11  ;;  %v3794_v31 = vld [vmem:[%s4112_s24 + $0xdc] ss:$12 sps:$4 sm:$0xff]   ;;  %v3795_v33 = vld [vmem:[%s4112_s24 + $0xe0] ss:$12 sps:$4 sm:$0xff]   ;;  %v3792_v35 = vld [vmem:[%s4112_s24 + $0xd8] ss:$12 sps:$4 sm:$0xff]  }
  0x1b   : > { %418 = vmatpush1.bf16.msra.mxu0 %v3764_v12  ;;  %472 = vmatprep.subr.bf16.mxu1 %v4059_v1  ;;  %v3798_v36 = vld [vmem:[%s4112_s24 + $0xf4] ss:$12 sps:$4 sm:$0xff]   ;;  %v3799_v37 = vld [vmem:[%s4112_s24 + $0xf8] ss:$12 sps:$4 sm:$0xff]   ;;  %v3796_v38 = vld [vmem:[%s4112_s24 + $0xf0] ss:$12 sps:$4 sm:$0xff]  }
  0x1c   : > { %419 = vmatprep.subr.bf16.mxu0 %v3765_v13  ;;  %v3802_v39 = vld [vmem:[%s4112_s24 + $0x10c] ss:$12 sps:$4 sm:$0xff]   ;;  %v3803_v41 = vld [vmem:[%s4112_s24 + $0x110] ss:$12 sps:$4 sm:$0xff]   ;;  %v3800_v42 = vld [vmem:[%s4112_s24 + $0x108] ss:$12 sps:$4 sm:$0xff]  }
  0x1d   : > { %v3806_v43 = vld [vmem:[%s4112_s24 + $0x124] ss:$12 sps:$4 sm:$0xff]   ;;  %v3807_v44 = vld [vmem:[%s4112_s24 + $0x128] ss:$12 sps:$4 sm:$0xff]   ;;  %v3804_v45 = vld [vmem:[%s4112_s24 + $0x120] ss:$12 sps:$4 sm:$0xff]  }
  0x1e   : > { %473 = vmatpush1.bf16.msra.mxu1 %v3767_v14  ;;  %v3810_v46 = vld [vmem:[%s4112_s24 + $0x13c] ss:$12 sps:$4 sm:$0xff]   ;;  %v3811_v47 = vld [vmem:[%s4112_s24 + $0x140] ss:$12 sps:$4 sm:$0xff]   ;;  %v3808_v48 = vld [vmem:[%s4112_s24 + $0x138] ss:$12 sps:$4 sm:$0xff]  }
  0x1f   : > { %420 = vmatpush1.bf16.msra.mxu0 %v3768_v15  ;;  %474 = vmatprep.subr.bf16.mxu1 %v4059_v1  ;;  %v3814_v49 = vld [vmem:[%s4112_s24 + $0x154] ss:$12 sps:$4 sm:$0xff]   ;;  %v3815_v50 = vld [vmem:[%s4112_s24 + $0x158] ss:$12 sps:$4 sm:$0xff]   ;;  %v3812_v51 = vld [vmem:[%s4112_s24 + $0x150] ss:$12 sps:$4 sm:$0xff]  }
  0x20   : > { %421 = vmatprep.subr.bf16.mxu0 %v3769_v16  ;;  %v3818_v52 = vld [vmem:[%s4112_s24 + $0x16c] ss:$12 sps:$4 sm:$0xff]   ;;  %v3819_v53 = vld [vmem:[%s4112_s24 + $0x170] ss:$12 sps:$4 sm:$0xff]   ;;  %v3816_v54 = vld [vmem:[%s4112_s24 + $0x168] ss:$12 sps:$4 sm:$0xff]  }
  0x21   : > { %v3825_v55 = vld [vmem:[%s4112_s24 + $0x184] ss:$12 sps:$4 sm:$0xff]   ;;  %v3826_v56 = vld [vmem:[%s4112_s24 + $0x188] ss:$12 sps:$4 sm:$0xff]   ;;  %v3823_v57 = vld [vmem:[%s4112_s24 + $0x180] ss:$12 sps:$4 sm:$0xff]  }
  0x22   : > { %475 = vmatpush1.bf16.msra.mxu1 %v3771_v17  ;;  %v3829_v58 = vld [vmem:[%s4112_s24 + $0x19c] ss:$12 sps:$4 sm:$0xff]   ;;  %v3830_v59 = vld [vmem:[%s4112_s24 + $0x1a0] ss:$12 sps:$4 sm:$0xff]   ;;  %v3827_v60 = vld [vmem:[%s4112_s24 + $0x198] ss:$12 sps:$4 sm:$0xff]  }
  0x23   : > { %422 = vmatpush1.bf16.msra.mxu0 %v3772_v18  ;;  %476 = vmatprep.subr.bf16.mxu1 %v4059_v1  ;;  %v3833_v61 = vld [vmem:[%s4112_s24 + $0x1b4] ss:$12 sps:$4 sm:$0xff]   ;;  %v3834_v62 = vld [vmem:[%s4112_s24 + $0x1b8] ss:$12 sps:$4 sm:$0xff]   ;;  %v3831_v63 = vld [vmem:[%s4112_s24 + $0x1b0] ss:$12 sps:$4 sm:$0xff]  }
  0x24   : > { %423 = vmatprep.subr.bf16.mxu0 %v3773_v19  ;;  %v3837_v2 = vld [vmem:[%s4112_s24 + $0x1cc] ss:$12 sps:$4 sm:$0xff]   ;;  %v3838_v3 = vld [vmem:[%s4112_s24 + $0x1d0] ss:$12 sps:$4 sm:$0xff]   ;;  %v3835_v4 = vld [vmem:[%s4112_s24 + $0x1c8] ss:$12 sps:$4 sm:$0xff]  }
  0x25   : > { %v3841_v5 = vld [vmem:[%s4112_s24 + $0x1e4] ss:$12 sps:$4 sm:$0xff]   ;;  %v3842_v6 = vld [vmem:[%s4112_s24 + $0x1e8] ss:$12 sps:$4 sm:$0xff]   ;;  %v3839_v7 = vld [vmem:[%s4112_s24 + $0x1e0] ss:$12 sps:$4 sm:$0xff]  }
  0x26   : > { %477 = vmatpush1.bf16.msra.mxu1 %v3775_v20  ;;  %v3845_v8 = vld [vmem:[%s4112_s24 + $0x1fc] ss:$12 sps:$4 sm:$0xff]   ;;  %v3846_v9 = vld [vmem:[%s4112_s24 + $0x200] ss:$12 sps:$4 sm:$0xff]   ;;  %v3843_v10 = vld [vmem:[%s4112_s24 + $0x1f8] ss:$12 sps:$4 sm:$0xff]  }
  0x27   : > { %424 = vmatpush1.bf16.msra.mxu0 %v3776_v21  ;;  %478 = vmatprep.subr.bf16.mxu1 %v4059_v1  ;;  %v3849_v11 = vld [vmem:[%s4112_s24 + $0x214] ss:$12 sps:$4 sm:$0xff]   ;;  %v3847_v13 = vld [vmem:[%s4112_s24 + $0x210] ss:$12 sps:$4 sm:$0xff]   ;;  %v3850_v14 = vld [vmem:[%s4112_s24 + $0x218] ss:$12 sps:$4 sm:$0xff]  }
  0x28   : > { %425 = vmatprep.subr.bf16.mxu0 %v3777_v22  ;;  %v186_v12 = vld [vmem:[%s4713_s2 + $0x10] sm:$0xff]  ;;  %v3853_v15 = vld [vmem:[%s4112_s24 + $0x22c] ss:$12 sps:$4 sm:$0xff]   ;;  %v3861_v22 = vld [vmem:[%s4112_s24 + $0x25c] ss:$12 sps:$4 sm:$0xff]  }
  0x29   : > { %236 = vperm.xlu1 %3752, %v186_v12   ;;  %v187_v16 = vld [vmem:[%s4713_s2 + $0x18] sm:$0xff]  ;;  %v3851_v18 = vld [vmem:[%s4112_s24 + $0x228] ss:$12 sps:$4 sm:$0xff]   ;;  %v3857_v19 = vld [vmem:[%s4112_s24 + $0x244] ss:$12 sps:$4 sm:$0xff]  }
  0x2a   : > { %479 = vmatpush1.bf16.msra.mxu1 %v3779_v23  ;;  %v3854_v17 = vld [vmem:[%s4112_s24 + $0x230] ss:$12 sps:$4 sm:$0xff]   ;;  %v3858_v20 = vld [vmem:[%s4112_s24 + $0x248] ss:$12 sps:$4 sm:$0xff]   ;;  %v3855_v21 = vld [vmem:[%s4112_s24 + $0x240] ss:$12 sps:$4 sm:$0xff]  }
  0x2b   : > { %426 = vmatpush1.bf16.msra.mxu0 %v3780_v24  ;;  %480 = vmatprep.subr.bf16.mxu1 %v4059_v1  ;;  %v3862_v23 = vld [vmem:[%s4112_s24 + $0x260] ss:$12 sps:$4 sm:$0xff]   ;;  %v3859_v24 = vld [vmem:[%s4112_s24 + $0x258] ss:$12 sps:$4 sm:$0xff]  }
  0x2c   : > { %427 = vmatprep.subr.bf16.mxu0 %v3781_v25  ;;  %v3865_v25 = vld [vmem:[%s4112_s24 + $0x274] ss:$12 sps:$4 sm:$0xff]   ;;  %v3930_v12 = vld [vmem:[%s4112_s24 + $0x3f8] ss:$12 sps:$4 sm:$0xff]  }
  0x2d   : > { %241 = vperm.xlu1 %3752, %v187_v16   ;;  %v3931_v16 = vld [vmem:[%s4112_s24 + $0x408] ss:$12 sps:$4 sm:$0xff]  }
  0x2e   : > { %481 = vmatpush1.bf16.msra.mxu1 %v3783_v26  ;;  %v3866_v26 = vld [vmem:[%s4112_s24 + $0x278] ss:$12 sps:$4 sm:$0xff]  }
  0x2f   : > { %428 = vmatpush1.bf16.msra.mxu0 %v3784_v27  ;;  %482 = vmatprep.subr.bf16.mxu1 %v4059_v1  ;;  %v3863_v27 = vld [vmem:[%s4112_s24 + $0x270] ss:$12 sps:$4 sm:$0xff]  }
  0x30   : > { %429 = vmatprep.subr.bf16.mxu0 %v3785_v28  ;;  %v3869_v28 = vld [vmem:[%s4112_s24 + $0x28c] ss:$12 sps:$4 sm:$0xff]  }
  0x32   : > { %483 = vmatpush1.bf16.msra.mxu1 %v3787_v29  ;;  %v3870_v29 = vld [vmem:[%s4112_s24 + $0x290] ss:$12 sps:$4 sm:$0xff]  }
  0x33   : > { %430 = vmatpush1.bf16.msra.mxu0 %v3788_v30  ;;  %809 = vmatprep.subr.bf16.mxu1 %v4059_v1  ;;  %v3867_v30 = vld [vmem:[%s4112_s24 + $0x288] ss:$12 sps:$4 sm:$0xff]  }
  0x34   : > { %756 = vmatprep.subr.bf16.mxu0 %v3794_v31  ;;  %v3873_v31 = vld [vmem:[%s4112_s24 + $0x2a4] ss:$12 sps:$4 sm:$0xff]  }
  0x35   : > { %499 = vmatmul.mubr.bf16.vlgmr.msra.gmra.mrb[0].mxu1 %v4153_v32 }
  0x36   : > { %446 = vmatmul.mubr.bf16.vlgmr.msra.gmra.mrb[0].mxu0 %v4153_v32  ;;  %810 = vmatpush1.bf16.msra.mxu1 %v3795_v33  ;;  %v3874_v33 = vld [vmem:[%s4112_s24 + $0x2a8] ss:$12 sps:$4 sm:$0xff]  }
  0x37   : > { %757 = vmatpush1.bf16.msra.mxu0 %v3792_v35  ;;  %811 = vmatprep.subr.bf16.mxu1 %v4059_v1  ;;  %v3871_v35 = vld [vmem:[%s4112_s24 + $0x2a0] ss:$12 sps:$4 sm:$0xff]  }
  0x38   : > { %758 = vmatprep.subr.bf16.mxu0 %v3798_v36  ;;  %3082 = vmatprep.mubr.msk.bf16.mxu0 %vm406_vm0, %v4159_v34  ;;  %v3877_v36 = vld [vmem:[%s4112_s24 + $0x2bc] ss:$12 sps:$4 sm:$0xff]  }
  0x39   : > { %3084 = vmatprep.mubr.msk.bf16.mxu1 %vm406_vm0, %v4159_v34 }
  0x3a   : > { %812 = vmatpush1.bf16.msra.mxu1 %v3799_v37  ;;  %v3878_v37 = vld [vmem:[%s4112_s24 + $0x2c0] ss:$12 sps:$4 sm:$0xff]  }
  0x3b   : > { %759 = vmatpush1.bf16.msra.mxu0 %v3796_v38  ;;  %813 = vmatprep.subr.bf16.mxu1 %v4059_v1  ;;  %v3875_v38 = vld [vmem:[%s4112_s24 + $0x2b8] ss:$12 sps:$4 sm:$0xff]  }
  0x3c   : > { %760 = vmatprep.subr.bf16.mxu0 %v3802_v39  ;;  %v3881_v39 = vld [vmem:[%s4112_s24 + $0x2d4] ss:$12 sps:$4 sm:$0xff]  }
  0x3d   : > { %507 = vmatmul.mubr.bf16.gmra.mrb[4].mxu1 %v4175_v40 }
  0x3e   : > { %814 = vmatpush1.bf16.msra.mxu1 %v3803_v41  ;;  %456 = vmatmul.mubr.bf16.gmra.mrb[4].mxu0 %v4175_v40  ;;  %v3882_v41 = vld [vmem:[%s4112_s24 + $0x2d8] ss:$12 sps:$4 sm:$0xff]  }
  0x3f   : > { %761 = vmatpush1.bf16.msra.mxu0 %v3800_v42  ;;  %815 = vmatprep.subr.bf16.mxu1 %v4059_v1  ;;  %v3879_v42 = vld [vmem:[%s4112_s24 + $0x2d0] ss:$12 sps:$4 sm:$0xff]  }
  0x40   : > { %762 = vmatprep.subr.bf16.mxu0 %v3806_v43  ;;  %3158 = vmatprep.mubr.msk.bf16.mxu1 %vm406_vm0, %v4091_v0  ;;  %v3885_v43 = vld [vmem:[%s4112_s24 + $0x2ec] ss:$12 sps:$4 sm:$0xff]  }
  0x41   : > { %3156 = vmatprep.mubr.msk.bf16.mxu0 %vm406_vm0, %v4091_v0 }
  0x42   : > { %816 = vmatpush1.bf16.msra.mxu1 %v3807_v44  ;;  %v3886_v44 = vld [vmem:[%s4112_s24 + $0x2f0] ss:$12 sps:$4 sm:$0xff]  }
  0x43   : > { %763 = vmatpush1.bf16.msra.mxu0 %v3804_v45  ;;  %817 = vmatprep.subr.bf16.mxu1 %v4059_v1  ;;  %v3883_v45 = vld [vmem:[%s4112_s24 + $0x2e8] ss:$12 sps:$4 sm:$0xff]  }
  0x44   : > { %764 = vmatprep.subr.bf16.mxu0 %v3810_v46  ;;  %v3889_v46 = vld [vmem:[%s4112_s24 + $0x304] ss:$12 sps:$4 sm:$0xff]  }
  0x46   : > { %818 = vmatpush1.bf16.msra.mxu1 %v3811_v47  ;;  %v3890_v47 = vld [vmem:[%s4112_s24 + $0x308] ss:$12 sps:$4 sm:$0xff]  }
  0x47   : > { %765 = vmatpush1.bf16.msra.mxu0 %v3808_v48  ;;  %819 = vmatprep.subr.bf16.mxu1 %v4059_v1  ;;  %v3887_v48 = vld [vmem:[%s4112_s24 + $0x300] ss:$12 sps:$4 sm:$0xff]  }
  0x48   : > { %766 = vmatprep.subr.bf16.mxu0 %v3814_v49  ;;  %v3894_v49 = vld [vmem:[%s4112_s24 + $0x320] ss:$12 sps:$4 sm:$0xff]  }
  0x4a   : > { %820 = vmatpush1.bf16.msra.mxu1 %v3815_v50  ;;  %v3891_v50 = vld [vmem:[%s4112_s24 + $0x318] ss:$12 sps:$4 sm:$0xff]  }
  0x4b   : > { %767 = vmatpush1.bf16.msra.mxu0 %v3812_v51  ;;  %821 = vmatprep.subr.bf16.mxu1 %v4059_v1  ;;  %v3897_v51 = vld [vmem:[%s4112_s24 + $0x334] ss:$12 sps:$4 sm:$0xff]  }
  0x4c   : > { %768 = vmatprep.subr.bf16.mxu0 %v3818_v52  ;;  %v3898_v52 = vld [vmem:[%s4112_s24 + $0x338] ss:$12 sps:$4 sm:$0xff]  }
  0x4e   : > { %822 = vmatpush1.bf16.msra.mxu1 %v3819_v53  ;;  %v3895_v53 = vld [vmem:[%s4112_s24 + $0x330] ss:$12 sps:$4 sm:$0xff]  }
  0x4f   : > { %769 = vmatpush1.bf16.msra.mxu0 %v3816_v54  ;;  %823 = vmatprep.subr.bf16.mxu1 %v4059_v1  ;;  %v3901_v54 = vld [vmem:[%s4112_s24 + $0x34c] ss:$12 sps:$4 sm:$0xff]  }
  0x50   : > { %770 = vmatprep.subr.bf16.mxu0 %v3825_v55  ;;  %v3902_v55 = vld [vmem:[%s4112_s24 + $0x350] ss:$12 sps:$4 sm:$0xff]  }
  0x52   : > { %824 = vmatpush1.bf16.msra.mxu1 %v3826_v56  ;;  %v3899_v56 = vld [vmem:[%s4112_s24 + $0x348] ss:$12 sps:$4 sm:$0xff]  }
  0x53   : > { %771 = vmatpush1.bf16.msra.mxu0 %v3823_v57  ;;  %825 = vmatprep.subr.bf16.mxu1 %v4059_v1  ;;  %v3905_v57 = vld [vmem:[%s4112_s24 + $0x364] ss:$12 sps:$4 sm:$0xff]  }
  0x54   : > { %772 = vmatprep.subr.bf16.mxu0 %v3829_v58  ;;  %v3906_v58 = vld [vmem:[%s4112_s24 + $0x368] ss:$12 sps:$4 sm:$0xff]  }
  0x56   : > { %826 = vmatpush1.bf16.msra.mxu1 %v3830_v59  ;;  %v3903_v59 = vld [vmem:[%s4112_s24 + $0x360] ss:$12 sps:$4 sm:$0xff]  }
  0x57   : > { %773 = vmatpush1.bf16.msra.mxu0 %v3827_v60  ;;  %1153 = vmatprep.subr.bf16.mxu1 %v4059_v1  ;;  %v3909_v60 = vld [vmem:[%s4112_s24 + $0x37c] ss:$12 sps:$4 sm:$0xff]  }
  0x58   : > { %1100 = vmatprep.subr.bf16.mxu0 %v3833_v61  ;;  %v3910_v61 = vld [vmem:[%s4112_s24 + $0x380] ss:$12 sps:$4 sm:$0xff]  }
  0x59   : > { %842 = vmatmul.mubr.bf16.vlgmr.msra.gmra.mrb[8].mxu1 %v4153_v32 }
  0x5a   : > { %789 = vmatmul.mubr.bf16.vlgmr.msra.gmra.mrb[8].mxu0 %v4153_v32  ;;  %1154 = vmatpush1.bf16.msra.mxu1 %v3834_v62  ;;  %v3907_v62 = vld [vmem:[%s4112_s24 + $0x378] ss:$12 sps:$4 sm:$0xff]  }
  0x5b   : > { %1101 = vmatpush1.bf16.msra.mxu0 %v3831_v63  ;;  %1155 = vmatprep.subr.bf16.mxu1 %v4059_v1  ;;  %v3913_v63 = vld [vmem:[%s4112_s24 + $0x394] ss:$12 sps:$4 sm:$0xff]  }
  0x5c   : > { %1102 = vmatprep.subr.bf16.mxu0 %v3837_v2  ;;  %3157 = vmatprep.mubr.msk.bf16.mxu0 %vm406_vm0, %v4159_v34  ;;  %v3911_v2 = vld [vmem:[%s4112_s24 + $0x390] ss:$12 sps:$4 sm:$0xff]  }
  0x5d   : > { %3159 = vmatprep.mubr.msk.bf16.mxu1 %vm406_vm0, %v4159_v34 }
  0x5e   : > { %1156 = vmatpush1.bf16.msra.mxu1 %v3838_v3  ;;  %v3917_v3 = vld [vmem:[%s4112_s24 + $0x3ac] ss:$12 sps:$4 sm:$0xff]  }
  0x5f   : > { %1103 = vmatpush1.bf16.msra.mxu0 %v3835_v4  ;;  %1157 = vmatprep.subr.bf16.mxu1 %v4059_v1  ;;  %v3918_v4 = vld [vmem:[%s4112_s24 + $0x3b0] ss:$12 sps:$4 sm:$0xff]  }
  0x60   : > { %1104 = vmatprep.subr.bf16.mxu0 %v3841_v5  ;;  %v3921_v5 = vld [vmem:[%s4112_s24 + $0x3c4] ss:$12 sps:$4 sm:$0xff]  }
  0x61   : > { %850 = vmatmul.mubr.bf16.gmra.mrb[12].mxu1 %v4175_v40 }
  0x62   : > { %1158 = vmatpush1.bf16.msra.mxu1 %v3842_v6  ;;  %799 = vmatmul.mubr.bf16.gmra.mrb[12].mxu0 %v4175_v40  ;;  %v4342_v6 = vld [vmem:[%s4712_s1 + $0x4] ss:$8 sps:$4 sm:$0xff]  }
  0x63   : > { %1105 = vmatpush1.bf16.msra.mxu0 %v3839_v7  ;;  %1159 = vmatprep.subr.bf16.mxu1 %v4059_v1  ;;  %v3919_v7 = vld [vmem:[%s4112_s24 + $0x3c0] ss:$12 sps:$4 sm:$0xff]  }
  0x64   : > { %1106 = vmatprep.subr.bf16.mxu0 %v3845_v8  ;;  %3241 = vmatprep.mubr.msk.bf16.mxu1 %vm406_vm0, %v4091_v0  ;;  %v3925_v8 = vld [vmem:[%s4112_s24 + $0x3dc] ss:$12 sps:$4 sm:$0xff]  }
  0x65   : > { %3239 = vmatprep.mubr.msk.bf16.mxu0 %vm406_vm0, %v4091_v0 }
  0x66   : > { %1160 = vmatpush1.bf16.msra.mxu1 %v3846_v9  ;;  %v3926_v9 = vld [vmem:[%s4112_s24 + $0x3e0] ss:$12 sps:$4 sm:$0xff]  }
  0x67   : > { %1107 = vmatpush1.bf16.msra.mxu0 %v3843_v10  ;;  %1161 = vmatprep.subr.bf16.mxu1 %v4059_v1  ;;  %v3923_v10 = vld [vmem:[%s4112_s24 + $0x3d8] ss:$12 sps:$4 sm:$0xff]  }
  0x68   : > { %1108 = vmatprep.subr.bf16.mxu0 %v3849_v11  ;;  %v3929_v11 = vld [vmem:[%s4112_s24 + $0x3f4] ss:$12 sps:$4 sm:$0xff]  }
  0x6a   : > { %1162 = vmatpush1.bf16.msra.mxu1 %v3850_v14  ;;  %v3933_v14 = vld [vmem:[%s4112_s24 + $0x40c] ss:$12 sps:$4 sm:$0xff]  }
  0x6b   : > { %1109 = vmatpush1.bf16.msra.mxu0 %v3847_v13  ;;  %1163 = vmatprep.subr.bf16.mxu1 %v4059_v1  ;;  %v3927_v13 = vld [vmem:[%s4112_s24 + $0x3f0] ss:$12 sps:$4 sm:$0xff]  }
  0x6c   : > { %1110 = vmatprep.subr.bf16.mxu0 %v3853_v15  ;;  %v3934_v15 = vld [vmem:[%s4112_s24 + $0x410] ss:$12 sps:$4 sm:$0xff]  }
  0x6e   : > { %1164 = vmatpush1.bf16.msra.mxu1 %v3854_v17  ;;  %v3937_v17 = vld [vmem:[%s4112_s24 + $0x424] ss:$12 sps:$4 sm:$0xff]  }
  0x6f   : > { %1111 = vmatpush1.bf16.msra.mxu0 %v3851_v18  ;;  %1165 = vmatprep.subr.bf16.mxu1 %v4059_v1  ;;  %v3938_v18 = vld [vmem:[%s4112_s24 + $0x428] ss:$12 sps:$4 sm:$0xff]  }
  0x70   : > { %1112 = vmatprep.subr.bf16.mxu0 %v3857_v19  ;;  %v3935_v19 = vld [vmem:[%s4112_s24 + $0x420] ss:$12 sps:$4 sm:$0xff]  }
  0x72   : > { %1166 = vmatpush1.bf16.msra.mxu1 %v3858_v20  ;;  %v3941_v20 = vld [vmem:[%s4112_s24 + $0x43c] ss:$12 sps:$4 sm:$0xff]  }
  0x73   : > { %1113 = vmatpush1.bf16.msra.mxu0 %v3855_v21  ;;  %1167 = vmatprep.subr.bf16.mxu1 %v4059_v1  ;;  %v3942_v21 = vld [vmem:[%s4112_s24 + $0x440] ss:$12 sps:$4 sm:$0xff]  }
  0x74   : > { %1114 = vmatprep.subr.bf16.mxu0 %v3861_v22  ;;  %v3939_v22 = vld [vmem:[%s4112_s24 + $0x438] ss:$12 sps:$4 sm:$0xff]  }
  0x76   : > { %1168 = vmatpush1.bf16.msra.mxu1 %v3862_v23  ;;  %v3945_v23 = vld [vmem:[%s4112_s24 + $0x454] ss:$12 sps:$4 sm:$0xff]  }
  0x77   : > { %1115 = vmatpush1.bf16.msra.mxu0 %v3859_v24  ;;  %1169 = vmatprep.subr.bf16.mxu1 %v4059_v1  ;;  %v4375_v24 = vld [vmem:[%s4712_s1] ss:$8 sps:$4 sm:$0xff]  }
  0x78   : > { %1116 = vmatprep.subr.bf16.mxu0 %v3865_v25  ;;  %v3946_v25 = vld [vmem:[%s4112_s24 + $0x458] ss:$12 sps:$4 sm:$0xff]  }
  0x7a   : > { %1170 = vmatpush1.bf16.msra.mxu1 %v3866_v26  ;;  %v3943_v26 = vld [vmem:[%s4112_s24 + $0x450] ss:$12 sps:$4 sm:$0xff]  }
  0x7b   : > { %1117 = vmatpush1.bf16.msra.mxu0 %v3863_v27  ;;  %1497 = vmatprep.subr.bf16.mxu1 %v4059_v1  ;;  %v3949_v27 = vld [vmem:[%s4112_s24 + $0x46c] ss:$12 sps:$4 sm:$0xff]  }
  0x7c   : > { %1444 = vmatprep.subr.bf16.mxu0 %v3869_v28  ;;  %v4386_v28 = vld [vmem:[%s4712_s1 + $0x14] ss:$8 sps:$4 sm:$0xff]  }
  0x7d   : > { %1186 = vmatmul.mubr.bf16.vlgmr.msra.gmra.mrb[16].mxu1 %v4153_v32 }
  0x7e   : > { %1133 = vmatmul.mubr.bf16.vlgmr.msra.gmra.mrb[16].mxu0 %v4153_v32  ;;  %1498 = vmatpush1.bf16.msra.mxu1 %v3870_v29  ;;  %v3950_v29 = vld [vmem:[%s4112_s24 + $0x470] ss:$12 sps:$4 sm:$0xff]  }
  0x7f   : > { %1445 = vmatpush1.bf16.msra.mxu0 %v3867_v30  ;;  %1499 = vmatprep.subr.bf16.mxu1 %v4059_v1  ;;  %v3947_v30 = vld [vmem:[%s4112_s24 + $0x468] ss:$12 sps:$4 sm:$0xff]  }
  0x80   : > { %1446 = vmatprep.subr.bf16.mxu0 %v3873_v31  ;;  %3240 = vmatprep.mubr.msk.bf16.mxu0 %vm406_vm0, %v4159_v34  ;;  %v3953_v31 = vld [vmem:[%s4112_s24 + $0x484] ss:$12 sps:$4 sm:$0xff]  }
  0x81   : > { %3242 = vmatprep.mubr.msk.bf16.mxu1 %vm406_vm0, %v4159_v34 }
  0x82   : > { %1500 = vmatpush1.bf16.msra.mxu1 %v3874_v33  ;;  %v4399_v33 = vld [vmem:[%s4712_s1 + $0x10] ss:$8 sps:$4 sm:$0xff]  }
  0x83   : > { %1447 = vmatpush1.bf16.msra.mxu0 %v3871_v35  ;;  %1501 = vmatprep.subr.bf16.mxu1 %v4059_v1  ;;  %v3954_v35 = vld [vmem:[%s4112_s24 + $0x488] ss:$12 sps:$4 sm:$0xff]  }
  0x84   : > { %1448 = vmatprep.subr.bf16.mxu0 %v3877_v36  ;;  %v3951_v36 = vld [vmem:[%s4112_s24 + $0x480] ss:$12 sps:$4 sm:$0xff]  }
  0x85   : > { %1194 = vmatmul.mubr.bf16.gmra.mrb[20].mxu1 %v4175_v40 }
  0x86   : > { %1502 = vmatpush1.bf16.msra.mxu1 %v3878_v37  ;;  %1143 = vmatmul.mubr.bf16.gmra.mrb[20].mxu0 %v4175_v40  ;;  %v3957_v37 = vld [vmem:[%s4112_s24 + $0x49c] ss:$12 sps:$4 sm:$0xff]  }
  0x87   : > { %1449 = vmatpush1.bf16.msra.mxu0 %v3875_v38  ;;  %1503 = vmatprep.subr.bf16.mxu1 %v4059_v1  ;;  %v3958_v38 = vld [vmem:[%s4112_s24 + $0x4a0] ss:$12 sps:$4 sm:$0xff]  }
  0x88   : > { %1450 = vmatprep.subr.bf16.mxu0 %v3881_v39  ;;  %3324 = vmatprep.mubr.msk.bf16.mxu1 %vm406_vm0, %v4091_v0  ;;  %v3955_v39 = vld [vmem:[%s4112_s24 + $0x498] ss:$12 sps:$4 sm:$0xff]  }
  0x89   : > { %3322 = vmatprep.mubr.msk.bf16.mxu0 %vm406_vm0, %v4091_v0  ;;  %v3893_v0 = vld [vmem:[%s4112_s24 + $0x31c] ss:$12 sps:$4 sm:$0xff]  }
  0x8a   : > { %1504 = vmatpush1.bf16.msra.mxu1 %v3882_v41  ;;  %v3961_v41 = vld [vmem:[%s4112_s24 + $0x4b4] ss:$12 sps:$4 sm:$0xff]  }
  0x8b   : > { %1451 = vmatpush1.bf16.msra.mxu0 %v3879_v42  ;;  %1505 = vmatprep.subr.bf16.mxu1 %v4059_v1  ;;  %v3962_v42 = vld [vmem:[%s4112_s24 + $0x4b8] ss:$12 sps:$4 sm:$0xff]  }
  0x8c   : > { %1452 = vmatprep.subr.bf16.mxu0 %v3885_v43  ;;  %v3959_v43 = vld [vmem:[%s4112_s24 + $0x4b0] ss:$12 sps:$4 sm:$0xff]  }
  0x8e   : > { %1506 = vmatpush1.bf16.msra.mxu1 %v3886_v44  ;;  %v3965_v44 = vld [vmem:[%s4112_s24 + $0x4cc] ss:$12 sps:$4 sm:$0xff]  }
  0x8f   : > { %1453 = vmatpush1.bf16.msra.mxu0 %v3883_v45  ;;  %1507 = vmatprep.subr.bf16.mxu1 %v4059_v1  ;;  %v3966_v45 = vld [vmem:[%s4112_s24 + $0x4d0] ss:$12 sps:$4 sm:$0xff]  }
  0x90   : > { %1454 = vmatprep.subr.bf16.mxu0 %v3889_v46  ;;  %v3963_v46 = vld [vmem:[%s4112_s24 + $0x4c8] ss:$12 sps:$4 sm:$0xff]  }
  0x92   : > { %1508 = vmatpush1.bf16.msra.mxu1 %v3890_v47  ;;  %v3969_v47 = vld [vmem:[%s4112_s24 + $0x4e4] ss:$12 sps:$4 sm:$0xff]  }
  0x93   : > { %1455 = vmatpush1.bf16.msra.mxu0 %v3887_v48  ;;  %1509 = vmatprep.subr.bf16.mxu1 %v4059_v1  ;;  %v3970_v48 = vld [vmem:[%s4112_s24 + $0x4e8] ss:$12 sps:$4 sm:$0xff]  }
  0x94   : > { %1456 = vmatprep.subr.bf16.mxu0 %v3893_v0  ;;  %v3967_v0 = vld [vmem:[%s4112_s24 + $0x4e0] ss:$12 sps:$4 sm:$0xff]  }
  0x96   : > { %1510 = vmatpush1.bf16.msra.mxu1 %v3894_v49  ;;  %v3973_v49 = vld [vmem:[%s4112_s24 + $0x4fc] ss:$12 sps:$4 sm:$0xff]  }
  0x97   : > { %1457 = vmatpush1.bf16.msra.mxu0 %v3891_v50  ;;  %1511 = vmatprep.subr.bf16.mxu1 %v4059_v1  ;;  %v3974_v50 = vld [vmem:[%s4112_s24 + $0x500] ss:$12 sps:$4 sm:$0xff]  }
  0x98   : > { %1458 = vmatprep.subr.bf16.mxu0 %v3897_v51  ;;  %v3971_v51 = vld [vmem:[%s4112_s24 + $0x4f8] ss:$12 sps:$4 sm:$0xff]  }
  0x9a   : > { %1512 = vmatpush1.bf16.msra.mxu1 %v3898_v52  ;;  %v3977_v52 = vld [vmem:[%s4112_s24 + $0x514] ss:$12 sps:$4 sm:$0xff]  }
  0x9b   : > { %1459 = vmatpush1.bf16.msra.mxu0 %v3895_v53  ;;  %1513 = vmatprep.subr.bf16.mxu1 %v4059_v1  ;;  %v3978_v53 = vld [vmem:[%s4112_s24 + $0x518] ss:$12 sps:$4 sm:$0xff]  }
  0x9c   : > { %1460 = vmatprep.subr.bf16.mxu0 %v3901_v54  ;;  %v3975_v54 = vld [vmem:[%s4112_s24 + $0x510] ss:$12 sps:$4 sm:$0xff]  }
  0x9e   : > { %1514 = vmatpush1.bf16.msra.mxu1 %v3902_v55  ;;  %v3981_v55 = vld [vmem:[%s4112_s24 + $0x52c] ss:$12 sps:$4 sm:$0xff]  }
  0x9f   : > { %1461 = vmatpush1.bf16.msra.mxu0 %v3899_v56  ;;  %1841 = vmatprep.subr.bf16.mxu1 %v4059_v1  ;;  %v3982_v56 = vld [vmem:[%s4112_s24 + $0x530] ss:$12 sps:$4 sm:$0xff]  }
  0xa0   : > { %1788 = vmatprep.subr.bf16.mxu0 %v3905_v57  ;;  %v3979_v57 = vld [vmem:[%s4112_s24 + $0x528] ss:$12 sps:$4 sm:$0xff]  }
  0xa1   : > { %1530 = vmatmul.mubr.bf16.vlgmr.msra.gmra.mrb[24].mxu1 %v4153_v32 }
  0xa2   : > { %1477 = vmatmul.mubr.bf16.vlgmr.msra.gmra.mrb[24].mxu0 %v4153_v32  ;;  %1842 = vmatpush1.bf16.msra.mxu1 %v3906_v58  ;;  %v3914_v32 = vld [vmem:[%s4112_s24 + $0x398] ss:$12 sps:$4 sm:$0xff]  }
  0xa3   : > { %1789 = vmatpush1.bf16.msra.mxu0 %v3903_v59  ;;  %1843 = vmatprep.subr.bf16.mxu1 %v4059_v1  ;;  %v3985_v58 = vld [vmem:[%s4112_s24 + $0x544] ss:$12 sps:$4 sm:$0xff]   ;;  %v3986_v59 = vld [vmem:[%s4112_s24 + $0x548] ss:$12 sps:$4 sm:$0xff]  }
  0xa4   : > { %1790 = vmatprep.subr.bf16.mxu0 %v3909_v60  ;;  %3323 = vmatprep.mubr.msk.bf16.mxu0 %vm406_vm0, %v4159_v34  ;;  %v3983_v60 = vld [vmem:[%s4112_s24 + $0x540] ss:$12 sps:$4 sm:$0xff]  }
  0xa5   : > { %3325 = vmatprep.mubr.msk.bf16.mxu1 %vm406_vm0, %v4159_v34  ;;  %v3915_v34 = vld [vmem:[%s4112_s24 + $0x3a8] ss:$12 sps:$4 sm:$0xff]  }
  0xa6   : > { %1844 = vmatpush1.bf16.msra.mxu1 %v3910_v61  ;;  %v3989_v61 = vld [vmem:[%s4112_s24 + $0x55c] ss:$12 sps:$4 sm:$0xff]  }
  0xa7   : > { %1791 = vmatpush1.bf16.msra.mxu0 %v3907_v62  ;;  %1845 = vmatprep.subr.bf16.mxu1 %v4059_v1  ;;  %v3990_v62 = vld [vmem:[%s4112_s24 + $0x560] ss:$12 sps:$4 sm:$0xff]  }
  0xa8   : > { %1792 = vmatprep.subr.bf16.mxu0 %v3913_v63  ;;  %v3987_v63 = vld [vmem:[%s4112_s24 + $0x558] ss:$12 sps:$4 sm:$0xff]  }
  0xa9   : > { %1538 = vmatmul.mubr.bf16.gmra.mrb[28].mxu1 %v4175_v40 }
  0xaa   : > { %1846 = vmatpush1.bf16.msra.mxu1 %v3914_v32  ;;  %1487 = vmatmul.mubr.bf16.gmra.mrb[28].mxu0 %v4175_v40  ;;  %v3922_v40 = vld [vmem:[%s4112_s24 + $0x3c8] ss:$12 sps:$4 sm:$0xff]  }
  0xab   : > { %1793 = vmatpush1.bf16.msra.mxu0 %v3911_v2  ;;  %1847 = vmatprep.subr.bf16.mxu1 %v4059_v1  ;;  %v3993_v32 = vld [vmem:[%s4112_s24 + $0x574] ss:$12 sps:$4 sm:$0xff]   ;;  %v3994_v2 = vld [vmem:[%s4112_s24 + $0x578] ss:$12 sps:$4 sm:$0xff]  }
  0xac   : > { %1794 = vmatprep.subr.bf16.mxu0 %v3917_v3  ;;  %3407 = vmatprep.mubr.msk.bf16.mxu1 %vm406_vm0, %v4342_v6  ;;  %v3991_v3 = vld [vmem:[%s4112_s24 + $0x570] ss:$12 sps:$4 sm:$0xff]  }
  0xad   : > { %3405 = vmatprep.mubr.msk.bf16.mxu0 %vm406_vm0, %v4342_v6 }
  0xae   : > { %1848 = vmatpush1.bf16.msra.mxu1 %v3918_v4  ;;  %v3997_v4 = vld [vmem:[%s4112_s24 + $0x58c] ss:$12 sps:$4 sm:$0xff]  }
  0xaf   : > { %1795 = vmatpush1.bf16.msra.mxu0 %v3915_v34  ;;  %1849 = vmatprep.subr.bf16.mxu1 %v4059_v1  ;;  %v3998_v34 = vld [vmem:[%s4112_s24 + $0x590] ss:$12 sps:$4 sm:$0xff]  }
  0xb0   : > { %1796 = vmatprep.subr.bf16.mxu0 %v3921_v5  ;;  %v3995_v5 = vld [vmem:[%s4112_s24 + $0x588] ss:$12 sps:$4 sm:$0xff]  }
  0xb2   : > { %1850 = vmatpush1.bf16.msra.mxu1 %v3922_v40  ;;  %v4001_v40 = vld [vmem:[%s4112_s24 + $0x5a4] ss:$12 sps:$4 sm:$0xff]  }
  0xb3   : > { %1797 = vmatpush1.bf16.msra.mxu0 %v3919_v7  ;;  %1851 = vmatprep.subr.bf16.mxu1 %v4059_v1  ;;  %v4002_v7 = vld [vmem:[%s4112_s24 + $0x5a8] ss:$12 sps:$4 sm:$0xff]  }
  0xb4   : > { %1798 = vmatprep.subr.bf16.mxu0 %v3925_v8  ;;  %v3999_v8 = vld [vmem:[%s4112_s24 + $0x5a0] ss:$12 sps:$4 sm:$0xff]  }
  0xb6   : > { %1852 = vmatpush1.bf16.msra.mxu1 %v3926_v9  ;;  %v4005_v9 = vld [vmem:[%s4112_s24 + $0x5bc] ss:$12 sps:$4 sm:$0xff]  }
  0xb7   : > { %1799 = vmatpush1.bf16.msra.mxu0 %v3923_v10  ;;  %1853 = vmatprep.subr.bf16.mxu1 %v4059_v1  ;;  %v4471_v10 = vpop.permute.xlu0 %226 }
  0xb8   : > { %1800 = vmatprep.subr.bf16.mxu0 %v3929_v11  ;;  %v4006_v11 = vld [vmem:[%s4112_s24 + $0x5c0] ss:$12 sps:$4 sm:$0xff]  }
  0xba   : > { %1854 = vmatpush1.bf16.msra.mxu1 %v3930_v12  ;;  %v4003_v12 = vld [vmem:[%s4112_s24 + $0x5b8] ss:$12 sps:$4 sm:$0xff]  }
  0xbb   : > { %1801 = vmatpush1.bf16.msra.mxu0 %v3927_v13  ;;  %1855 = vmatprep.subr.bf16.mxu1 %v4059_v1  ;;  %v4009_v13 = vld [vmem:[%s4112_s24 + $0x5d4] ss:$12 sps:$4 sm:$0xff]  }
  0xbc   : > { %1802 = vmatprep.subr.bf16.mxu0 %v3933_v14  ;;  %v4010_v14 = vld [vmem:[%s4112_s24 + $0x5d8] ss:$12 sps:$4 sm:$0xff]  }
  0xbe   : > { %1856 = vmatpush1.bf16.msra.mxu1 %v3934_v15  ;;  %v4007_v15 = vld [vmem:[%s4112_s24 + $0x5d0] ss:$12 sps:$4 sm:$0xff]  }
  0xbf   : > { %1803 = vmatpush1.bf16.msra.mxu0 %v3931_v16  ;;  %1857 = vmatprep.subr.bf16.mxu1 %v4059_v1  ;;  %v4480_v16 = vpop.permute.xlu0 %231 }
  0xc0   : > { %1804 = vmatprep.subr.bf16.mxu0 %v3937_v17 }
  0xc2   : > { %1858 = vmatpush1.bf16.msra.mxu1 %v3938_v18  ;;  %v4013_v18 = vld [vmem:[%s4112_s24 + $0x5ec] ss:$12 sps:$4 sm:$0xff]  }
  0xc3   : > { %1805 = vmatpush1.bf16.msra.mxu0 %v3935_v19  ;;  %2185 = vmatprep.subr.bf16.mxu1 %v4059_v1  ;;  %v4484_v19 = vpop.permute.xlu1 %236 }
  0xc4   : > { %2132 = vmatprep.subr.bf16.mxu0 %v3941_v20 }
  0xc5   : > { %1874 = vmatmul.mubr.bf16.vlgmr.msra.gmra.mrb[32].mxu1 %v4375_v24 }
  0xc6   : > { %1821 = vmatmul.mubr.bf16.vlgmr.msra.gmra.mrb[32].mxu0 %v4375_v24  ;;  %2186 = vmatpush1.bf16.msra.mxu1 %v3942_v21 }
  0xc7   : > { %2133 = vmatpush1.bf16.msra.mxu0 %v3939_v22  ;;  %2187 = vmatprep.subr.bf16.mxu1 %v4059_v1 }
  0xc8   : > { %2134 = vmatprep.subr.bf16.mxu0 %v3945_v23  ;;  %3406 = vmatprep.mubr.msk.bf16.mxu0 %vm406_vm0, %v4386_v28 }
  0xc9   : > { %3408 = vmatprep.mubr.msk.bf16.mxu1 %vm406_vm0, %v4386_v28 }
  0xca   : > { %2188 = vmatpush1.bf16.msra.mxu1 %v3946_v25 }
  0xcb   : > { %2135 = vmatpush1.bf16.msra.mxu0 %v3943_v26  ;;  %2189 = vmatprep.subr.bf16.mxu1 %v4059_v1 }
  0xcc   : > { %2136 = vmatprep.subr.bf16.mxu0 %v3949_v27  ;;  %v4014_v27 = vld [vmem:[%s4112_s24 + $0x5f0] ss:$12 sps:$4 sm:$0xff]  }
  0xcd   : > { %1882 = vmatmul.mubr.bf16.gmra.mrb[36].mxu1 %v4399_v33 }
  0xce   : > { %2190 = vmatpush1.bf16.msra.mxu1 %v3950_v29  ;;  %1831 = vmatmul.mubr.bf16.gmra.mrb[36].mxu0 %v4399_v33 }
  0xcf   : > { %2137 = vmatpush1.bf16.msra.mxu0 %v3947_v30  ;;  %2191 = vmatprep.subr.bf16.mxu1 %v4059_v1 }
  0xd0   : > { %2138 = vmatprep.subr.bf16.mxu0 %v3953_v31  ;;  %3490 = vmatprep.mubr.msk.bf16.mxu1 %vm406_vm0, %v4342_v6 }
  0xd1   : > { %3488 = vmatprep.mubr.msk.bf16.mxu0 %vm406_vm0, %v4342_v6 }
  0xd2   : > { %2192 = vmatpush1.bf16.msra.mxu1 %v3954_v35 }
  0xd3   : > { %2139 = vmatpush1.bf16.msra.mxu0 %v3951_v36  ;;  %2193 = vmatprep.subr.bf16.mxu1 %v4059_v1 }
  0xd4   : > { %2140 = vmatprep.subr.bf16.mxu0 %v3957_v37  ;;  %v4011_v37 = vld [vmem:[%s4112_s24 + $0x5e8] ss:$12 sps:$4 sm:$0xff]  }
  0xd6   : > { %2194 = vmatpush1.bf16.msra.mxu1 %v3958_v38 }
  0xd7   : > { %2141 = vmatpush1.bf16.msra.mxu0 %v3955_v39  ;;  %2195 = vmatprep.subr.bf16.mxu1 %v4059_v1 }
  0xd8   : > { %2142 = vmatprep.subr.bf16.mxu0 %v3961_v41 }
  0xda   : > { %2196 = vmatpush1.bf16.msra.mxu1 %v3962_v42  ;;  %v4017_v42 = vld [vmem:[%s4112_s24 + $0x604] ss:$12 sps:$4 sm:$0xff]  }
  0xdb   : > { %2143 = vmatpush1.bf16.msra.mxu0 %v3959_v43  ;;  %2197 = vmatprep.subr.bf16.mxu1 %v4059_v1 }
  0xdc   : > { %2144 = vmatprep.subr.bf16.mxu0 %v3965_v44 }
  0xde   : > { %2198 = vmatpush1.bf16.msra.mxu1 %v3966_v45 }
  0xdf   : > { %2145 = vmatpush1.bf16.msra.mxu0 %v3963_v46  ;;  %2199 = vmatprep.subr.bf16.mxu1 %v4059_v1 }
  0xe0   : > { %2146 = vmatprep.subr.bf16.mxu0 %v3969_v47 }
  0xe2   : > { %2200 = vmatpush1.bf16.msra.mxu1 %v3970_v48  ;;  %v4018_v48 = vld [vmem:[%s4112_s24 + $0x608] ss:$12 sps:$4 sm:$0xff]  }
  0xe3   : > { %2147 = vmatpush1.bf16.msra.mxu0 %v3967_v0  ;;  %2201 = vmatprep.subr.bf16.mxu1 %v4059_v1 }
  0xe4   : > { %2148 = vmatprep.subr.bf16.mxu0 %v3973_v49 }
  0xe6   : > { %2202 = vmatpush1.bf16.msra.mxu1 %v3974_v50 }
  0xe7   : > { %2149 = vmatpush1.bf16.msra.mxu0 %v3971_v51  ;;  %2529 = vmatprep.subr.bf16.mxu1 %v4059_v1  ;;  %v4015_v51 = vld [vmem:[%s4112_s24 + $0x600] ss:$12 sps:$4 sm:$0xff]  }
  0xe8   : > { %2476 = vmatprep.subr.bf16.mxu0 %v3977_v52  ;;  %v4021_v52 = vld [vmem:[%s4112_s24 + $0x61c] ss:$12 sps:$4 sm:$0xff]  }
  0xe9   : > { %2218 = vmatmul.mubr.bf16.vlgmr.msra.gmra.mrb[40].mxu1 %v4375_v24 }
  0xea   : > { %2165 = vmatmul.mubr.bf16.vlgmr.msra.gmra.mrb[40].mxu0 %v4375_v24  ;;  %2530 = vmatpush1.bf16.msra.mxu1 %v3978_v53 }
  0xeb   : > { %2477 = vmatpush1.bf16.msra.mxu0 %v3975_v54  ;;  %2531 = vmatprep.subr.bf16.mxu1 %v4059_v1  ;;  %v4508_v54 = vpop.permute.xlu1 %241 }
  0xec   : > { %2478 = vmatprep.subr.bf16.mxu0 %v3981_v55  ;;  %3489 = vmatprep.mubr.msk.bf16.mxu0 %vm406_vm0, %v4386_v28 }
  0xed   : > { %3491 = vmatprep.mubr.msk.bf16.mxu1 %vm406_vm0, %v4386_v28 }
  0xee   : > { %2532 = vmatpush1.bf16.msra.mxu1 %v3982_v56 }
  0xef   : > { %2479 = vmatpush1.bf16.msra.mxu0 %v3979_v57  ;;  %2533 = vmatprep.subr.bf16.mxu1 %v4059_v1 }
  0xf0   : > { %2480 = vmatprep.subr.bf16.mxu0 %v3985_v58 }
  0xf1   : > { %2226 = vmatmul.mubr.bf16.gmra.mrb[44].mxu1 %v4399_v33 }
  0xf2   : > { %2534 = vmatpush1.bf16.msra.mxu1 %v3986_v59  ;;  %2175 = vmatmul.mubr.bf16.gmra.mrb[44].mxu0 %v4399_v33  ;;  %v4022_v59 = vld [vmem:[%s4112_s24 + $0x620] ss:$12 sps:$4 sm:$0xff]  }
  0xf3   : > { %2481 = vmatpush1.bf16.msra.mxu0 %v3983_v60  ;;  %2535 = vmatprep.subr.bf16.mxu1 %v4059_v1 }
  0xf4   : > { %2482 = vmatprep.subr.bf16.mxu0 %v3989_v61  ;;  %3573 = vmatprep.mubr.msk.bf16.mxu1 %vm406_vm0, %v4342_v6 }
  0xf5   : > { %3571 = vmatprep.mubr.msk.bf16.mxu0 %vm406_vm0, %v4342_v6 }
  0xf6   : > { %2536 = vmatpush1.bf16.msra.mxu1 %v3990_v62 }
  0xf7   : > { %2483 = vmatpush1.bf16.msra.mxu0 %v3987_v63  ;;  %2537 = vmatprep.subr.bf16.mxu1 %v4059_v1  ;;  %v4019_v63 = vld [vmem:[%s4112_s24 + $0x618] ss:$12 sps:$4 sm:$0xff]  }
  0xf8   : > { %2484 = vmatprep.subr.bf16.mxu0 %v3993_v32 }
  0xfa   : > { %2538 = vmatpush1.bf16.msra.mxu1 %v3994_v2 }
  0xfb   : > { %2485 = vmatpush1.bf16.msra.mxu0 %v3991_v3  ;;  %2539 = vmatprep.subr.bf16.mxu1 %v4059_v1 }
  0xfc   : > { %2486 = vmatprep.subr.bf16.mxu0 %v3997_v4 }
  0xfe   : > { %2540 = vmatpush1.bf16.msra.mxu1 %v3998_v34 }
  0xff   : > { %2487 = vmatpush1.bf16.msra.mxu0 %v3995_v5  ;;  %2541 = vmatprep.subr.bf16.mxu1 %v4059_v1  ;;  %v4025_v5 = vld [vmem:[%s4112_s24 + $0x634] ss:$12 sps:$4 sm:$0xff]  }
 0x100   : > { %2488 = vmatprep.subr.bf16.mxu0 %v4001_v40 }
 0x102   : > { %2542 = vmatpush1.bf16.msra.mxu1 %v4002_v7 }
 0x103   : > { %2489 = vmatpush1.bf16.msra.mxu0 %v3999_v8  ;;  %2543 = vmatprep.subr.bf16.mxu1 %v4059_v1 }
 0x104   : > { %2490 = vmatprep.subr.bf16.mxu0 %v4005_v9 }
 0x106   : > { %2544 = vmatpush1.bf16.msra.mxu1 %v4006_v11 }
 0x107   : > { %2491 = vmatpush1.bf16.msra.mxu0 %v4003_v12  ;;  %2545 = vmatprep.subr.bf16.mxu1 %v4059_v1 }
 0x108   : > { %v500_v17 = vpop.f32.mrb[0].mxu1  ;;  %2492 = vmatprep.subr.bf16.mxu0 %v4009_v13 }
 0x109   : > { %v501_v20 = vadd.f32 %v500_v17, %v4471_v10  ;;  %v447_v21 = vpop.f32.mrb[0].mxu0  ;;  %v502_v22 = vpop.f32.mrb[1].mxu1  ;;  %v4023_v17 = vld [vmem:[%s4112_s24 + $0x630] ss:$12 sps:$4 sm:$0xff]  }
 0x10a   : > { %v448_v23 = vadd.f32 %v447_v21, %v4471_v10  ;;  %v449_v25 = vpop.f32.mrb[1].mxu0  ;;  %v503_v26 = vpop.f32.mrb[2].mxu1  ;;  %2546 = vmatpush1.bf16.msra.mxu1 %v4010_v14  ;;  %v4026_v14 = vld [vmem:[%s4112_s24 + $0x638] ss:$12 sps:$4 sm:$0xff]  }
 0x10b   : > { %v517_v29 = vmax.f32 %v501_v20, 0.0  ;;  %v450_v30 = vadd.f32 %v449_v25, %v4471_v10  ;;  %v504_v31 = vadd.f32 %v503_v26, %v4480_v16  ;;  %v451_v35 = vpop.f32.mrb[2].mxu0  ;;  %v505_v36 = vpop.f32.mrb[3].mxu1  ;;  %2493 = vmatpush1.bf16.msra.mxu0 %v4007_v15  ;;  %2873 = vmatprep.subr.bf16.mxu1 %v4059_v1  ;;  %v4029_v22 = vld [vmem:[%s4112_s24 + $0x64c] ss:$12 sps:$4 sm:$0xff]  }
 0x10c   : > { %v515_v38 = vmax.f32 %v448_v23, 0.0  ;;  %v452_v39 = vadd.f32 %v451_v35, %v4480_v16  ;;  %v453_v41 = vpop.f32.mrb[3].mxu0  ;;  %2820 = vmatprep.subr.bf16.mxu0 %v4013_v18  ;;  %v4030_v25 = vld [vmem:[%s4112_s24 + $0x650] ss:$12 sps:$4 sm:$0xff]   ;;  %v4027_v26 = vld [vmem:[%s4112_s24 + $0x648] ss:$12 sps:$4 sm:$0xff]  }
 0x10d   : > { %v3677_v43 = vpack.c.bf16 %v517_v29, %v517_v29  ;;  %v516_v44 = vmax.f32 %v450_v30, 0.0  ;;  %v520_v45 = vmax.f32 %v504_v31, 0.0  ;;  %v454_v46 = vadd.f32 %v453_v41, %v4480_v16  ;;  %2562 = vmatmul.mubr.bf16.vlgmr.msra.gmra.mrb[48].mxu1 %v4375_v24  ;;  %v4034_v29 = vld [vmem:[%s4112_s24 + $0x668] ss:$12 sps:$4 sm:$0xff]   ;;  %v4038_v31 = vld [vmem:[%s4112_s24 + $0x680] ss:$12 sps:$4 sm:$0xff]  }
 0x10e   : > { %v518_v47 = vmax.f32 %v452_v39, 0.0  ;;  %2509 = vmatmul.mubr.bf16.vlgmr.msra.gmra.mrb[48].mxu0 %v4375_v24  ;;  %2874 = vmatpush1.bf16.msra.mxu1 %v4014_v27  ;;  %v4033_v27 = vld [vmem:[%s4112_s24 + $0x664] ss:$12 sps:$4 sm:$0xff]   ;;  %v4037_v30 = vld [vmem:[%s4112_s24 + $0x67c] ss:$12 sps:$4 sm:$0xff]  }
 0x10f   : > { %568 = vst [vmem:[%s4496_s20 + $0x8] sm:$0xf] %v3677_v43  ;;  %v3676_v0 = vpack.c.bf16 %v516_v44, %v515_v38  ;;  %v3679_v49 = vpack.c.bf16 %v520_v45, %v520_v45  ;;  %v519_v50 = vmax.f32 %v454_v46, 0.0  ;;  %2821 = vmatpush1.bf16.msra.mxu0 %v4011_v37  ;;  %2875 = vmatprep.subr.bf16.mxu1 %v4059_v1  ;;  %v4035_v35 = vld [vmem:[%s4112_s24 + $0x678] ss:$12 sps:$4 sm:$0xff]  }
 0x110   : > { %2822 = vmatprep.subr.bf16.mxu0 %v4017_v42  ;;  %v508_v53 = vpop.f32.mrb[4].mxu1  ;;  %3572 = vmatprep.mubr.msk.bf16.mxu0 %vm406_vm0, %v4386_v28  ;;  %v4041_v36 = vld [vmem:[%s4112_s24 + $0x694] ss:$12 sps:$4 sm:$0xff]   ;;  %v4042_v37 = vld [vmem:[%s4112_s24 + $0x698] ss:$12 sps:$4 sm:$0xff]  }
 0x111   : > { %567 = vst [vmem:[%s4496_s20] sm:$0xff] %v3676_v0  ;;  %570 = vst [vmem:[%s4496_s20 + $0x14] sm:$0xf] %v3679_v49  ;;  %v3678_v55 = vpack.c.bf16 %v519_v50, %v518_v47  ;;  %v457_v56 = vpop.f32.mrb[4].mxu0  ;;  %v509_v57 = vadd.f32 %v508_v53, %v4484_v19  ;;  %v510_v58 = vpop.f32.mrb[5].mxu1  ;;  %3574 = vmatprep.mubr.msk.bf16.mxu1 %vm406_vm0, %v4386_v28  ;;  %v4039_v38 = vld [vmem:[%s4112_s24 + $0x690] ss:$12 sps:$4 sm:$0xff]  }
 0x112   : > { %2876 = vmatpush1.bf16.msra.mxu1 %v4018_v48  ;;  %v458_v60 = vadd.f32 %v457_v56, %v4484_v19  ;;  %v459_v61 = vpop.f32.mrb[5].mxu0  ;;  %v511_v62 = vpop.f32.mrb[6].mxu1  ;;  %v4045_v39 = vld [vmem:[%s4112_s24 + $0x6ac] ss:$12 sps:$4 sm:$0xff]   ;;  %v4046_v41 = vld [vmem:[%s4112_s24 + $0x6b0] ss:$12 sps:$4 sm:$0xff]  }
 0x113   : > { %569 = vst [vmem:[%s4496_s20 + $0xc] sm:$0xff] %v3678_v55  ;;  %2823 = vmatpush1.bf16.msra.mxu0 %v4015_v51  ;;  %2877 = vmatprep.subr.bf16.mxu1 %v4059_v1  ;;  %v460_v32 = vadd.f32 %v459_v61, %v4484_v19  ;;  %v523_v2 = vmax.f32 %v509_v57, 0.0  ;;  %v461_v3 = vpop.f32.mrb[6].mxu0  ;;  %v512_v4 = vadd.f32 %v511_v62, %v4508_v54  ;;  %v513_v34 = vpop.f32.mrb[7].mxu1  ;;  %v4043_v42 = vld [vmem:[%s4112_s24 + $0x6a8] ss:$12 sps:$4 sm:$0xff]  }
 0x114   : > { %2824 = vmatprep.subr.bf16.mxu0 %v4021_v52  ;;  %v521_v40 = vmax.f32 %v458_v60, 0.0  ;;  %v462_v7 = vadd.f32 %v461_v3, %v4508_v54  ;;  %v463_v8 = vpop.f32.mrb[7].mxu0 }
 0x115   : > { %v522_v9 = vmax.f32 %v460_v32, 0.0  ;;  %v3681_v11 = vpack.c.bf16 %v523_v2, %v523_v2  ;;  %v464_v12 = vadd.f32 %v463_v8, %v4508_v54  ;;  %v526_v13 = vmax.f32 %v512_v4, 0.0  ;;  %2570 = vmatmul.mubr.bf16.gmra.mrb[52].mxu1 %v4399_v33 }
 0x116   : > { %2878 = vmatpush1.bf16.msra.mxu1 %v4022_v59  ;;  %v524_v15 = vmax.f32 %v462_v7, 0.0  ;;  %2519 = vmatmul.mubr.bf16.gmra.mrb[52].mxu0 %v4399_v33 }
 0x117   : > { %2825 = vmatpush1.bf16.msra.mxu0 %v4019_v63  ;;  %2879 = vmatprep.subr.bf16.mxu1 %v4059_v1  ;;  %v3680_v18 = vpack.c.bf16 %v522_v9, %v521_v40  ;;  %572 = vst [vmem:[%s4496_s20 + $0x20] sm:$0xf] %v3681_v11  ;;  %v525_v20 = vmax.f32 %v464_v12, 0.0  ;;  %v3683_v21 = vpack.c.bf16 %v526_v13, %v526_v13 }
 0x118   : > { %2826 = vmatprep.subr.bf16.mxu0 %v4025_v5  ;;  %3656 = vmatprep.mubr.msk.bf16.mxu1 %vm406_vm0, %v4342_v6 }
 0x119   : > { %571 = vst [vmem:[%s4496_s20 + $0x18] sm:$0xff] %v3680_v18  ;;  %v3682_v23 = vpack.c.bf16 %v525_v20, %v524_v15  ;;  %574 = vst [vmem:[%s4496_s20 + $0x2c] sm:$0xf] %v3683_v21  ;;  %3654 = vmatprep.mubr.msk.bf16.mxu0 %vm406_vm0, %v4342_v6  ;;  %v4031_v6 = vld [vmem:[%s4112_s24 + $0x660] ss:$12 sps:$4 sm:$0xff]  }
 0x11a   : > { %2880 = vmatpush1.bf16.msra.mxu1 %v4026_v14 }
 0x11b   : > { %2827 = vmatpush1.bf16.msra.mxu0 %v4023_v17  ;;  %2881 = vmatprep.subr.bf16.mxu1 %v4059_v1  ;;  %573 = vst [vmem:[%s4496_s20 + $0x24] sm:$0xff] %v3682_v23 }
 0x11c   : > { %2828 = vmatprep.subr.bf16.mxu0 %v4029_v22 }
 0x11e   : > { %2882 = vmatpush1.bf16.msra.mxu1 %v4030_v25 }
 0x11f   : > { %2829 = vmatpush1.bf16.msra.mxu0 %v4027_v26  ;;  %2883 = vmatprep.subr.bf16.mxu1 %v4059_v1 }
 0x120   : > { %2830 = vmatprep.subr.bf16.mxu0 %v4033_v27 }
 0x122   : > { %2884 = vmatpush1.bf16.msra.mxu1 %v4034_v29 }
 0x123   : > { %2831 = vmatpush1.bf16.msra.mxu0 %v4031_v6  ;;  %2885 = vmatprep.subr.bf16.mxu1 %v4059_v1 }
 0x124   : > { %2832 = vmatprep.subr.bf16.mxu0 %v4037_v30 }
 0x126   : > { %2886 = vmatpush1.bf16.msra.mxu1 %v4038_v31 }
 0x127   : > { %2833 = vmatpush1.bf16.msra.mxu0 %v4035_v35  ;;  %2887 = vmatprep.subr.bf16.mxu1 %v4059_v1 }
 0x128   : > { %2834 = vmatprep.subr.bf16.mxu0 %v4041_v36 }
 0x12a   : > { %2888 = vmatpush1.bf16.msra.mxu1 %v4042_v37 }
 0x12b   : > { %2835 = vmatpush1.bf16.msra.mxu0 %v4039_v38  ;;  %2889 = vmatprep.subr.bf16.mxu1 %v4059_v1 }
 0x12c   : > { %v843_v43 = vpop.f32.mrb[8].mxu1  ;;  %2836 = vmatprep.subr.bf16.mxu0 %v4045_v39 }
 0x12d   : > { %v844_v44 = vadd.f32 %v843_v43, %v4471_v10  ;;  %v790_v45 = vpop.f32.mrb[8].mxu0  ;;  %v845_v46 = vpop.f32.mrb[9].mxu1 }
 0x12e   : > { %v791_v47 = vadd.f32 %v790_v45, %v4471_v10  ;;  %v792_v48 = vpop.f32.mrb[9].mxu0  ;;  %v846_v0 = vpop.f32.mrb[10].mxu1  ;;  %2890 = vmatpush1.bf16.msra.mxu1 %v4046_v41 }
 0x12f   : > { %v860_v49 = vmax.f32 %v844_v44, 0.0  ;;  %v793_v50 = vadd.f32 %v792_v48, %v4471_v10  ;;  %v847_v51 = vadd.f32 %v846_v0, %v4480_v16  ;;  %v794_v52 = vpop.f32.mrb[10].mxu0  ;;  %v848_v1 = vpop.f32.mrb[11].mxu1  ;;  %2837 = vmatpush1.bf16.msra.mxu0 %v4043_v42 }
 0x130   : > { %v858_v53 = vmax.f32 %v791_v47, 0.0  ;;  %v795_v55 = vadd.f32 %v794_v52, %v4480_v16  ;;  %v796_v56 = vpop.f32.mrb[11].mxu0 }
 0x131   : > { %v3685_v57 = vpack.c.bf16 %v860_v49, %v860_v49  ;;  %v859_v58 = vmax.f32 %v793_v50, 0.0  ;;  %v863_v59 = vmax.f32 %v847_v51, 0.0  ;;  %v797_v60 = vadd.f32 %v796_v56, %v4480_v16  ;;  %2906 = vmatmul.mubr.bf16.vlgmr.msra.gmra.mrb[56].mxu1 %v4375_v24 }
 0x132   : > { %v861_v61 = vmax.f32 %v795_v55, 0.0  ;;  %2853 = vmatmul.mubr.bf16.vlgmr.msra.gmra.mrb[56].mxu0 %v4375_v24  ;;  %3657 = vmatprep.mubr.msk.bf16.mxu1 %vm406_vm0, %v4386_v28 }
 0x133   : > { %3169 = vst [vmem:[%s4496_s20 + $0x38] sm:$0xf] %v3685_v57  ;;  %v3684_v62 = vpack.c.bf16 %v859_v58, %v858_v53  ;;  %v3687_v63 = vpack.c.bf16 %v863_v59, %v863_v59  ;;  %v862_v32 = vmax.f32 %v797_v60, 0.0  ;;  %3655 = vmatprep.mubr.msk.bf16.mxu0 %vm406_vm0, %v4386_v28 }
 0x134   : > { %v851_v2 = vpop.f32.mrb[12].mxu1 }
 0x135   : > { %3168 = vst [vmem:[%s4496_s20 + $0x30] sm:$0xff] %v3684_v62  ;;  %3171 = vst [vmem:[%s4496_s20 + $0x44] sm:$0xf] %v3687_v63  ;;  %v3686_v3 = vpack.c.bf16 %v862_v32, %v861_v61  ;;  %v800_v4 = vpop.f32.mrb[12].mxu0  ;;  %v852_v34 = vadd.f32 %v851_v2, %v4484_v19  ;;  %v853_v5 = vpop.f32.mrb[13].mxu1 }
 0x136   : > { %v801_v24 = vadd.f32 %v800_v4, %v4484_v19  ;;  %v802_v40 = vpop.f32.mrb[13].mxu0  ;;  %v854_v7 = vpop.f32.mrb[14].mxu1 }
 0x137   : > { %3170 = vst [vmem:[%s4496_s20 + $0x3c] sm:$0xff] %v3686_v3  ;;  %v803_v8 = vadd.f32 %v802_v40, %v4484_v19  ;;  %v866_v9 = vmax.f32 %v852_v34, 0.0  ;;  %v804_v11 = vpop.f32.mrb[14].mxu0  ;;  %v855_v28 = vadd.f32 %v854_v7, %v4508_v54  ;;  %v856_v12 = vpop.f32.mrb[15].mxu1 }
 0x138   : > { %v864_v13 = vmax.f32 %v801_v24, 0.0  ;;  %v805_v14 = vadd.f32 %v804_v11, %v4508_v54  ;;  %v806_v15 = vpop.f32.mrb[15].mxu0 }
 0x139   : > { %2914 = vmatmul.mubr.bf16.gmra.mrb[60].mxu1 %v4399_v33  ;;  %v865_v17 = vmax.f32 %v803_v8, 0.0  ;;  %v3689_v18 = vpack.c.bf16 %v866_v9, %v866_v9  ;;  %v807_v20 = vadd.f32 %v806_v15, %v4508_v54  ;;  %v869_v21 = vmax.f32 %v855_v28, 0.0 }
 0x13a   : > { %2863 = vmatmul.mubr.bf16.gmra.mrb[60].mxu0 %v4399_v33  ;;  %v867_v22 = vmax.f32 %v805_v14, 0.0 }
 0x13b   : > { %v3688_v23 = vpack.c.bf16 %v865_v17, %v864_v13  ;;  %3173 = vst [vmem:[%s4496_s20 + $0x50] sm:$0xf] %v3689_v18  ;;  %v868_v25 = vmax.f32 %v807_v20, 0.0  ;;  %v3691_v26 = vpack.c.bf16 %v869_v21, %v869_v21 }
 0x13d   : > { %3172 = vst [vmem:[%s4496_s20 + $0x48] sm:$0xff] %v3688_v23  ;;  %v3690_v27 = vpack.c.bf16 %v868_v25, %v867_v22  ;;  %3175 = vst [vmem:[%s4496_s20 + $0x5c] sm:$0xf] %v3691_v26 }
 0x13f   : > { %3174 = vst [vmem:[%s4496_s20 + $0x54] sm:$0xff] %v3690_v27 }
 0x150   : > { %v1187_v29 = vpop.f32.mrb[16].mxu1 }
 0x151   : > { %v1188_v6 = vadd.f32 %v1187_v29, %v4471_v10  ;;  %v1134_v30 = vpop.f32.mrb[16].mxu0  ;;  %v1189_v31 = vpop.f32.mrb[17].mxu1 }
 0x152   : > { %v1135_v35 = vadd.f32 %v1134_v30, %v4471_v10  ;;  %v1136_v36 = vpop.f32.mrb[17].mxu0  ;;  %v1190_v37 = vpop.f32.mrb[18].mxu1 }
 0x153   : > { %v1204_v33 = vmax.f32 %v1188_v6, 0.0  ;;  %v1137_v38 = vadd.f32 %v1136_v36, %v4471_v10  ;;  %v1191_v39 = vadd.f32 %v1190_v37, %v4480_v16  ;;  %v1138_v41 = vpop.f32.mrb[18].mxu0  ;;  %v1192_v42 = vpop.f32.mrb[19].mxu1 }
 0x154   : > { %v1202_v43 = vmax.f32 %v1135_v35, 0.0  ;;  %v1139_v44 = vadd.f32 %v1138_v41, %v4480_v16  ;;  %v1140_v45 = vpop.f32.mrb[19].mxu0 }
 0x155   : > { %v3693_v46 = vpack.c.bf16 %v1204_v33, %v1204_v33  ;;  %v1203_v47 = vmax.f32 %v1137_v38, 0.0  ;;  %v1207_v48 = vmax.f32 %v1191_v39, 0.0  ;;  %v1141_v0 = vadd.f32 %v1140_v45, %v4480_v16 }
 0x156   : > { %v1205_v49 = vmax.f32 %v1139_v44, 0.0 }
 0x157   : > { %3252 = vst [vmem:[%s4496_s20 + $0x68] sm:$0xf] %v3693_v46  ;;  %v3692_v50 = vpack.c.bf16 %v1203_v47, %v1202_v43  ;;  %v3695_v51 = vpack.c.bf16 %v1207_v48, %v1207_v48  ;;  %v1206_v52 = vmax.f32 %v1141_v0, 0.0 }
 0x158   : > { %v1195_v1 = vpop.f32.mrb[20].mxu1 }
 0x159   : > { %3251 = vst [vmem:[%s4496_s20 + $0x60] sm:$0xff] %v3692_v50  ;;  %3254 = vst [vmem:[%s4496_s20 + $0x74] sm:$0xf] %v3695_v51  ;;  %v3694_v53 = vpack.c.bf16 %v1206_v52, %v1205_v49  ;;  %v1144_v55 = vpop.f32.mrb[20].mxu0  ;;  %v1196_v56 = vadd.f32 %v1195_v1, %v4484_v19  ;;  %v1197_v57 = vpop.f32.mrb[21].mxu1 }
 0x15a   : > { %v1145_v58 = vadd.f32 %v1144_v55, %v4484_v19  ;;  %v1146_v59 = vpop.f32.mrb[21].mxu0  ;;  %v1198_v60 = vpop.f32.mrb[22].mxu1 }
 0x15b   : > { %3253 = vst [vmem:[%s4496_s20 + $0x6c] sm:$0xff] %v3694_v53  ;;  %v1147_v61 = vadd.f32 %v1146_v59, %v4484_v19  ;;  %v1210_v62 = vmax.f32 %v1196_v56, 0.0  ;;  %v1148_v63 = vpop.f32.mrb[22].mxu0  ;;  %v1199_v32 = vadd.f32 %v1198_v60, %v4508_v54  ;;  %v1200_v2 = vpop.f32.mrb[23].mxu1 }
 0x15c   : > { %v1208_v3 = vmax.f32 %v1145_v58, 0.0  ;;  %v1149_v4 = vadd.f32 %v1148_v63, %v4508_v54  ;;  %v1150_v34 = vpop.f32.mrb[23].mxu0 }
 0x15d   : > { %v1209_v5 = vmax.f32 %v1147_v61, 0.0  ;;  %v3697_v24 = vpack.c.bf16 %v1210_v62, %v1210_v62  ;;  %v1151_v40 = vadd.f32 %v1150_v34, %v4508_v54  ;;  %v1213_v7 = vmax.f32 %v1199_v32, 0.0 }
 0x15e   : > { %v1211_v8 = vmax.f32 %v1149_v4, 0.0 }
 0x15f   : > { %v3696_v9 = vpack.c.bf16 %v1209_v5, %v1208_v3  ;;  %3256 = vst [vmem:[%s4496_s20 + $0x80] sm:$0xf] %v3697_v24  ;;  %v1212_v11 = vmax.f32 %v1151_v40, 0.0  ;;  %v3699_v28 = vpack.c.bf16 %v1213_v7, %v1213_v7 }
 0x161   : > { %3255 = vst [vmem:[%s4496_s20 + $0x78] sm:$0xff] %v3696_v9  ;;  %v3698_v12 = vpack.c.bf16 %v1212_v11, %v1211_v8  ;;  %3258 = vst [vmem:[%s4496_s20 + $0x8c] sm:$0xf] %v3699_v28 }
 0x163   : > { %3257 = vst [vmem:[%s4496_s20 + $0x84] sm:$0xff] %v3698_v12 }
 0x174   : > { %v1531_v13 = vpop.f32.mrb[24].mxu1 }
 0x175   : > { %v1532_v14 = vadd.f32 %v1531_v13, %v4471_v10  ;;  %v1478_v15 = vpop.f32.mrb[24].mxu0  ;;  %v1533_v17 = vpop.f32.mrb[25].mxu1 }
 0x176   : > { %v1479_v18 = vadd.f32 %v1478_v15, %v4471_v10  ;;  %v1480_v20 = vpop.f32.mrb[25].mxu0  ;;  %v1534_v21 = vpop.f32.mrb[26].mxu1 }
 0x177   : > { %v1548_v22 = vmax.f32 %v1532_v14, 0.0  ;;  %v1481_v23 = vadd.f32 %v1480_v20, %v4471_v10  ;;  %v1535_v25 = vadd.f32 %v1534_v21, %v4480_v16  ;;  %v1482_v26 = vpop.f32.mrb[26].mxu0  ;;  %v1536_v27 = vpop.f32.mrb[27].mxu1 }
 0x178   : > { %v1546_v29 = vmax.f32 %v1479_v18, 0.0  ;;  %v1483_v6 = vadd.f32 %v1482_v26, %v4480_v16  ;;  %v1484_v30 = vpop.f32.mrb[27].mxu0 }
 0x179   : > { %v3701_v31 = vpack.c.bf16 %v1548_v22, %v1548_v22  ;;  %v1547_v35 = vmax.f32 %v1481_v23, 0.0  ;;  %v1551_v36 = vmax.f32 %v1535_v25, 0.0  ;;  %v1485_v37 = vadd.f32 %v1484_v30, %v4480_v16 }
 0x17a   : > { %v1549_v33 = vmax.f32 %v1483_v6, 0.0 }
 0x17b   : > { %3335 = vst [vmem:[%s4496_s20 + $0x98] sm:$0xf] %v3701_v31  ;;  %v3700_v38 = vpack.c.bf16 %v1547_v35, %v1546_v29  ;;  %v3703_v39 = vpack.c.bf16 %v1551_v36, %v1551_v36  ;;  %v1550_v41 = vmax.f32 %v1485_v37, 0.0 }
 0x17c   : > { %v1539_v42 = vpop.f32.mrb[28].mxu1 }
 0x17d   : > { %3334 = vst [vmem:[%s4496_s20 + $0x90] sm:$0xff] %v3700_v38  ;;  %3337 = vst [vmem:[%s4496_s20 + $0xa4] sm:$0xf] %v3703_v39  ;;  %v3702_v43 = vpack.c.bf16 %v1550_v41, %v1549_v33  ;;  %v1488_v44 = vpop.f32.mrb[28].mxu0  ;;  %v1540_v45 = vadd.f32 %v1539_v42, %v4484_v19  ;;  %v1541_v46 = vpop.f32.mrb[29].mxu1 }
 0x17e   : > { %v1489_v47 = vadd.f32 %v1488_v44, %v4484_v19  ;;  %v1490_v48 = vpop.f32.mrb[29].mxu0  ;;  %v1542_v0 = vpop.f32.mrb[30].mxu1 }
 0x17f   : > { %3336 = vst [vmem:[%s4496_s20 + $0x9c] sm:$0xff] %v3702_v43  ;;  %v1491_v49 = vadd.f32 %v1490_v48, %v4484_v19  ;;  %v1554_v50 = vmax.f32 %v1540_v45, 0.0  ;;  %v1492_v51 = vpop.f32.mrb[30].mxu0  ;;  %v1543_v52 = vadd.f32 %v1542_v0, %v4508_v54  ;;  %v1544_v1 = vpop.f32.mrb[31].mxu1 }
 0x180   : > { %v1552_v53 = vmax.f32 %v1489_v47, 0.0  ;;  %v1493_v55 = vadd.f32 %v1492_v51, %v4508_v54  ;;  %v1494_v56 = vpop.f32.mrb[31].mxu0 }
 0x181   : > { %v1553_v57 = vmax.f32 %v1491_v49, 0.0  ;;  %v3705_v58 = vpack.c.bf16 %v1554_v50, %v1554_v50  ;;  %v1495_v59 = vadd.f32 %v1494_v56, %v4508_v54  ;;  %v1557_v60 = vmax.f32 %v1543_v52, 0.0 }
 0x182   : > { %v1555_v61 = vmax.f32 %v1493_v55, 0.0 }
 0x183   : > { %v3704_v62 = vpack.c.bf16 %v1553_v57, %v1552_v53  ;;  %3339 = vst [vmem:[%s4496_s20 + $0xb0] sm:$0xf] %v3705_v58  ;;  %v1556_v63 = vmax.f32 %v1495_v59, 0.0  ;;  %v3707_v32 = vpack.c.bf16 %v1557_v60, %v1557_v60 }
 0x185   : > { %3338 = vst [vmem:[%s4496_s20 + $0xa8] sm:$0xff] %v3704_v62  ;;  %v3706_v2 = vpack.c.bf16 %v1556_v63, %v1555_v61  ;;  %3341 = vst [vmem:[%s4496_s20 + $0xbc] sm:$0xf] %v3707_v32 }
 0x187   : > { %3340 = vst [vmem:[%s4496_s20 + $0xb4] sm:$0xff] %v3706_v2 }
 0x198   : > { %v1875_v3 = vpop.f32.mrb[32].mxu1 }
 0x199   : > { %v1876_v4 = vadd.f32 %v1875_v3, %v4471_v10  ;;  %v1822_v34 = vpop.f32.mrb[32].mxu0  ;;  %v1877_v5 = vpop.f32.mrb[33].mxu1 }
 0x19a   : > { %v1823_v24 = vadd.f32 %v1822_v34, %v4471_v10  ;;  %v1824_v40 = vpop.f32.mrb[33].mxu0  ;;  %v1878_v7 = vpop.f32.mrb[34].mxu1 }
 0x19b   : > { %v1892_v8 = vmax.f32 %v1876_v4, 0.0  ;;  %v1825_v9 = vadd.f32 %v1824_v40, %v4471_v10  ;;  %v1879_v11 = vadd.f32 %v1878_v7, %v4480_v16  ;;  %v1826_v28 = vpop.f32.mrb[34].mxu0  ;;  %v1880_v12 = vpop.f32.mrb[35].mxu1 }
 0x19c   : > { %v1890_v13 = vmax.f32 %v1823_v24, 0.0  ;;  %v1827_v14 = vadd.f32 %v1826_v28, %v4480_v16  ;;  %v1828_v15 = vpop.f32.mrb[35].mxu0 }
 0x19d   : > { %v3709_v17 = vpack.c.bf16 %v1892_v8, %v1892_v8  ;;  %v1891_v18 = vmax.f32 %v1825_v9, 0.0  ;;  %v1895_v20 = vmax.f32 %v1879_v11, 0.0  ;;  %v1829_v21 = vadd.f32 %v1828_v15, %v4480_v16 }
 0x19e   : > { %v1893_v22 = vmax.f32 %v1827_v14, 0.0 }
 0x19f   : > { %3418 = vst [vmem:[%s4496_s20 + $0xc8] sm:$0xf] %v3709_v17  ;;  %v3708_v23 = vpack.c.bf16 %v1891_v18, %v1890_v13  ;;  %v3711_v25 = vpack.c.bf16 %v1895_v20, %v1895_v20  ;;  %v1894_v26 = vmax.f32 %v1829_v21, 0.0 }
 0x1a0   : > { %v1883_v27 = vpop.f32.mrb[36].mxu1 }
 0x1a1   : > { %3417 = vst [vmem:[%s4496_s20 + $0xc0] sm:$0xff] %v3708_v23  ;;  %3420 = vst [vmem:[%s4496_s20 + $0xd4] sm:$0xf] %v3711_v25  ;;  %v3710_v29 = vpack.c.bf16 %v1894_v26, %v1893_v22  ;;  %v1832_v6 = vpop.f32.mrb[36].mxu0  ;;  %v1884_v30 = vadd.f32 %v1883_v27, %v4484_v19  ;;  %v1885_v31 = vpop.f32.mrb[37].mxu1 }
 0x1a2   : > { %v1833_v35 = vadd.f32 %v1832_v6, %v4484_v19  ;;  %v1834_v36 = vpop.f32.mrb[37].mxu0  ;;  %v1886_v37 = vpop.f32.mrb[38].mxu1 }
 0x1a3   : > { %3419 = vst [vmem:[%s4496_s20 + $0xcc] sm:$0xff] %v3710_v29  ;;  %v1835_v33 = vadd.f32 %v1834_v36, %v4484_v19  ;;  %v1898_v38 = vmax.f32 %v1884_v30, 0.0  ;;  %v1836_v39 = vpop.f32.mrb[38].mxu0  ;;  %v1887_v41 = vadd.f32 %v1886_v37, %v4508_v54  ;;  %v1888_v42 = vpop.f32.mrb[39].mxu1 }
 0x1a4   : > { %v1896_v43 = vmax.f32 %v1833_v35, 0.0  ;;  %v1837_v44 = vadd.f32 %v1836_v39, %v4508_v54  ;;  %v1838_v45 = vpop.f32.mrb[39].mxu0 }
 0x1a5   : > { %v1897_v46 = vmax.f32 %v1835_v33, 0.0  ;;  %v3713_v47 = vpack.c.bf16 %v1898_v38, %v1898_v38  ;;  %v1839_v48 = vadd.f32 %v1838_v45, %v4508_v54  ;;  %v1901_v0 = vmax.f32 %v1887_v41, 0.0 }
 0x1a6   : > { %v1899_v49 = vmax.f32 %v1837_v44, 0.0 }
 0x1a7   : > { %v3712_v50 = vpack.c.bf16 %v1897_v46, %v1896_v43  ;;  %3422 = vst [vmem:[%s4496_s20 + $0xe0] sm:$0xf] %v3713_v47  ;;  %v1900_v51 = vmax.f32 %v1839_v48, 0.0  ;;  %v3715_v52 = vpack.c.bf16 %v1901_v0, %v1901_v0 }
 0x1a9   : > { %3421 = vst [vmem:[%s4496_s20 + $0xd8] sm:$0xff] %v3712_v50  ;;  %v3714_v1 = vpack.c.bf16 %v1900_v51, %v1899_v49  ;;  %3424 = vst [vmem:[%s4496_s20 + $0xec] sm:$0xf] %v3715_v52 }
 0x1ab   : > { %3423 = vst [vmem:[%s4496_s20 + $0xe4] sm:$0xff] %v3714_v1 }
 0x1bc   : > { %v2219_v53 = vpop.f32.mrb[40].mxu1 }
 0x1bd   : > { %v2220_v55 = vadd.f32 %v2219_v53, %v4471_v10  ;;  %v2166_v56 = vpop.f32.mrb[40].mxu0  ;;  %v2221_v57 = vpop.f32.mrb[41].mxu1 }
 0x1be   : > { %v2167_v58 = vadd.f32 %v2166_v56, %v4471_v10  ;;  %v2168_v59 = vpop.f32.mrb[41].mxu0  ;;  %v2222_v60 = vpop.f32.mrb[42].mxu1 }
 0x1bf   : > { %v2236_v61 = vmax.f32 %v2220_v55, 0.0  ;;  %v2169_v62 = vadd.f32 %v2168_v59, %v4471_v10  ;;  %v2223_v63 = vadd.f32 %v2222_v60, %v4480_v16  ;;  %v2170_v32 = vpop.f32.mrb[42].mxu0  ;;  %v2224_v2 = vpop.f32.mrb[43].mxu1 }
 0x1c0   : > { %v2234_v3 = vmax.f32 %v2167_v58, 0.0  ;;  %v2171_v4 = vadd.f32 %v2170_v32, %v4480_v16  ;;  %v2172_v34 = vpop.f32.mrb[43].mxu0 }
 0x1c1   : > { %v3717_v5 = vpack.c.bf16 %v2236_v61, %v2236_v61  ;;  %v2235_v24 = vmax.f32 %v2169_v62, 0.0  ;;  %v2239_v40 = vmax.f32 %v2223_v63, 0.0  ;;  %v2173_v7 = vadd.f32 %v2172_v34, %v4480_v16 }
 0x1c2   : > { %v2237_v8 = vmax.f32 %v2171_v4, 0.0 }
 0x1c3   : > { %3501 = vst [vmem:[%s4496_s20 + $0xf8] sm:$0xf] %v3717_v5  ;;  %v3716_v9 = vpack.c.bf16 %v2235_v24, %v2234_v3  ;;  %v3719_v11 = vpack.c.bf16 %v2239_v40, %v2239_v40  ;;  %v2238_v28 = vmax.f32 %v2173_v7, 0.0 }
 0x1c4   : > { %v2227_v12 = vpop.f32.mrb[44].mxu1 }
 0x1c5   : > { %3500 = vst [vmem:[%s4496_s20 + $0xf0] sm:$0xff] %v3716_v9  ;;  %3503 = vst [vmem:[%s4496_s20 + $0x104] sm:$0xf] %v3719_v11  ;;  %v3718_v13 = vpack.c.bf16 %v2238_v28, %v2237_v8  ;;  %v2176_v14 = vpop.f32.mrb[44].mxu0  ;;  %v2228_v15 = vadd.f32 %v2227_v12, %v4484_v19  ;;  %v2229_v17 = vpop.f32.mrb[45].mxu1 }
 0x1c6   : > { %v2177_v18 = vadd.f32 %v2176_v14, %v4484_v19  ;;  %v2178_v20 = vpop.f32.mrb[45].mxu0  ;;  %v2230_v21 = vpop.f32.mrb[46].mxu1 }
 0x1c7   : > { %3502 = vst [vmem:[%s4496_s20 + $0xfc] sm:$0xff] %v3718_v13  ;;  %v2179_v22 = vadd.f32 %v2178_v20, %v4484_v19  ;;  %v2242_v23 = vmax.f32 %v2228_v15, 0.0  ;;  %v2180_v25 = vpop.f32.mrb[46].mxu0  ;;  %v2231_v26 = vadd.f32 %v2230_v21, %v4508_v54  ;;  %v2232_v27 = vpop.f32.mrb[47].mxu1 }
 0x1c8   : > { %v2240_v29 = vmax.f32 %v2177_v18, 0.0  ;;  %v2181_v6 = vadd.f32 %v2180_v25, %v4508_v54  ;;  %v2182_v30 = vpop.f32.mrb[47].mxu0 }
 0x1c9   : > { %v2241_v31 = vmax.f32 %v2179_v22, 0.0  ;;  %v3721_v35 = vpack.c.bf16 %v2242_v23, %v2242_v23  ;;  %v2183_v36 = vadd.f32 %v2182_v30, %v4508_v54  ;;  %v2245_v37 = vmax.f32 %v2231_v26, 0.0 }
 0x1ca   : > { %v2243_v33 = vmax.f32 %v2181_v6, 0.0 }
 0x1cb   : > { %v3720_v38 = vpack.c.bf16 %v2241_v31, %v2240_v29  ;;  %3505 = vst [vmem:[%s4496_s20 + $0x110] sm:$0xf] %v3721_v35  ;;  %v2244_v39 = vmax.f32 %v2183_v36, 0.0  ;;  %v3723_v41 = vpack.c.bf16 %v2245_v37, %v2245_v37 }
 0x1cd   : > { %3504 = vst [vmem:[%s4496_s20 + $0x108] sm:$0xff] %v3720_v38  ;;  %v3722_v42 = vpack.c.bf16 %v2244_v39, %v2243_v33  ;;  %3507 = vst [vmem:[%s4496_s20 + $0x11c] sm:$0xf] %v3723_v41 }
 0x1cf   : > { %3506 = vst [vmem:[%s4496_s20 + $0x114] sm:$0xff] %v3722_v42 }
 0x1e0   : > { %v2563_v43 = vpop.f32.mrb[48].mxu1 }
 0x1e1   : > { %v2564_v44 = vadd.f32 %v2563_v43, %v4471_v10  ;;  %v2510_v45 = vpop.f32.mrb[48].mxu0  ;;  %v2565_v46 = vpop.f32.mrb[49].mxu1 }
 0x1e2   : > { %v2511_v47 = vadd.f32 %v2510_v45, %v4471_v10  ;;  %v2512_v48 = vpop.f32.mrb[49].mxu0  ;;  %v2566_v0 = vpop.f32.mrb[50].mxu1 }
 0x1e3   : > { %v2580_v49 = vmax.f32 %v2564_v44, 0.0  ;;  %v2513_v50 = vadd.f32 %v2512_v48, %v4471_v10  ;;  %v2567_v51 = vadd.f32 %v2566_v0, %v4480_v16  ;;  %v2514_v52 = vpop.f32.mrb[50].mxu0  ;;  %v2568_v1 = vpop.f32.mrb[51].mxu1 }
 0x1e4   : > { %v2578_v53 = vmax.f32 %v2511_v47, 0.0  ;;  %v2515_v55 = vadd.f32 %v2514_v52, %v4480_v16  ;;  %v2516_v56 = vpop.f32.mrb[51].mxu0 }
 0x1e5   : > { %v3725_v57 = vpack.c.bf16 %v2580_v49, %v2580_v49  ;;  %v2579_v58 = vmax.f32 %v2513_v50, 0.0  ;;  %v2583_v59 = vmax.f32 %v2567_v51, 0.0  ;;  %v2517_v60 = vadd.f32 %v2516_v56, %v4480_v16 }
 0x1e6   : > { %v2581_v61 = vmax.f32 %v2515_v55, 0.0 }
 0x1e7   : > { %3584 = vst [vmem:[%s4496_s20 + $0x128] sm:$0xf] %v3725_v57  ;;  %v3724_v62 = vpack.c.bf16 %v2579_v58, %v2578_v53  ;;  %v3727_v63 = vpack.c.bf16 %v2583_v59, %v2583_v59  ;;  %v2582_v32 = vmax.f32 %v2517_v60, 0.0 }
 0x1e8   : > { %v2571_v2 = vpop.f32.mrb[52].mxu1 }
 0x1e9   : > { %3583 = vst [vmem:[%s4496_s20 + $0x120] sm:$0xff] %v3724_v62  ;;  %3586 = vst [vmem:[%s4496_s20 + $0x134] sm:$0xf] %v3727_v63  ;;  %v3726_v3 = vpack.c.bf16 %v2582_v32, %v2581_v61  ;;  %v2520_v4 = vpop.f32.mrb[52].mxu0  ;;  %v2572_v34 = vadd.f32 %v2571_v2, %v4484_v19  ;;  %v2573_v5 = vpop.f32.mrb[53].mxu1 }
 0x1ea   : > { %v2521_v24 = vadd.f32 %v2520_v4, %v4484_v19  ;;  %v2522_v40 = vpop.f32.mrb[53].mxu0  ;;  %v2574_v7 = vpop.f32.mrb[54].mxu1 }
 0x1eb   : > { %3585 = vst [vmem:[%s4496_s20 + $0x12c] sm:$0xff] %v3726_v3  ;;  %v2523_v8 = vadd.f32 %v2522_v40, %v4484_v19  ;;  %v2586_v9 = vmax.f32 %v2572_v34, 0.0  ;;  %v2524_v11 = vpop.f32.mrb[54].mxu0  ;;  %v2575_v28 = vadd.f32 %v2574_v7, %v4508_v54  ;;  %v2576_v12 = vpop.f32.mrb[55].mxu1 }
 0x1ec   : > { %v2584_v13 = vmax.f32 %v2521_v24, 0.0  ;;  %v2525_v14 = vadd.f32 %v2524_v11, %v4508_v54  ;;  %v2526_v15 = vpop.f32.mrb[55].mxu0 }
 0x1ed   : > { %v2585_v17 = vmax.f32 %v2523_v8, 0.0  ;;  %v3729_v18 = vpack.c.bf16 %v2586_v9, %v2586_v9  ;;  %v2527_v20 = vadd.f32 %v2526_v15, %v4508_v54  ;;  %v2589_v21 = vmax.f32 %v2575_v28, 0.0 }
 0x1ee   : > { %v2587_v22 = vmax.f32 %v2525_v14, 0.0 }
 0x1ef   : > { %v3728_v23 = vpack.c.bf16 %v2585_v17, %v2584_v13  ;;  %3588 = vst [vmem:[%s4496_s20 + $0x140] sm:$0xf] %v3729_v18  ;;  %v2588_v25 = vmax.f32 %v2527_v20, 0.0  ;;  %v3731_v26 = vpack.c.bf16 %v2589_v21, %v2589_v21 }
 0x1f1   : > { %3587 = vst [vmem:[%s4496_s20 + $0x138] sm:$0xff] %v3728_v23  ;;  %v3730_v27 = vpack.c.bf16 %v2588_v25, %v2587_v22  ;;  %3590 = vst [vmem:[%s4496_s20 + $0x14c] sm:$0xf] %v3731_v26 }
 0x1f3   : > { %3589 = vst [vmem:[%s4496_s20 + $0x144] sm:$0xff] %v3730_v27 }
 0x204   : > { %v2907_v29 = vpop.f32.mrb[56].mxu1 }
 0x205   : > { %v2908_v6 = vadd.f32 %v2907_v29, %v4471_v10  ;;  %v2854_v30 = vpop.f32.mrb[56].mxu0  ;;  %v2909_v31 = vpop.f32.mrb[57].mxu1 }
 0x206   : > { %v2855_v35 = vadd.f32 %v2854_v30, %v4471_v10  ;;  %v2856_v36 = vpop.f32.mrb[57].mxu0  ;;  %v2910_v37 = vpop.f32.mrb[58].mxu1 }
 0x207   : > { %v2924_v33 = vmax.f32 %v2908_v6, 0.0  ;;  %v2857_v38 = vadd.f32 %v2856_v36, %v4471_v10  ;;  %v2911_v39 = vadd.f32 %v2910_v37, %v4480_v16  ;;  %v2858_v41 = vpop.f32.mrb[58].mxu0  ;;  %v2912_v42 = vpop.f32.mrb[59].mxu1 }
 0x208   : > { %v2922_v43 = vmax.f32 %v2855_v35, 0.0  ;;  %v2859_v44 = vadd.f32 %v2858_v41, %v4480_v16  ;;  %v2860_v45 = vpop.f32.mrb[59].mxu0 }
 0x209   : > { %v3733_v46 = vpack.c.bf16 %v2924_v33, %v2924_v33  ;;  %v2923_v47 = vmax.f32 %v2857_v38, 0.0  ;;  %v2927_v48 = vmax.f32 %v2911_v39, 0.0  ;;  %v2861_v0 = vadd.f32 %v2860_v45, %v4480_v16 }
 0x20a   : > { %v2925_v49 = vmax.f32 %v2859_v44, 0.0 }
 0x20b   : > { %3667 = vst [vmem:[%s4496_s20 + $0x158] sm:$0xf] %v3733_v46  ;;  %v3732_v50 = vpack.c.bf16 %v2923_v47, %v2922_v43  ;;  %v3735_v10 = vpack.c.bf16 %v2927_v48, %v2927_v48  ;;  %v2926_v51 = vmax.f32 %v2861_v0, 0.0 }
 0x20c   : > { %v2915_v52 = vpop.f32.mrb[60].mxu1 }
 0x20d   : > { %3666 = vst [vmem:[%s4496_s20 + $0x150] sm:$0xff] %v3732_v50  ;;  %3669 = vst [vmem:[%s4496_s20 + $0x164] sm:$0xf] %v3735_v10  ;;  %v3734_v1 = vpack.c.bf16 %v2926_v51, %v2925_v49  ;;  %v2916_v53 = vadd.f32 %v2915_v52, %v4484_v19  ;;  %v2864_v55 = vpop.f32.mrb[60].mxu0  ;;  %v2917_v56 = vpop.f32.mrb[61].mxu1 }
 0x20e   : > { %v2865_v57 = vadd.f32 %v2864_v55, %v4484_v19  ;;  %v2866_v58 = vpop.f32.mrb[61].mxu0  ;;  %v2918_v59 = vpop.f32.mrb[62].mxu1 }
 0x20f   : > { %3668 = vst [vmem:[%s4496_s20 + $0x15c] sm:$0xff] %v3734_v1  ;;  %v2930_v16 = vmax.f32 %v2916_v53, 0.0  ;;  %v2867_v60 = vadd.f32 %v2866_v58, %v4484_v19  ;;  %v2919_v61 = vadd.f32 %v2918_v59, %v4508_v54  ;;  %v2868_v62 = vpop.f32.mrb[62].mxu0  ;;  %v2920_v63 = vpop.f32.mrb[63].mxu1 }
 0x210   : > { %v2928_v32 = vmax.f32 %v2865_v57, 0.0  ;;  %v2869_v2 = vadd.f32 %v2868_v62, %v4508_v54  ;;  %v2870_v3 = vpop.f32.mrb[63].mxu0 }
 0x211   : > { %v3737_v4 = vpack.c.bf16 %v2930_v16, %v2930_v16  ;;  %v2929_v34 = vmax.f32 %v2867_v60, 0.0  ;;  %v2933_v5 = vmax.f32 %v2919_v61, 0.0  ;;  %v2871_v24 = vadd.f32 %v2870_v3, %v4508_v54 }
 0x212   : > { %v2931_v40 = vmax.f32 %v2869_v2, 0.0 }
 0x213   : > { %3671 = vst [vmem:[%s4496_s20 + $0x170] sm:$0xf] %v3737_v4  ;;  %v3736_v7 = vpack.c.bf16 %v2929_v34, %v2928_v32  ;;  %v3739_v19 = vpack.c.bf16 %v2933_v5, %v2933_v5  ;;  %v2932_v8 = vmax.f32 %v2871_v24, 0.0 }
 0x215   : > { %3670 = vst [vmem:[%s4496_s20 + $0x168] sm:$0xff] %v3736_v7  ;;  %3673 = vst [vmem:[%s4496_s20 + $0x17c] sm:$0xf] %v3739_v19  ;;  %v3738_v9 = vpack.c.bf16 %v2932_v8, %v2931_v40 }
 0x217   : > { %3672 = vst [vmem:[%s4496_s20 + $0x174] sm:$0xff] %v3738_v9 }
 0x218 PF: > { %s13_s12 = sadd.s32 1, %s4057_s12  }
 0x219   : > { %p10_p4 = scmp.ge.s32.totalorder %s13_s12, 4  }
 0x21b   :  { %12 = sbr.rel (!%p10_p4) target bundleno = 1 (0x1), region = 76 }

// kernel: wind_turbine_forward.12
= control target key start
LH: loop header
LB: loop body
LE: loop exit
PB: predicated region body
PF: predicated region fallthrough
CT: control target
= control target key end

     0   :  { %s600_s15 = smov 0   ;;  %s715_s0 = inlined_call_operand.vmem [shape: bf16[384,128], index: 0, kind: input, shape index: {}]   ;;  %s716_s1 = inlined_call_operand.vmem [shape: bf16[384,128], index: 1, kind: input, shape index: {}]   ;;  %s717_s2 = inlined_call_operand.vmem [shape: bf16[384,128], index: 2, kind: input, shape index: {}]   ;;  %s718_s3 = inlined_call_operand.vmem [shape: bf16[384,128], index: 3, kind: input, shape index: {}]   ;;  %s719_s4 = inlined_call_operand.vmem [shape: bf16[384,128], index: 4, kind: output, shape index: {}]  }
   0x1 LB: > { %s487_s16 = sadd.s32 4294967295, %s573_s15   ;;  %p491_p0 = scmp.ge.s32.totalorder %s573_s15, 1  ;;  %s573_s15 = sphi %s600_s15, %s14_s15  }
   0x2   : > { %p196_p1 = scmp.lt.s32.totalorder %s573_s15, 4 }
   0x4   : > { %p197_p2 = pnand %p491_p0, %p196_p1 }
   0x5   : > { %s492_s17 = sshll.u32 (!%p197_p2), %s487_s16, 4 }
   0x6   : > { %200 = sbr.rel (%p197_p2) target bundleno = 47 (0x2f), region = 36  ;;  %p238_p3 = scmp.lt.s32.totalorder (!%p197_p2), %s492_s17, 47 }
   0xd   : > { %s721_s17 = smov (!%p238_p3, %s492_s17), 47 }
   0xe   : > { %s608_s18 = sshll.u32 %s721_s17, 2 }
   0xf   : > { %s614_s21 = scalar_lea.vmem %s715_s0, %s608_s18  ;;  %s620_s24 = scalar_lea.vmem %s716_s1, %s608_s18 }
  0x10   : > { %s626_s27 = scalar_lea.vmem %s717_s2, %s608_s18  ;;  %s632_s30 = scalar_lea.vmem %s718_s3, %s608_s18  ;;  %v267_v0 = vld [vmem:[%s614_s21] sm:$0xf]  ;;  %v268_v1 = vld [vmem:[%s614_s21 + $0x4] sm:$0xf]  ;;  %v269_v10 = vld [vmem:[%s614_s21 + $0x8] sm:$0xf] }
  0x11   : > { %v283_v2 = vld [vmem:[%s620_s24] sm:$0xf]  ;;  %v284_v3 = vld [vmem:[%s620_s24 + $0x4] sm:$0xf]  ;;  %v270_v13 = vld [vmem:[%s614_s21 + $0xc] sm:$0xf]  ;;  %s656_s7 = scalar_lea.vmem %s719_s4, %s608_s18 }
  0x12   : > { %v299_v4 = vmax.bf16 %v283_v2, %v267_v0  ;;  %v315_v5 = vld [vmem:[%s626_s27] sm:$0xf]  ;;  %v316_v6 = vld [vmem:[%s626_s27 + $0x4] sm:$0xf]  ;;  %v300_v7 = vmax.bf16 %v284_v3, %v268_v1  ;;  %v285_v14 = vld [vmem:[%s620_s24 + $0x8] sm:$0xf] }
  0x13   : > { %v331_v8 = vld [vmem:[%s632_s30] sm:$0xf]  ;;  %v332_v9 = vld [vmem:[%s632_s30 + $0x4] sm:$0xf]  ;;  %v286_v15 = vld [vmem:[%s620_s24 + $0xc] sm:$0xf]  ;;  %v301_v16 = vmax.bf16 %v285_v14, %v269_v10 }
  0x14   : > { %v347_v11 = vmax.bf16 %v331_v8, %v315_v5  ;;  %v348_v12 = vmax.bf16 %v332_v9, %v316_v6  ;;  %v302_v17 = vmax.bf16 %v286_v15, %v270_v13  ;;  %v317_v18 = vld [vmem:[%s626_s27 + $0x8] sm:$0xf]  ;;  %v318_v19 = vld [vmem:[%s626_s27 + $0xc] sm:$0xf]  ;;  %v271_v25 = vld [vmem:[%s614_s21 + $0x10] sm:$0xf] }
  0x15   : > { %v333_v20 = vld [vmem:[%s632_s30 + $0x8] sm:$0xf]  ;;  %v334_v23 = vld [vmem:[%s632_s30 + $0xc] sm:$0xf]  ;;  %v272_v26 = vld [vmem:[%s614_s21 + $0x14] sm:$0xf] }
  0x16   : > { %v363_v21 = vmax.bf16 %v347_v11, %v299_v4  ;;  %v364_v22 = vmax.bf16 %v348_v12, %v300_v7  ;;  %v349_v24 = vmax.bf16 %v333_v20, %v317_v18  ;;  %v350_v27 = vmax.bf16 %v334_v23, %v318_v19  ;;  %v287_v28 = vld [vmem:[%s620_s24 + $0x10] sm:$0xf]  ;;  %v288_v29 = vld [vmem:[%s620_s24 + $0x14] sm:$0xf]  ;;  %v273_v41 = vld [vmem:[%s614_s21 + $0x18] sm:$0xf] }
  0x17   : > { %v319_v30 = vld [vmem:[%s626_s27 + $0x10] sm:$0xf]  ;;  %v303_v33 = vmax.bf16 %v287_v28, %v271_v25  ;;  %v304_v34 = vmax.bf16 %v288_v29, %v272_v26  ;;  %v320_v35 = vld [vmem:[%s626_s27 + $0x14] sm:$0xf]  ;;  %v274_v42 = vld [vmem:[%s614_s21 + $0x1c] sm:$0xf] }
  0x18   : > { %v544_v31 = vcombine.low %v363_v21, %v364_v22  ;;  %v365_v32 = vmax.bf16 %v349_v24, %v301_v16  ;;  %v335_v36 = vld [vmem:[%s632_s30 + $0x10] sm:$0xf]  ;;  %v336_v37 = vld [vmem:[%s632_s30 + $0x14] sm:$0xf]  ;;  %v366_v38 = vmax.bf16 %v350_v27, %v302_v17  ;;  %v289_v43 = vld [vmem:[%s620_s24 + $0x18] sm:$0xf] }
  0x19   : > { %v351_v39 = vmax.bf16 %v335_v36, %v319_v30  ;;  %v352_v40 = vmax.bf16 %v336_v37, %v320_v35  ;;  %v290_v44 = vld [vmem:[%s620_s24 + $0x1c] sm:$0xf]  ;;  %v305_v45 = vmax.bf16 %v289_v43, %v273_v41  ;;  %v321_v46 = vld [vmem:[%s626_s27 + $0x18] sm:$0xf]  ;;  %v275_v54 = vld [vmem:[%s614_s21 + $0x20] sm:$0xf] }
  0x1a   : > { %508 = vst [vmem:[%s656_s7] sm:$0xff] %v544_v31   ;;  %v322_v47 = vld [vmem:[%s626_s27 + $0x1c] sm:$0xf]  ;;  %v545_v48 = vcombine.low %v365_v32, %v366_v38  ;;  %v306_v51 = vmax.bf16 %v290_v44, %v274_v42  ;;  %v337_v52 = vld [vmem:[%s632_s30 + $0x18] sm:$0xf]  ;;  %v276_v57 = vld [vmem:[%s614_s21 + $0x24] sm:$0xf] }
  0x1b   : > { %v367_v49 = vmax.bf16 %v351_v39, %v303_v33  ;;  %v368_v50 = vmax.bf16 %v352_v40, %v304_v34  ;;  %v338_v53 = vld [vmem:[%s632_s30 + $0x1c] sm:$0xf]  ;;  %v353_v55 = vmax.bf16 %v337_v52, %v321_v46  ;;  %v291_v58 = vld [vmem:[%s620_s24 + $0x20] sm:$0xf]  ;;  %v292_v59 = vld [vmem:[%s620_s24 + $0x24] sm:$0xf] }
  0x1c   : > { %v354_v56 = vmax.bf16 %v338_v53, %v322_v47  ;;  %546 = vst [vmem:[%s656_s7 + $0x8] sm:$0xff] %v545_v48   ;;  %v307_v61 = vmax.bf16 %v291_v58, %v275_v54  ;;  %v308_v62 = vmax.bf16 %v292_v59, %v276_v57  ;;  %v323_v63 = vld [vmem:[%s626_s27 + $0x20] sm:$0xf]  ;;  %v324_v0 = vld [vmem:[%s626_s27 + $0x24] sm:$0xf] }
  0x1d   : > { %v547_v60 = vcombine.low %v367_v49, %v368_v50  ;;  %v339_v1 = vld [vmem:[%s632_s30 + $0x20] sm:$0xf]  ;;  %v369_v2 = vmax.bf16 %v353_v55, %v305_v45  ;;  %v340_v4 = vld [vmem:[%s632_s30 + $0x24] sm:$0xf]  ;;  %v277_v6 = vld [vmem:[%s614_s21 + $0x28] sm:$0xf] }
  0x1e   : > { %v370_v3 = vmax.bf16 %v354_v56, %v306_v51  ;;  %v355_v5 = vmax.bf16 %v339_v1, %v323_v63  ;;  %v278_v7 = vld [vmem:[%s614_s21 + $0x2c] sm:$0xf]  ;;  %v356_v8 = vmax.bf16 %v340_v4, %v324_v0  ;;  %v293_v9 = vld [vmem:[%s620_s24 + $0x28] sm:$0xf]  ;;  %v279_v22 = vld [vmem:[%s614_s21 + $0x30] sm:$0xf] }
  0x1f   : > { %548 = vst [vmem:[%s656_s7 + $0x10] sm:$0xff] %v547_v60   ;;  %v294_v10 = vld [vmem:[%s620_s24 + $0x2c] sm:$0xf]  ;;  %v325_v11 = vld [vmem:[%s626_s27 + $0x28] sm:$0xf]  ;;  %v309_v14 = vmax.bf16 %v293_v9, %v277_v6 }
  0x20   : > { %v549_v12 = vcombine.low %v369_v2, %v370_v3  ;;  %v371_v13 = vmax.bf16 %v355_v5, %v307_v61  ;;  %v310_v15 = vmax.bf16 %v294_v10, %v278_v7  ;;  %v326_v16 = vld [vmem:[%s626_s27 + $0x2c] sm:$0xf]  ;;  %v341_v17 = vld [vmem:[%s632_s30 + $0x28] sm:$0xf]  ;;  %v372_v19 = vmax.bf16 %v356_v8, %v308_v62  ;;  %v280_v23 = vld [vmem:[%s614_s21 + $0x34] sm:$0xf] }
  0x21   : > { %v342_v18 = vld [vmem:[%s632_s30 + $0x2c] sm:$0xf]  ;;  %v357_v20 = vmax.bf16 %v341_v17, %v325_v11  ;;  %v295_v24 = vld [vmem:[%s620_s24 + $0x30] sm:$0xf]  ;;  %v296_v25 = vld [vmem:[%s620_s24 + $0x34] sm:$0xf] }
  0x22   : > { %v358_v21 = vmax.bf16 %v342_v18, %v326_v16  ;;  %550 = vst [vmem:[%s656_s7 + $0x18] sm:$0xff] %v549_v12   ;;  %v311_v26 = vmax.bf16 %v295_v24, %v279_v22  ;;  %v327_v27 = vld [vmem:[%s626_s27 + $0x30] sm:$0xf]  ;;  %v328_v28 = vld [vmem:[%s626_s27 + $0x34] sm:$0xf]  ;;  %v551_v29 = vcombine.low %v371_v13, %v372_v19  ;;  %v312_v32 = vmax.bf16 %v296_v25, %v280_v23 }
  0x23   : > { %v373_v30 = vmax.bf16 %v357_v20, %v309_v14  ;;  %v343_v33 = vld [vmem:[%s632_s30 + $0x30] sm:$0xf]  ;;  %v344_v34 = vld [vmem:[%s632_s30 + $0x34] sm:$0xf]  ;;  %v281_v35 = vld [vmem:[%s614_s21 + $0x38] sm:$0xf] }
  0x24   : > { %v374_v31 = vmax.bf16 %v358_v21, %v310_v15  ;;  %v359_v36 = vmax.bf16 %v343_v33, %v327_v27  ;;  %v360_v37 = vmax.bf16 %v344_v34, %v328_v28  ;;  %v282_v38 = vld [vmem:[%s614_s21 + $0x3c] sm:$0xf]  ;;  %v297_v39 = vld [vmem:[%s620_s24 + $0x38] sm:$0xf]  ;;  %552 = vst [vmem:[%s656_s7 + $0x20] sm:$0xff] %v551_v29  }
  0x25   : > { %v298_v40 = vld [vmem:[%s620_s24 + $0x3c] sm:$0xf]  ;;  %v313_v42 = vmax.bf16 %v297_v39, %v281_v35  ;;  %v329_v44 = vld [vmem:[%s626_s27 + $0x38] sm:$0xf] }
  0x26   : > { %v553_v41 = vcombine.low %v373_v30, %v374_v31  ;;  %v314_v43 = vmax.bf16 %v298_v40, %v282_v38  ;;  %v330_v45 = vld [vmem:[%s626_s27 + $0x3c] sm:$0xf]  ;;  %v345_v46 = vld [vmem:[%s632_s30 + $0x38] sm:$0xf]  ;;  %v375_v47 = vmax.bf16 %v359_v36, %v311_v26  ;;  %v376_v48 = vmax.bf16 %v360_v37, %v312_v32 }
  0x27   : > { %v346_v49 = vld [vmem:[%s632_s30 + $0x3c] sm:$0xf]  ;;  %v361_v50 = vmax.bf16 %v345_v46, %v329_v44 }
  0x28   : > { %554 = vst [vmem:[%s656_s7 + $0x28] sm:$0xff] %v553_v41   ;;  %v362_v51 = vmax.bf16 %v346_v49, %v330_v45  ;;  %v555_v52 = vcombine.low %v375_v47, %v376_v48 }
  0x29   : > { %v377_v53 = vmax.bf16 %v361_v50, %v313_v42 }
  0x2a   : > { %v378_v54 = vmax.bf16 %v362_v51, %v314_v43  ;;  %556 = vst [vmem:[%s656_s7 + $0x30] sm:$0xff] %v555_v52  }
  0x2c   : > { %v557_v55 = vcombine.low %v377_v53, %v378_v54 }
  0x2e   : > { %558 = vst [vmem:[%s656_s7 + $0x38] sm:$0xff] %v557_v55  }
  0x2f PF: > { %s14_s15 = sadd.s32 1, %s573_s15  }
  0x30   : > { %p11_p4 = scmp.ge.s32.totalorder %s14_s15, 5  }
  0x32   :  { %13 = sbr.rel (!%p11_p4) target bundleno = 1 (0x1), region = 75 }

// kernel: wind_turbine_forward.14
= control target key start
LH: loop header
LB: loop body
LE: loop exit
PB: predicated region body
PF: predicated region fallthrough
CT: control target
= control target key end

     0   :  { %v287_v1 = vmov 0   ;;  %vm140_vm0 = vcmask 523264   ;;  %v35_v18 = vlaneseq  ;;  %s386_s1 = inlined_call_operand.vmem [shape: bf16[64,512], index: 1, kind: input, shape index: {}]   ;;  %s387_s0 = inlined_call_operand.vmem [shape: bf16[16,64], index: 0, kind: input, shape index: {}]   ;;  %s388_s2 = inlined_call_operand.vmem [shape: f32[1,512], index: 2, kind: input, shape index: {}]   ;;  %s389_s3 = inlined_call_operand.vmem [shape: f32[16,512], index: 3, kind: output, shape index: {}]  }
   0x1   :  { %v262_v0 = vld [vmem:[%s386_s1 + $0x4] ss:$16 sps:$4 sm:$0xff]   ;;  %176 = vmatprep.mubr.bf16.mxu0 %v287_v1  ;;  %219 = vmatprep.mubr.bf16.mxu1 %v287_v1  ;;  %v264_v2 = vld [vmem:[%s386_s1 + $0xc] ss:$16 sps:$4 sm:$0xff]   ;;  %v266_v3 = vld [vmem:[%s386_s1] ss:$16 sps:$4 sm:$0xff]  }
   0x2   :  { %144 = vmatprep.subr.bf16.mxu0 %v262_v0  ;;  %v267_v4 = vld [vmem:[%s386_s1 + $0x8] ss:$16 sps:$4 sm:$0xff]   ;;  %187 = vmatprep.subr.bf16.mxu1 %v264_v2  ;;  %v268_v5 = vld [vmem:[%s386_s1 + $0x24] ss:$16 sps:$4 sm:$0xff]   ;;  %v270_v6 = vld [vmem:[%s386_s1 + $0x2c] ss:$16 sps:$4 sm:$0xff]  }
   0x3   :  { %145 = vmatpush1.bf16.msra.mxu0 %v266_v3  ;;  %188 = vmatpush1.bf16.msra.mxu1 %v267_v4  ;;  %v272_v7 = vld [vmem:[%s386_s1 + $0x20] ss:$16 sps:$4 sm:$0xff]   ;;  %v273_v8 = vld [vmem:[%s386_s1 + $0x28] ss:$16 sps:$4 sm:$0xff]   ;;  %v274_v9 = vld [vmem:[%s386_s1 + $0x44] ss:$16 sps:$4 sm:$0xff]  }
   0x4   :  { %146 = vmatprep.subr.bf16.mxu0 %v268_v5  ;;  %189 = vmatprep.subr.bf16.mxu1 %v270_v6  ;;  %v276_v10 = vld [vmem:[%s386_s1 + $0x4c] ss:$16 sps:$4 sm:$0xff]   ;;  %v278_v11 = vld [vmem:[%s386_s1 + $0x40] ss:$16 sps:$4 sm:$0xff]   ;;  %v279_v12 = vld [vmem:[%s386_s1 + $0x48] ss:$16 sps:$4 sm:$0xff]  }
   0x5   :  { %v280_v13 = vld [vmem:[%s386_s1 + $0x64] ss:$16 sps:$4 sm:$0xff]   ;;  %v282_v14 = vld [vmem:[%s386_s1 + $0x6c] ss:$16 sps:$4 sm:$0xff]   ;;  %v284_v15 = vld [vmem:[%s386_s1 + $0x60] ss:$16 sps:$4 sm:$0xff]  }
   0x6   :  { %v285_v16 = vld [vmem:[%s386_s1 + $0x68] ss:$16 sps:$4 sm:$0xff]   ;;  %v286_v17 = vld [vmem:[%s387_s0] sm:$0xff]   ;;  %v36_v19 = vshrl.u32 %v35_v18, 7 }
   0x7   :  { %147 = vmatpush1.bf16.msra.mxu0 %v272_v7  ;;  %190 = vmatpush1.bf16.msra.mxu1 %v273_v8  ;;  %v33_v22 = vld [vmem:[%s388_s2] sm:$0xf] }
   0x8   :  { %148 = vmatprep.subr.bf16.mxu0 %v274_v9  ;;  %191 = vmatprep.subr.bf16.mxu1 %v276_v10  ;;  %v37_v20 = vsub.s32 0, %v36_v19  ;;  %v45_v21 = vsub.s32 2, %v36_v19  ;;  %v41_v23 = vsub.s32 1, %v36_v19  ;;  %v49_v24 = vsub.s32 3, %v36_v19 }
   0xa   :  { %v38_v25 = vrot.slane %v33_v22, %v37_v20  ;;  %v46_v26 = vrot.slane %v33_v22, %v45_v21  ;;  %v42_v27 = vrot.slane %v33_v22, %v41_v23  ;;  %v50_v28 = vrot.slane %v33_v22, %v49_v24 }
   0xb   :  { %149 = vmatpush1.bf16.msra.mxu0 %v278_v11  ;;  %192 = vmatpush1.bf16.msra.mxu1 %v279_v12 }
   0xc   :  { %150 = vmatprep.subr.bf16.mxu0 %v280_v13  ;;  %193 = vmatprep.subr.bf16.mxu1 %v282_v14 }
   0xf   :  { %151 = vmatpush1.bf16.msra.mxu0 %v284_v15  ;;  %194 = vmatpush1.bf16.msra.mxu1 %v285_v16 }
  0x12   :  { %259 = vmatmul.mubr.msk.bf16.vlgmr.msra.gmra.mrb[0].mxu0 %vm140_vm0, %v286_v17  ;;  %260 = vmatmul.mubr.msk.bf16.vlgmr.msra.gmra.mrb[0].mxu1 %vm140_vm0, %v286_v17 }
  0xe5   :  { %v178_v29 = vpop.f32.mrb[0].mxu0  ;;  %v221_v30 = vpop.f32.mrb[0].mxu1 }
  0xe6   :  { %v179_v31 = vadd.f32 %v178_v29, %v38_v25  ;;  %v222_v32 = vadd.f32 %v221_v30, %v46_v26  ;;  %v180_v33 = vpop.f32.mrb[1].mxu0  ;;  %v223_v34 = vpop.f32.mrb[1].mxu1 }
  0xe7   :  { %v181_v35 = vadd.f32 %v180_v33, %v42_v27  ;;  %v224_v36 = vadd.f32 %v223_v34, %v50_v28  ;;  %v182_v37 = vpop.f32.mrb[2].mxu0  ;;  %v225_v38 = vpop.f32.mrb[2].mxu1 }
  0xe8   :  { %230 = vst [vmem:[%s389_s3] sm:$0xff] %v179_v31  ;;  %232 = vst [vmem:[%s389_s3 + $0x10] sm:$0xff] %v222_v32  ;;  %v183_v39 = vadd.f32 %v182_v37, %v38_v25  ;;  %v226_v40 = vadd.f32 %v225_v38, %v46_v26  ;;  %v184_v41 = vpop.f32.mrb[3].mxu0  ;;  %v227_v42 = vpop.f32.mrb[3].mxu1 }
  0xe9   :  { %231 = vst [vmem:[%s389_s3 + $0x8] sm:$0xff] %v181_v35  ;;  %233 = vst [vmem:[%s389_s3 + $0x18] sm:$0xff] %v224_v36  ;;  %v185_v43 = vadd.f32 %v184_v41, %v42_v27  ;;  %v228_v44 = vadd.f32 %v227_v42, %v50_v28 }
  0xea   :  { %234 = vst [vmem:[%s389_s3 + $0x20] sm:$0xff] %v183_v39  ;;  %236 = vst [vmem:[%s389_s3 + $0x30] sm:$0xff] %v226_v40 }
  0xeb   :  { %235 = vst [vmem:[%s389_s3 + $0x28] sm:$0xff] %v185_v43  ;;  %237 = vst [vmem:[%s389_s3 + $0x38] sm:$0xff] %v228_v44 }

// kernel: wind_turbine_forward.13
= control target key start
LH: loop header
LB: loop body
LE: loop exit
PB: predicated region body
PF: predicated region fallthrough
CT: control target
= control target key end

     0   :  { %vm1832_vm0 = vcmask 523264   ;;  %s2999_s1 = inlined_call_operand.vmem [shape: bf16[2560,64], index: 1, kind: input, shape index: {}]   ;;  %s3000_s0 = inlined_call_operand.vmem [shape: bf16[16,2560], index: 0, kind: input, shape index: {}]   ;;  %s3001_s2 = inlined_call_operand.vmem [shape: f32[1,64], index: 2, kind: input, shape index: {}]   ;;  %s3002_s3 = inlined_call_operand.vmem [shape: f32[16,64], index: 3, kind: output, shape index: {}]  }
   0x1   :  { %v2240_v0 = vld [vmem:[%s2999_s1 + $0x40] sm:$0xff]   ;;  %v2244_v4 = vld [vmem:[%s2999_s1 + $0x48] sm:$0xff]   ;;  %v2248_v8 = vld [vmem:[%s2999_s1 + $0x50] sm:$0xff]  }
   0x2   :  { %v2241_v1 = vld [vmem:[%s2999_s1 + $0xc0] sm:$0xff]   ;;  %2020 = vmatprep.subr.bf16.mxu0 %v2240_v0  ;;  %v2245_v5 = vld [vmem:[%s2999_s1 + $0xc8] sm:$0xff]   ;;  %v2249_v9 = vld [vmem:[%s2999_s1 + $0xd0] sm:$0xff]  }
   0x3   :  { %v2242_v2 = vld [vmem:[%s2999_s1] sm:$0xff]   ;;  %2042 = vmatprep.subr.bf16.mxu1 %v2241_v1  ;;  %v2246_v6 = vld [vmem:[%s2999_s1 + $0x8] sm:$0xff]   ;;  %v2250_v10 = vld [vmem:[%s2999_s1 + $0x10] sm:$0xff]  }
   0x4   :  { %v2243_v3 = vld [vmem:[%s2999_s1 + $0x80] sm:$0xff]   ;;  %2021 = vmatpush3.bf16.msra.mxu0 %v2242_v2  ;;  %v2247_v7 = vld [vmem:[%s2999_s1 + $0x88] sm:$0xff]   ;;  %v2251_v11 = vld [vmem:[%s2999_s1 + $0x90] sm:$0xff]  }
   0x5   :  { %2043 = vmatpush3.bf16.msra.mxu1 %v2243_v3  ;;  %2022 = vmatprep.subr.bf16.mxu0 %v2244_v4  ;;  %v2252_v12 = vld [vmem:[%s2999_s1 + $0x58] sm:$0xff]   ;;  %v2256_v16 = vld [vmem:[%s2999_s1 + $0x60] sm:$0xff]   ;;  %v2260_v20 = vld [vmem:[%s2999_s1 + $0x68] sm:$0xff]  }
   0x6   :  { %2044 = vmatprep.subr.bf16.mxu1 %v2245_v5  ;;  %v2253_v13 = vld [vmem:[%s2999_s1 + $0xd8] sm:$0xff]   ;;  %v2257_v17 = vld [vmem:[%s2999_s1 + $0xe0] sm:$0xff]   ;;  %v2261_v21 = vld [vmem:[%s2999_s1 + $0xe8] sm:$0xff]  }
   0x7   :  { %v2254_v14 = vld [vmem:[%s2999_s1 + $0x18] sm:$0xff]   ;;  %v2258_v18 = vld [vmem:[%s2999_s1 + $0x20] sm:$0xff]   ;;  %v2262_v22 = vld [vmem:[%s2999_s1 + $0x28] sm:$0xff]  }
   0x8   :  { %2023 = vmatpush3.bf16.msra.mxu0 %v2246_v6  ;;  %v2255_v15 = vld [vmem:[%s2999_s1 + $0x98] sm:$0xff]   ;;  %v2259_v19 = vld [vmem:[%s2999_s1 + $0xa0] sm:$0xff]   ;;  %v2263_v23 = vld [vmem:[%s2999_s1 + $0xa8] sm:$0xff]  }
   0x9   :  { %2045 = vmatpush3.bf16.msra.mxu1 %v2247_v7  ;;  %2024 = vmatprep.subr.bf16.mxu0 %v2248_v8  ;;  %v2264_v24 = vld [vmem:[%s2999_s1 + $0x70] sm:$0xff]   ;;  %v2268_v28 = vld [vmem:[%s2999_s1 + $0x78] sm:$0xff]   ;;  %v2278_v36 = vld [vmem:[%s2999_s1 + $0x140] sm:$0xff]  }
   0xa   :  { %2046 = vmatprep.subr.bf16.mxu1 %v2249_v9  ;;  %v2265_v25 = vld [vmem:[%s2999_s1 + $0xf0] sm:$0xff]   ;;  %v2269_v29 = vld [vmem:[%s2999_s1 + $0xf8] sm:$0xff]   ;;  %v2279_v37 = vld [vmem:[%s2999_s1 + $0x1c0] sm:$0xff]  }
   0xb   :  { %v2266_v26 = vld [vmem:[%s2999_s1 + $0x30] sm:$0xff]   ;;  %v2270_v30 = vld [vmem:[%s2999_s1 + $0x38] sm:$0xff]   ;;  %v2280_v38 = vld [vmem:[%s2999_s1 + $0x100] sm:$0xff]  }
   0xc   :  { %2025 = vmatpush3.bf16.msra.mxu0 %v2250_v10  ;;  %v2267_v27 = vld [vmem:[%s2999_s1 + $0xb0] sm:$0xff]   ;;  %v2271_v31 = vld [vmem:[%s2999_s1 + $0xb8] sm:$0xff]   ;;  %v2281_v39 = vld [vmem:[%s2999_s1 + $0x180] sm:$0xff]  }
   0xd   :  { %2047 = vmatpush3.bf16.msra.mxu1 %v2251_v11  ;;  %2026 = vmatprep.subr.bf16.mxu0 %v2252_v12  ;;  %v2272_v32 = vld [vmem:[%s3000_s0] ss:$80 sps:$4 sm:$0xff]   ;;  %v2274_v33 = vld [vmem:[%s3000_s0 + $0x4] ss:$80 sps:$4 sm:$0xff]   ;;  %v2275_v34 = vld [vmem:[%s3000_s0 + $0x8] ss:$80 sps:$4 sm:$0xff]  }
   0xe   :  { %2048 = vmatprep.subr.bf16.mxu1 %v2253_v13  ;;  %v2277_v35 = vld [vmem:[%s3000_s0 + $0xc] ss:$80 sps:$4 sm:$0xff]   ;;  %1454 = vmatprep.mubr.bf16.mxu0 %v2274_v33  ;;  %v2286_v44 = vld [vmem:[%s2999_s1 + $0x150] sm:$0xff]   ;;  %v2294_v52 = vld [vmem:[%s2999_s1 + $0x160] sm:$0xff]  }
   0xf   :  { %1495 = vmatprep.mubr.bf16.mxu1 %v2277_v35  ;;  %v2282_v40 = vld [vmem:[%s2999_s1 + $0x148] sm:$0xff]   ;;  %v2287_v45 = vld [vmem:[%s2999_s1 + $0x1d0] sm:$0xff]   ;;  %v2290_v48 = vld [vmem:[%s2999_s1 + $0x158] sm:$0xff]  }
  0x10   :  { %2027 = vmatpush3.bf16.msra.mxu0 %v2254_v14  ;;  %v2283_v41 = vld [vmem:[%s2999_s1 + $0x1c8] sm:$0xff]   ;;  %v2288_v46 = vld [vmem:[%s2999_s1 + $0x110] sm:$0xff]   ;;  %v2291_v49 = vld [vmem:[%s2999_s1 + $0x1d8] sm:$0xff]  }
  0x11   :  { %2049 = vmatpush3.bf16.msra.mxu1 %v2255_v15  ;;  %2028 = vmatprep.subr.bf16.mxu0 %v2256_v16  ;;  %v2284_v42 = vld [vmem:[%s2999_s1 + $0x108] sm:$0xff]   ;;  %v2289_v47 = vld [vmem:[%s2999_s1 + $0x190] sm:$0xff]   ;;  %v2292_v50 = vld [vmem:[%s2999_s1 + $0x118] sm:$0xff]  }
  0x12   :  { %2050 = vmatprep.subr.bf16.mxu1 %v2257_v17  ;;  %v2285_v43 = vld [vmem:[%s2999_s1 + $0x188] sm:$0xff]   ;;  %v2293_v51 = vld [vmem:[%s2999_s1 + $0x198] sm:$0xff]   ;;  %v2295_v53 = vld [vmem:[%s2999_s1 + $0x1e0] sm:$0xff]  }
  0x13   :  { %v2296_v54 = vld [vmem:[%s2999_s1 + $0x120] sm:$0xff]   ;;  %v2298_v56 = vld [vmem:[%s2999_s1 + $0x168] sm:$0xff]   ;;  %v2302_v60 = vld [vmem:[%s2999_s1 + $0x170] sm:$0xff]  }
  0x14   :  { %2029 = vmatpush3.bf16.msra.mxu0 %v2258_v18  ;;  %v2297_v55 = vld [vmem:[%s2999_s1 + $0x1a0] sm:$0xff]   ;;  %v2299_v57 = vld [vmem:[%s2999_s1 + $0x1e8] sm:$0xff]   ;;  %v2303_v61 = vld [vmem:[%s2999_s1 + $0x1f0] sm:$0xff]  }
  0x15   :  { %2051 = vmatpush3.bf16.msra.mxu1 %v2259_v19  ;;  %2030 = vmatprep.subr.bf16.mxu0 %v2260_v20  ;;  %v2300_v58 = vld [vmem:[%s2999_s1 + $0x128] sm:$0xff]   ;;  %v2304_v62 = vld [vmem:[%s2999_s1 + $0x130] sm:$0xff]   ;;  %v2306_v0 = vld [vmem:[%s2999_s1 + $0x178] sm:$0xff]  }
  0x16   :  { %2052 = vmatprep.subr.bf16.mxu1 %v2261_v21  ;;  %v2301_v59 = vld [vmem:[%s2999_s1 + $0x1a8] sm:$0xff]   ;;  %v2305_v63 = vld [vmem:[%s2999_s1 + $0x1b0] sm:$0xff]   ;;  %v2307_v1 = vld [vmem:[%s2999_s1 + $0x1f8] sm:$0xff]  }
  0x17   :  { %v2308_v2 = vld [vmem:[%s2999_s1 + $0x138] sm:$0xff]   ;;  %v2310_v4 = vld [vmem:[%s3000_s0 + $0x10] ss:$80 sps:$4 sm:$0xff]   ;;  %v2312_v5 = vld [vmem:[%s3000_s0 + $0x14] ss:$80 sps:$4 sm:$0xff]  }
  0x18   :  { %2031 = vmatpush3.bf16.msra.mxu0 %v2262_v22  ;;  %v2309_v3 = vld [vmem:[%s2999_s1 + $0x1b8] sm:$0xff]   ;;  %v2316_v8 = vld [vmem:[%s2999_s1 + $0x240] sm:$0xff]   ;;  %v2320_v12 = vld [vmem:[%s2999_s1 + $0x248] sm:$0xff]  }
  0x19   :  { %2053 = vmatpush3.bf16.msra.mxu1 %v2263_v23  ;;  %2032 = vmatprep.subr.bf16.mxu0 %v2264_v24  ;;  %v2313_v6 = vld [vmem:[%s3000_s0 + $0x18] ss:$80 sps:$4 sm:$0xff]   ;;  %v2315_v7 = vld [vmem:[%s3000_s0 + $0x1c] ss:$80 sps:$4 sm:$0xff]   ;;  %v2317_v9 = vld [vmem:[%s2999_s1 + $0x2c0] sm:$0xff]  }
  0x1a   :  { %2054 = vmatprep.subr.bf16.mxu1 %v2265_v25  ;;  %v2318_v10 = vld [vmem:[%s2999_s1 + $0x200] sm:$0xff]   ;;  %v2321_v13 = vld [vmem:[%s2999_s1 + $0x2c8] sm:$0xff]   ;;  %v2324_v16 = vld [vmem:[%s2999_s1 + $0x250] sm:$0xff]  }
  0x1b   :  { %v2319_v11 = vld [vmem:[%s2999_s1 + $0x280] sm:$0xff]   ;;  %v2322_v14 = vld [vmem:[%s2999_s1 + $0x208] sm:$0xff]   ;;  %v2325_v17 = vld [vmem:[%s2999_s1 + $0x2d0] sm:$0xff]  }
  0x1c   :  { %2033 = vmatpush3.bf16.msra.mxu0 %v2266_v26  ;;  %v2323_v15 = vld [vmem:[%s2999_s1 + $0x288] sm:$0xff]   ;;  %v2326_v18 = vld [vmem:[%s2999_s1 + $0x210] sm:$0xff]   ;;  %v2328_v20 = vld [vmem:[%s2999_s1 + $0x258] sm:$0xff]  }
  0x1d   :  { %2055 = vmatpush3.bf16.msra.mxu1 %v2267_v27  ;;  %2034 = vmatprep.subr.bf16.mxu0 %v2268_v28  ;;  %v2327_v19 = vld [vmem:[%s2999_s1 + $0x290] sm:$0xff]   ;;  %v2329_v21 = vld [vmem:[%s2999_s1 + $0x2d8] sm:$0xff]   ;;  %v2332_v24 = vld [vmem:[%s2999_s1 + $0x260] sm:$0xff]  }
  0x1e   :  { %2056 = vmatprep.subr.bf16.mxu1 %v2269_v29  ;;  %v2330_v22 = vld [vmem:[%s2999_s1 + $0x218] sm:$0xff]   ;;  %v2333_v25 = vld [vmem:[%s2999_s1 + $0x2e0] sm:$0xff]   ;;  %v2336_v28 = vld [vmem:[%s2999_s1 + $0x268] sm:$0xff]  }
  0x1f   :  { %v2331_v23 = vld [vmem:[%s2999_s1 + $0x298] sm:$0xff]   ;;  %v2334_v26 = vld [vmem:[%s2999_s1 + $0x220] sm:$0xff]   ;;  %v2337_v29 = vld [vmem:[%s2999_s1 + $0x2e8] sm:$0xff]  }
  0x20   :  { %2035 = vmatpush3.bf16.msra.mxu0 %v2270_v30  ;;  %v2335_v27 = vld [vmem:[%s2999_s1 + $0x2a0] sm:$0xff]   ;;  %v2338_v30 = vld [vmem:[%s2999_s1 + $0x228] sm:$0xff]   ;;  %v2341_v33 = vld [vmem:[%s2999_s1 + $0x2f0] sm:$0xff]  }
  0x21   :  { %2057 = vmatpush3.bf16.msra.mxu1 %v2271_v31  ;;  %2064 = vmatprep.subr.bf16.mxu0 %v2278_v36  ;;  %v2339_v31 = vld [vmem:[%s2999_s1 + $0x2a8] sm:$0xff]   ;;  %v2343_v35 = vld [vmem:[%s2999_s1 + $0x2b0] sm:$0xff]   ;;  %v2344_v36 = vld [vmem:[%s2999_s1 + $0x278] sm:$0xff]  }
  0x22   :  { %2086 = vmatprep.subr.bf16.mxu1 %v2279_v37  ;;  %v2345_v37 = vld [vmem:[%s2999_s1 + $0x2f8] sm:$0xff]  }
  0x23   :  { %1455 = vmatmul.mubr.bf16.vlgmr.msra.gmra.mrb[0].mxu0 %v2272_v32  ;;  %v2340_v32 = vld [vmem:[%s2999_s1 + $0x270] sm:$0xff]  }
  0x24   :  { %1496 = vmatmul.mubr.bf16.vlgmr.msra.gmra.mrb[0].mxu1 %v2275_v34  ;;  %2065 = vmatpush3.bf16.msra.mxu0 %v2280_v38  ;;  %v2342_v34 = vld [vmem:[%s2999_s1 + $0x230] sm:$0xff]   ;;  %v2346_v38 = vld [vmem:[%s2999_s1 + $0x238] sm:$0xff]  }
  0x25   :  { %2087 = vmatpush3.bf16.msra.mxu1 %v2281_v39  ;;  %2066 = vmatprep.subr.bf16.mxu0 %v2282_v40  ;;  %v2347_v39 = vld [vmem:[%s2999_s1 + $0x2b8] sm:$0xff]   ;;  %v2348_v40 = vld [vmem:[%s3000_s0 + $0x20] ss:$80 sps:$4 sm:$0xff]  }
  0x26   :  { %2088 = vmatprep.subr.bf16.mxu1 %v2283_v41  ;;  %1536 = vmatprep.mubr.bf16.mxu0 %v2312_v5  ;;  %v2350_v41 = vld [vmem:[%s3000_s0 + $0x24] ss:$80 sps:$4 sm:$0xff]  }
  0x27   :  { %1577 = vmatprep.mubr.bf16.mxu1 %v2315_v7  ;;  %v2379_v5 = vld [vmem:[%s2999_s1 + $0x3f0] sm:$0xff]  }
  0x28   :  { %2067 = vmatpush3.bf16.msra.mxu0 %v2284_v42  ;;  %v2351_v42 = vld [vmem:[%s3000_s0 + $0x28] ss:$80 sps:$4 sm:$0xff]   ;;  %v2381_v7 = vld [vmem:[%s2999_s1 + $0x3b0] sm:$0xff]  }
  0x29   :  { %2089 = vmatpush3.bf16.msra.mxu1 %v2285_v43  ;;  %2068 = vmatprep.subr.bf16.mxu0 %v2286_v44  ;;  %v2353_v43 = vld [vmem:[%s3000_s0 + $0x2c] ss:$80 sps:$4 sm:$0xff]   ;;  %v2354_v44 = vld [vmem:[%s2999_s1 + $0x340] sm:$0xff]  }
  0x2a   :  { %2090 = vmatprep.subr.bf16.mxu1 %v2287_v45  ;;  %v2355_v45 = vld [vmem:[%s2999_s1 + $0x3c0] sm:$0xff]  }
  0x2c   :  { %2069 = vmatpush3.bf16.msra.mxu0 %v2288_v46  ;;  %v2356_v46 = vld [vmem:[%s2999_s1 + $0x300] sm:$0xff]  }
  0x2d   :  { %2091 = vmatpush3.bf16.msra.mxu1 %v2289_v47  ;;  %2070 = vmatprep.subr.bf16.mxu0 %v2290_v48  ;;  %v2357_v47 = vld [vmem:[%s2999_s1 + $0x380] sm:$0xff]   ;;  %v2358_v48 = vld [vmem:[%s2999_s1 + $0x348] sm:$0xff]  }
  0x2e   :  { %2092 = vmatprep.subr.bf16.mxu1 %v2291_v49  ;;  %v2359_v49 = vld [vmem:[%s2999_s1 + $0x3c8] sm:$0xff]  }
  0x30   :  { %2071 = vmatpush3.bf16.msra.mxu0 %v2292_v50  ;;  %v2360_v50 = vld [vmem:[%s2999_s1 + $0x308] sm:$0xff]  }
  0x31   :  { %2093 = vmatpush3.bf16.msra.mxu1 %v2293_v51  ;;  %2072 = vmatprep.subr.bf16.mxu0 %v2294_v52  ;;  %v2361_v51 = vld [vmem:[%s2999_s1 + $0x388] sm:$0xff]   ;;  %v2362_v52 = vld [vmem:[%s2999_s1 + $0x350] sm:$0xff]  }
  0x32   :  { %2094 = vmatprep.subr.bf16.mxu1 %v2295_v53  ;;  %v2363_v53 = vld [vmem:[%s2999_s1 + $0x3d0] sm:$0xff]  }
  0x34   :  { %2073 = vmatpush3.bf16.msra.mxu0 %v2296_v54  ;;  %v2364_v54 = vld [vmem:[%s2999_s1 + $0x310] sm:$0xff]  }
  0x35   :  { %2095 = vmatpush3.bf16.msra.mxu1 %v2297_v55  ;;  %2074 = vmatprep.subr.bf16.mxu0 %v2298_v56  ;;  %v2365_v55 = vld [vmem:[%s2999_s1 + $0x390] sm:$0xff]   ;;  %v2366_v56 = vld [vmem:[%s2999_s1 + $0x358] sm:$0xff]  }
  0x36   :  { %2096 = vmatprep.subr.bf16.mxu1 %v2299_v57  ;;  %v2367_v57 = vld [vmem:[%s2999_s1 + $0x3d8] sm:$0xff]  }
  0x38   :  { %2075 = vmatpush3.bf16.msra.mxu0 %v2300_v58  ;;  %v2368_v58 = vld [vmem:[%s2999_s1 + $0x318] sm:$0xff]  }
  0x39   :  { %2097 = vmatpush3.bf16.msra.mxu1 %v2301_v59  ;;  %2076 = vmatprep.subr.bf16.mxu0 %v2302_v60  ;;  %v2369_v59 = vld [vmem:[%s2999_s1 + $0x398] sm:$0xff]   ;;  %v2370_v60 = vld [vmem:[%s2999_s1 + $0x360] sm:$0xff]  }
  0x3a   :  { %2098 = vmatprep.subr.bf16.mxu1 %v2303_v61  ;;  %v2371_v61 = vld [vmem:[%s2999_s1 + $0x3e0] sm:$0xff]  }
  0x3c   :  { %2077 = vmatpush3.bf16.msra.mxu0 %v2304_v62  ;;  %v2372_v62 = vld [vmem:[%s2999_s1 + $0x320] sm:$0xff]  }
  0x3d   :  { %2099 = vmatpush3.bf16.msra.mxu1 %v2305_v63  ;;  %2078 = vmatprep.subr.bf16.mxu0 %v2306_v0  ;;  %v2373_v63 = vld [vmem:[%s2999_s1 + $0x3a0] sm:$0xff]   ;;  %v2374_v0 = vld [vmem:[%s2999_s1 + $0x368] sm:$0xff]  }
  0x3e   :  { %2100 = vmatprep.subr.bf16.mxu1 %v2307_v1  ;;  %v2375_v1 = vld [vmem:[%s2999_s1 + $0x3e8] sm:$0xff]  }
  0x40   :  { %2079 = vmatpush3.bf16.msra.mxu0 %v2308_v2  ;;  %v2376_v2 = vld [vmem:[%s2999_s1 + $0x328] sm:$0xff]  }
  0x41   :  { %2101 = vmatpush3.bf16.msra.mxu1 %v2309_v3  ;;  %2108 = vmatprep.subr.bf16.mxu0 %v2316_v8  ;;  %v2377_v3 = vld [vmem:[%s2999_s1 + $0x3a8] sm:$0xff]   ;;  %v2382_v8 = vld [vmem:[%s2999_s1 + $0x378] sm:$0xff]  }
  0x42   :  { %2130 = vmatprep.subr.bf16.mxu1 %v2317_v9  ;;  %v2383_v9 = vld [vmem:[%s2999_s1 + $0x3f8] sm:$0xff]  }
  0x43   :  { %1537 = vmatmul.mubr.bf16.vlgmr.msra.gmra.mrb[4].mxu0 %v2310_v4  ;;  %v2378_v4 = vld [vmem:[%s2999_s1 + $0x370] sm:$0xff]  }
  0x44   :  { %1578 = vmatmul.mubr.bf16.vlgmr.msra.gmra.mrb[4].mxu1 %v2313_v6  ;;  %2109 = vmatpush3.bf16.msra.mxu0 %v2318_v10  ;;  %v2380_v6 = vld [vmem:[%s2999_s1 + $0x330] sm:$0xff]   ;;  %v2384_v10 = vld [vmem:[%s2999_s1 + $0x338] sm:$0xff]  }
  0x45   :  { %2131 = vmatpush3.bf16.msra.mxu1 %v2319_v11  ;;  %2110 = vmatprep.subr.bf16.mxu0 %v2320_v12  ;;  %v2385_v11 = vld [vmem:[%s2999_s1 + $0x3b8] sm:$0xff]   ;;  %v2386_v12 = vld [vmem:[%s3000_s0 + $0x30] ss:$80 sps:$4 sm:$0xff]  }
  0x46   :  { %2132 = vmatprep.subr.bf16.mxu1 %v2321_v13  ;;  %1618 = vmatprep.mubr.bf16.mxu0 %v2350_v41  ;;  %v2388_v13 = vld [vmem:[%s3000_s0 + $0x34] ss:$80 sps:$4 sm:$0xff]  }
  0x47   :  { %1659 = vmatprep.mubr.bf16.mxu1 %v2353_v43  ;;  %v2417_v41 = vld [vmem:[%s2999_s1 + $0x4f0] sm:$0xff]  }
  0x48   :  { %2111 = vmatpush3.bf16.msra.mxu0 %v2322_v14  ;;  %v2389_v14 = vld [vmem:[%s3000_s0 + $0x38] ss:$80 sps:$4 sm:$0xff]   ;;  %v2419_v43 = vld [vmem:[%s2999_s1 + $0x4b0] sm:$0xff]  }
  0x49   :  { %2133 = vmatpush3.bf16.msra.mxu1 %v2323_v15  ;;  %2112 = vmatprep.subr.bf16.mxu0 %v2324_v16  ;;  %v2391_v15 = vld [vmem:[%s3000_s0 + $0x3c] ss:$80 sps:$4 sm:$0xff]   ;;  %v2392_v16 = vld [vmem:[%s2999_s1 + $0x440] sm:$0xff]  }
  0x4a   :  { %2134 = vmatprep.subr.bf16.mxu1 %v2325_v17  ;;  %v2393_v17 = vld [vmem:[%s2999_s1 + $0x4c0] sm:$0xff]  }
  0x4c   :  { %2113 = vmatpush3.bf16.msra.mxu0 %v2326_v18  ;;  %v2394_v18 = vld [vmem:[%s2999_s1 + $0x400] sm:$0xff]  }
  0x4d   :  { %2135 = vmatpush3.bf16.msra.mxu1 %v2327_v19  ;;  %2114 = vmatprep.subr.bf16.mxu0 %v2328_v20  ;;  %v2395_v19 = vld [vmem:[%s2999_s1 + $0x480] sm:$0xff]   ;;  %v2396_v20 = vld [vmem:[%s2999_s1 + $0x448] sm:$0xff]  }
  0x4e   :  { %2136 = vmatprep.subr.bf16.mxu1 %v2329_v21  ;;  %v2397_v21 = vld [vmem:[%s2999_s1 + $0x4c8] sm:$0xff]  }
  0x50   :  { %2115 = vmatpush3.bf16.msra.mxu0 %v2330_v22  ;;  %v2398_v22 = vld [vmem:[%s2999_s1 + $0x408] sm:$0xff]  }
  0x51   :  { %2137 = vmatpush3.bf16.msra.mxu1 %v2331_v23  ;;  %2116 = vmatprep.subr.bf16.mxu0 %v2332_v24  ;;  %v2399_v23 = vld [vmem:[%s2999_s1 + $0x488] sm:$0xff]   ;;  %v2400_v24 = vld [vmem:[%s2999_s1 + $0x450] sm:$0xff]  }
  0x52   :  { %2138 = vmatprep.subr.bf16.mxu1 %v2333_v25  ;;  %v2401_v25 = vld [vmem:[%s2999_s1 + $0x4d0] sm:$0xff]  }
  0x54   :  { %2117 = vmatpush3.bf16.msra.mxu0 %v2334_v26  ;;  %v2402_v26 = vld [vmem:[%s2999_s1 + $0x410] sm:$0xff]  }
  0x55   :  { %2139 = vmatpush3.bf16.msra.mxu1 %v2335_v27  ;;  %2118 = vmatprep.subr.bf16.mxu0 %v2336_v28  ;;  %v2403_v27 = vld [vmem:[%s2999_s1 + $0x490] sm:$0xff]   ;;  %v2404_v28 = vld [vmem:[%s2999_s1 + $0x458] sm:$0xff]  }
  0x56   :  { %2140 = vmatprep.subr.bf16.mxu1 %v2337_v29  ;;  %v2405_v29 = vld [vmem:[%s2999_s1 + $0x4d8] sm:$0xff]  }
  0x58   :  { %2119 = vmatpush3.bf16.msra.mxu0 %v2338_v30  ;;  %v2406_v30 = vld [vmem:[%s2999_s1 + $0x418] sm:$0xff]  }
  0x59   :  { %2141 = vmatpush3.bf16.msra.mxu1 %v2339_v31  ;;  %2120 = vmatprep.subr.bf16.mxu0 %v2340_v32  ;;  %v2407_v31 = vld [vmem:[%s2999_s1 + $0x498] sm:$0xff]   ;;  %v2408_v32 = vld [vmem:[%s2999_s1 + $0x460] sm:$0xff]  }
  0x5a   :  { %2142 = vmatprep.subr.bf16.mxu1 %v2341_v33  ;;  %v2409_v33 = vld [vmem:[%s2999_s1 + $0x4e0] sm:$0xff]  }
  0x5c   :  { %2121 = vmatpush3.bf16.msra.mxu0 %v2342_v34  ;;  %v2410_v34 = vld [vmem:[%s2999_s1 + $0x420] sm:$0xff]  }
  0x5d   :  { %2143 = vmatpush3.bf16.msra.mxu1 %v2343_v35  ;;  %2122 = vmatprep.subr.bf16.mxu0 %v2344_v36  ;;  %v2411_v35 = vld [vmem:[%s2999_s1 + $0x4a0] sm:$0xff]   ;;  %v2412_v36 = vld [vmem:[%s2999_s1 + $0x468] sm:$0xff]  }
  0x5e   :  { %2144 = vmatprep.subr.bf16.mxu1 %v2345_v37  ;;  %v2413_v37 = vld [vmem:[%s2999_s1 + $0x4e8] sm:$0xff]  }
  0x60   :  { %2123 = vmatpush3.bf16.msra.mxu0 %v2346_v38  ;;  %v2414_v38 = vld [vmem:[%s2999_s1 + $0x428] sm:$0xff]  }
  0x61   :  { %2145 = vmatpush3.bf16.msra.mxu1 %v2347_v39  ;;  %2152 = vmatprep.subr.bf16.mxu0 %v2354_v44  ;;  %v2415_v39 = vld [vmem:[%s2999_s1 + $0x4a8] sm:$0xff]   ;;  %v2420_v44 = vld [vmem:[%s2999_s1 + $0x478] sm:$0xff]  }
  0x62   :  { %2174 = vmatprep.subr.bf16.mxu1 %v2355_v45  ;;  %v2421_v45 = vld [vmem:[%s2999_s1 + $0x4f8] sm:$0xff]  }
  0x63   :  { %1619 = vmatmul.mubr.bf16.vlgmr.msra.gmra.mrb[8].mxu0 %v2348_v40  ;;  %v2416_v40 = vld [vmem:[%s2999_s1 + $0x470] sm:$0xff]  }
  0x64   :  { %1660 = vmatmul.mubr.bf16.vlgmr.msra.gmra.mrb[8].mxu1 %v2351_v42  ;;  %2153 = vmatpush3.bf16.msra.mxu0 %v2356_v46  ;;  %v2418_v42 = vld [vmem:[%s2999_s1 + $0x430] sm:$0xff]   ;;  %v2422_v46 = vld [vmem:[%s2999_s1 + $0x438] sm:$0xff]  }
  0x65   :  { %2175 = vmatpush3.bf16.msra.mxu1 %v2357_v47  ;;  %2154 = vmatprep.subr.bf16.mxu0 %v2358_v48  ;;  %v2423_v47 = vld [vmem:[%s2999_s1 + $0x4b8] sm:$0xff]   ;;  %v2424_v48 = vld [vmem:[%s3000_s0 + $0x40] ss:$80 sps:$4 sm:$0xff]  }
  0x66   :  { %2176 = vmatprep.subr.bf16.mxu1 %v2359_v49  ;;  %1700 = vmatprep.mubr.bf16.mxu0 %v2388_v13  ;;  %v2426_v49 = vld [vmem:[%s3000_s0 + $0x44] ss:$80 sps:$4 sm:$0xff]  }
  0x67   :  { %1741 = vmatprep.mubr.bf16.mxu1 %v2391_v15 }
  0x68   :  { %2155 = vmatpush3.bf16.msra.mxu0 %v2360_v50  ;;  %v2427_v50 = vld [vmem:[%s3000_s0 + $0x48] ss:$80 sps:$4 sm:$0xff]  }
  0x69   :  { %2177 = vmatpush3.bf16.msra.mxu1 %v2361_v51  ;;  %2156 = vmatprep.subr.bf16.mxu0 %v2362_v52  ;;  %v2429_v51 = vld [vmem:[%s3000_s0 + $0x4c] ss:$80 sps:$4 sm:$0xff]  }
  0x6a   :  { %2178 = vmatprep.subr.bf16.mxu1 %v2363_v53 }
  0x6c   :  { %2157 = vmatpush3.bf16.msra.mxu0 %v2364_v54  ;;  %v1839_v54 = vld [vmem:[%s3001_s2] ss:$0 sm:$0xff] }
  0x6d   :  { %2179 = vmatpush3.bf16.msra.mxu1 %v2365_v55  ;;  %2158 = vmatprep.subr.bf16.mxu0 %v2366_v56 }
  0x6e   :  { %2180 = vmatprep.subr.bf16.mxu1 %v2367_v57 }
  0x70   :  { %2159 = vmatpush3.bf16.msra.mxu0 %v2368_v58 }
  0x71   :  { %2181 = vmatpush3.bf16.msra.mxu1 %v2369_v59  ;;  %2160 = vmatprep.subr.bf16.mxu0 %v2370_v60 }
  0x72   :  { %2182 = vmatprep.subr.bf16.mxu1 %v2371_v61 }
  0x74   :  { %2161 = vmatpush3.bf16.msra.mxu0 %v2372_v62 }
  0x75   :  { %2183 = vmatpush3.bf16.msra.mxu1 %v2373_v63  ;;  %2162 = vmatprep.subr.bf16.mxu0 %v2374_v0 }
  0x76   :  { %2184 = vmatprep.subr.bf16.mxu1 %v2375_v1 }
  0x78   :  { %2163 = vmatpush3.bf16.msra.mxu0 %v2376_v2 }
  0x79   :  { %2185 = vmatpush3.bf16.msra.mxu1 %v2377_v3  ;;  %2164 = vmatprep.subr.bf16.mxu0 %v2378_v4 }
  0x7a   :  { %2186 = vmatprep.subr.bf16.mxu1 %v2379_v5 }
  0x7c   :  { %2165 = vmatpush3.bf16.msra.mxu0 %v2380_v6 }
  0x7d   :  { %2187 = vmatpush3.bf16.msra.mxu1 %v2381_v7  ;;  %2166 = vmatprep.subr.bf16.mxu0 %v2382_v8 }
  0x7e   :  { %2188 = vmatprep.subr.bf16.mxu1 %v2383_v9 }
  0x80   :  { %2167 = vmatpush3.bf16.msra.mxu0 %v2384_v10 }
  0x81   :  { %2189 = vmatpush3.bf16.msra.mxu1 %v2385_v11  ;;  %2196 = vmatprep.subr.bf16.mxu0 %v2392_v16 }
  0x82   :  { %2218 = vmatprep.subr.bf16.mxu1 %v2393_v17 }
  0x83   :  { %1701 = vmatmul.mubr.bf16.vlgmr.msra.gmra.mrb[12].mxu0 %v2386_v12 }
  0x84   :  { %1742 = vmatmul.mubr.bf16.vlgmr.msra.gmra.mrb[12].mxu1 %v2389_v14  ;;  %2197 = vmatpush3.bf16.msra.mxu0 %v2394_v18 }
  0x85   :  { %2219 = vmatpush3.bf16.msra.mxu1 %v2395_v19  ;;  %2198 = vmatprep.subr.bf16.mxu0 %v2396_v20 }
  0x86   :  { %2220 = vmatprep.subr.bf16.mxu1 %v2397_v21  ;;  %1782 = vmatprep.mubr.bf16.mxu0 %v2426_v49 }
  0x87   :  { %1823 = vmatprep.mubr.bf16.mxu1 %v2429_v51 }
  0x88   :  { %2199 = vmatpush3.bf16.msra.mxu0 %v2398_v22 }
  0x89   :  { %2221 = vmatpush3.bf16.msra.mxu1 %v2399_v23  ;;  %2200 = vmatprep.subr.bf16.mxu0 %v2400_v24 }
  0x8a   :  { %2222 = vmatprep.subr.bf16.mxu1 %v2401_v25 }
  0x8c   :  { %2201 = vmatpush3.bf16.msra.mxu0 %v2402_v26 }
  0x8d   :  { %2223 = vmatpush3.bf16.msra.mxu1 %v2403_v27  ;;  %2202 = vmatprep.subr.bf16.mxu0 %v2404_v28 }
  0x8e   :  { %2224 = vmatprep.subr.bf16.mxu1 %v2405_v29 }
  0x90   :  { %2203 = vmatpush3.bf16.msra.mxu0 %v2406_v30 }
  0x91   :  { %2225 = vmatpush3.bf16.msra.mxu1 %v2407_v31  ;;  %2204 = vmatprep.subr.bf16.mxu0 %v2408_v32 }
  0x92   :  { %2226 = vmatprep.subr.bf16.mxu1 %v2409_v33 }
  0x94   :  { %2205 = vmatpush3.bf16.msra.mxu0 %v2410_v34 }
  0x95   :  { %2227 = vmatpush3.bf16.msra.mxu1 %v2411_v35  ;;  %2206 = vmatprep.subr.bf16.mxu0 %v2412_v36 }
  0x96   :  { %2228 = vmatprep.subr.bf16.mxu1 %v2413_v37 }
  0x98   :  { %2207 = vmatpush3.bf16.msra.mxu0 %v2414_v38 }
  0x99   :  { %2229 = vmatpush3.bf16.msra.mxu1 %v2415_v39  ;;  %2208 = vmatprep.subr.bf16.mxu0 %v2416_v40 }
  0x9a   :  { %2230 = vmatprep.subr.bf16.mxu1 %v2417_v41 }
  0x9c   :  { %2209 = vmatpush3.bf16.msra.mxu0 %v2418_v42 }
  0x9d   :  { %2231 = vmatpush3.bf16.msra.mxu1 %v2419_v43  ;;  %2210 = vmatprep.subr.bf16.mxu0 %v2420_v44 }
  0x9e   :  { %2232 = vmatprep.subr.bf16.mxu1 %v2421_v45 }
  0xa0   :  { %2211 = vmatpush3.bf16.msra.mxu0 %v2422_v46 }
  0xa1   :  { %2233 = vmatpush3.bf16.msra.mxu1 %v2423_v47 }
  0xa3   :  { %1783 = vmatmul.mubr.bf16.vlgmr.msra.gmra.mrb[16].mxu0 %v2424_v48 }
  0xa4   :  { %1824 = vmatmul.mubr.bf16.vlgmr.msra.gmra.mrb[16].mxu1 %v2427_v50 }
  0xf6   :  { %v2036_v52 = vpop.f32.mrb[0].mxu0 }
  0xf7   :  { %v2058_v53 = vpop.f32.mrb[0].mxu1  ;;  %v2037_v55 = vpop.f32.mrb[1].mxu0 }
  0xf8   :  { %v2038_v56 = vadd.f32 %v2037_v55, %v2036_v52  ;;  %v2059_v57 = vpop.f32.mrb[1].mxu1  ;;  %v2039_v58 = vpop.f32.mrb[2].mxu0 }
  0xf9   :  { %v2060_v59 = vadd.f32 %v2059_v57, %v2058_v53  ;;  %v2061_v60 = vpop.f32.mrb[2].mxu1  ;;  %v2040_v61 = vpop.f32.mrb[3].mxu0 }
  0xfa   :  { %v1457_v62 = vadd.f32 %v2038_v56, %v1839_v54  ;;  %v2041_v63 = vadd.f32 %v2040_v61, %v2039_v58  ;;  %v2062_v0 = vpop.f32.mrb[3].mxu1 }
  0xfb   :  { %v2063_v1 = vadd.f32 %v2062_v0, %v2061_v60 }
  0xfc   :  { %v1498_v2 = vadd.f32 %v2060_v59, %v1457_v62  ;;  %v1460_v3 = vadd.f32 %v2041_v63, %v1839_v54 }
  0xfe   :  { %v1501_v4 = vadd.f32 %v2063_v1, %v1460_v3 }
 0x116   :  { %v2080_v5 = vpop.f32.mrb[4].mxu0 }
 0x117   :  { %v2081_v6 = vpop.f32.mrb[5].mxu0  ;;  %v2102_v7 = vpop.f32.mrb[4].mxu1 }
 0x118   :  { %v2082_v8 = vadd.f32 %v2081_v6, %v2080_v5  ;;  %v2083_v9 = vpop.f32.mrb[6].mxu0  ;;  %v2103_v10 = vpop.f32.mrb[5].mxu1 }
 0x119   :  { %v2084_v11 = vpop.f32.mrb[7].mxu0  ;;  %v2104_v13 = vadd.f32 %v2103_v10, %v2102_v7  ;;  %v2105_v14 = vpop.f32.mrb[6].mxu1 }
 0x11a   :  { %v1539_v12 = vadd.f32 %v2082_v8, %v1498_v2  ;;  %v2085_v15 = vadd.f32 %v2084_v11, %v2083_v9  ;;  %v2106_v16 = vpop.f32.mrb[7].mxu1 }
 0x11b   :  { %v2107_v19 = vadd.f32 %v2106_v16, %v2105_v14 }
 0x11c   :  { %v1580_v17 = vadd.f32 %v2104_v13, %v1539_v12  ;;  %v1542_v18 = vadd.f32 %v2085_v15, %v1501_v4 }
 0x11e   :  { %v1583_v20 = vadd.f32 %v2107_v19, %v1542_v18 }
 0x136   :  { %v2124_v21 = vpop.f32.mrb[8].mxu0 }
 0x137   :  { %v2146_v22 = vpop.f32.mrb[8].mxu1  ;;  %v2125_v23 = vpop.f32.mrb[9].mxu0 }
 0x138   :  { %v2126_v24 = vadd.f32 %v2125_v23, %v2124_v21  ;;  %v2147_v25 = vpop.f32.mrb[9].mxu1  ;;  %v2127_v26 = vpop.f32.mrb[10].mxu0 }
 0x139   :  { %v2148_v27 = vadd.f32 %v2147_v25, %v2146_v22  ;;  %v2149_v28 = vpop.f32.mrb[10].mxu1  ;;  %v2128_v29 = vpop.f32.mrb[11].mxu0 }
 0x13a   :  { %v1621_v30 = vadd.f32 %v2126_v24, %v1580_v17  ;;  %v2129_v31 = vadd.f32 %v2128_v29, %v2127_v26  ;;  %v2150_v32 = vpop.f32.mrb[11].mxu1 }
 0x13b   :  { %v2151_v33 = vadd.f32 %v2150_v32, %v2149_v28 }
 0x13c   :  { %v1662_v34 = vadd.f32 %v2148_v27, %v1621_v30  ;;  %v1624_v35 = vadd.f32 %v2129_v31, %v1583_v20 }
 0x13e   :  { %v1665_v36 = vadd.f32 %v2151_v33, %v1624_v35 }
 0x156   :  { %v2168_v37 = vpop.f32.mrb[12].mxu0 }
 0x157   :  { %v2190_v38 = vpop.f32.mrb[12].mxu1  ;;  %v2169_v39 = vpop.f32.mrb[13].mxu0 }
 0x158   :  { %v2170_v40 = vadd.f32 %v2169_v39, %v2168_v37  ;;  %v2191_v41 = vpop.f32.mrb[13].mxu1  ;;  %v2171_v42 = vpop.f32.mrb[14].mxu0 }
 0x159   :  { %v2192_v43 = vadd.f32 %v2191_v41, %v2190_v38  ;;  %v2193_v44 = vpop.f32.mrb[14].mxu1  ;;  %v2172_v45 = vpop.f32.mrb[15].mxu0 }
 0x15a   :  { %v1703_v46 = vadd.f32 %v2170_v40, %v1662_v34  ;;  %v2173_v47 = vadd.f32 %v2172_v45, %v2171_v42  ;;  %v2194_v48 = vpop.f32.mrb[15].mxu1 }
 0x15b   :  { %v2195_v49 = vadd.f32 %v2194_v48, %v2193_v44 }
 0x15c   :  { %v1744_v50 = vadd.f32 %v2192_v43, %v1703_v46  ;;  %v1706_v51 = vadd.f32 %v2173_v47, %v1665_v36 }
 0x15e   :  { %v1747_v52 = vadd.f32 %v2195_v49, %v1706_v51 }
 0x176   :  { %v2212_v53 = vpop.f32.mrb[16].mxu0 }
 0x177   :  { %v2213_v54 = vpop.f32.mrb[17].mxu0  ;;  %v2234_v55 = vpop.f32.mrb[16].mxu1 }
 0x178   :  { %v2214_v56 = vadd.f32 %v2213_v54, %v2212_v53  ;;  %v2215_v57 = vpop.f32.mrb[18].mxu0  ;;  %v2235_v58 = vpop.f32.mrb[17].mxu1 }
 0x179   :  { %v2216_v59 = vpop.f32.mrb[19].mxu0  ;;  %v2236_v61 = vadd.f32 %v2235_v58, %v2234_v55  ;;  %v2237_v62 = vpop.f32.mrb[18].mxu1 }
 0x17a   :  { %v1785_v60 = vadd.f32 %v2214_v56, %v1744_v50  ;;  %v2217_v63 = vadd.f32 %v2216_v59, %v2215_v57  ;;  %v2238_v0 = vpop.f32.mrb[19].mxu1 }
 0x17b   :  { %v2239_v3 = vadd.f32 %v2238_v0, %v2237_v62 }
 0x17c   :  { %v1826_v1 = vadd.f32 %v2236_v61, %v1785_v60  ;;  %v1788_v2 = vadd.f32 %v2217_v63, %v1747_v52 }
 0x17e   :  { %1833 = vst.msk [vmem:[%s3002_s3] sm:$0xff] %vm1832_vm0, %v1826_v1  ;;  %v1829_v4 = vadd.f32 %v2239_v3, %v1788_v2 }
 0x180   :  { %1834 = vst.msk [vmem:[%s3002_s3 + $0x8] sm:$0xff] %vm1832_vm0, %v1829_v4 }

// kernel: wind_turbine_forward.16
= control target key start
LH: loop header
LB: loop body
LE: loop exit
PB: predicated region body
PF: predicated region fallthrough
CT: control target
= control target key end

     0   :  { %v418_v1 = vmov 0   ;;  %v51_v34 = vlaneseq  ;;  %s565_s1 = inlined_call_operand.vmem [shape: bf16[128,512], index: 1, kind: input, shape index: {}]   ;;  %s566_s0 = inlined_call_operand.vmem [shape: bf16[16,128], index: 0, kind: input, shape index: {}]   ;;  %s567_s2 = inlined_call_operand.vmem [shape: f32[1,512], index: 2, kind: input, shape index: {}]   ;;  %s568_s3 = inlined_call_operand.vmem [shape: f32[16,512], index: 3, kind: output, shape index: {}]  }
   0x1   :  { %v369_v0 = vld [vmem:[%s565_s1 + $0x4] ss:$16 sps:$4 sm:$0xff]   ;;  %269 = vmatprep.mubr.bf16.mxu0 %v418_v1  ;;  %312 = vmatprep.mubr.bf16.mxu1 %v418_v1  ;;  %v371_v2 = vld [vmem:[%s565_s1 + $0xc] ss:$16 sps:$4 sm:$0xff]   ;;  %v373_v3 = vld [vmem:[%s565_s1] ss:$16 sps:$4 sm:$0xff]  }
   0x2   :  { %237 = vmatprep.subr.bf16.mxu0 %v369_v0  ;;  %v374_v4 = vld [vmem:[%s565_s1 + $0x8] ss:$16 sps:$4 sm:$0xff]   ;;  %280 = vmatprep.subr.bf16.mxu1 %v371_v2  ;;  %v375_v5 = vld [vmem:[%s565_s1 + $0x24] ss:$16 sps:$4 sm:$0xff]   ;;  %v377_v6 = vld [vmem:[%s565_s1 + $0x2c] ss:$16 sps:$4 sm:$0xff]  }
   0x3   :  { %238 = vmatpush1.bf16.msra.mxu0 %v373_v3  ;;  %281 = vmatpush1.bf16.msra.mxu1 %v374_v4  ;;  %v379_v7 = vld [vmem:[%s565_s1 + $0x20] ss:$16 sps:$4 sm:$0xff]   ;;  %v380_v8 = vld [vmem:[%s565_s1 + $0x28] ss:$16 sps:$4 sm:$0xff]   ;;  %v381_v9 = vld [vmem:[%s565_s1 + $0x44] ss:$16 sps:$4 sm:$0xff]  }
   0x4   :  { %239 = vmatprep.subr.bf16.mxu0 %v375_v5  ;;  %282 = vmatprep.subr.bf16.mxu1 %v377_v6  ;;  %v383_v10 = vld [vmem:[%s565_s1 + $0x4c] ss:$16 sps:$4 sm:$0xff]   ;;  %v385_v11 = vld [vmem:[%s565_s1 + $0x40] ss:$16 sps:$4 sm:$0xff]   ;;  %v386_v12 = vld [vmem:[%s565_s1 + $0x48] ss:$16 sps:$4 sm:$0xff]  }
   0x5   :  { %v387_v13 = vld [vmem:[%s565_s1 + $0x64] ss:$16 sps:$4 sm:$0xff]   ;;  %v389_v14 = vld [vmem:[%s565_s1 + $0x6c] ss:$16 sps:$4 sm:$0xff]   ;;  %v391_v15 = vld [vmem:[%s565_s1 + $0x60] ss:$16 sps:$4 sm:$0xff]  }
   0x6   :  { %v392_v16 = vld [vmem:[%s565_s1 + $0x68] ss:$16 sps:$4 sm:$0xff]   ;;  %v393_v17 = vld [vmem:[%s565_s1 + $0x84] ss:$16 sps:$4 sm:$0xff]   ;;  %v395_v18 = vld [vmem:[%s565_s1 + $0x8c] ss:$16 sps:$4 sm:$0xff]  }
   0x7   :  { %240 = vmatpush1.bf16.msra.mxu0 %v379_v7  ;;  %283 = vmatpush1.bf16.msra.mxu1 %v380_v8  ;;  %v397_v19 = vld [vmem:[%s565_s1 + $0x80] ss:$16 sps:$4 sm:$0xff]   ;;  %v398_v20 = vld [vmem:[%s565_s1 + $0x88] ss:$16 sps:$4 sm:$0xff]   ;;  %v399_v21 = vld [vmem:[%s565_s1 + $0xa4] ss:$16 sps:$4 sm:$0xff]  }
   0x8   :  { %241 = vmatprep.subr.bf16.mxu0 %v381_v9  ;;  %284 = vmatprep.subr.bf16.mxu1 %v383_v10  ;;  %v401_v22 = vld [vmem:[%s565_s1 + $0xac] ss:$16 sps:$4 sm:$0xff]   ;;  %v403_v23 = vld [vmem:[%s565_s1 + $0xa0] ss:$16 sps:$4 sm:$0xff]   ;;  %v404_v24 = vld [vmem:[%s565_s1 + $0xa8] ss:$16 sps:$4 sm:$0xff]  }
   0x9   :  { %v405_v25 = vld [vmem:[%s565_s1 + $0xc4] ss:$16 sps:$4 sm:$0xff]   ;;  %v407_v26 = vld [vmem:[%s565_s1 + $0xcc] ss:$16 sps:$4 sm:$0xff]   ;;  %v409_v27 = vld [vmem:[%s565_s1 + $0xc0] ss:$16 sps:$4 sm:$0xff]  }
   0xa   :  { %v410_v28 = vld [vmem:[%s565_s1 + $0xc8] ss:$16 sps:$4 sm:$0xff]   ;;  %v411_v29 = vld [vmem:[%s565_s1 + $0xe4] ss:$16 sps:$4 sm:$0xff]   ;;  %v413_v30 = vld [vmem:[%s565_s1 + $0xec] ss:$16 sps:$4 sm:$0xff]  }
   0xb   :  { %242 = vmatpush1.bf16.msra.mxu0 %v385_v11  ;;  %285 = vmatpush1.bf16.msra.mxu1 %v386_v12  ;;  %v415_v31 = vld [vmem:[%s565_s1 + $0xe0] ss:$16 sps:$4 sm:$0xff]   ;;  %v416_v32 = vld [vmem:[%s565_s1 + $0xe8] ss:$16 sps:$4 sm:$0xff]   ;;  %v52_v35 = vshrl.u32 %v51_v34, 7 }
   0xc   :  { %243 = vmatprep.subr.bf16.mxu0 %v387_v13  ;;  %286 = vmatprep.subr.bf16.mxu1 %v389_v14  ;;  %v417_v33 = vld [vmem:[%s566_s0] sm:$0xff]  }
   0xd   :  { %v53_v36 = vsub.s32 0, %v52_v35  ;;  %v61_v37 = vsub.s32 2, %v52_v35  ;;  %v49_v38 = vld [vmem:[%s567_s2] sm:$0xf]  ;;  %v57_v39 = vsub.s32 1, %v52_v35  ;;  %v65_v40 = vsub.s32 3, %v52_v35 }
   0xf   :  { %244 = vmatpush1.bf16.msra.mxu0 %v391_v15  ;;  %287 = vmatpush1.bf16.msra.mxu1 %v392_v16  ;;  %v54_v41 = vrot.slane %v49_v38, %v53_v36  ;;  %v62_v42 = vrot.slane %v49_v38, %v61_v37  ;;  %v58_v43 = vrot.slane %v49_v38, %v57_v39 }
  0x10   :  { %245 = vmatprep.subr.bf16.mxu0 %v393_v17  ;;  %288 = vmatprep.subr.bf16.mxu1 %v395_v18  ;;  %v66_v44 = vrot.slane %v49_v38, %v65_v40 }
  0x13   :  { %246 = vmatpush1.bf16.msra.mxu0 %v397_v19  ;;  %289 = vmatpush1.bf16.msra.mxu1 %v398_v20 }
  0x14   :  { %247 = vmatprep.subr.bf16.mxu0 %v399_v21  ;;  %290 = vmatprep.subr.bf16.mxu1 %v401_v22 }
  0x17   :  { %248 = vmatpush1.bf16.msra.mxu0 %v403_v23  ;;  %291 = vmatpush1.bf16.msra.mxu1 %v404_v24 }
  0x18   :  { %249 = vmatprep.subr.bf16.mxu0 %v405_v25  ;;  %292 = vmatprep.subr.bf16.mxu1 %v407_v26 }
  0x1b   :  { %250 = vmatpush1.bf16.msra.mxu0 %v409_v27  ;;  %293 = vmatpush1.bf16.msra.mxu1 %v410_v28 }
  0x1c   :  { %251 = vmatprep.subr.bf16.mxu0 %v411_v29  ;;  %294 = vmatprep.subr.bf16.mxu1 %v413_v30 }
  0x1f   :  { %252 = vmatpush1.bf16.msra.mxu0 %v415_v31  ;;  %295 = vmatpush1.bf16.msra.mxu1 %v416_v32 }
  0x22   :  { %270 = vmatmul.mubr.bf16.vlgmr.msra.gmra.mrb[0].mxu0 %v417_v33  ;;  %313 = vmatmul.mubr.bf16.vlgmr.msra.gmra.mrb[0].mxu1 %v417_v33 }
  0xf5   :  { %v271_v45 = vpop.f32.mrb[0].mxu0  ;;  %v314_v46 = vpop.f32.mrb[0].mxu1 }
  0xf6   :  { %v272_v47 = vadd.f32 %v271_v45, %v54_v41  ;;  %v315_v48 = vadd.f32 %v314_v46, %v62_v42  ;;  %v273_v49 = vpop.f32.mrb[1].mxu0  ;;  %v316_v50 = vpop.f32.mrb[1].mxu1 }
  0xf7   :  { %v274_v51 = vadd.f32 %v273_v49, %v58_v43  ;;  %v317_v52 = vadd.f32 %v316_v50, %v66_v44  ;;  %v275_v53 = vpop.f32.mrb[2].mxu0  ;;  %v318_v54 = vpop.f32.mrb[2].mxu1 }
  0xf8   :  { %323 = vst [vmem:[%s568_s3] sm:$0xff] %v272_v47  ;;  %325 = vst [vmem:[%s568_s3 + $0x10] sm:$0xff] %v315_v48  ;;  %v276_v55 = vadd.f32 %v275_v53, %v54_v41  ;;  %v319_v56 = vadd.f32 %v318_v54, %v62_v42  ;;  %v277_v57 = vpop.f32.mrb[3].mxu0  ;;  %v320_v58 = vpop.f32.mrb[3].mxu1 }
  0xf9   :  { %324 = vst [vmem:[%s568_s3 + $0x8] sm:$0xff] %v274_v51  ;;  %326 = vst [vmem:[%s568_s3 + $0x18] sm:$0xff] %v317_v52  ;;  %v278_v59 = vadd.f32 %v277_v57, %v58_v43  ;;  %v321_v60 = vadd.f32 %v320_v58, %v66_v44 }
  0xfa   :  { %327 = vst [vmem:[%s568_s3 + $0x20] sm:$0xff] %v276_v55  ;;  %329 = vst [vmem:[%s568_s3 + $0x30] sm:$0xff] %v319_v56 }
  0xfb   :  { %328 = vst [vmem:[%s568_s3 + $0x28] sm:$0xff] %v278_v59  ;;  %330 = vst [vmem:[%s568_s3 + $0x38] sm:$0xff] %v321_v60 }

// kernel: wind_turbine_forward.15
= control target key start
LH: loop header
LB: loop body
LE: loop exit
PB: predicated region body
PF: predicated region fallthrough
CT: control target
= control target key end

     0   :  { %v1625_v1 = vmov 0   ;;  %v1626_v2 = vmov 0.0   ;;  %v1627_v36 = vmov 1983009808   ;;  %v305_v38 = vlaneseq  ;;  %s2235_s1 = inlined_call_operand.vmem [shape: bf16[128,512], index: 1, kind: input, shape index: {}]   ;;  %s2236_s0 = inlined_call_operand.vmem [shape: f32[8,2,512], index: 0, kind: input, shape index: {}]   ;;  %s2237_s2 = inlined_call_operand.vmem [shape: f32[8,2,128], index: 2, kind: output, shape index: {}]  }
   0x1   :  { %v1646_v0 = vld [vmem:[%s2235_s1 + $0x4] ss:$16 sps:$4 sm:$0xff]   ;;  %246 = vmatprep.mubr.bf16.mxu0 %v1625_v1  ;;  %287 = vmatprep.mubr.bf16.mxu1 %v1625_v1  ;;  %16 = vst [vmem:[#allocation2] sm:$0x3] %v1626_v2  ;;  %17 = vst [vmem:[#allocation3] sm:$0x3] %v1626_v2  ;;  %v303_v37 = vunpack.c.l.s4 %v1627_v36 }
   0x2   :  { %v1653_v3 = vld [vmem:[%s2235_s1 + $0xc] ss:$16 sps:$4 sm:$0xff]   ;;  %214 = vmatprep.subr.bf16.mxu0 %v1646_v0  ;;  %v1659_v4 = vld [vmem:[%s2235_s1] ss:$16 sps:$4 sm:$0xff]   ;;  %v1664_v5 = vld [vmem:[%s2235_s1 + $0x8] ss:$16 sps:$4 sm:$0xff]  }
   0x3   :  { %255 = vmatprep.subr.bf16.mxu1 %v1653_v3  ;;  %v1670_v6 = vld [vmem:[%s2235_s1 + $0x24] ss:$16 sps:$4 sm:$0xff]   ;;  %215 = vmatpush1.bf16.msra.mxu0 %v1659_v4  ;;  %v1677_v7 = vld [vmem:[%s2235_s1 + $0x2c] ss:$16 sps:$4 sm:$0xff]   ;;  %v1682_v8 = vld [vmem:[%s2235_s1 + $0x20] ss:$16 sps:$4 sm:$0xff]   ;;  %v304_v39 = vunpack.c.0.s8 %v303_v37 }
   0x4   :  { %256 = vmatpush1.bf16.msra.mxu1 %v1664_v5  ;;  %216 = vmatprep.subr.bf16.mxu0 %v1670_v6  ;;  %v1688_v9 = vld [vmem:[%s2235_s1 + $0x28] ss:$16 sps:$4 sm:$0xff]   ;;  %v1694_v10 = vld [vmem:[%s2235_s1 + $0x44] ss:$16 sps:$4 sm:$0xff]   ;;  %v1699_v11 = vld [vmem:[%s2235_s1 + $0x4c] ss:$16 sps:$4 sm:$0xff]  }
   0x5   :  { %257 = vmatprep.subr.bf16.mxu1 %v1677_v7  ;;  %v1704_v12 = vld [vmem:[%s2235_s1 + $0x40] ss:$16 sps:$4 sm:$0xff]   ;;  %v1709_v13 = vld [vmem:[%s2235_s1 + $0x48] ss:$16 sps:$4 sm:$0xff]   ;;  %v1716_v14 = vld [vmem:[%s2235_s1 + $0x64] ss:$16 sps:$4 sm:$0xff]  }
   0x6   :  { %v1723_v15 = vld [vmem:[%s2235_s1 + $0x6c] ss:$16 sps:$4 sm:$0xff]   ;;  %v1728_v16 = vld [vmem:[%s2235_s1 + $0x60] ss:$16 sps:$4 sm:$0xff]   ;;  %v1735_v17 = vld [vmem:[%s2235_s1 + $0x68] ss:$16 sps:$4 sm:$0xff]  }
   0x7   :  { %217 = vmatpush1.bf16.msra.mxu0 %v1682_v8  ;;  %v1740_v18 = vld [vmem:[%s2235_s1 + $0x84] ss:$16 sps:$4 sm:$0xff]   ;;  %v1747_v19 = vld [vmem:[%s2235_s1 + $0x8c] ss:$16 sps:$4 sm:$0xff]   ;;  %v1752_v20 = vld [vmem:[%s2235_s1 + $0x80] ss:$16 sps:$4 sm:$0xff]  }
   0x8   :  { %258 = vmatpush1.bf16.msra.mxu1 %v1688_v9  ;;  %218 = vmatprep.subr.bf16.mxu0 %v1694_v10  ;;  %v1757_v21 = vld [vmem:[%s2235_s1 + $0x88] ss:$16 sps:$4 sm:$0xff]   ;;  %v1764_v22 = vld [vmem:[%s2235_s1 + $0xa4] ss:$16 sps:$4 sm:$0xff]   ;;  %v1771_v23 = vld [vmem:[%s2235_s1 + $0xac] ss:$16 sps:$4 sm:$0xff]  }
   0x9   :  { %259 = vmatprep.subr.bf16.mxu1 %v1699_v11  ;;  %v1778_v24 = vld [vmem:[%s2235_s1 + $0xa0] ss:$16 sps:$4 sm:$0xff]   ;;  %v1783_v25 = vld [vmem:[%s2235_s1 + $0xa8] ss:$16 sps:$4 sm:$0xff]   ;;  %v1790_v26 = vld [vmem:[%s2235_s1 + $0xc4] ss:$16 sps:$4 sm:$0xff]  }
   0xa   :  { %v1795_v27 = vld [vmem:[%s2235_s1 + $0xcc] ss:$16 sps:$4 sm:$0xff]   ;;  %v1802_v28 = vld [vmem:[%s2235_s1 + $0xc0] ss:$16 sps:$4 sm:$0xff]   ;;  %v1807_v29 = vld [vmem:[%s2235_s1 + $0xc8] ss:$16 sps:$4 sm:$0xff]  }
   0xb   :  { %219 = vmatpush1.bf16.msra.mxu0 %v1704_v12  ;;  %v1814_v30 = vld [vmem:[%s2235_s1 + $0xe4] ss:$16 sps:$4 sm:$0xff]   ;;  %v1819_v31 = vld [vmem:[%s2235_s1 + $0xec] ss:$16 sps:$4 sm:$0xff]   ;;  %v1826_v32 = vld [vmem:[%s2235_s1 + $0xe0] ss:$16 sps:$4 sm:$0xff]  }
   0xc   :  { %260 = vmatpush1.bf16.msra.mxu1 %v1709_v13  ;;  %220 = vmatprep.subr.bf16.mxu0 %v1716_v14  ;;  %v1831_v33 = vld [vmem:[%s2235_s1 + $0xe8] ss:$16 sps:$4 sm:$0xff]   ;;  %v50_v34 = vld [vmem:[#allocation2] sm:$0x3]  ;;  %v306_v40 = vshrl.u32 %v305_v38, 7 }
   0xd   :  { %261 = vmatprep.subr.bf16.mxu1 %v1723_v15  ;;  %v53_v35 = vpack.c.bf16 %v50_v34, %v50_v34  ;;  %v52_v54 = vld [vmem:[%s2236_s0] sm:$0xff] }
   0xe   :  { %v1873_v43 = vsub.s32 %v304_v39, %v306_v40  ;;  %v51_v38 = vld [vmem:[#allocation3] sm:$0x3] }
   0xf   :  { %221 = vmatpush1.bf16.msra.mxu0 %v1728_v16 }
  0x10   :  { %262 = vmatpush1.bf16.msra.mxu1 %v1735_v17  ;;  %222 = vmatprep.subr.bf16.mxu0 %v1740_v18 }
  0x11   :  { %263 = vmatprep.subr.bf16.mxu1 %v1747_v19 }
  0x13   :  { %223 = vmatpush1.bf16.msra.mxu0 %v1752_v20 }
  0x14   :  { %264 = vmatpush1.bf16.msra.mxu1 %v1757_v21  ;;  %224 = vmatprep.subr.bf16.mxu0 %v1764_v22 }
  0x15   :  { %265 = vmatprep.subr.bf16.mxu1 %v1771_v23 }
  0x17   :  { %225 = vmatpush1.bf16.msra.mxu0 %v1778_v24 }
  0x18   :  { %266 = vmatpush1.bf16.msra.mxu1 %v1783_v25  ;;  %226 = vmatprep.subr.bf16.mxu0 %v1790_v26 }
  0x19   :  { %267 = vmatprep.subr.bf16.mxu1 %v1795_v27 }
  0x1b   :  { %227 = vmatpush1.bf16.msra.mxu0 %v1802_v28 }
  0x1c   :  { %268 = vmatpush1.bf16.msra.mxu1 %v1807_v29  ;;  %228 = vmatprep.subr.bf16.mxu0 %v1814_v30 }
  0x1d   :  { %269 = vmatprep.subr.bf16.mxu1 %v1819_v31 }
  0x1f   :  { %229 = vmatpush1.bf16.msra.mxu0 %v1826_v32 }
  0x20   :  { %270 = vmatpush1.bf16.msra.mxu1 %v1831_v33  ;;  %354 = vmatprep.subr.bf16.mxu0 %v1646_v0 }
  0x21   :  { %395 = vmatprep.subr.bf16.mxu1 %v1653_v3 }
  0x22   :  { %247 = vmatmul.mubr.bf16.vlgmr.msra.gmra.mrb[0].mxu0 %v53_v35 }
  0x23   :  { %288 = vmatmul.mubr.bf16.vlgmr.msra.gmra.mrb[0].mxu1 %v53_v35  ;;  %355 = vmatpush1.bf16.msra.mxu0 %v1659_v4 }
  0x24   :  { %396 = vmatpush1.bf16.msra.mxu1 %v1664_v5  ;;  %356 = vmatprep.subr.bf16.mxu0 %v1670_v6 }
  0x25   :  { %397 = vmatprep.subr.bf16.mxu1 %v1677_v7  ;;  %386 = vmatprep.mubr.bf16.mxu0 %v1625_v1 }
  0x26   :  { %427 = vmatprep.mubr.bf16.mxu1 %v1625_v1 }
  0x27   :  { %357 = vmatpush1.bf16.msra.mxu0 %v1682_v8 }
  0x28   :  { %398 = vmatpush1.bf16.msra.mxu1 %v1688_v9  ;;  %358 = vmatprep.subr.bf16.mxu0 %v1694_v10 }
  0x29   :  { %399 = vmatprep.subr.bf16.mxu1 %v1699_v11 }
  0x2b   :  { %359 = vmatpush1.bf16.msra.mxu0 %v1704_v12 }
  0x2c   :  { %400 = vmatpush1.bf16.msra.mxu1 %v1709_v13  ;;  %360 = vmatprep.subr.bf16.mxu0 %v1716_v14 }
  0x2d   :  { %401 = vmatprep.subr.bf16.mxu1 %v1723_v15 }
  0x2f   :  { %361 = vmatpush1.bf16.msra.mxu0 %v1728_v16 }
  0x30   :  { %402 = vmatpush1.bf16.msra.mxu1 %v1735_v17  ;;  %362 = vmatprep.subr.bf16.mxu0 %v1740_v18 }
  0x31   :  { %403 = vmatprep.subr.bf16.mxu1 %v1747_v19 }
  0x33   :  { %363 = vmatpush1.bf16.msra.mxu0 %v1752_v20 }
  0x34   :  { %404 = vmatpush1.bf16.msra.mxu1 %v1757_v21  ;;  %364 = vmatprep.subr.bf16.mxu0 %v1764_v22 }
  0x35   :  { %405 = vmatprep.subr.bf16.mxu1 %v1771_v23 }
  0x37   :  { %365 = vmatpush1.bf16.msra.mxu0 %v1778_v24 }
  0x38   :  { %406 = vmatpush1.bf16.msra.mxu1 %v1783_v25  ;;  %366 = vmatprep.subr.bf16.mxu0 %v1790_v26 }
  0x39   :  { %407 = vmatprep.subr.bf16.mxu1 %v1795_v27 }
  0x3b   :  { %367 = vmatpush1.bf16.msra.mxu0 %v1802_v28 }
  0x3c   :  { %408 = vmatpush1.bf16.msra.mxu1 %v1807_v29  ;;  %368 = vmatprep.subr.bf16.mxu0 %v1814_v30 }
  0x3d   :  { %409 = vmatprep.subr.bf16.mxu1 %v1819_v31 }
  0x3f   :  { %369 = vmatpush1.bf16.msra.mxu0 %v1826_v32 }
  0x40   :  { %410 = vmatpush1.bf16.msra.mxu1 %v1831_v33  ;;  %495 = vmatprep.subr.bf16.mxu0 %v1646_v0 }
  0x41   :  { %536 = vmatprep.subr.bf16.mxu1 %v1653_v3 }
  0xf5   :  { %v248_v41 = vpop.f32.mrb[0].mxu0 }
  0xf6   :  { %v289_v42 = vpop.f32.mrb[0].mxu1  ;;  %v250_v44 = vpop.f32.mrb[1].mxu0 }
  0xf7   :  { %v291_v45 = vpop.f32.mrb[1].mxu1  ;;  %v300_v46 = vcombine.low %v248_v41, %v250_v44  ;;  %v252_v48 = vpop.f32.mrb[2].mxu0 }
  0xf8   :  { %v301_v47 = vcombine.low %v289_v42, %v291_v45  ;;  %v293_v49 = vpop.f32.mrb[2].mxu1  ;;  %v253_v50 = vpop.f32.mrb[3].mxu0 }
  0xf9   :  { %v294_v51 = vpop.f32.mrb[3].mxu1  ;;  %v308_v52 = vrot.slane %v300_v46, %v1873_v43 }
  0xfa   :  { %v315_v53 = vrot.slane %v301_v47, %v1873_v43 }
  0xfc   :  { %v316_v55 = vcombine.low %v308_v52, %v315_v53 }
  0xfe   :  { %v318_v56 = vadd.f32 %v316_v55, %v52_v54 }
 0x100   :  { %v1376_v57 = vmul.f32 -1.442695, %v318_v56  ;;  %v326_v58 = vrot.slane %v318_v56, 2  ;;  %v337_v60 = vrot.slane %v318_v56, 6  ;;  %v334_v63 = vrot.slane %v318_v56, 4 }
 0x102   :  { %1465 = vpow2.f32 %v1376_v57  ;;  %v1377_v59 = vmul.f32 -1.442695, %v326_v58  ;;  %v1378_v61 = vmul.f32 -1.442695, %v337_v60 }
 0x104   :  { %1467 = vpow2.f32 %v1377_v59 }
 0x105   :  { %1469 = vpow2.f32 %v1378_v61 }
 0x10c   :  { %v1466_v62 = vpop.eup %1465 }
 0x10d   :  { %v322_v2 = vadd.f32 1.0, %v1466_v62  ;;  %v1379_v62 = vld [vmem:[%s2236_s0 + $0x8] sm:$0xff] }
 0x10e   :  { %v1468_v34 = vpop.eup %1467 }
 0x10f   :  { %1471 = vrcp.f32 %v322_v2  ;;  %v331_v35 = vadd.f32 1.0, %v1468_v34  ;;  %v1470_v36 = vpop.eup %1469 }
 0x110   :  { %1473 = vtanh.f32 %v334_v63  ;;  %v342_v41 = vadd.f32 1.0, %v1470_v36 }
 0x111   :  { %1475 = vrcp.f32 %v331_v35 }
 0x112   :  { %1477 = vrcp.f32 %v342_v41 }
 0x119   :  { %v1472_v37 = vpop.eup %1471 }
 0x11a   :  { %v1474_v39 = vpop.eup %1473 }
 0x11b   :  { %v1476_v40 = vpop.eup %1475  ;;  %v346_v44 = vmul.f32 %v1474_v39, %v1472_v37 }
 0x11c   :  { %v345_v42 = vmul.f32 %v1476_v40, %v51_v38  ;;  %v1478_v46 = vpop.eup %1477 }
 0x11e   :  { %v1880_v45 = vadd.f32 %v346_v44, %v345_v42 }
 0x120   :  { %1479 = vtanh.f32 %v1880_v45 }
 0x12a   :  { %v1480_v47 = vpop.eup %1479 }
 0x12b   :  { %v349_v48 = vmul.f32 %v1480_v47, %v1478_v46 }
 0x12d   :  { %350 = vst [vmem:[%s2237_s2] sm:$0x3] %v349_v48  ;;  %v353_v49 = vpack.c.bf16 %v349_v48, %v349_v48 }
 0x12f   :  { %387 = vmatmul.mubr.bf16.vlgmr.msra.gmra.mrb[4].mxu0 %v353_v49  ;;  %428 = vmatmul.mubr.bf16.vlgmr.msra.gmra.mrb[4].mxu1 %v353_v49 }
 0x130   :  { %496 = vmatpush1.bf16.msra.mxu0 %v1659_v4  ;;  %537 = vmatpush1.bf16.msra.mxu1 %v1664_v5 }
 0x131   :  { %497 = vmatprep.subr.bf16.mxu0 %v1670_v6  ;;  %538 = vmatprep.subr.bf16.mxu1 %v1677_v7 }
 0x132   :  { %527 = vmatprep.mubr.bf16.mxu0 %v1625_v1  ;;  %568 = vmatprep.mubr.bf16.mxu1 %v1625_v1 }
 0x134   :  { %498 = vmatpush1.bf16.msra.mxu0 %v1682_v8  ;;  %539 = vmatpush1.bf16.msra.mxu1 %v1688_v9 }
 0x135   :  { %499 = vmatprep.subr.bf16.mxu0 %v1694_v10  ;;  %540 = vmatprep.subr.bf16.mxu1 %v1699_v11 }
 0x138   :  { %500 = vmatpush1.bf16.msra.mxu0 %v1704_v12  ;;  %541 = vmatpush1.bf16.msra.mxu1 %v1709_v13 }
 0x139   :  { %501 = vmatprep.subr.bf16.mxu0 %v1716_v14  ;;  %542 = vmatprep.subr.bf16.mxu1 %v1723_v15 }
 0x13c   :  { %502 = vmatpush1.bf16.msra.mxu0 %v1728_v16  ;;  %543 = vmatpush1.bf16.msra.mxu1 %v1735_v17 }
 0x13d   :  { %503 = vmatprep.subr.bf16.mxu0 %v1740_v18  ;;  %544 = vmatprep.subr.bf16.mxu1 %v1747_v19 }
 0x140   :  { %504 = vmatpush1.bf16.msra.mxu0 %v1752_v20  ;;  %545 = vmatpush1.bf16.msra.mxu1 %v1757_v21 }
 0x141   :  { %505 = vmatprep.subr.bf16.mxu0 %v1764_v22  ;;  %546 = vmatprep.subr.bf16.mxu1 %v1771_v23 }
 0x144   :  { %506 = vmatpush1.bf16.msra.mxu0 %v1778_v24  ;;  %547 = vmatpush1.bf16.msra.mxu1 %v1783_v25 }
 0x145   :  { %507 = vmatprep.subr.bf16.mxu0 %v1790_v26  ;;  %548 = vmatprep.subr.bf16.mxu1 %v1795_v27 }
 0x148   :  { %508 = vmatpush1.bf16.msra.mxu0 %v1802_v28  ;;  %549 = vmatpush1.bf16.msra.mxu1 %v1807_v29 }
 0x149   :  { %509 = vmatprep.subr.bf16.mxu0 %v1814_v30  ;;  %550 = vmatprep.subr.bf16.mxu1 %v1819_v31 }
 0x14c   :  { %510 = vmatpush1.bf16.msra.mxu0 %v1826_v32  ;;  %551 = vmatpush1.bf16.msra.mxu1 %v1831_v33 }
 0x14d   :  { %636 = vmatprep.subr.bf16.mxu0 %v1646_v0  ;;  %677 = vmatprep.subr.bf16.mxu1 %v1653_v3 }
 0x202   :  { %v388_v50 = vpop.f32.mrb[4].mxu0  ;;  %v429_v51 = vpop.f32.mrb[4].mxu1 }
 0x203   :  { %v390_v52 = vpop.f32.mrb[5].mxu0  ;;  %v431_v53 = vpop.f32.mrb[5].mxu1 }
 0x204   :  { %v440_v54 = vcombine.low %v388_v50, %v390_v52  ;;  %v441_v55 = vcombine.low %v429_v51, %v431_v53  ;;  %v392_v56 = vpop.f32.mrb[6].mxu0  ;;  %v433_v57 = vpop.f32.mrb[6].mxu1 }
 0x205   :  { %v393_v58 = vpop.f32.mrb[7].mxu0  ;;  %v434_v59 = vpop.f32.mrb[7].mxu1 }
 0x206   :  { %v448_v60 = vrot.slane %v440_v54, %v1873_v43  ;;  %v455_v61 = vrot.slane %v441_v55, %v1873_v43 }
 0x208   :  { %v456_v63 = vcombine.low %v448_v60, %v455_v61 }
 0x20a   :  { %v458_v2 = vadd.f32 %v1379_v62, %v456_v63 }
 0x20c   :  { %v1380_v34 = vmul.f32 -1.442695, %v458_v2  ;;  %v466_v35 = vrot.slane %v458_v2, 2  ;;  %v477_v37 = vrot.slane %v458_v2, 6  ;;  %v474_v40 = vrot.slane %v458_v2, 4 }
 0x20e   :  { %1481 = vpow2.f32 %v1380_v34  ;;  %v1381_v36 = vmul.f32 -1.442695, %v466_v35  ;;  %v1382_v38 = vmul.f32 -1.442695, %v477_v37 }
 0x210   :  { %1483 = vpow2.f32 %v1381_v36 }
 0x211   :  { %1485 = vpow2.f32 %v1382_v38  ;;  %v1384_v38 = vld [vmem:[%s2236_s0 + $0x10] sm:$0xff] }
 0x218   :  { %v1482_v39 = vpop.eup %1481 }
 0x219   :  { %v462_v41 = vadd.f32 1.0, %v1482_v39 }
 0x21a   :  { %v1484_v42 = vpop.eup %1483 }
 0x21b   :  { %1487 = vrcp.f32 %v462_v41  ;;  %v471_v44 = vadd.f32 1.0, %v1484_v42  ;;  %v1486_v46 = vpop.eup %1485 }
 0x21c   :  { %1489 = vtanh.f32 %v474_v40  ;;  %v482_v50 = vadd.f32 1.0, %v1486_v46 }
 0x21d   :  { %1491 = vrcp.f32 %v471_v44 }
 0x21e   :  { %1493 = vrcp.f32 %v482_v50 }
 0x225   :  { %v1488_v47 = vpop.eup %1487 }
 0x226   :  { %v1490_v48 = vpop.eup %1489 }
 0x227   :  { %v1492_v49 = vpop.eup %1491  ;;  %v486_v52 = vmul.f32 %v1490_v48, %v1488_v47 }
 0x228   :  { %v485_v51 = vmul.f32 %v1492_v49, %v1880_v45  ;;  %v1494_v54 = vpop.eup %1493 }
 0x22a   :  { %v1926_v53 = vadd.f32 %v486_v52, %v485_v51 }
 0x22c   :  { %1495 = vtanh.f32 %v1926_v53 }
 0x236   :  { %v1496_v55 = vpop.eup %1495 }
 0x237   :  { %v489_v56 = vmul.f32 %v1496_v55, %v1494_v54 }
 0x239   :  { %1383 = vst [vmem:[%s2237_s2 + $0x2] sm:$0x3] %v489_v56  ;;  %v494_v57 = vpack.c.bf16 %v489_v56, %v489_v56 }
 0x23b   :  { %528 = vmatmul.mubr.bf16.vlgmr.msra.gmra.mrb[8].mxu0 %v494_v57  ;;  %569 = vmatmul.mubr.bf16.vlgmr.msra.gmra.mrb[8].mxu1 %v494_v57 }
 0x23c   :  { %637 = vmatpush1.bf16.msra.mxu0 %v1659_v4  ;;  %678 = vmatpush1.bf16.msra.mxu1 %v1664_v5 }
 0x23d   :  { %638 = vmatprep.subr.bf16.mxu0 %v1670_v6  ;;  %679 = vmatprep.subr.bf16.mxu1 %v1677_v7 }
 0x23e   :  { %668 = vmatprep.mubr.bf16.mxu0 %v1625_v1  ;;  %709 = vmatprep.mubr.bf16.mxu1 %v1625_v1 }
 0x240   :  { %639 = vmatpush1.bf16.msra.mxu0 %v1682_v8  ;;  %680 = vmatpush1.bf16.msra.mxu1 %v1688_v9 }
 0x241   :  { %640 = vmatprep.subr.bf16.mxu0 %v1694_v10  ;;  %681 = vmatprep.subr.bf16.mxu1 %v1699_v11 }
 0x244   :  { %641 = vmatpush1.bf16.msra.mxu0 %v1704_v12  ;;  %682 = vmatpush1.bf16.msra.mxu1 %v1709_v13 }
 0x245   :  { %642 = vmatprep.subr.bf16.mxu0 %v1716_v14  ;;  %683 = vmatprep.subr.bf16.mxu1 %v1723_v15 }
 0x248   :  { %643 = vmatpush1.bf16.msra.mxu0 %v1728_v16  ;;  %684 = vmatpush1.bf16.msra.mxu1 %v1735_v17 }
 0x249   :  { %644 = vmatprep.subr.bf16.mxu0 %v1740_v18  ;;  %685 = vmatprep.subr.bf16.mxu1 %v1747_v19 }
 0x24c   :  { %645 = vmatpush1.bf16.msra.mxu0 %v1752_v20  ;;  %686 = vmatpush1.bf16.msra.mxu1 %v1757_v21 }
 0x24d   :  { %646 = vmatprep.subr.bf16.mxu0 %v1764_v22  ;;  %687 = vmatprep.subr.bf16.mxu1 %v1771_v23 }
 0x250   :  { %647 = vmatpush1.bf16.msra.mxu0 %v1778_v24  ;;  %688 = vmatpush1.bf16.msra.mxu1 %v1783_v25 }
 0x251   :  { %648 = vmatprep.subr.bf16.mxu0 %v1790_v26  ;;  %689 = vmatprep.subr.bf16.mxu1 %v1795_v27 }
 0x254   :  { %649 = vmatpush1.bf16.msra.mxu0 %v1802_v28  ;;  %690 = vmatpush1.bf16.msra.mxu1 %v1807_v29 }
 0x255   :  { %650 = vmatprep.subr.bf16.mxu0 %v1814_v30  ;;  %691 = vmatprep.subr.bf16.mxu1 %v1819_v31 }
 0x258   :  { %651 = vmatpush1.bf16.msra.mxu0 %v1826_v32  ;;  %692 = vmatpush1.bf16.msra.mxu1 %v1831_v33 }
 0x259   :  { %777 = vmatprep.subr.bf16.mxu0 %v1646_v0  ;;  %818 = vmatprep.subr.bf16.mxu1 %v1653_v3 }
 0x30e   :  { %v529_v45 = vpop.f32.mrb[8].mxu0  ;;  %v570_v58 = vpop.f32.mrb[8].mxu1 }
 0x30f   :  { %v531_v59 = vpop.f32.mrb[9].mxu0  ;;  %v572_v60 = vpop.f32.mrb[9].mxu1 }
 0x310   :  { %v581_v61 = vcombine.low %v529_v45, %v531_v59  ;;  %v582_v62 = vcombine.low %v570_v58, %v572_v60  ;;  %v533_v63 = vpop.f32.mrb[10].mxu0  ;;  %v574_v2 = vpop.f32.mrb[10].mxu1 }
 0x311   :  { %v534_v34 = vpop.f32.mrb[11].mxu0  ;;  %v575_v35 = vpop.f32.mrb[11].mxu1 }
 0x312   :  { %v589_v36 = vrot.slane %v581_v61, %v1873_v43  ;;  %v596_v37 = vrot.slane %v582_v62, %v1873_v43 }
 0x314   :  { %v597_v39 = vcombine.low %v589_v36, %v596_v37 }
 0x316   :  { %v599_v40 = vadd.f32 %v1384_v38, %v597_v39 }
 0x318   :  { %v1385_v41 = vmul.f32 -1.442695, %v599_v40  ;;  %v607_v42 = vrot.slane %v599_v40, 2  ;;  %v618_v46 = vrot.slane %v599_v40, 6  ;;  %v615_v49 = vrot.slane %v599_v40, 4 }
 0x31a   :  { %1497 = vpow2.f32 %v1385_v41  ;;  %v1386_v44 = vmul.f32 -1.442695, %v607_v42  ;;  %v1387_v47 = vmul.f32 -1.442695, %v618_v46 }
 0x31c   :  { %1499 = vpow2.f32 %v1386_v44 }
 0x31d   :  { %1501 = vpow2.f32 %v1387_v47  ;;  %v1389_v47 = vld [vmem:[%s2236_s0 + $0x18] sm:$0xff] }
 0x324   :  { %v1498_v48 = vpop.eup %1497 }
 0x325   :  { %v603_v50 = vadd.f32 1.0, %v1498_v48 }
 0x326   :  { %v1500_v51 = vpop.eup %1499 }
 0x327   :  { %1503 = vrcp.f32 %v603_v50  ;;  %v612_v52 = vadd.f32 1.0, %v1500_v51  ;;  %v1502_v54 = vpop.eup %1501 }
 0x328   :  { %1505 = vtanh.f32 %v615_v49  ;;  %v623_v45 = vadd.f32 1.0, %v1502_v54 }
 0x329   :  { %1507 = vrcp.f32 %v612_v52 }
 0x32a   :  { %1509 = vrcp.f32 %v623_v45 }
 0x331   :  { %v1504_v55 = vpop.eup %1503 }
 0x332   :  { %v1506_v56 = vpop.eup %1505 }
 0x333   :  { %v1508_v57 = vpop.eup %1507  ;;  %v627_v59 = vmul.f32 %v1506_v56, %v1504_v55 }
 0x334   :  { %v626_v58 = vmul.f32 %v1508_v57, %v1926_v53  ;;  %v1510_v61 = vpop.eup %1509 }
 0x336   :  { %v1972_v60 = vadd.f32 %v627_v59, %v626_v58 }
 0x338   :  { %1511 = vtanh.f32 %v1972_v60 }
 0x342   :  { %v1512_v62 = vpop.eup %1511 }
 0x343   :  { %v630_v63 = vmul.f32 %v1512_v62, %v1510_v61 }
 0x345   :  { %1388 = vst [vmem:[%s2237_s2 + $0x4] sm:$0x3] %v630_v63  ;;  %v635_v2 = vpack.c.bf16 %v630_v63, %v630_v63 }
 0x347   :  { %669 = vmatmul.mubr.bf16.vlgmr.msra.gmra.mrb[12].mxu0 %v635_v2  ;;  %710 = vmatmul.mubr.bf16.vlgmr.msra.gmra.mrb[12].mxu1 %v635_v2 }
 0x348   :  { %778 = vmatpush1.bf16.msra.mxu0 %v1659_v4  ;;  %819 = vmatpush1.bf16.msra.mxu1 %v1664_v5 }
 0x349   :  { %779 = vmatprep.subr.bf16.mxu0 %v1670_v6  ;;  %820 = vmatprep.subr.bf16.mxu1 %v1677_v7 }
 0x34a   :  { %809 = vmatprep.mubr.bf16.mxu0 %v1625_v1  ;;  %850 = vmatprep.mubr.bf16.mxu1 %v1625_v1 }
 0x34c   :  { %780 = vmatpush1.bf16.msra.mxu0 %v1682_v8  ;;  %821 = vmatpush1.bf16.msra.mxu1 %v1688_v9 }
 0x34d   :  { %781 = vmatprep.subr.bf16.mxu0 %v1694_v10  ;;  %822 = vmatprep.subr.bf16.mxu1 %v1699_v11 }
 0x350   :  { %782 = vmatpush1.bf16.msra.mxu0 %v1704_v12  ;;  %823 = vmatpush1.bf16.msra.mxu1 %v1709_v13 }
 0x351   :  { %783 = vmatprep.subr.bf16.mxu0 %v1716_v14  ;;  %824 = vmatprep.subr.bf16.mxu1 %v1723_v15 }
 0x354   :  { %784 = vmatpush1.bf16.msra.mxu0 %v1728_v16  ;;  %825 = vmatpush1.bf16.msra.mxu1 %v1735_v17 }
 0x355   :  { %785 = vmatprep.subr.bf16.mxu0 %v1740_v18  ;;  %826 = vmatprep.subr.bf16.mxu1 %v1747_v19 }
 0x358   :  { %786 = vmatpush1.bf16.msra.mxu0 %v1752_v20  ;;  %827 = vmatpush1.bf16.msra.mxu1 %v1757_v21 }
 0x359   :  { %787 = vmatprep.subr.bf16.mxu0 %v1764_v22  ;;  %828 = vmatprep.subr.bf16.mxu1 %v1771_v23 }
 0x35c   :  { %788 = vmatpush1.bf16.msra.mxu0 %v1778_v24  ;;  %829 = vmatpush1.bf16.msra.mxu1 %v1783_v25 }
 0x35d   :  { %789 = vmatprep.subr.bf16.mxu0 %v1790_v26  ;;  %830 = vmatprep.subr.bf16.mxu1 %v1795_v27 }
 0x360   :  { %790 = vmatpush1.bf16.msra.mxu0 %v1802_v28  ;;  %831 = vmatpush1.bf16.msra.mxu1 %v1807_v29 }
 0x361   :  { %791 = vmatprep.subr.bf16.mxu0 %v1814_v30  ;;  %832 = vmatprep.subr.bf16.mxu1 %v1819_v31 }
 0x364   :  { %792 = vmatpush1.bf16.msra.mxu0 %v1826_v32  ;;  %833 = vmatpush1.bf16.msra.mxu1 %v1831_v33 }
 0x365   :  { %918 = vmatprep.subr.bf16.mxu0 %v1646_v0  ;;  %959 = vmatprep.subr.bf16.mxu1 %v1653_v3 }
 0x41a   :  { %v670_v53 = vpop.f32.mrb[12].mxu0  ;;  %v711_v34 = vpop.f32.mrb[12].mxu1 }
 0x41b   :  { %v672_v35 = vpop.f32.mrb[13].mxu0  ;;  %v713_v36 = vpop.f32.mrb[13].mxu1 }
 0x41c   :  { %v722_v37 = vcombine.low %v670_v53, %v672_v35  ;;  %v723_v38 = vcombine.low %v711_v34, %v713_v36  ;;  %v674_v39 = vpop.f32.mrb[14].mxu0  ;;  %v715_v40 = vpop.f32.mrb[14].mxu1 }
 0x41d   :  { %v675_v41 = vpop.f32.mrb[15].mxu0  ;;  %v716_v42 = vpop.f32.mrb[15].mxu1 }
 0x41e   :  { %v730_v44 = vrot.slane %v722_v37, %v1873_v43  ;;  %v737_v46 = vrot.slane %v723_v38, %v1873_v43 }
 0x420   :  { %v738_v48 = vcombine.low %v730_v44, %v737_v46 }
 0x422   :  { %v740_v49 = vadd.f32 %v1389_v47, %v738_v48 }
 0x424   :  { %v1390_v50 = vmul.f32 -1.442695, %v740_v49  ;;  %v748_v51 = vrot.slane %v740_v49, 2  ;;  %v759_v54 = vrot.slane %v740_v49, 6  ;;  %v756_v57 = vrot.slane %v740_v49, 4 }
 0x426   :  { %1513 = vpow2.f32 %v1390_v50  ;;  %v1391_v52 = vmul.f32 -1.442695, %v748_v51  ;;  %v1392_v55 = vmul.f32 -1.442695, %v759_v54 }
 0x428   :  { %1515 = vpow2.f32 %v1391_v52 }
 0x429   :  { %1517 = vpow2.f32 %v1392_v55 }
 0x430   :  { %v1514_v56 = vpop.eup %1513 }
 0x431   :  { %v744_v45 = vadd.f32 1.0, %v1514_v56 }
 0x432   :  { %v1516_v58 = vpop.eup %1515 }
 0x433   :  { %1519 = vrcp.f32 %v744_v45  ;;  %v753_v59 = vadd.f32 1.0, %v1516_v58  ;;  %v1518_v61 = vpop.eup %1517 }
 0x434   :  { %1521 = vtanh.f32 %v756_v57  ;;  %v764_v53 = vadd.f32 1.0, %v1518_v61 }
 0x435   :  { %1523 = vrcp.f32 %v753_v59 }
 0x436   :  { %1525 = vrcp.f32 %v764_v53 }
 0x43d   :  { %v1520_v62 = vpop.eup %1519 }
 0x43e   :  { %v1522_v63 = vpop.eup %1521 }
 0x43f   :  { %v1524_v2 = vpop.eup %1523  ;;  %v768_v35 = vmul.f32 %v1522_v63, %v1520_v62 }
 0x440   :  { %v767_v34 = vmul.f32 %v1524_v2, %v1972_v60  ;;  %v1526_v37 = vpop.eup %1525 }
 0x442   :  { %v2018_v36 = vadd.f32 %v768_v35, %v767_v34 }
 0x444   :  { %1527 = vtanh.f32 %v2018_v36 }
 0x44e   :  { %v1528_v38 = vpop.eup %1527 }
 0x44f   :  { %v771_v39 = vmul.f32 %v1528_v38, %v1526_v37 }
 0x451   :  { %1393 = vst [vmem:[%s2237_s2 + $0x6] sm:$0x3] %v771_v39  ;;  %v776_v40 = vpack.c.bf16 %v771_v39, %v771_v39 }
 0x453   :  { %810 = vmatmul.mubr.bf16.vlgmr.msra.gmra.mrb[16].mxu0 %v776_v40  ;;  %851 = vmatmul.mubr.bf16.vlgmr.msra.gmra.mrb[16].mxu1 %v776_v40 }
 0x454   :  { %919 = vmatpush1.bf16.msra.mxu0 %v1659_v4  ;;  %960 = vmatpush1.bf16.msra.mxu1 %v1664_v5 }
 0x455   :  { %920 = vmatprep.subr.bf16.mxu0 %v1670_v6  ;;  %961 = vmatprep.subr.bf16.mxu1 %v1677_v7 }
 0x456   :  { %950 = vmatprep.mubr.bf16.mxu0 %v1625_v1  ;;  %991 = vmatprep.mubr.bf16.mxu1 %v1625_v1 }
 0x458   :  { %921 = vmatpush1.bf16.msra.mxu0 %v1682_v8  ;;  %962 = vmatpush1.bf16.msra.mxu1 %v1688_v9 }
 0x459   :  { %922 = vmatprep.subr.bf16.mxu0 %v1694_v10  ;;  %963 = vmatprep.subr.bf16.mxu1 %v1699_v11 }
 0x45c   :  { %923 = vmatpush1.bf16.msra.mxu0 %v1704_v12  ;;  %964 = vmatpush1.bf16.msra.mxu1 %v1709_v13 }
 0x45d   :  { %924 = vmatprep.subr.bf16.mxu0 %v1716_v14  ;;  %965 = vmatprep.subr.bf16.mxu1 %v1723_v15 }
 0x460   :  { %925 = vmatpush1.bf16.msra.mxu0 %v1728_v16  ;;  %966 = vmatpush1.bf16.msra.mxu1 %v1735_v17 }
 0x461   :  { %926 = vmatprep.subr.bf16.mxu0 %v1740_v18  ;;  %967 = vmatprep.subr.bf16.mxu1 %v1747_v19 }
 0x464   :  { %927 = vmatpush1.bf16.msra.mxu0 %v1752_v20  ;;  %968 = vmatpush1.bf16.msra.mxu1 %v1757_v21 }
 0x465   :  { %928 = vmatprep.subr.bf16.mxu0 %v1764_v22  ;;  %969 = vmatprep.subr.bf16.mxu1 %v1771_v23 }
 0x468   :  { %929 = vmatpush1.bf16.msra.mxu0 %v1778_v24  ;;  %970 = vmatpush1.bf16.msra.mxu1 %v1783_v25 }
 0x469   :  { %930 = vmatprep.subr.bf16.mxu0 %v1790_v26  ;;  %971 = vmatprep.subr.bf16.mxu1 %v1795_v27 }
 0x46c   :  { %931 = vmatpush1.bf16.msra.mxu0 %v1802_v28  ;;  %972 = vmatpush1.bf16.msra.mxu1 %v1807_v29 }
 0x46d   :  { %932 = vmatprep.subr.bf16.mxu0 %v1814_v30  ;;  %973 = vmatprep.subr.bf16.mxu1 %v1819_v31 }
 0x470   :  { %933 = vmatpush1.bf16.msra.mxu0 %v1826_v32  ;;  %974 = vmatpush1.bf16.msra.mxu1 %v1831_v33 }
 0x471   :  { %1059 = vmatprep.subr.bf16.mxu0 %v1646_v0  ;;  %1100 = vmatprep.subr.bf16.mxu1 %v1653_v3  ;;  %v1394_v0 = vld [vmem:[%s2236_s0 + $0x20] sm:$0xff] }
 0x526   :  { %v811_v4 = vpop.f32.mrb[16].mxu0  ;;  %v852_v5 = vpop.f32.mrb[16].mxu1 }
 0x527   :  { %v813_v60 = vpop.f32.mrb[17].mxu0  ;;  %v854_v41 = vpop.f32.mrb[17].mxu1 }
 0x528   :  { %v863_v42 = vcombine.low %v811_v4, %v813_v60  ;;  %v864_v44 = vcombine.low %v852_v5, %v854_v41  ;;  %v815_v46 = vpop.f32.mrb[18].mxu0  ;;  %v856_v47 = vpop.f32.mrb[18].mxu1 }
 0x529   :  { %v816_v48 = vpop.f32.mrb[19].mxu0  ;;  %v857_v49 = vpop.f32.mrb[19].mxu1 }
 0x52a   :  { %v871_v50 = vrot.slane %v863_v42, %v1873_v43  ;;  %v878_v51 = vrot.slane %v864_v44, %v1873_v43  ;;  %v2079_v42 = vld [vmem:[%s2235_s1 + $0x8] ss:$16 sps:$4 sm:$0xff]  }
 0x52c   :  { %v879_v52 = vcombine.low %v871_v50, %v878_v51 }
 0x52e   :  { %v881_v3 = vadd.f32 %v1394_v0, %v879_v52 }
 0x530   :  { %v1395_v54 = vmul.f32 -1.442695, %v881_v3  ;;  %v889_v55 = vrot.slane %v881_v3, 2  ;;  %v900_v57 = vrot.slane %v881_v3, 6  ;;  %v897_v59 = vrot.slane %v881_v3, 4 }
 0x532   :  { %1529 = vpow2.f32 %v1395_v54  ;;  %v1396_v56 = vmul.f32 -1.442695, %v889_v55  ;;  %v1397_v45 = vmul.f32 -1.442695, %v900_v57  ;;  %v1597_v55 = vld [vmem:[%s2235_s1 + $0x24] ss:$16 sps:$4 sm:$0xff]  }
 0x533   :  { %v1599_v57 = vld [vmem:[%s2235_s1 + $0x20] ss:$16 sps:$4 sm:$0xff]  }
 0x534   :  { %1531 = vpow2.f32 %v1396_v56  ;;  %v1598_v56 = vld [vmem:[%s2235_s1 + $0x2c] ss:$16 sps:$4 sm:$0xff]  }
 0x535   :  { %1533 = vpow2.f32 %v1397_v45  ;;  %v1600_v45 = vld [vmem:[%s2235_s1 + $0x28] ss:$16 sps:$4 sm:$0xff]  }
 0x53c   :  { %v1530_v58 = vpop.eup %1529 }
 0x53d   :  { %v885_v61 = vadd.f32 1.0, %v1530_v58  ;;  %v1601_v58 = vld [vmem:[%s2235_s1 + $0x44] ss:$16 sps:$4 sm:$0xff]  }
 0x53e   :  { %v1532_v62 = vpop.eup %1531 }
 0x53f   :  { %1535 = vrcp.f32 %v885_v61  ;;  %v894_v63 = vadd.f32 1.0, %v1532_v62  ;;  %v1534_v2 = vpop.eup %1533  ;;  %v1604_v61 = vld [vmem:[%s2235_s1 + $0x48] ss:$16 sps:$4 sm:$0xff]   ;;  %v1605_v62 = vld [vmem:[%s2235_s1 + $0x64] ss:$16 sps:$4 sm:$0xff]  }
 0x540   :  { %1537 = vtanh.f32 %v897_v59  ;;  %v905_v37 = vadd.f32 1.0, %v1534_v2  ;;  %v1602_v59 = vld [vmem:[%s2235_s1 + $0x4c] ss:$16 sps:$4 sm:$0xff]   ;;  %v1607_v2 = vld [vmem:[%s2235_s1 + $0x60] ss:$16 sps:$4 sm:$0xff]  }
 0x541   :  { %1539 = vrcp.f32 %v894_v63  ;;  %v1606_v63 = vld [vmem:[%s2235_s1 + $0x6c] ss:$16 sps:$4 sm:$0xff]  }
 0x542   :  { %1541 = vrcp.f32 %v905_v37  ;;  %v1611_v37 = vld [vmem:[%s2235_s1 + $0x80] ss:$16 sps:$4 sm:$0xff]  }
 0x549   :  { %v1536_v53 = vpop.eup %1535 }
 0x54a   :  { %v1538_v34 = vpop.eup %1537 }
 0x54b   :  { %v1540_v35 = vpop.eup %1539  ;;  %v909_v39 = vmul.f32 %v1538_v34, %v1536_v53  ;;  %v1608_v53 = vld [vmem:[%s2235_s1 + $0x68] ss:$16 sps:$4 sm:$0xff]   ;;  %v1609_v34 = vld [vmem:[%s2235_s1 + $0x84] ss:$16 sps:$4 sm:$0xff]  }
 0x54c   :  { %v908_v38 = vmul.f32 %v1540_v35, %v2018_v36  ;;  %v1542_v4 = vpop.eup %1541  ;;  %v2073_v36 = vld [vmem:[%s2235_s1] ss:$16 sps:$4 sm:$0xff]   ;;  %v1610_v35 = vld [vmem:[%s2235_s1 + $0x8c] ss:$16 sps:$4 sm:$0xff]  }
 0x54e   :  { %v2064_v40 = vadd.f32 %v909_v39, %v908_v38  ;;  %v1612_v38 = vld [vmem:[%s2235_s1 + $0x88] ss:$16 sps:$4 sm:$0xff]   ;;  %v1613_v39 = vld [vmem:[%s2235_s1 + $0xa4] ss:$16 sps:$4 sm:$0xff]  }
 0x550   :  { %1543 = vtanh.f32 %v2064_v40 }
 0x55a   :  { %v1544_v5 = vpop.eup %1543 }
 0x55b   :  { %v912_v60 = vmul.f32 %v1544_v5, %v1542_v4  ;;  %v1615_v4 = vld [vmem:[%s2235_s1 + $0xa0] ss:$16 sps:$4 sm:$0xff]   ;;  %v1616_v5 = vld [vmem:[%s2235_s1 + $0xa8] ss:$16 sps:$4 sm:$0xff]  }
 0x55d   :  { %1398 = vst [vmem:[%s2237_s2 + $0x8] sm:$0x3] %v912_v60  ;;  %v917_v41 = vpack.c.bf16 %v912_v60, %v912_v60  ;;  %v1617_v60 = vld [vmem:[%s2235_s1 + $0xc4] ss:$16 sps:$4 sm:$0xff]  }
 0x55f   :  { %951 = vmatmul.mubr.bf16.vlgmr.msra.gmra.mrb[20].mxu0 %v917_v41  ;;  %992 = vmatmul.mubr.bf16.vlgmr.msra.gmra.mrb[20].mxu1 %v917_v41  ;;  %v1618_v41 = vld [vmem:[%s2235_s1 + $0xcc] ss:$16 sps:$4 sm:$0xff]  }
 0x560   :  { %1060 = vmatpush1.bf16.msra.mxu0 %v2073_v36  ;;  %1101 = vmatpush1.bf16.msra.mxu1 %v2079_v42 }
 0x561   :  { %1061 = vmatprep.subr.bf16.mxu0 %v1670_v6  ;;  %1102 = vmatprep.subr.bf16.mxu1 %v1677_v7  ;;  %v1595_v6 = vld [vmem:[%s2235_s1 + $0x4] ss:$16 sps:$4 sm:$0xff]   ;;  %v1596_v7 = vld [vmem:[%s2235_s1 + $0xc] ss:$16 sps:$4 sm:$0xff]  }
 0x562   :  { %1091 = vmatprep.mubr.bf16.mxu0 %v1625_v1  ;;  %1132 = vmatprep.mubr.bf16.mxu1 %v1625_v1 }
 0x564   :  { %1062 = vmatpush1.bf16.msra.mxu0 %v1682_v8  ;;  %1103 = vmatpush1.bf16.msra.mxu1 %v1688_v9 }
 0x565   :  { %1063 = vmatprep.subr.bf16.mxu0 %v1694_v10  ;;  %1104 = vmatprep.subr.bf16.mxu1 %v1699_v11 }
 0x568   :  { %1064 = vmatpush1.bf16.msra.mxu0 %v1704_v12  ;;  %1105 = vmatpush1.bf16.msra.mxu1 %v1709_v13 }
 0x569   :  { %1065 = vmatprep.subr.bf16.mxu0 %v1716_v14  ;;  %1106 = vmatprep.subr.bf16.mxu1 %v1723_v15 }
 0x56c   :  { %1066 = vmatpush1.bf16.msra.mxu0 %v1728_v16  ;;  %1107 = vmatpush1.bf16.msra.mxu1 %v1735_v17 }
 0x56d   :  { %1067 = vmatprep.subr.bf16.mxu0 %v1740_v18  ;;  %1108 = vmatprep.subr.bf16.mxu1 %v1747_v19 }
 0x570   :  { %1068 = vmatpush1.bf16.msra.mxu0 %v1752_v20  ;;  %1109 = vmatpush1.bf16.msra.mxu1 %v1757_v21  ;;  %v1399_v20 = vld [vmem:[%s2236_s0 + $0x28] sm:$0xff] }
 0x571   :  { %1069 = vmatprep.subr.bf16.mxu0 %v1764_v22  ;;  %1110 = vmatprep.subr.bf16.mxu1 %v1771_v23 }
 0x574   :  { %1070 = vmatpush1.bf16.msra.mxu0 %v1778_v24  ;;  %1111 = vmatpush1.bf16.msra.mxu1 %v1783_v25 }
 0x575   :  { %1071 = vmatprep.subr.bf16.mxu0 %v1790_v26  ;;  %1112 = vmatprep.subr.bf16.mxu1 %v1795_v27 }
 0x578   :  { %1072 = vmatpush1.bf16.msra.mxu0 %v1802_v28  ;;  %1113 = vmatpush1.bf16.msra.mxu1 %v1807_v29 }
 0x579   :  { %1073 = vmatprep.subr.bf16.mxu0 %v1814_v30  ;;  %1114 = vmatprep.subr.bf16.mxu1 %v1819_v31 }
 0x57c   :  { %1074 = vmatpush1.bf16.msra.mxu0 %v1826_v32  ;;  %1115 = vmatpush1.bf16.msra.mxu1 %v1831_v33 }
 0x57d   :  { %1200 = vmatprep.subr.bf16.mxu0 %v1595_v6  ;;  %1241 = vmatprep.subr.bf16.mxu1 %v1596_v7  ;;  %v1621_v6 = vld [vmem:[%s2235_s1 + $0xe4] ss:$16 sps:$4 sm:$0xff]   ;;  %v1622_v7 = vld [vmem:[%s2235_s1 + $0xec] ss:$16 sps:$4 sm:$0xff]  }
 0x632   :  { %v952_v8 = vpop.f32.mrb[20].mxu0  ;;  %v993_v9 = vpop.f32.mrb[20].mxu1 }
 0x633   :  { %v954_v10 = vpop.f32.mrb[21].mxu0  ;;  %v995_v11 = vpop.f32.mrb[21].mxu1 }
 0x634   :  { %v1004_v12 = vcombine.low %v952_v8, %v954_v10  ;;  %v1005_v13 = vcombine.low %v993_v9, %v995_v11  ;;  %v956_v14 = vpop.f32.mrb[22].mxu0  ;;  %v997_v15 = vpop.f32.mrb[22].mxu1  ;;  %v1623_v8 = vld [vmem:[%s2235_s1 + $0xe0] ss:$16 sps:$4 sm:$0xff]   ;;  %v1624_v9 = vld [vmem:[%s2235_s1 + $0xe8] ss:$16 sps:$4 sm:$0xff]  }
 0x635   :  { %v957_v16 = vpop.f32.mrb[23].mxu0  ;;  %v998_v17 = vpop.f32.mrb[23].mxu1 }
 0x636   :  { %v1012_v18 = vrot.slane %v1004_v12, %v1873_v43  ;;  %v1019_v19 = vrot.slane %v1005_v13, %v1873_v43 }
 0x638   :  { %v1020_v21 = vcombine.low %v1012_v18, %v1019_v19 }
 0x63a   :  { %v1022_v22 = vadd.f32 %v1399_v20, %v1020_v21 }
 0x63c   :  { %v1400_v23 = vmul.f32 -1.442695, %v1022_v22  ;;  %v1030_v24 = vrot.slane %v1022_v22, 2  ;;  %v1041_v26 = vrot.slane %v1022_v22, 6  ;;  %v1038_v29 = vrot.slane %v1022_v22, 4  ;;  %v1404_v22 = vld [vmem:[%s2236_s0 + $0x30] sm:$0xff] }
 0x63e   :  { %1545 = vpow2.f32 %v1400_v23  ;;  %v1401_v25 = vmul.f32 -1.442695, %v1030_v24  ;;  %v1402_v27 = vmul.f32 -1.442695, %v1041_v26 }
 0x640   :  { %1547 = vpow2.f32 %v1401_v25 }
 0x641   :  { %1549 = vpow2.f32 %v1402_v27 }
 0x648   :  { %v1546_v28 = vpop.eup %1545 }
 0x649   :  { %v1026_v30 = vadd.f32 1.0, %v1546_v28 }
 0x64a   :  { %v1548_v31 = vpop.eup %1547 }
 0x64b   :  { %1551 = vrcp.f32 %v1026_v30  ;;  %v1035_v32 = vadd.f32 1.0, %v1548_v31  ;;  %v1550_v33 = vpop.eup %1549 }
 0x64c   :  { %1553 = vtanh.f32 %v1038_v29  ;;  %v1046_v48 = vadd.f32 1.0, %v1550_v33 }
 0x64d   :  { %1555 = vrcp.f32 %v1035_v32 }
 0x64e   :  { %1557 = vrcp.f32 %v1046_v48 }
 0x655   :  { %v1552_v44 = vpop.eup %1551 }
 0x656   :  { %v1554_v46 = vpop.eup %1553 }
 0x657   :  { %v1556_v47 = vpop.eup %1555  ;;  %v1050_v50 = vmul.f32 %v1554_v46, %v1552_v44 }
 0x658   :  { %v1049_v49 = vmul.f32 %v1556_v47, %v2064_v40  ;;  %v1558_v0 = vpop.eup %1557  ;;  %v1614_v40 = vld [vmem:[%s2235_s1 + $0xac] ss:$16 sps:$4 sm:$0xff]  }
 0x65a   :  { %v2124_v51 = vadd.f32 %v1050_v50, %v1049_v49 }
 0x65c   :  { %1559 = vtanh.f32 %v2124_v51 }
 0x666   :  { %v1560_v52 = vpop.eup %1559 }
 0x667   :  { %v1053_v3 = vmul.f32 %v1560_v52, %v1558_v0 }
 0x669   :  { %1403 = vst [vmem:[%s2237_s2 + $0xa] sm:$0x3] %v1053_v3  ;;  %v1058_v54 = vpack.c.bf16 %v1053_v3, %v1053_v3 }
 0x66b   :  { %1092 = vmatmul.mubr.bf16.vlgmr.msra.gmra.mrb[24].mxu0 %v1058_v54  ;;  %1133 = vmatmul.mubr.bf16.vlgmr.msra.gmra.mrb[24].mxu1 %v1058_v54 }
 0x66c   :  { %1201 = vmatpush1.bf16.msra.mxu0 %v2073_v36  ;;  %1242 = vmatpush1.bf16.msra.mxu1 %v2079_v42  ;;  %v1619_v36 = vld [vmem:[%s2235_s1 + $0xc0] ss:$16 sps:$4 sm:$0xff]   ;;  %v1620_v42 = vld [vmem:[%s2235_s1 + $0xc8] ss:$16 sps:$4 sm:$0xff]  }
 0x66d   :  { %1202 = vmatprep.subr.bf16.mxu0 %v1597_v55  ;;  %1243 = vmatprep.subr.bf16.mxu1 %v1598_v56 }
 0x66e   :  { %1232 = vmatprep.mubr.bf16.mxu0 %v1625_v1  ;;  %1273 = vmatprep.mubr.bf16.mxu1 %v1625_v1  ;;  %v1603_v1 = vld [vmem:[%s2235_s1 + $0x40] ss:$16 sps:$4 sm:$0xff]  }
 0x670   :  { %1203 = vmatpush1.bf16.msra.mxu0 %v1599_v57  ;;  %1244 = vmatpush1.bf16.msra.mxu1 %v1600_v45 }
 0x671   :  { %1204 = vmatprep.subr.bf16.mxu0 %v1601_v58  ;;  %1245 = vmatprep.subr.bf16.mxu1 %v1602_v59 }
 0x674   :  { %1205 = vmatpush1.bf16.msra.mxu0 %v1603_v1  ;;  %1246 = vmatpush1.bf16.msra.mxu1 %v1604_v61 }
 0x675   :  { %1206 = vmatprep.subr.bf16.mxu0 %v1605_v62  ;;  %1247 = vmatprep.subr.bf16.mxu1 %v1606_v63 }
 0x678   :  { %1207 = vmatpush1.bf16.msra.mxu0 %v1607_v2  ;;  %1248 = vmatpush1.bf16.msra.mxu1 %v1608_v53 }
 0x679   :  { %1208 = vmatprep.subr.bf16.mxu0 %v1609_v34  ;;  %1249 = vmatprep.subr.bf16.mxu1 %v1610_v35 }
 0x67c   :  { %1209 = vmatpush1.bf16.msra.mxu0 %v1611_v37  ;;  %1250 = vmatpush1.bf16.msra.mxu1 %v1612_v38  ;;  %v1409_v37 = vld [vmem:[%s2236_s0 + $0x38] sm:$0xff] }
 0x67d   :  { %1210 = vmatprep.subr.bf16.mxu0 %v1613_v39  ;;  %1251 = vmatprep.subr.bf16.mxu1 %v1614_v40 }
 0x680   :  { %1211 = vmatpush1.bf16.msra.mxu0 %v1615_v4  ;;  %1252 = vmatpush1.bf16.msra.mxu1 %v1616_v5 }
 0x681   :  { %1212 = vmatprep.subr.bf16.mxu0 %v1617_v60  ;;  %1253 = vmatprep.subr.bf16.mxu1 %v1618_v41 }
 0x684   :  { %1213 = vmatpush1.bf16.msra.mxu0 %v1619_v36  ;;  %1254 = vmatpush1.bf16.msra.mxu1 %v1620_v42 }
 0x685   :  { %1214 = vmatprep.subr.bf16.mxu0 %v1621_v6  ;;  %1255 = vmatprep.subr.bf16.mxu1 %v1622_v7 }
 0x688   :  { %1215 = vmatpush1.bf16.msra.mxu0 %v1623_v8  ;;  %1256 = vmatpush1.bf16.msra.mxu1 %v1624_v9 }
 0x73e   :  { %v1093_v10 = vpop.f32.mrb[24].mxu0  ;;  %v1134_v11 = vpop.f32.mrb[24].mxu1 }
 0x73f   :  { %v1095_v12 = vpop.f32.mrb[25].mxu0  ;;  %v1136_v13 = vpop.f32.mrb[25].mxu1 }
 0x740   :  { %v1145_v14 = vcombine.low %v1093_v10, %v1095_v12  ;;  %v1146_v15 = vcombine.low %v1134_v11, %v1136_v13  ;;  %v1097_v16 = vpop.f32.mrb[26].mxu0  ;;  %v1138_v17 = vpop.f32.mrb[26].mxu1 }
 0x741   :  { %v1098_v18 = vpop.f32.mrb[27].mxu0  ;;  %v1139_v19 = vpop.f32.mrb[27].mxu1 }
 0x742   :  { %v1153_v20 = vrot.slane %v1145_v14, %v1873_v43  ;;  %v1160_v21 = vrot.slane %v1146_v15, %v1873_v43 }
 0x744   :  { %v1161_v23 = vcombine.low %v1153_v20, %v1160_v21 }
 0x746   :  { %v1163_v24 = vadd.f32 %v1404_v22, %v1161_v23 }
 0x748   :  { %v1405_v25 = vmul.f32 -1.442695, %v1163_v24  ;;  %v1171_v26 = vrot.slane %v1163_v24, 2  ;;  %v1182_v28 = vrot.slane %v1163_v24, 6  ;;  %v1179_v31 = vrot.slane %v1163_v24, 4 }
 0x74a   :  { %1561 = vpow2.f32 %v1405_v25  ;;  %v1406_v27 = vmul.f32 -1.442695, %v1171_v26  ;;  %v1407_v29 = vmul.f32 -1.442695, %v1182_v28 }
 0x74c   :  { %1563 = vpow2.f32 %v1406_v27 }
 0x74d   :  { %1565 = vpow2.f32 %v1407_v29 }
 0x754   :  { %v1562_v30 = vpop.eup %1561 }
 0x755   :  { %v1167_v32 = vadd.f32 1.0, %v1562_v30 }
 0x756   :  { %v1564_v33 = vpop.eup %1563 }
 0x757   :  { %1567 = vrcp.f32 %v1167_v32  ;;  %v1176_v44 = vadd.f32 1.0, %v1564_v33  ;;  %v1566_v46 = vpop.eup %1565 }
 0x758   :  { %1569 = vtanh.f32 %v1179_v31  ;;  %v1187_v50 = vadd.f32 1.0, %v1566_v46 }
 0x759   :  { %1571 = vrcp.f32 %v1176_v44 }
 0x75a   :  { %1573 = vrcp.f32 %v1187_v50 }
 0x761   :  { %v1568_v47 = vpop.eup %1567 }
 0x762   :  { %v1570_v48 = vpop.eup %1569 }
 0x763   :  { %v1572_v49 = vpop.eup %1571  ;;  %v1191_v52 = vmul.f32 %v1570_v48, %v1568_v47 }
 0x764   :  { %v1190_v0 = vmul.f32 %v1572_v49, %v2124_v51  ;;  %v1574_v54 = vpop.eup %1573 }
 0x766   :  { %v1192_v3 = vadd.f32 %v1191_v52, %v1190_v0 }
 0x768   :  { %1575 = vtanh.f32 %v1192_v3 }
 0x772   :  { %v1576_v55 = vpop.eup %1575 }
 0x773   :  { %v1194_v56 = vmul.f32 %v1576_v55, %v1574_v54 }
 0x775   :  { %1408 = vst [vmem:[%s2237_s2 + $0xc] sm:$0x3] %v1194_v56  ;;  %v1199_v57 = vpack.c.bf16 %v1194_v56, %v1194_v56 }
 0x777   :  { %1233 = vmatmul.mubr.bf16.vlgmr.msra.gmra.mrb[28].mxu0 %v1199_v57  ;;  %1274 = vmatmul.mubr.bf16.vlgmr.msra.gmra.mrb[28].mxu1 %v1199_v57 }
 0x84a   :  { %v1234_v45 = vpop.f32.mrb[28].mxu0  ;;  %v1275_v58 = vpop.f32.mrb[28].mxu1 }
 0x84b   :  { %v1236_v59 = vpop.f32.mrb[29].mxu0  ;;  %v1277_v1 = vpop.f32.mrb[29].mxu1 }
 0x84c   :  { %v1286_v61 = vcombine.low %v1234_v45, %v1236_v59  ;;  %v1287_v51 = vcombine.low %v1275_v58, %v1277_v1  ;;  %v1238_v62 = vpop.f32.mrb[30].mxu0  ;;  %v1279_v63 = vpop.f32.mrb[30].mxu1 }
 0x84d   :  { %v1239_v2 = vpop.f32.mrb[31].mxu0  ;;  %v1280_v53 = vpop.f32.mrb[31].mxu1 }
 0x84e   :  { %v1294_v34 = vrot.slane %v1286_v61, %v1873_v43  ;;  %v1301_v35 = vrot.slane %v1287_v51, %v1873_v43 }
 0x850   :  { %v1302_v38 = vcombine.low %v1294_v34, %v1301_v35 }
 0x852   :  { %v1304_v39 = vadd.f32 %v1409_v37, %v1302_v38 }
 0x854   :  { %v1410_v40 = vmul.f32 -1.442695, %v1304_v39  ;;  %v1312_v4 = vrot.slane %v1304_v39, 2  ;;  %v1323_v60 = vrot.slane %v1304_v39, 6  ;;  %v1320_v42 = vrot.slane %v1304_v39, 4 }
 0x856   :  { %1577 = vpow2.f32 %v1410_v40  ;;  %v1411_v5 = vmul.f32 -1.442695, %v1312_v4  ;;  %v1412_v41 = vmul.f32 -1.442695, %v1323_v60 }
 0x858   :  { %1579 = vpow2.f32 %v1411_v5 }
 0x859   :  { %1581 = vpow2.f32 %v1412_v41 }
 0x860   :  { %v1578_v36 = vpop.eup %1577 }
 0x861   :  { %v1308_v6 = vadd.f32 1.0, %v1578_v36 }
 0x862   :  { %v1580_v7 = vpop.eup %1579 }
 0x863   :  { %1583 = vrcp.f32 %v1308_v6  ;;  %v1317_v43 = vadd.f32 1.0, %v1580_v7  ;;  %v1582_v8 = vpop.eup %1581 }
 0x864   :  { %1585 = vtanh.f32 %v1320_v42  ;;  %v1328_v12 = vadd.f32 1.0, %v1582_v8 }
 0x865   :  { %1587 = vrcp.f32 %v1317_v43 }
 0x866   :  { %1589 = vrcp.f32 %v1328_v12 }
 0x86d   :  { %v1584_v9 = vpop.eup %1583 }
 0x86e   :  { %v1586_v10 = vpop.eup %1585 }
 0x86f   :  { %v1588_v11 = vpop.eup %1587  ;;  %v1332_v14 = vmul.f32 %v1586_v10, %v1584_v9 }
 0x870   :  { %v1331_v13 = vmul.f32 %v1588_v11, %v1192_v3  ;;  %v1590_v16 = vpop.eup %1589 }
 0x872   :  { %v1333_v15 = vadd.f32 %v1332_v14, %v1331_v13 }
 0x874   :  { %1591 = vtanh.f32 %v1333_v15  ;;  %1339 = vst [vmem:[#allocation3] sm:$0x3] %v1333_v15 }
 0x87e   :  { %v1592_v17 = vpop.eup %1591 }
 0x87f   :  { %v1335_v18 = vmul.f32 %v1592_v17, %v1590_v16 }
 0x881   :  { %1413 = vst [vmem:[%s2237_s2 + $0xe] sm:$0x3] %v1335_v18  ;;  %1338 = vst [vmem:[#allocation2] sm:$0x3] %v1335_v18 }

</bundles_post_ra>
